<compile_context>
chip_gen: v7x
topology: tpu7x:2x2x1
jax: 0.10.0
libtpu: 0.0.40
codegen_flags: <defaults>
</compile_context>

<pallas_src>
import functools
import numpy as np
import jax
import jax.numpy as jnp
from jax.experimental import pallas as pl
from jax.experimental.pallas import tpu as pltpu

N_CH = 9                       # EEG channels (conv1 kernel height)
C2 = 2 * N_CH                  # 18 feature maps
C2P = 24                       # channels padded to a sublane multiple (8)
N_FFT = 1250
F_LO, F_HI = 40, 320
W_SPEC = 2 * (F_HI - F_LO)     # 560 == sample_length
K2 = 10                        # conv2 kernel width
W_OUT = W_SPEC - (K2 - 1)      # 551
WP = 640                       # spectral width padded to a lane multiple (128)
CK = C2P * K2                  # 240 == im2col contraction size
N_CLASSES = 40
NCLS_PAD = 128                 # classes padded to a full vreg lane width
FLAT = C2 * W_OUT              # 9918 == 2*n_channels*(sample_length-9)
BN_EPS = 1e-5
NEG_BIG = -1e30


# ----------------------------- Pallas kernel -------------------------------

def ccnn_fused_kernel(y_ref, basis_ref, b1_ref, w2s_ref, b2_ref, wfc_ref,
                      bfc_ref, out_ref, h1_ref, x2_ref, h2_ref, *, tb):
    # ---- stage 1: real-DFT (rfft bins 40:320) + conv1 bias/BN + ReLU --------
    # y already carries the conv1 channel mix (commutes with the DFT).
    h1 = jnp.dot(y_ref[...], basis_ref[...],
                 preferred_element_type=jnp.float32)          # (tb*C2P, WP) f32
    h1 = jnp.maximum(h1 + b1_ref[...], 0.0)
    h1_ref[...] = h1.astype(jnp.bfloat16)

    # ---- stage 2: per-sample im2col (K=240) + conv2 + BN + ReLU -------------
    for b in range(tb):
        h1b = h1_ref[b * C2P:(b + 1) * C2P, :]                # (C2P, WP) bf16
        slot = b % 2                                          # double-buffered
        for k in range(K2):
            if k == 0:
                blk = h1b
            else:
                blk = jnp.concatenate(
                    [h1b[:, k:], jnp.zeros((C2P, k), jnp.bfloat16)], axis=1)
            x2_ref[slot, k * C2P:(k + 1) * C2P, :] = blk
        ob = jnp.dot(w2s_ref[...], x2_ref[slot],
                     preferred_element_type=jnp.float32)      # (C2P, WP) f32
        ob = jnp.maximum(ob + b2_ref[...], 0.0)
        for o in range(C2):                                   # rows keyed (o, b)
            h2_ref[o * tb + b, :] = ob[o, :]

    # ---- stage 3: FC (contract per conv2 channel) + softmax ----------------
    acc = jnp.zeros((tb, NCLS_PAD), jnp.float32)
    for o in range(C2):
        x_o = h2_ref[o * tb:(o + 1) * tb, :].astype(jnp.bfloat16)  # (tb, WP)
        acc = acc + jnp.dot(x_o, wfc_ref[o],
                            preferred_element_type=jnp.float32)
    logits = acc + bfc_ref[...]              # padded class lanes carry -1e30
    m = jnp.max(logits, axis=1, keepdims=True)
    e = jnp.exp(logits - m)
    out_ref[...] = e * pl.reciprocal(jnp.sum(e, axis=1, keepdims=True),
                                     approx=True)


# ------------------------------- JAX glue -----------------------------------

def make_params(key):
    ks = jax.random.split(key, 14)
    p = {}
    p["w1"] = 0.2 * jax.random.normal(ks[0], (C2, N_CH), jnp.float32)
    p["b1"] = 0.1 * jax.random.normal(ks[1], (C2,), jnp.float32)
    p["g1"] = 1.0 + 0.1 * jax.random.normal(ks[2], (C2,), jnp.float32)
    p["be1"] = 0.1 * jax.random.normal(ks[3], (C2,), jnp.float32)
    p["rm1"] = 0.1 * jax.random.normal(ks[4], (C2,), jnp.float32)
    p["rv1"] = 1.0 + 0.1 * jnp.abs(jax.random.normal(ks[5], (C2,), jnp.float32))
    p["w2"] = 0.1 * jax.random.normal(ks[6], (C2, C2, K2), jnp.float32)
    p["b2"] = 0.1 * jax.random.normal(ks[7], (C2,), jnp.float32)
    p["g2"] = 1.0 + 0.1 * jax.random.normal(ks[8], (C2,), jnp.float32)
    p["be2"] = 0.1 * jax.random.normal(ks[9], (C2,), jnp.float32)
    p["rm2"] = 0.1 * jax.random.normal(ks[10], (C2,), jnp.float32)
    p["rv2"] = 1.0 + 0.1 * jnp.abs(jax.random.normal(ks[11], (C2,), jnp.float32))
    # small FC scale keeps the softmax well conditioned so the bf16-vs-f64
    # comparison in the test is meaningful at tight tolerances.
    p["wfc"] = 0.002 * jax.random.normal(ks[12], (FLAT, N_CLASSES), jnp.float32)
    p["bfc"] = 0.1 * jax.random.normal(ks[13], (N_CLASSES,), jnp.float32)
    return p


def fold_bn(w, b, gamma, beta, rmean, rvar, trailing_axes):
    # eval-mode BatchNorm folded into the preceding conv (per output channel)
    s = gamma / jnp.sqrt(rvar + BN_EPS)
    w_eff = w * s.reshape(s.shape + (1,) * trailing_axes)
    b_eff = (b - rmean) * s + beta
    return w_eff, b_eff


def dft_basis(t_len):
    # real-DFT basis for rfft(n=1250)[40:320]: cols = [Re | Im] (Im = -sin)
    t = np.arange(t_len, dtype=np.float64)[:, None]
    f = np.arange(F_LO, F_HI, dtype=np.float64)[None, :]
    ang = 2.0 * np.pi * t * f / N_FFT
    return jnp.asarray(np.concatenate([np.cos(ang), -np.sin(ang)], axis=1),
                       dtype=jnp.float32)                     # (T, 560)


def _tile_size(batch):
    if batch >= 32:
        return 16
    if batch >= 8:
        return 8
    return batch


@jax.jit
def ccnn_forward(x, params, basis):
    B, T = x.shape[0], x.shape[-1]
    x0 = x[:, 0].astype(jnp.float32)           # torch: x[:, 0].unsqueeze(1)

    w1e, b1e = fold_bn(params["w1"], params["b1"], params["g1"], params["be1"],
                       params["rm1"], params["rv1"], 1)
    w2e, b2e = fold_bn(params["w2"], params["b2"], params["g2"], params["be2"],
                       params["rm2"], params["rv2"], 2)

    tb = _tile_size(B)
    bp = ((B + tb - 1) // tb) * tb
    grid = bp // tb

    # conv1 channel mix hoisted (commutes with the time-axis DFT); pad channels
    # 18 -> 24 and batch B -> bp, flatten channel-major, cast to bf16.
    y = jnp.einsum("oc,bct->bot", w1e, x0)                    # (B, C2, T) f32
    y = jnp.pad(y, ((0, bp - B), (0, C2P - C2), (0, 0)))
    y2d = y.reshape(bp * C2P, T).astype(jnp.bfloat16)

    basis_p = jnp.pad(basis, ((0, 0), (0, WP - W_SPEC))).astype(jnp.bfloat16)

    b1t = jnp.tile(jnp.pad(b1e, (0, C2P - C2)), tb)[:, None]  # (tb*C2P, 1) f32

    # conv2 weights stacked for im2col: W2stk[o, k*C2P + i] = w2e[o, i, k]
    w2p = jnp.zeros((C2P, C2P, K2), jnp.float32).at[:C2, :C2, :].set(w2e)
    w2s = jnp.transpose(w2p, (0, 2, 1)).reshape(C2P, CK).astype(jnp.bfloat16)
    b2p = jnp.pad(b2e, (0, C2P - C2))[:, None]                # (C2P, 1) f32

    # FC weights reshaped to (C2, W_OUT, 40), padded to (C2, 640, 128).
    wfc3 = params["wfc"].reshape(C2, W_OUT, N_CLASSES)
    wfcp = jnp.zeros((C2, WP, NCLS_PAD), jnp.float32)
    wfcp = wfcp.at[:, :W_OUT, :N_CLASSES].set(wfc3).astype(jnp.bfloat16)
    bfcp = jnp.full((1, NCLS_PAD), NEG_BIG, jnp.float32)
    bfcp = bfcp.at[0, :N_CLASSES].set(params["bfc"])

    kernel = functools.partial(ccnn_fused_kernel, tb=tb)
    out = pl.pallas_call(
        kernel,
        out_shape=jax.ShapeDtypeStruct((bp, NCLS_PAD), jnp.float32),
        grid=(grid,),
        in_specs=[
            pl.BlockSpec((tb * C2P, T), lambda i: (i, 0)),            # y
            pl.BlockSpec((T, WP), lambda i: (0, 0)),                  # DFT basis
            pl.BlockSpec((tb * C2P, 1), lambda i: (0, 0)),            # b1 (tiled)
            pl.BlockSpec((C2P, CK), lambda i: (0, 0)),                # conv2 W
            pl.BlockSpec((C2P, 1), lambda i: (0, 0)),                 # b2
            pl.BlockSpec((C2, WP, NCLS_PAD), lambda i: (0, 0, 0)),    # FC W
            pl.BlockSpec((1, NCLS_PAD), lambda i: (0, 0)),            # FC bias
        ],
        out_specs=pl.BlockSpec((tb, NCLS_PAD), lambda i: (i, 0)),
        scratch_shapes=[
            pltpu.VMEM((tb * C2P, WP), jnp.bfloat16),   # h1 (post-ReLU)
            pltpu.VMEM((2, CK, WP), jnp.bfloat16),      # im2col double buffer
            pltpu.VMEM((C2 * tb, WP), jnp.float32),     # h2, rows keyed (o, b)
        ],
        compiler_params=pltpu.CompilerParams(
            dimension_semantics=("parallel",),
            vmem_limit_bytes=48 * 1024 * 1024),
    )(y2d, basis_p, b1t, w2s, b2p, wfcp, bfcp)

    return out[:B, :N_CLASSES]


# ------------------------------ reference -----------------------------------

def reference_numpy(x, params):
    p = {k: np.asarray(v, dtype=np.float64) for k, v in params.items()}
    x0 = np.asarray(x, dtype=np.float64)[:, 0]
    X = np.fft.rfft(x0, n=N_FFT, axis=-1)
    spec = np.concatenate([X[..., F_LO:F_HI].real, X[..., F_LO:F_HI].imag],
                          axis=-1)
    s1 = p["g1"] / np.sqrt(p["rv1"] + BN_EPS)
    w1e = p["w1"] * s1[:, None]
    b1e = (p["b1"] - p["rm1"]) * s1 + p["be1"]
    h1 = np.maximum(np.einsum("oc,bct->bot", w1e, spec)
                    + b1e[None, :, None], 0.0)
    s2 = p["g2"] / np.sqrt(p["rv2"] + BN_EPS)
    w2e = p["w2"] * s2[:, None, None]
    b2e = (p["b2"] - p["rm2"]) * s2 + p["be2"]
    B = x0.shape[0]
    acc = np.zeros((B, C2, W_OUT))
    for k in range(K2):
        acc += np.einsum("oi,bit->bot", w2e[:, :, k], h1[:, :, k:k + W_OUT])
    h2 = np.maximum(acc + b2e[None, :, None], 0.0)
    logits = h2.reshape(B, -1) @ p["wfc"] + p["bfc"]
    e = np.exp(logits - logits.max(axis=1, keepdims=True))
    return e / e.sum(axis=1, keepdims=True)


if __name__ == "__main__":
    key = jax.random.PRNGKey(0)
    k_x, k_p = jax.random.split(key)
    B, SUBBAN, T = 2, 3, 128          # small time length; rfft zero-pads to 1250
    x = jax.random.normal(k_x, (B, SUBBAN, N_CH, T), jnp.float32)
    params = make_params(k_p)
    basis = dft_basis(T)

    out = jax.block_until_ready(ccnn_forward(x, params, basis))
    ref = reference_numpy(x, params)

    o = np.asarray(out)
    assert o.shape == (B, N_CLASSES)
    assert np.all(np.isfinite(o))
    assert np.allclose(o.sum(axis=1), 1.0, atol=1e-3)
    assert np.allclose(o, ref, atol=3e-3, rtol=3e-2), \
        float(np.max(np.abs(o - ref)))
    print("KERNEL_OK")
</pallas_src>

<mosaic_0001>
module attributes {stable_mosaic.version = 11 : i64} {
  func.func @ccnn_fused_kernel(%arg0: i32, %arg1: memref<48x128xbf16, #tpu.memory_space<vmem>>, %arg2: memref<128x640xbf16, #tpu.memory_space<vmem>>, %arg3: memref<48x1xf32, #tpu.memory_space<vmem>>, %arg4: memref<24x240xbf16, #tpu.memory_space<vmem>>, %arg5: memref<24x1xf32, #tpu.memory_space<vmem>>, %arg6: memref<18x640x128xbf16, #tpu.memory_space<vmem>>, %arg7: memref<1x128xf32, #tpu.memory_space<vmem>>, %arg8: memref<2x128xf32, #tpu.memory_space<vmem>>, %arg9: memref<48x640xbf16, #tpu.memory_space<vmem>>, %arg10: memref<2x240x640xbf16, #tpu.memory_space<vmem>>, %arg11: memref<36x640xf32, #tpu.memory_space<vmem>>) attributes {dimension_semantics = [#tpu.dimension_semantics<parallel>], iteration_bounds = array<i64: 1>, scalar_prefetch = 0 : i64, scratch_operands = 3 : i64, tpu.core_type = #tpu.core_type<tc>, window_params = [{transform_indices = @transform_0, window_bounds = array<i64: 48, 128>}, {pipeline_mode = #tpu.pipeline_mode<synchronous>, transform_indices = @transform_1, window_bounds = array<i64: 128, 640>}, {pipeline_mode = #tpu.pipeline_mode<synchronous>, transform_indices = @transform_2, window_bounds = array<i64: 48, 1>}, {pipeline_mode = #tpu.pipeline_mode<synchronous>, transform_indices = @transform_3, window_bounds = array<i64: 24, 240>}, {pipeline_mode = #tpu.pipeline_mode<synchronous>, transform_indices = @transform_4, window_bounds = array<i64: 24, 1>}, {pipeline_mode = #tpu.pipeline_mode<synchronous>, transform_indices = @transform_5, window_bounds = array<i64: 18, 640, 128>}, {pipeline_mode = #tpu.pipeline_mode<synchronous>, transform_indices = @transform_6, window_bounds = array<i64: 1, 128>}, {transform_indices = @transform_7, window_bounds = array<i64: 2, 128>}]} {
    %c0 = arith.constant 0 : index
    %c0_0 = arith.constant 0 : index
    %0 = vector.load %arg1[%c0, %c0_0] : memref<48x128xbf16, #tpu.memory_space<vmem>>, vector<48x128xbf16>
    %c0_1 = arith.constant 0 : index
    %c0_2 = arith.constant 0 : index
    %1 = vector.load %arg2[%c0_1, %c0_2] : memref<128x640xbf16, #tpu.memory_space<vmem>>, vector<128x640xbf16>
    %cst = arith.constant dense<0.000000e+00> : vector<48x640xf32>
    %2 = tpu.matmul %0, %1, %cst {dimension_numbers = #tpu.dot_dimension_numbers<[1], [0], [0], [1], [0, 0, 1, 1], [], []>} : vector<48x128xbf16>, vector<128x640xbf16>, vector<48x640xf32> -> vector<48x640xf32>
    %c0_3 = arith.constant 0 : index
    %c0_4 = arith.constant 0 : index
    %3 = vector.load %arg3[%c0_3, %c0_4] : memref<48x1xf32, #tpu.memory_space<vmem>>, vector<48x1xf32>
    %4 = vector.broadcast %3 : vector<48x1xf32> to vector<48x640xf32>
    %5 = arith.addf %2, %4 : vector<48x640xf32>
    %cst_5 = arith.constant 0.000000e+00 : f32
    %6 = vector.broadcast %cst_5 : f32 to vector<48x640xf32>
    %7 = arith.maximumf %5, %6 : vector<48x640xf32>
    %8 = arith.truncf %7 : vector<48x640xf32> to vector<48x640xbf16>
    %c0_6 = arith.constant 0 : index
    %c0_7 = arith.constant 0 : index
    %9 = vector.load %arg9[%c0_6, %c0_7] : memref<48x640xbf16, #tpu.memory_space<vmem>>, vector<48x640xbf16>
    tpu.vector_store %arg9[%c0_6, %c0_7], %8 {strides = array<i32>} : memref<48x640xbf16, #tpu.memory_space<vmem>>, vector<48x640xbf16>,
    %c0_8 = arith.constant 0 : index
    %c0_9 = arith.constant 0 : index
    %10 = vector.load %arg9[%c0_8, %c0_9] : memref<48x640xbf16, #tpu.memory_space<vmem>>, vector<24x640xbf16>
    %c0_10 = arith.constant 0 : index
    %c0_11 = arith.constant 0 : index
    %c0_12 = arith.constant 0 : index
    %11 = vector.load %arg10[%c0_10, %c0_11, %c0_12] : memref<2x240x640xbf16, #tpu.memory_space<vmem>>, vector<1x24x640xbf16>
    %12 = vector.shape_cast %11 : vector<1x24x640xbf16> to vector<24x640xbf16>
    %13 = vector.shape_cast %10 : vector<24x640xbf16> to vector<1x24x640xbf16>
    tpu.vector_store %arg10[%c0_10, %c0_11, %c0_12], %13 {strides = array<i32>} : memref<2x240x640xbf16, #tpu.memory_space<vmem>>, vector<1x24x640xbf16>,
    %14 = vector.extract_strided_slice %10 {offsets = [0, 1], sizes = [24, 639], strides = [1, 1]} : vector<24x640xbf16> to vector<24x639xbf16>
    %cst_13 = arith.constant 0.000000e+00 : bf16
    %15 = vector.broadcast %cst_13 : bf16 to vector<24x1xbf16>
    %16 = tpu.concatenate %14, %15 in 1 : vector<24x639xbf16>, vector<24x1xbf16> -> vector<24x640xbf16>
    %c0_14 = arith.constant 0 : index
    %c24 = arith.constant 24 : index
    %c0_15 = arith.constant 0 : index
    %17 = vector.load %arg10[%c0_14, %c24, %c0_15] : memref<2x240x640xbf16, #tpu.memory_space<vmem>>, vector<1x24x640xbf16>
    %18 = vector.shape_cast %17 : vector<1x24x640xbf16> to vector<24x640xbf16>
    %19 = vector.shape_cast %16 : vector<24x640xbf16> to vector<1x24x640xbf16>
    tpu.vector_store %arg10[%c0_14, %c24, %c0_15], %19 {strides = array<i32>} : memref<2x240x640xbf16, #tpu.memory_space<vmem>>, vector<1x24x640xbf16>,
    %20 = vector.extract_strided_slice %10 {offsets = [0, 2], sizes = [24, 638], strides = [1, 1]} : vector<24x640xbf16> to vector<24x638xbf16>
    %cst_16 = arith.constant 0.000000e+00 : bf16
    %21 = vector.broadcast %cst_16 : bf16 to vector<24x2xbf16>
    %22 = tpu.concatenate %20, %21 in 1 : vector<24x638xbf16>, vector<24x2xbf16> -> vector<24x640xbf16>
    %c0_17 = arith.constant 0 : index
    %c48 = arith.constant 48 : index
    %c0_18 = arith.constant 0 : index
    %23 = vector.load %arg10[%c0_17, %c48, %c0_18] : memref<2x240x640xbf16, #tpu.memory_space<vmem>>, vector<1x24x640xbf16>
    %24 = vector.shape_cast %23 : vector<1x24x640xbf16> to vector<24x640xbf16>
    %25 = vector.shape_cast %22 : vector<24x640xbf16> to vector<1x24x640xbf16>
    tpu.vector_store %arg10[%c0_17, %c48, %c0_18], %25 {strides = array<i32>} : memref<2x240x640xbf16, #tpu.memory_space<vmem>>, vector<1x24x640xbf16>,
    %26 = vector.extract_strided_slice %10 {offsets = [0, 3], sizes = [24, 637], strides = [1, 1]} : vector<24x640xbf16> to vector<24x637xbf16>
    %cst_19 = arith.constant 0.000000e+00 : bf16
    %27 = vector.broadcast %cst_19 : bf16 to vector<24x3xbf16>
    %28 = tpu.concatenate %26, %27 in 1 : vector<24x637xbf16>, vector<24x3xbf16> -> vector<24x640xbf16>
    %c0_20 = arith.constant 0 : index
    %c72 = arith.constant 72 : index
    %c0_21 = arith.constant 0 : index
    %29 = vector.load %arg10[%c0_20, %c72, %c0_21] : memref<2x240x640xbf16, #tpu.memory_space<vmem>>, vector<1x24x640xbf16>
    %30 = vector.shape_cast %29 : vector<1x24x640xbf16> to vector<24x640xbf16>
    %31 = vector.shape_cast %28 : vector<24x640xbf16> to vector<1x24x640xbf16>
    tpu.vector_store %arg10[%c0_20, %c72, %c0_21], %31 {strides = array<i32>} : memref<2x240x640xbf16, #tpu.memory_space<vmem>>, vector<1x24x640xbf16>,
    %32 = vector.extract_strided_slice %10 {offsets = [0, 4], sizes = [24, 636], strides = [1, 1]} : vector<24x640xbf16> to vector<24x636xbf16>
    %cst_22 = arith.constant 0.000000e+00 : bf16
    %33 = vector.broadcast %cst_22 : bf16 to vector<24x4xbf16>
    %34 = tpu.concatenate %32, %33 in 1 : vector<24x636xbf16>, vector<24x4xbf16> -> vector<24x640xbf16>
    %c0_23 = arith.constant 0 : index
    %c96 = arith.constant 96 : index
    %c0_24 = arith.constant 0 : index
    %35 = vector.load %arg10[%c0_23, %c96, %c0_24] : memref<2x240x640xbf16, #tpu.memory_space<vmem>>, vector<1x24x640xbf16>
    %36 = vector.shape_cast %35 : vector<1x24x640xbf16> to vector<24x640xbf16>
    %37 = vector.shape_cast %34 : vector<24x640xbf16> to vector<1x24x640xbf16>
    tpu.vector_store %arg10[%c0_23, %c96, %c0_24], %37 {strides = array<i32>} : memref<2x240x640xbf16, #tpu.memory_space<vmem>>, vector<1x24x640xbf16>,
    %38 = vector.extract_strided_slice %10 {offsets = [0, 5], sizes = [24, 635], strides = [1, 1]} : vector<24x640xbf16> to vector<24x635xbf16>
    %cst_25 = arith.constant 0.000000e+00 : bf16
    %39 = vector.broadcast %cst_25 : bf16 to vector<24x5xbf16>
    %40 = tpu.concatenate %38, %39 in 1 : vector<24x635xbf16>, vector<24x5xbf16> -> vector<24x640xbf16>
    %c0_26 = arith.constant 0 : index
    %c120 = arith.constant 120 : index
    %c0_27 = arith.constant 0 : index
    %41 = vector.load %arg10[%c0_26, %c120, %c0_27] : memref<2x240x640xbf16, #tpu.memory_space<vmem>>, vector<1x24x640xbf16>
    %42 = vector.shape_cast %41 : vector<1x24x640xbf16> to vector<24x640xbf16>
    %43 = vector.shape_cast %40 : vector<24x640xbf16> to vector<1x24x640xbf16>
    tpu.vector_store %arg10[%c0_26, %c120, %c0_27], %43 {strides = array<i32>} : memref<2x240x640xbf16, #tpu.memory_space<vmem>>, vector<1x24x640xbf16>,
    %44 = vector.extract_strided_slice %10 {offsets = [0, 6], sizes = [24, 634], strides = [1, 1]} : vector<24x640xbf16> to vector<24x634xbf16>
    %cst_28 = arith.constant 0.000000e+00 : bf16
    %45 = vector.broadcast %cst_28 : bf16 to vector<24x6xbf16>
    %46 = tpu.concatenate %44, %45 in 1 : vector<24x634xbf16>, vector<24x6xbf16> -> vector<24x640xbf16>
    %c0_29 = arith.constant 0 : index
    %c144 = arith.constant 144 : index
    %c0_30 = arith.constant 0 : index
    %47 = vector.load %arg10[%c0_29, %c144, %c0_30] : memref<2x240x640xbf16, #tpu.memory_space<vmem>>, vector<1x24x640xbf16>
    %48 = vector.shape_cast %47 : vector<1x24x640xbf16> to vector<24x640xbf16>
    %49 = vector.shape_cast %46 : vector<24x640xbf16> to vector<1x24x640xbf16>
    tpu.vector_store %arg10[%c0_29, %c144, %c0_30], %49 {strides = array<i32>} : memref<2x240x640xbf16, #tpu.memory_space<vmem>>, vector<1x24x640xbf16>,
    %50 = vector.extract_strided_slice %10 {offsets = [0, 7], sizes = [24, 633], strides = [1, 1]} : vector<24x640xbf16> to vector<24x633xbf16>
    %cst_31 = arith.constant 0.000000e+00 : bf16
    %51 = vector.broadcast %cst_31 : bf16 to vector<24x7xbf16>
    %52 = tpu.concatenate %50, %51 in 1 : vector<24x633xbf16>, vector<24x7xbf16> -> vector<24x640xbf16>
    %c0_32 = arith.constant 0 : index
    %c168 = arith.constant 168 : index
    %c0_33 = arith.constant 0 : index
    %53 = vector.load %arg10[%c0_32, %c168, %c0_33] : memref<2x240x640xbf16, #tpu.memory_space<vmem>>, vector<1x24x640xbf16>
    %54 = vector.shape_cast %53 : vector<1x24x640xbf16> to vector<24x640xbf16>
    %55 = vector.shape_cast %52 : vector<24x640xbf16> to vector<1x24x640xbf16>
    tpu.vector_store %arg10[%c0_32, %c168, %c0_33], %55 {strides = array<i32>} : memref<2x240x640xbf16, #tpu.memory_space<vmem>>, vector<1x24x640xbf16>,
    %56 = vector.extract_strided_slice %10 {offsets = [0, 8], sizes = [24, 632], strides = [1, 1]} : vector<24x640xbf16> to vector<24x632xbf16>
    %cst_34 = arith.constant 0.000000e+00 : bf16
    %57 = vector.broadcast %cst_34 : bf16 to vector<24x8xbf16>
    %58 = tpu.concatenate %56, %57 in 1 : vector<24x632xbf16>, vector<24x8xbf16> -> vector<24x640xbf16>
    %c0_35 = arith.constant 0 : index
    %c192 = arith.constant 192 : index
    %c0_36 = arith.constant 0 : index
    %59 = vector.load %arg10[%c0_35, %c192, %c0_36] : memref<2x240x640xbf16, #tpu.memory_space<vmem>>, vector<1x24x640xbf16>
    %60 = vector.shape_cast %59 : vector<1x24x640xbf16> to vector<24x640xbf16>
    %61 = vector.shape_cast %58 : vector<24x640xbf16> to vector<1x24x640xbf16>
    tpu.vector_store %arg10[%c0_35, %c192, %c0_36], %61 {strides = array<i32>} : memref<2x240x640xbf16, #tpu.memory_space<vmem>>, vector<1x24x640xbf16>,
    %62 = vector.extract_strided_slice %10 {offsets = [0, 9], sizes = [24, 631], strides = [1, 1]} : vector<24x640xbf16> to vector<24x631xbf16>
    %cst_37 = arith.constant 0.000000e+00 : bf16
    %63 = vector.broadcast %cst_37 : bf16 to vector<24x9xbf16>
    %64 = tpu.concatenate %62, %63 in 1 : vector<24x631xbf16>, vector<24x9xbf16> -> vector<24x640xbf16>
    %c0_38 = arith.constant 0 : index
    %c216 = arith.constant 216 : index
    %c0_39 = arith.constant 0 : index
    %65 = vector.load %arg10[%c0_38, %c216, %c0_39] : memref<2x240x640xbf16, #tpu.memory_space<vmem>>, vector<1x24x640xbf16>
    %66 = vector.shape_cast %65 : vector<1x24x640xbf16> to vector<24x640xbf16>
    %67 = vector.shape_cast %64 : vector<24x640xbf16> to vector<1x24x640xbf16>
    tpu.vector_store %arg10[%c0_38, %c216, %c0_39], %67 {strides = array<i32>} : memref<2x240x640xbf16, #tpu.memory_space<vmem>>, vector<1x24x640xbf16>,
    %c0_40 = arith.constant 0 : index
    %c0_41 = arith.constant 0 : index
    %68 = vector.load %arg4[%c0_40, %c0_41] : memref<24x240xbf16, #tpu.memory_space<vmem>>, vector<24x240xbf16>
    %c0_42 = arith.constant 0 : index
    %c0_43 = arith.constant 0 : index
    %c0_44 = arith.constant 0 : index
    %69 = vector.load %arg10[%c0_42, %c0_43, %c0_44] : memref<2x240x640xbf16, #tpu.memory_space<vmem>>, vector<1x240x640xbf16>
    %70 = vector.shape_cast %69 : vector<1x240x640xbf16> to vector<240x640xbf16>
    %cst_45 = arith.constant dense<0.000000e+00> : vector<24x640xf32>
    %71 = tpu.matmul %68, %70, %cst_45 {dimension_numbers = #tpu.dot_dimension_numbers<[1], [0], [0], [1], [0, 0, 1, 1], [], []>} : vector<24x240xbf16>, vector<240x640xbf16>, vector<24x640xf32> -> vector<24x640xf32>
    %c0_46 = arith.constant 0 : index
    %c0_47 = arith.constant 0 : index
    %72 = vector.load %arg5[%c0_46, %c0_47] : memref<24x1xf32, #tpu.memory_space<vmem>>, vector<24x1xf32>
    %73 = vector.broadcast %72 : vector<24x1xf32> to vector<24x640xf32>
    %74 = arith.addf %71, %73 : vector<24x640xf32>
    %cst_48 = arith.constant 0.000000e+00 : f32
    %75 = vector.broadcast %cst_48 : f32 to vector<24x640xf32>
    %76 = arith.maximumf %74, %75 : vector<24x640xf32>
    %77 = vector.extract_strided_slice %76 {offsets = [0, 0], sizes = [1, 640], strides = [1, 1]} : vector<24x640xf32> to vector<1x640xf32>
    %78 = vector.shape_cast %77 : vector<1x640xf32> to vector<640xf32>
    %c0_49 = arith.constant 0 : index
    %c0_50 = arith.constant 0 : index
    %79 = vector.load %arg11[%c0_49, %c0_50] : memref<36x640xf32, #tpu.memory_space<vmem>>, vector<1x640xf32>
    %80 = vector.shape_cast %79 : vector<1x640xf32> to vector<640xf32>
    %81 = vector.shape_cast %78 : vector<640xf32> to vector<1x640xf32>
    tpu.vector_store %arg11[%c0_49, %c0_50], %81 {strides = array<i32>} : memref<36x640xf32, #tpu.memory_space<vmem>>, vector<1x640xf32>,
    %82 = vector.extract_strided_slice %76 {offsets = [1, 0], sizes = [1, 640], strides = [1, 1]} : vector<24x640xf32> to vector<1x640xf32>
    %83 = vector.shape_cast %82 : vector<1x640xf32> to vector<640xf32>
    %c2 = arith.constant 2 : index
    %c0_51 = arith.constant 0 : index
    %84 = vector.load %arg11[%c2, %c0_51] : memref<36x640xf32, #tpu.memory_space<vmem>>, vector<1x640xf32>
    %85 = vector.shape_cast %84 : vector<1x640xf32> to vector<640xf32>
    %86 = vector.shape_cast %83 : vector<640xf32> to vector<1x640xf32>
    tpu.vector_store %arg11[%c2, %c0_51], %86 {strides = array<i32>} : memref<36x640xf32, #tpu.memory_space<vmem>>, vector<1x640xf32>,
    %87 = vector.extract_strided_slice %76 {offsets = [2, 0], sizes = [1, 640], strides = [1, 1]} : vector<24x640xf32> to vector<1x640xf32>
    %88 = vector.shape_cast %87 : vector<1x640xf32> to vector<640xf32>
    %c4 = arith.constant 4 : index
    %c0_52 = arith.constant 0 : index
    %89 = vector.load %arg11[%c4, %c0_52] : memref<36x640xf32, #tpu.memory_space<vmem>>, vector<1x640xf32>
    %90 = vector.shape_cast %89 : vector<1x640xf32> to vector<640xf32>
    %91 = vector.shape_cast %88 : vector<640xf32> to vector<1x640xf32>
    tpu.vector_store %arg11[%c4, %c0_52], %91 {strides = array<i32>} : memref<36x640xf32, #tpu.memory_space<vmem>>, vector<1x640xf32>,
    %92 = vector.extract_strided_slice %76 {offsets = [3, 0], sizes = [1, 640], strides = [1, 1]} : vector<24x640xf32> to vector<1x640xf32>
    %93 = vector.shape_cast %92 : vector<1x640xf32> to vector<640xf32>
    %c6 = arith.constant 6 : index
    %c0_53 = arith.constant 0 : index
    %94 = vector.load %arg11[%c6, %c0_53] : memref<36x640xf32, #tpu.memory_space<vmem>>, vector<1x640xf32>
    %95 = vector.shape_cast %94 : vector<1x640xf32> to vector<640xf32>
    %96 = vector.shape_cast %93 : vector<640xf32> to vector<1x640xf32>
    tpu.vector_store %arg11[%c6, %c0_53], %96 {strides = array<i32>} : memref<36x640xf32, #tpu.memory_space<vmem>>, vector<1x640xf32>,
    %97 = vector.extract_strided_slice %76 {offsets = [4, 0], sizes = [1, 640], strides = [1, 1]} : vector<24x640xf32> to vector<1x640xf32>
    %98 = vector.shape_cast %97 : vector<1x640xf32> to vector<640xf32>
    %c8 = arith.constant 8 : index
    %c0_54 = arith.constant 0 : index
    %99 = vector.load %arg11[%c8, %c0_54] : memref<36x640xf32, #tpu.memory_space<vmem>>, vector<1x640xf32>
    %100 = vector.shape_cast %99 : vector<1x640xf32> to vector<640xf32>
    %101 = vector.shape_cast %98 : vector<640xf32> to vector<1x640xf32>
    tpu.vector_store %arg11[%c8, %c0_54], %101 {strides = array<i32>} : memref<36x640xf32, #tpu.memory_space<vmem>>, vector<1x640xf32>,
    %102 = vector.extract_strided_slice %76 {offsets = [5, 0], sizes = [1, 640], strides = [1, 1]} : vector<24x640xf32> to vector<1x640xf32>
    %103 = vector.shape_cast %102 : vector<1x640xf32> to vector<640xf32>
    %c10 = arith.constant 10 : index
    %c0_55 = arith.constant 0 : index
    %104 = vector.load %arg11[%c10, %c0_55] : memref<36x640xf32, #tpu.memory_space<vmem>>, vector<1x640xf32>
    %105 = vector.shape_cast %104 : vector<1x640xf32> to vector<640xf32>
    %106 = vector.shape_cast %103 : vector<640xf32> to vector<1x640xf32>
    tpu.vector_store %arg11[%c10, %c0_55], %106 {strides = array<i32>} : memref<36x640xf32, #tpu.memory_space<vmem>>, vector<1x640xf32>,
    %107 = vector.extract_strided_slice %76 {offsets = [6, 0], sizes = [1, 640], strides = [1, 1]} : vector<24x640xf32> to vector<1x640xf32>
    %108 = vector.shape_cast %107 : vector<1x640xf32> to vector<640xf32>
    %c12 = arith.constant 12 : index
    %c0_56 = arith.constant 0 : index
    %109 = vector.load %arg11[%c12, %c0_56] : memref<36x640xf32, #tpu.memory_space<vmem>>, vector<1x640xf32>
    %110 = vector.shape_cast %109 : vector<1x640xf32> to vector<640xf32>
    %111 = vector.shape_cast %108 : vector<640xf32> to vector<1x640xf32>
    tpu.vector_store %arg11[%c12, %c0_56], %111 {strides = array<i32>} : memref<36x640xf32, #tpu.memory_space<vmem>>, vector<1x640xf32>,
    %112 = vector.extract_strided_slice %76 {offsets = [7, 0], sizes = [1, 640], strides = [1, 1]} : vector<24x640xf32> to vector<1x640xf32>
    %113 = vector.shape_cast %112 : vector<1x640xf32> to vector<640xf32>
    %c14 = arith.constant 14 : index
    %c0_57 = arith.constant 0 : index
    %114 = vector.load %arg11[%c14, %c0_57] : memref<36x640xf32, #tpu.memory_space<vmem>>, vector<1x640xf32>
    %115 = vector.shape_cast %114 : vector<1x640xf32> to vector<640xf32>
    %116 = vector.shape_cast %113 : vector<640xf32> to vector<1x640xf32>
    tpu.vector_store %arg11[%c14, %c0_57], %116 {strides = array<i32>} : memref<36x640xf32, #tpu.memory_space<vmem>>, vector<1x640xf32>,
    %117 = vector.extract_strided_slice %76 {offsets = [8, 0], sizes = [1, 640], strides = [1, 1]} : vector<24x640xf32> to vector<1x640xf32>
    %118 = vector.shape_cast %117 : vector<1x640xf32> to vector<640xf32>
    %c16 = arith.constant 16 : index
    %c0_58 = arith.constant 0 : index
    %119 = vector.load %arg11[%c16, %c0_58] : memref<36x640xf32, #tpu.memory_space<vmem>>, vector<1x640xf32>
    %120 = vector.shape_cast %119 : vector<1x640xf32> to vector<640xf32>
    %121 = vector.shape_cast %118 : vector<640xf32> to vector<1x640xf32>
    tpu.vector_store %arg11[%c16, %c0_58], %121 {strides = array<i32>} : memref<36x640xf32, #tpu.memory_space<vmem>>, vector<1x640xf32>,
    %122 = vector.extract_strided_slice %76 {offsets = [9, 0], sizes = [1, 640], strides = [1, 1]} : vector<24x640xf32> to vector<1x640xf32>
    %123 = vector.shape_cast %122 : vector<1x640xf32> to vector<640xf32>
    %c18 = arith.constant 18 : index
    %c0_59 = arith.constant 0 : index
    %124 = vector.load %arg11[%c18, %c0_59] : memref<36x640xf32, #tpu.memory_space<vmem>>, vector<1x640xf32>
    %125 = vector.shape_cast %124 : vector<1x640xf32> to vector<640xf32>
    %126 = vector.shape_cast %123 : vector<640xf32> to vector<1x640xf32>
    tpu.vector_store %arg11[%c18, %c0_59], %126 {strides = array<i32>} : memref<36x640xf32, #tpu.memory_space<vmem>>, vector<1x640xf32>,
    %127 = vector.extract_strided_slice %76 {offsets = [10, 0], sizes = [1, 640], strides = [1, 1]} : vector<24x640xf32> to vector<1x640xf32>
    %128 = vector.shape_cast %127 : vector<1x640xf32> to vector<640xf32>
    %c20 = arith.constant 20 : index
    %c0_60 = arith.constant 0 : index
    %129 = vector.load %arg11[%c20, %c0_60] : memref<36x640xf32, #tpu.memory_space<vmem>>, vector<1x640xf32>
    %130 = vector.shape_cast %129 : vector<1x640xf32> to vector<640xf32>
    %131 = vector.shape_cast %128 : vector<640xf32> to vector<1x640xf32>
    tpu.vector_store %arg11[%c20, %c0_60], %131 {strides = array<i32>} : memref<36x640xf32, #tpu.memory_space<vmem>>, vector<1x640xf32>,
    %132 = vector.extract_strided_slice %76 {offsets = [11, 0], sizes = [1, 640], strides = [1, 1]} : vector<24x640xf32> to vector<1x640xf32>
    %133 = vector.shape_cast %132 : vector<1x640xf32> to vector<640xf32>
    %c22 = arith.constant 22 : index
    %c0_61 = arith.constant 0 : index
    %134 = vector.load %arg11[%c22, %c0_61] : memref<36x640xf32, #tpu.memory_space<vmem>>, vector<1x640xf32>
    %135 = vector.shape_cast %134 : vector<1x640xf32> to vector<640xf32>
    %136 = vector.shape_cast %133 : vector<640xf32> to vector<1x640xf32>
    tpu.vector_store %arg11[%c22, %c0_61], %136 {strides = array<i32>} : memref<36x640xf32, #tpu.memory_space<vmem>>, vector<1x640xf32>,
    %137 = vector.extract_strided_slice %76 {offsets = [12, 0], sizes = [1, 640], strides = [1, 1]} : vector<24x640xf32> to vector<1x640xf32>
    %138 = vector.shape_cast %137 : vector<1x640xf32> to vector<640xf32>
    %c24_62 = arith.constant 24 : index
    %c0_63 = arith.constant 0 : index
    %139 = vector.load %arg11[%c24_62, %c0_63] : memref<36x640xf32, #tpu.memory_space<vmem>>, vector<1x640xf32>
    %140 = vector.shape_cast %139 : vector<1x640xf32> to vector<640xf32>
    %141 = vector.shape_cast %138 : vector<640xf32> to vector<1x640xf32>
    tpu.vector_store %arg11[%c24_62, %c0_63], %141 {strides = array<i32>} : memref<36x640xf32, #tpu.memory_space<vmem>>, vector<1x640xf32>,
    %142 = vector.extract_strided_slice %76 {offsets = [13, 0], sizes = [1, 640], strides = [1, 1]} : vector<24x640xf32> to vector<1x640xf32>
    %143 = vector.shape_cast %142 : vector<1x640xf32> to vector<640xf32>
    %c26 = arith.constant 26 : index
    %c0_64 = arith.constant 0 : index
    %144 = vector.load %arg11[%c26, %c0_64] : memref<36x640xf32, #tpu.memory_space<vmem>>, vector<1x640xf32>
    %145 = vector.shape_cast %144 : vector<1x640xf32> to vector<640xf32>
    %146 = vector.shape_cast %143 : vector<640xf32> to vector<1x640xf32>
    tpu.vector_store %arg11[%c26, %c0_64], %146 {strides = array<i32>} : memref<36x640xf32, #tpu.memory_space<vmem>>, vector<1x640xf32>,
    %147 = vector.extract_strided_slice %76 {offsets = [14, 0], sizes = [1, 640], strides = [1, 1]} : vector<24x640xf32> to vector<1x640xf32>
    %148 = vector.shape_cast %147 : vector<1x640xf32> to vector<640xf32>
    %c28 = arith.constant 28 : index
    %c0_65 = arith.constant 0 : index
    %149 = vector.load %arg11[%c28, %c0_65] : memref<36x640xf32, #tpu.memory_space<vmem>>, vector<1x640xf32>
    %150 = vector.shape_cast %149 : vector<1x640xf32> to vector<640xf32>
    %151 = vector.shape_cast %148 : vector<640xf32> to vector<1x640xf32>
    tpu.vector_store %arg11[%c28, %c0_65], %151 {strides = array<i32>} : memref<36x640xf32, #tpu.memory_space<vmem>>, vector<1x640xf32>,
    %152 = vector.extract_strided_slice %76 {offsets = [15, 0], sizes = [1, 640], strides = [1, 1]} : vector<24x640xf32> to vector<1x640xf32>
    %153 = vector.shape_cast %152 : vector<1x640xf32> to vector<640xf32>
    %c30 = arith.constant 30 : index
    %c0_66 = arith.constant 0 : index
    %154 = vector.load %arg11[%c30, %c0_66] : memref<36x640xf32, #tpu.memory_space<vmem>>, vector<1x640xf32>
    %155 = vector.shape_cast %154 : vector<1x640xf32> to vector<640xf32>
    %156 = vector.shape_cast %153 : vector<640xf32> to vector<1x640xf32>
    tpu.vector_store %arg11[%c30, %c0_66], %156 {strides = array<i32>} : memref<36x640xf32, #tpu.memory_space<vmem>>, vector<1x640xf32>,
    %157 = vector.extract_strided_slice %76 {offsets = [16, 0], sizes = [1, 640], strides = [1, 1]} : vector<24x640xf32> to vector<1x640xf32>
    %158 = vector.shape_cast %157 : vector<1x640xf32> to vector<640xf32>
    %c32 = arith.constant 32 : index
    %c0_67 = arith.constant 0 : index
    %159 = vector.load %arg11[%c32, %c0_67] : memref<36x640xf32, #tpu.memory_space<vmem>>, vector<1x640xf32>
    %160 = vector.shape_cast %159 : vector<1x640xf32> to vector<640xf32>
    %161 = vector.shape_cast %158 : vector<640xf32> to vector<1x640xf32>
    tpu.vector_store %arg11[%c32, %c0_67], %161 {strides = array<i32>} : memref<36x640xf32, #tpu.memory_space<vmem>>, vector<1x640xf32>,
    %162 = vector.extract_strided_slice %76 {offsets = [17, 0], sizes = [1, 640], strides = [1, 1]} : vector<24x640xf32> to vector<1x640xf32>
    %163 = vector.shape_cast %162 : vector<1x640xf32> to vector<640xf32>
    %c34 = arith.constant 34 : index
    %c0_68 = arith.constant 0 : index
    %164 = vector.load %arg11[%c34, %c0_68] : memref<36x640xf32, #tpu.memory_space<vmem>>, vector<1x640xf32>
    %165 = vector.shape_cast %164 : vector<1x640xf32> to vector<640xf32>
    %166 = vector.shape_cast %163 : vector<640xf32> to vector<1x640xf32>
    tpu.vector_store %arg11[%c34, %c0_68], %166 {strides = array<i32>} : memref<36x640xf32, #tpu.memory_space<vmem>>, vector<1x640xf32>,
    %c24_69 = arith.constant 24 : index
    %c0_70 = arith.constant 0 : index
    %167 = vector.load %arg9[%c24_69, %c0_70] : memref<48x640xbf16, #tpu.memory_space<vmem>>, vector<24x640xbf16>
    %c1 = arith.constant 1 : index
    %c0_71 = arith.constant 0 : index
    %c0_72 = arith.constant 0 : index
    %168 = vector.load %arg10[%c1, %c0_71, %c0_72] : memref<2x240x640xbf16, #tpu.memory_space<vmem>>, vector<1x24x640xbf16>
    %169 = vector.shape_cast %168 : vector<1x24x640xbf16> to vector<24x640xbf16>
    %170 = vector.shape_cast %167 : vector<24x640xbf16> to vector<1x24x640xbf16>
    tpu.vector_store %arg10[%c1, %c0_71, %c0_72], %170 {strides = array<i32>} : memref<2x240x640xbf16, #tpu.memory_space<vmem>>, vector<1x24x640xbf16>,
    %171 = vector.extract_strided_slice %167 {offsets = [0, 1], sizes = [24, 639], strides = [1, 1]} : vector<24x640xbf16> to vector<24x639xbf16>
    %cst_73 = arith.constant 0.000000e+00 : bf16
    %172 = vector.broadcast %cst_73 : bf16 to vector<24x1xbf16>
    %173 = tpu.concatenate %171, %172 in 1 : vector<24x639xbf16>, vector<24x1xbf16> -> vector<24x640xbf16>
    %c1_74 = arith.constant 1 : index
    %c24_75 = arith.constant 24 : index
    %c0_76 = arith.constant 0 : index
    %174 = vector.load %arg10[%c1_74, %c24_75, %c0_76] : memref<2x240x640xbf16, #tpu.memory_space<vmem>>, vector<1x24x640xbf16>
    %175 = vector.shape_cast %174 : vector<1x24x640xbf16> to vector<24x640xbf16>
    %176 = vector.shape_cast %173 : vector<24x640xbf16> to vector<1x24x640xbf16>
    tpu.vector_store %arg10[%c1_74, %c24_75, %c0_76], %176 {strides = array<i32>} : memref<2x240x640xbf16, #tpu.memory_space<vmem>>, vector<1x24x640xbf16>,
    %177 = vector.extract_strided_slice %167 {offsets = [0, 2], sizes = [24, 638], strides = [1, 1]} : vector<24x640xbf16> to vector<24x638xbf16>
    %cst_77 = arith.constant 0.000000e+00 : bf16
    %178 = vector.broadcast %cst_77 : bf16 to vector<24x2xbf16>
    %179 = tpu.concatenate %177, %178 in 1 : vector<24x638xbf16>, vector<24x2xbf16> -> vector<24x640xbf16>
    %c1_78 = arith.constant 1 : index
    %c48_79 = arith.constant 48 : index
    %c0_80 = arith.constant 0 : index
    %180 = vector.load %arg10[%c1_78, %c48_79, %c0_80] : memref<2x240x640xbf16, #tpu.memory_space<vmem>>, vector<1x24x640xbf16>
    %181 = vector.shape_cast %180 : vector<1x24x640xbf16> to vector<24x640xbf16>
    %182 = vector.shape_cast %179 : vector<24x640xbf16> to vector<1x24x640xbf16>
    tpu.vector_store %arg10[%c1_78, %c48_79, %c0_80], %182 {strides = array<i32>} : memref<2x240x640xbf16, #tpu.memory_space<vmem>>, vector<1x24x640xbf16>,
    %183 = vector.extract_strided_slice %167 {offsets = [0, 3], sizes = [24, 637], strides = [1, 1]} : vector<24x640xbf16> to vector<24x637xbf16>
    %cst_81 = arith.constant 0.000000e+00 : bf16
    %184 = vector.broadcast %cst_81 : bf16 to vector<24x3xbf16>
    %185 = tpu.concatenate %183, %184 in 1 : vector<24x637xbf16>, vector<24x3xbf16> -> vector<24x640xbf16>
    %c1_82 = arith.constant 1 : index
    %c72_83 = arith.constant 72 : index
    %c0_84 = arith.constant 0 : index
    %186 = vector.load %arg10[%c1_82, %c72_83, %c0_84] : memref<2x240x640xbf16, #tpu.memory_space<vmem>>, vector<1x24x640xbf16>
    %187 = vector.shape_cast %186 : vector<1x24x640xbf16> to vector<24x640xbf16>
    %188 = vector.shape_cast %185 : vector<24x640xbf16> to vector<1x24x640xbf16>
    tpu.vector_store %arg10[%c1_82, %c72_83, %c0_84], %188 {strides = array<i32>} : memref<2x240x640xbf16, #tpu.memory_space<vmem>>, vector<1x24x640xbf16>,
    %189 = vector.extract_strided_slice %167 {offsets = [0, 4], sizes = [24, 636], strides = [1, 1]} : vector<24x640xbf16> to vector<24x636xbf16>
    %cst_85 = arith.constant 0.000000e+00 : bf16
    %190 = vector.broadcast %cst_85 : bf16 to vector<24x4xbf16>
    %191 = tpu.concatenate %189, %190 in 1 : vector<24x636xbf16>, vector<24x4xbf16> -> vector<24x640xbf16>
    %c1_86 = arith.constant 1 : index
    %c96_87 = arith.constant 96 : index
    %c0_88 = arith.constant 0 : index
    %192 = vector.load %arg10[%c1_86, %c96_87, %c0_88] : memref<2x240x640xbf16, #tpu.memory_space<vmem>>, vector<1x24x640xbf16>
    %193 = vector.shape_cast %192 : vector<1x24x640xbf16> to vector<24x640xbf16>
    %194 = vector.shape_cast %191 : vector<24x640xbf16> to vector<1x24x640xbf16>
    tpu.vector_store %arg10[%c1_86, %c96_87, %c0_88], %194 {strides = array<i32>} : memref<2x240x640xbf16, #tpu.memory_space<vmem>>, vector<1x24x640xbf16>,
    %195 = vector.extract_strided_slice %167 {offsets = [0, 5], sizes = [24, 635], strides = [1, 1]} : vector<24x640xbf16> to vector<24x635xbf16>
    %cst_89 = arith.constant 0.000000e+00 : bf16
    %196 = vector.broadcast %cst_89 : bf16 to vector<24x5xbf16>
    %197 = tpu.concatenate %195, %196 in 1 : vector<24x635xbf16>, vector<24x5xbf16> -> vector<24x640xbf16>
    %c1_90 = arith.constant 1 : index
    %c120_91 = arith.constant 120 : index
    %c0_92 = arith.constant 0 : index
    %198 = vector.load %arg10[%c1_90, %c120_91, %c0_92] : memref<2x240x640xbf16, #tpu.memory_space<vmem>>, vector<1x24x640xbf16>
    %199 = vector.shape_cast %198 : vector<1x24x640xbf16> to vector<24x640xbf16>
    %200 = vector.shape_cast %197 : vector<24x640xbf16> to vector<1x24x640xbf16>
    tpu.vector_store %arg10[%c1_90, %c120_91, %c0_92], %200 {strides = array<i32>} : memref<2x240x640xbf16, #tpu.memory_space<vmem>>, vector<1x24x640xbf16>,
    %201 = vector.extract_strided_slice %167 {offsets = [0, 6], sizes = [24, 634], strides = [1, 1]} : vector<24x640xbf16> to vector<24x634xbf16>
    %cst_93 = arith.constant 0.000000e+00 : bf16
    %202 = vector.broadcast %cst_93 : bf16 to vector<24x6xbf16>
    %203 = tpu.concatenate %201, %202 in 1 : vector<24x634xbf16>, vector<24x6xbf16> -> vector<24x640xbf16>
    %c1_94 = arith.constant 1 : index
    %c144_95 = arith.constant 144 : index
    %c0_96 = arith.constant 0 : index
    %204 = vector.load %arg10[%c1_94, %c144_95, %c0_96] : memref<2x240x640xbf16, #tpu.memory_space<vmem>>, vector<1x24x640xbf16>
    %205 = vector.shape_cast %204 : vector<1x24x640xbf16> to vector<24x640xbf16>
    %206 = vector.shape_cast %203 : vector<24x640xbf16> to vector<1x24x640xbf16>
    tpu.vector_store %arg10[%c1_94, %c144_95, %c0_96], %206 {strides = array<i32>} : memref<2x240x640xbf16, #tpu.memory_space<vmem>>, vector<1x24x640xbf16>,
    %207 = vector.extract_strided_slice %167 {offsets = [0, 7], sizes = [24, 633], strides = [1, 1]} : vector<24x640xbf16> to vector<24x633xbf16>
    %cst_97 = arith.constant 0.000000e+00 : bf16
    %208 = vector.broadcast %cst_97 : bf16 to vector<24x7xbf16>
    %209 = tpu.concatenate %207, %208 in 1 : vector<24x633xbf16>, vector<24x7xbf16> -> vector<24x640xbf16>
    %c1_98 = arith.constant 1 : index
    %c168_99 = arith.constant 168 : index
    %c0_100 = arith.constant 0 : index
    %210 = vector.load %arg10[%c1_98, %c168_99, %c0_100] : memref<2x240x640xbf16, #tpu.memory_space<vmem>>, vector<1x24x640xbf16>
    %211 = vector.shape_cast %210 : vector<1x24x640xbf16> to vector<24x640xbf16>
    %212 = vector.shape_cast %209 : vector<24x640xbf16> to vector<1x24x640xbf16>
    tpu.vector_store %arg10[%c1_98, %c168_99, %c0_100], %212 {strides = array<i32>} : memref<2x240x640xbf16, #tpu.memory_space<vmem>>, vector<1x24x640xbf16>,
    %213 = vector.extract_strided_slice %167 {offsets = [0, 8], sizes = [24, 632], strides = [1, 1]} : vector<24x640xbf16> to vector<24x632xbf16>
    %cst_101 = arith.constant 0.000000e+00 : bf16
    %214 = vector.broadcast %cst_101 : bf16 to vector<24x8xbf16>
    %215 = tpu.concatenate %213, %214 in 1 : vector<24x632xbf16>, vector<24x8xbf16> -> vector<24x640xbf16>
    %c1_102 = arith.constant 1 : index
    %c192_103 = arith.constant 192 : index
    %c0_104 = arith.constant 0 : index
    %216 = vector.load %arg10[%c1_102, %c192_103, %c0_104] : memref<2x240x640xbf16, #tpu.memory_space<vmem>>, vector<1x24x640xbf16>
    %217 = vector.shape_cast %216 : vector<1x24x640xbf16> to vector<24x640xbf16>
    %218 = vector.shape_cast %215 : vector<24x640xbf16> to vector<1x24x640xbf16>
    tpu.vector_store %arg10[%c1_102, %c192_103, %c0_104], %218 {strides = array<i32>} : memref<2x240x640xbf16, #tpu.memory_space<vmem>>, vector<1x24x640xbf16>,
    %219 = vector.extract_strided_slice %167 {offsets = [0, 9], sizes = [24, 631], strides = [1, 1]} : vector<24x640xbf16> to vector<24x631xbf16>
    %cst_105 = arith.constant 0.000000e+00 : bf16
    %220 = vector.broadcast %cst_105 : bf16 to vector<24x9xbf16>
    %221 = tpu.concatenate %219, %220 in 1 : vector<24x631xbf16>, vector<24x9xbf16> -> vector<24x640xbf16>
    %c1_106 = arith.constant 1 : index
    %c216_107 = arith.constant 216 : index
    %c0_108 = arith.constant 0 : index
    %222 = vector.load %arg10[%c1_106, %c216_107, %c0_108] : memref<2x240x640xbf16, #tpu.memory_space<vmem>>, vector<1x24x640xbf16>
    %223 = vector.shape_cast %222 : vector<1x24x640xbf16> to vector<24x640xbf16>
    %224 = vector.shape_cast %221 : vector<24x640xbf16> to vector<1x24x640xbf16>
    tpu.vector_store %arg10[%c1_106, %c216_107, %c0_108], %224 {strides = array<i32>} : memref<2x240x640xbf16, #tpu.memory_space<vmem>>, vector<1x24x640xbf16>,
    %c0_109 = arith.constant 0 : index
    %c0_110 = arith.constant 0 : index
    %225 = vector.load %arg4[%c0_109, %c0_110] : memref<24x240xbf16, #tpu.memory_space<vmem>>, vector<24x240xbf16>
    %c1_111 = arith.constant 1 : index
    %c0_112 = arith.constant 0 : index
    %c0_113 = arith.constant 0 : index
    %226 = vector.load %arg10[%c1_111, %c0_112, %c0_113] : memref<2x240x640xbf16, #tpu.memory_space<vmem>>, vector<1x240x640xbf16>
    %227 = vector.shape_cast %226 : vector<1x240x640xbf16> to vector<240x640xbf16>
    %cst_114 = arith.constant dense<0.000000e+00> : vector<24x640xf32>
    %228 = tpu.matmul %225, %227, %cst_114 {dimension_numbers = #tpu.dot_dimension_numbers<[1], [0], [0], [1], [0, 0, 1, 1], [], []>} : vector<24x240xbf16>, vector<240x640xbf16>, vector<24x640xf32> -> vector<24x640xf32>
    %c0_115 = arith.constant 0 : index
    %c0_116 = arith.constant 0 : index
    %229 = vector.load %arg5[%c0_115, %c0_116] : memref<24x1xf32, #tpu.memory_space<vmem>>, vector<24x1xf32>
    %230 = vector.broadcast %229 : vector<24x1xf32> to vector<24x640xf32>
    %231 = arith.addf %228, %230 : vector<24x640xf32>
    %cst_117 = arith.constant 0.000000e+00 : f32
    %232 = vector.broadcast %cst_117 : f32 to vector<24x640xf32>
    %233 = arith.maximumf %231, %232 : vector<24x640xf32>
    %234 = vector.extract_strided_slice %233 {offsets = [0, 0], sizes = [1, 640], strides = [1, 1]} : vector<24x640xf32> to vector<1x640xf32>
    %235 = vector.shape_cast %234 : vector<1x640xf32> to vector<640xf32>
    %c1_118 = arith.constant 1 : index
    %c0_119 = arith.constant 0 : index
    %236 = vector.load %arg11[%c1_118, %c0_119] : memref<36x640xf32, #tpu.memory_space<vmem>>, vector<1x640xf32>
    %237 = vector.shape_cast %236 : vector<1x640xf32> to vector<640xf32>
    %238 = vector.shape_cast %235 : vector<640xf32> to vector<1x640xf32>
    tpu.vector_store %arg11[%c1_118, %c0_119], %238 {strides = array<i32>} : memref<36x640xf32, #tpu.memory_space<vmem>>, vector<1x640xf32>,
    %239 = vector.extract_strided_slice %233 {offsets = [1, 0], sizes = [1, 640], strides = [1, 1]} : vector<24x640xf32> to vector<1x640xf32>
    %240 = vector.shape_cast %239 : vector<1x640xf32> to vector<640xf32>
    %c3 = arith.constant 3 : index
    %c0_120 = arith.constant 0 : index
    %241 = vector.load %arg11[%c3, %c0_120] : memref<36x640xf32, #tpu.memory_space<vmem>>, vector<1x640xf32>
    %242 = vector.shape_cast %241 : vector<1x640xf32> to vector<640xf32>
    %243 = vector.shape_cast %240 : vector<640xf32> to vector<1x640xf32>
    tpu.vector_store %arg11[%c3, %c0_120], %243 {strides = array<i32>} : memref<36x640xf32, #tpu.memory_space<vmem>>, vector<1x640xf32>,
    %244 = vector.extract_strided_slice %233 {offsets = [2, 0], sizes = [1, 640], strides = [1, 1]} : vector<24x640xf32> to vector<1x640xf32>
    %245 = vector.shape_cast %244 : vector<1x640xf32> to vector<640xf32>
    %c5 = arith.constant 5 : index
    %c0_121 = arith.constant 0 : index
    %246 = vector.load %arg11[%c5, %c0_121] : memref<36x640xf32, #tpu.memory_space<vmem>>, vector<1x640xf32>
    %247 = vector.shape_cast %246 : vector<1x640xf32> to vector<640xf32>
    %248 = vector.shape_cast %245 : vector<640xf32> to vector<1x640xf32>
    tpu.vector_store %arg11[%c5, %c0_121], %248 {strides = array<i32>} : memref<36x640xf32, #tpu.memory_space<vmem>>, vector<1x640xf32>,
    %249 = vector.extract_strided_slice %233 {offsets = [3, 0], sizes = [1, 640], strides = [1, 1]} : vector<24x640xf32> to vector<1x640xf32>
    %250 = vector.shape_cast %249 : vector<1x640xf32> to vector<640xf32>
    %c7 = arith.constant 7 : index
    %c0_122 = arith.constant 0 : index
    %251 = vector.load %arg11[%c7, %c0_122] : memref<36x640xf32, #tpu.memory_space<vmem>>, vector<1x640xf32>
    %252 = vector.shape_cast %251 : vector<1x640xf32> to vector<640xf32>
    %253 = vector.shape_cast %250 : vector<640xf32> to vector<1x640xf32>
    tpu.vector_store %arg11[%c7, %c0_122], %253 {strides = array<i32>} : memref<36x640xf32, #tpu.memory_space<vmem>>, vector<1x640xf32>,
    %254 = vector.extract_strided_slice %233 {offsets = [4, 0], sizes = [1, 640], strides = [1, 1]} : vector<24x640xf32> to vector<1x640xf32>
    %255 = vector.shape_cast %254 : vector<1x640xf32> to vector<640xf32>
    %c9 = arith.constant 9 : index
    %c0_123 = arith.constant 0 : index
    %256 = vector.load %arg11[%c9, %c0_123] : memref<36x640xf32, #tpu.memory_space<vmem>>, vector<1x640xf32>
    %257 = vector.shape_cast %256 : vector<1x640xf32> to vector<640xf32>
    %258 = vector.shape_cast %255 : vector<640xf32> to vector<1x640xf32>
    tpu.vector_store %arg11[%c9, %c0_123], %258 {strides = array<i32>} : memref<36x640xf32, #tpu.memory_space<vmem>>, vector<1x640xf32>,
    %259 = vector.extract_strided_slice %233 {offsets = [5, 0], sizes = [1, 640], strides = [1, 1]} : vector<24x640xf32> to vector<1x640xf32>
    %260 = vector.shape_cast %259 : vector<1x640xf32> to vector<640xf32>
    %c11 = arith.constant 11 : index
    %c0_124 = arith.constant 0 : index
    %261 = vector.load %arg11[%c11, %c0_124] : memref<36x640xf32, #tpu.memory_space<vmem>>, vector<1x640xf32>
    %262 = vector.shape_cast %261 : vector<1x640xf32> to vector<640xf32>
    %263 = vector.shape_cast %260 : vector<640xf32> to vector<1x640xf32>
    tpu.vector_store %arg11[%c11, %c0_124], %263 {strides = array<i32>} : memref<36x640xf32, #tpu.memory_space<vmem>>, vector<1x640xf32>,
    %264 = vector.extract_strided_slice %233 {offsets = [6, 0], sizes = [1, 640], strides = [1, 1]} : vector<24x640xf32> to vector<1x640xf32>
    %265 = vector.shape_cast %264 : vector<1x640xf32> to vector<640xf32>
    %c13 = arith.constant 13 : index
    %c0_125 = arith.constant 0 : index
    %266 = vector.load %arg11[%c13, %c0_125] : memref<36x640xf32, #tpu.memory_space<vmem>>, vector<1x640xf32>
    %267 = vector.shape_cast %266 : vector<1x640xf32> to vector<640xf32>
    %268 = vector.shape_cast %265 : vector<640xf32> to vector<1x640xf32>
    tpu.vector_store %arg11[%c13, %c0_125], %268 {strides = array<i32>} : memref<36x640xf32, #tpu.memory_space<vmem>>, vector<1x640xf32>,
    %269 = vector.extract_strided_slice %233 {offsets = [7, 0], sizes = [1, 640], strides = [1, 1]} : vector<24x640xf32> to vector<1x640xf32>
    %270 = vector.shape_cast %269 : vector<1x640xf32> to vector<640xf32>
    %c15 = arith.constant 15 : index
    %c0_126 = arith.constant 0 : index
    %271 = vector.load %arg11[%c15, %c0_126] : memref<36x640xf32, #tpu.memory_space<vmem>>, vector<1x640xf32>
    %272 = vector.shape_cast %271 : vector<1x640xf32> to vector<640xf32>
    %273 = vector.shape_cast %270 : vector<640xf32> to vector<1x640xf32>
    tpu.vector_store %arg11[%c15, %c0_126], %273 {strides = array<i32>} : memref<36x640xf32, #tpu.memory_space<vmem>>, vector<1x640xf32>,
    %274 = vector.extract_strided_slice %233 {offsets = [8, 0], sizes = [1, 640], strides = [1, 1]} : vector<24x640xf32> to vector<1x640xf32>
    %275 = vector.shape_cast %274 : vector<1x640xf32> to vector<640xf32>
    %c17 = arith.constant 17 : index
    %c0_127 = arith.constant 0 : index
    %276 = vector.load %arg11[%c17, %c0_127] : memref<36x640xf32, #tpu.memory_space<vmem>>, vector<1x640xf32>
    %277 = vector.shape_cast %276 : vector<1x640xf32> to vector<640xf32>
    %278 = vector.shape_cast %275 : vector<640xf32> to vector<1x640xf32>
    tpu.vector_store %arg11[%c17, %c0_127], %278 {strides = array<i32>} : memref<36x640xf32, #tpu.memory_space<vmem>>, vector<1x640xf32>,
    %279 = vector.extract_strided_slice %233 {offsets = [9, 0], sizes = [1, 640], strides = [1, 1]} : vector<24x640xf32> to vector<1x640xf32>
    %280 = vector.shape_cast %279 : vector<1x640xf32> to vector<640xf32>
    %c19 = arith.constant 19 : index
    %c0_128 = arith.constant 0 : index
    %281 = vector.load %arg11[%c19, %c0_128] : memref<36x640xf32, #tpu.memory_space<vmem>>, vector<1x640xf32>
    %282 = vector.shape_cast %281 : vector<1x640xf32> to vector<640xf32>
    %283 = vector.shape_cast %280 : vector<640xf32> to vector<1x640xf32>
    tpu.vector_store %arg11[%c19, %c0_128], %283 {strides = array<i32>} : memref<36x640xf32, #tpu.memory_space<vmem>>, vector<1x640xf32>,
    %284 = vector.extract_strided_slice %233 {offsets = [10, 0], sizes = [1, 640], strides = [1, 1]} : vector<24x640xf32> to vector<1x640xf32>
    %285 = vector.shape_cast %284 : vector<1x640xf32> to vector<640xf32>
    %c21 = arith.constant 21 : index
    %c0_129 = arith.constant 0 : index
    %286 = vector.load %arg11[%c21, %c0_129] : memref<36x640xf32, #tpu.memory_space<vmem>>, vector<1x640xf32>
    %287 = vector.shape_cast %286 : vector<1x640xf32> to vector<640xf32>
    %288 = vector.shape_cast %285 : vector<640xf32> to vector<1x640xf32>
    tpu.vector_store %arg11[%c21, %c0_129], %288 {strides = array<i32>} : memref<36x640xf32, #tpu.memory_space<vmem>>, vector<1x640xf32>,
    %289 = vector.extract_strided_slice %233 {offsets = [11, 0], sizes = [1, 640], strides = [1, 1]} : vector<24x640xf32> to vector<1x640xf32>
    %290 = vector.shape_cast %289 : vector<1x640xf32> to vector<640xf32>
    %c23 = arith.constant 23 : index
    %c0_130 = arith.constant 0 : index
    %291 = vector.load %arg11[%c23, %c0_130] : memref<36x640xf32, #tpu.memory_space<vmem>>, vector<1x640xf32>
    %292 = vector.shape_cast %291 : vector<1x640xf32> to vector<640xf32>
    %293 = vector.shape_cast %290 : vector<640xf32> to vector<1x640xf32>
    tpu.vector_store %arg11[%c23, %c0_130], %293 {strides = array<i32>} : memref<36x640xf32, #tpu.memory_space<vmem>>, vector<1x640xf32>,
    %294 = vector.extract_strided_slice %233 {offsets = [12, 0], sizes = [1, 640], strides = [1, 1]} : vector<24x640xf32> to vector<1x640xf32>
    %295 = vector.shape_cast %294 : vector<1x640xf32> to vector<640xf32>
    %c25 = arith.constant 25 : index
    %c0_131 = arith.constant 0 : index
    %296 = vector.load %arg11[%c25, %c0_131] : memref<36x640xf32, #tpu.memory_space<vmem>>, vector<1x640xf32>
    %297 = vector.shape_cast %296 : vector<1x640xf32> to vector<640xf32>
    %298 = vector.shape_cast %295 : vector<640xf32> to vector<1x640xf32>
    tpu.vector_store %arg11[%c25, %c0_131], %298 {strides = array<i32>} : memref<36x640xf32, #tpu.memory_space<vmem>>, vector<1x640xf32>,
    %299 = vector.extract_strided_slice %233 {offsets = [13, 0], sizes = [1, 640], strides = [1, 1]} : vector<24x640xf32> to vector<1x640xf32>
    %300 = vector.shape_cast %299 : vector<1x640xf32> to vector<640xf32>
    %c27 = arith.constant 27 : index
    %c0_132 = arith.constant 0 : index
    %301 = vector.load %arg11[%c27, %c0_132] : memref<36x640xf32, #tpu.memory_space<vmem>>, vector<1x640xf32>
    %302 = vector.shape_cast %301 : vector<1x640xf32> to vector<640xf32>
    %303 = vector.shape_cast %300 : vector<640xf32> to vector<1x640xf32>
    tpu.vector_store %arg11[%c27, %c0_132], %303 {strides = array<i32>} : memref<36x640xf32, #tpu.memory_space<vmem>>, vector<1x640xf32>,
    %304 = vector.extract_strided_slice %233 {offsets = [14, 0], sizes = [1, 640], strides = [1, 1]} : vector<24x640xf32> to vector<1x640xf32>
    %305 = vector.shape_cast %304 : vector<1x640xf32> to vector<640xf32>
    %c29 = arith.constant 29 : index
    %c0_133 = arith.constant 0 : index
    %306 = vector.load %arg11[%c29, %c0_133] : memref<36x640xf32, #tpu.memory_space<vmem>>, vector<1x640xf32>
    %307 = vector.shape_cast %306 : vector<1x640xf32> to vector<640xf32>
    %308 = vector.shape_cast %305 : vector<640xf32> to vector<1x640xf32>
    tpu.vector_store %arg11[%c29, %c0_133], %308 {strides = array<i32>} : memref<36x640xf32, #tpu.memory_space<vmem>>, vector<1x640xf32>,
    %309 = vector.extract_strided_slice %233 {offsets = [15, 0], sizes = [1, 640], strides = [1, 1]} : vector<24x640xf32> to vector<1x640xf32>
    %310 = vector.shape_cast %309 : vector<1x640xf32> to vector<640xf32>
    %c31 = arith.constant 31 : index
    %c0_134 = arith.constant 0 : index
    %311 = vector.load %arg11[%c31, %c0_134] : memref<36x640xf32, #tpu.memory_space<vmem>>, vector<1x640xf32>
    %312 = vector.shape_cast %311 : vector<1x640xf32> to vector<640xf32>
    %313 = vector.shape_cast %310 : vector<640xf32> to vector<1x640xf32>
    tpu.vector_store %arg11[%c31, %c0_134], %313 {strides = array<i32>} : memref<36x640xf32, #tpu.memory_space<vmem>>, vector<1x640xf32>,
    %314 = vector.extract_strided_slice %233 {offsets = [16, 0], sizes = [1, 640], strides = [1, 1]} : vector<24x640xf32> to vector<1x640xf32>
    %315 = vector.shape_cast %314 : vector<1x640xf32> to vector<640xf32>
    %c33 = arith.constant 33 : index
    %c0_135 = arith.constant 0 : index
    %316 = vector.load %arg11[%c33, %c0_135] : memref<36x640xf32, #tpu.memory_space<vmem>>, vector<1x640xf32>
    %317 = vector.shape_cast %316 : vector<1x640xf32> to vector<640xf32>
    %318 = vector.shape_cast %315 : vector<640xf32> to vector<1x640xf32>
    tpu.vector_store %arg11[%c33, %c0_135], %318 {strides = array<i32>} : memref<36x640xf32, #tpu.memory_space<vmem>>, vector<1x640xf32>,
    %319 = vector.extract_strided_slice %233 {offsets = [17, 0], sizes = [1, 640], strides = [1, 1]} : vector<24x640xf32> to vector<1x640xf32>
    %320 = vector.shape_cast %319 : vector<1x640xf32> to vector<640xf32>
    %c35 = arith.constant 35 : index
    %c0_136 = arith.constant 0 : index
    %321 = vector.load %arg11[%c35, %c0_136] : memref<36x640xf32, #tpu.memory_space<vmem>>, vector<1x640xf32>
    %322 = vector.shape_cast %321 : vector<1x640xf32> to vector<640xf32>
    %323 = vector.shape_cast %320 : vector<640xf32> to vector<1x640xf32>
    tpu.vector_store %arg11[%c35, %c0_136], %323 {strides = array<i32>} : memref<36x640xf32, #tpu.memory_space<vmem>>, vector<1x640xf32>,
    %cst_137 = arith.constant 0.000000e+00 : f32
    %324 = vector.broadcast %cst_137 : f32 to vector<2x128xf32>
    %c0_138 = arith.constant 0 : index
    %c0_139 = arith.constant 0 : index
    %325 = vector.load %arg11[%c0_138, %c0_139] : memref<36x640xf32, #tpu.memory_space<vmem>>, vector<2x640xf32>
    %326 = arith.truncf %325 : vector<2x640xf32> to vector<2x640xbf16>
    %c0_140 = arith.constant 0 : index
    %c0_141 = arith.constant 0 : index
    %c0_142 = arith.constant 0 : index
    %327 = vector.load %arg6[%c0_140, %c0_141, %c0_142] : memref<18x640x128xbf16, #tpu.memory_space<vmem>>, vector<1x640x128xbf16>
    %328 = vector.shape_cast %327 : vector<1x640x128xbf16> to vector<640x128xbf16>
    %cst_143 = arith.constant dense<0.000000e+00> : vector<2x128xf32>
    %329 = tpu.matmul %326, %328, %cst_143 {dimension_numbers = #tpu.dot_dimension_numbers<[1], [0], [0], [1], [0, 0, 1, 1], [], []>} : vector<2x640xbf16>, vector<640x128xbf16>, vector<2x128xf32> -> vector<2x128xf32>
    %330 = arith.addf %324, %329 : vector<2x128xf32>
    %c2_144 = arith.constant 2 : index
    %c0_145 = arith.constant 0 : index
    %331 = vector.load %arg11[%c2_144, %c0_145] : memref<36x640xf32, #tpu.memory_space<vmem>>, vector<2x640xf32>
    %332 = arith.truncf %331 : vector<2x640xf32> to vector<2x640xbf16>
    %c1_146 = arith.constant 1 : index
    %c0_147 = arith.constant 0 : index
    %c0_148 = arith.constant 0 : index
    %333 = vector.load %arg6[%c1_146, %c0_147, %c0_148] : memref<18x640x128xbf16, #tpu.memory_space<vmem>>, vector<1x640x128xbf16>
    %334 = vector.shape_cast %333 : vector<1x640x128xbf16> to vector<640x128xbf16>
    %cst_149 = arith.constant dense<0.000000e+00> : vector<2x128xf32>
    %335 = tpu.matmul %332, %334, %cst_149 {dimension_numbers = #tpu.dot_dimension_numbers<[1], [0], [0], [1], [0, 0, 1, 1], [], []>} : vector<2x640xbf16>, vector<640x128xbf16>, vector<2x128xf32> -> vector<2x128xf32>
    %336 = arith.addf %330, %335 : vector<2x128xf32>
    %c4_150 = arith.constant 4 : index
    %c0_151 = arith.constant 0 : index
    %337 = vector.load %arg11[%c4_150, %c0_151] : memref<36x640xf32, #tpu.memory_space<vmem>>, vector<2x640xf32>
    %338 = arith.truncf %337 : vector<2x640xf32> to vector<2x640xbf16>
    %c2_152 = arith.constant 2 : index
    %c0_153 = arith.constant 0 : index
    %c0_154 = arith.constant 0 : index
    %339 = vector.load %arg6[%c2_152, %c0_153, %c0_154] : memref<18x640x128xbf16, #tpu.memory_space<vmem>>, vector<1x640x128xbf16>
    %340 = vector.shape_cast %339 : vector<1x640x128xbf16> to vector<640x128xbf16>
    %cst_155 = arith.constant dense<0.000000e+00> : vector<2x128xf32>
    %341 = tpu.matmul %338, %340, %cst_155 {dimension_numbers = #tpu.dot_dimension_numbers<[1], [0], [0], [1], [0, 0, 1, 1], [], []>} : vector<2x640xbf16>, vector<640x128xbf16>, vector<2x128xf32> -> vector<2x128xf32>
    %342 = arith.addf %336, %341 : vector<2x128xf32>
    %c6_156 = arith.constant 6 : index
    %c0_157 = arith.constant 0 : index
    %343 = vector.load %arg11[%c6_156, %c0_157] : memref<36x640xf32, #tpu.memory_space<vmem>>, vector<2x640xf32>
    %344 = arith.truncf %343 : vector<2x640xf32> to vector<2x640xbf16>
    %c3_158 = arith.constant 3 : index
    %c0_159 = arith.constant 0 : index
    %c0_160 = arith.constant 0 : index
    %345 = vector.load %arg6[%c3_158, %c0_159, %c0_160] : memref<18x640x128xbf16, #tpu.memory_space<vmem>>, vector<1x640x128xbf16>
    %346 = vector.shape_cast %345 : vector<1x640x128xbf16> to vector<640x128xbf16>
    %cst_161 = arith.constant dense<0.000000e+00> : vector<2x128xf32>
    %347 = tpu.matmul %344, %346, %cst_161 {dimension_numbers = #tpu.dot_dimension_numbers<[1], [0], [0], [1], [0, 0, 1, 1], [], []>} : vector<2x640xbf16>, vector<640x128xbf16>, vector<2x128xf32> -> vector<2x128xf32>
    %348 = arith.addf %342, %347 : vector<2x128xf32>
    %c8_162 = arith.constant 8 : index
    %c0_163 = arith.constant 0 : index
    %349 = vector.load %arg11[%c8_162, %c0_163] : memref<36x640xf32, #tpu.memory_space<vmem>>, vector<2x640xf32>
    %350 = arith.truncf %349 : vector<2x640xf32> to vector<2x640xbf16>
    %c4_164 = arith.constant 4 : index
    %c0_165 = arith.constant 0 : index
    %c0_166 = arith.constant 0 : index
    %351 = vector.load %arg6[%c4_164, %c0_165, %c0_166] : memref<18x640x128xbf16, #tpu.memory_space<vmem>>, vector<1x640x128xbf16>
    %352 = vector.shape_cast %351 : vector<1x640x128xbf16> to vector<640x128xbf16>
    %cst_167 = arith.constant dense<0.000000e+00> : vector<2x128xf32>
    %353 = tpu.matmul %350, %352, %cst_167 {dimension_numbers = #tpu.dot_dimension_numbers<[1], [0], [0], [1], [0, 0, 1, 1], [], []>} : vector<2x640xbf16>, vector<640x128xbf16>, vector<2x128xf32> -> vector<2x128xf32>
    %354 = arith.addf %348, %353 : vector<2x128xf32>
    %c10_168 = arith.constant 10 : index
    %c0_169 = arith.constant 0 : index
    %355 = vector.load %arg11[%c10_168, %c0_169] : memref<36x640xf32, #tpu.memory_space<vmem>>, vector<2x640xf32>
    %356 = arith.truncf %355 : vector<2x640xf32> to vector<2x640xbf16>
    %c5_170 = arith.constant 5 : index
    %c0_171 = arith.constant 0 : index
    %c0_172 = arith.constant 0 : index
    %357 = vector.load %arg6[%c5_170, %c0_171, %c0_172] : memref<18x640x128xbf16, #tpu.memory_space<vmem>>, vector<1x640x128xbf16>
    %358 = vector.shape_cast %357 : vector<1x640x128xbf16> to vector<640x128xbf16>
    %cst_173 = arith.constant dense<0.000000e+00> : vector<2x128xf32>
    %359 = tpu.matmul %356, %358, %cst_173 {dimension_numbers = #tpu.dot_dimension_numbers<[1], [0], [0], [1], [0, 0, 1, 1], [], []>} : vector<2x640xbf16>, vector<640x128xbf16>, vector<2x128xf32> -> vector<2x128xf32>
    %360 = arith.addf %354, %359 : vector<2x128xf32>
    %c12_174 = arith.constant 12 : index
    %c0_175 = arith.constant 0 : index
    %361 = vector.load %arg11[%c12_174, %c0_175] : memref<36x640xf32, #tpu.memory_space<vmem>>, vector<2x640xf32>
    %362 = arith.truncf %361 : vector<2x640xf32> to vector<2x640xbf16>
    %c6_176 = arith.constant 6 : index
    %c0_177 = arith.constant 0 : index
    %c0_178 = arith.constant 0 : index
    %363 = vector.load %arg6[%c6_176, %c0_177, %c0_178] : memref<18x640x128xbf16, #tpu.memory_space<vmem>>, vector<1x640x128xbf16>
    %364 = vector.shape_cast %363 : vector<1x640x128xbf16> to vector<640x128xbf16>
    %cst_179 = arith.constant dense<0.000000e+00> : vector<2x128xf32>
    %365 = tpu.matmul %362, %364, %cst_179 {dimension_numbers = #tpu.dot_dimension_numbers<[1], [0], [0], [1], [0, 0, 1, 1], [], []>} : vector<2x640xbf16>, vector<640x128xbf16>, vector<2x128xf32> -> vector<2x128xf32>
    %366 = arith.addf %360, %365 : vector<2x128xf32>
    %c14_180 = arith.constant 14 : index
    %c0_181 = arith.constant 0 : index
    %367 = vector.load %arg11[%c14_180, %c0_181] : memref<36x640xf32, #tpu.memory_space<vmem>>, vector<2x640xf32>
    %368 = arith.truncf %367 : vector<2x640xf32> to vector<2x640xbf16>
    %c7_182 = arith.constant 7 : index
    %c0_183 = arith.constant 0 : index
    %c0_184 = arith.constant 0 : index
    %369 = vector.load %arg6[%c7_182, %c0_183, %c0_184] : memref<18x640x128xbf16, #tpu.memory_space<vmem>>, vector<1x640x128xbf16>
    %370 = vector.shape_cast %369 : vector<1x640x128xbf16> to vector<640x128xbf16>
    %cst_185 = arith.constant dense<0.000000e+00> : vector<2x128xf32>
    %371 = tpu.matmul %368, %370, %cst_185 {dimension_numbers = #tpu.dot_dimension_numbers<[1], [0], [0], [1], [0, 0, 1, 1], [], []>} : vector<2x640xbf16>, vector<640x128xbf16>, vector<2x128xf32> -> vector<2x128xf32>
    %372 = arith.addf %366, %371 : vector<2x128xf32>
    %c16_186 = arith.constant 16 : index
    %c0_187 = arith.constant 0 : index
    %373 = vector.load %arg11[%c16_186, %c0_187] : memref<36x640xf32, #tpu.memory_space<vmem>>, vector<2x640xf32>
    %374 = arith.truncf %373 : vector<2x640xf32> to vector<2x640xbf16>
    %c8_188 = arith.constant 8 : index
    %c0_189 = arith.constant 0 : index
    %c0_190 = arith.constant 0 : index
    %375 = vector.load %arg6[%c8_188, %c0_189, %c0_190] : memref<18x640x128xbf16, #tpu.memory_space<vmem>>, vector<1x640x128xbf16>
    %376 = vector.shape_cast %375 : vector<1x640x128xbf16> to vector<640x128xbf16>
    %cst_191 = arith.constant dense<0.000000e+00> : vector<2x128xf32>
    %377 = tpu.matmul %374, %376, %cst_191 {dimension_numbers = #tpu.dot_dimension_numbers<[1], [0], [0], [1], [0, 0, 1, 1], [], []>} : vector<2x640xbf16>, vector<640x128xbf16>, vector<2x128xf32> -> vector<2x128xf32>
    %378 = arith.addf %372, %377 : vector<2x128xf32>
    %c18_192 = arith.constant 18 : index
    %c0_193 = arith.constant 0 : index
    %379 = vector.load %arg11[%c18_192, %c0_193] : memref<36x640xf32, #tpu.memory_space<vmem>>, vector<2x640xf32>
    %380 = arith.truncf %379 : vector<2x640xf32> to vector<2x640xbf16>
    %c9_194 = arith.constant 9 : index
    %c0_195 = arith.constant 0 : index
    %c0_196 = arith.constant 0 : index
    %381 = vector.load %arg6[%c9_194, %c0_195, %c0_196] : memref<18x640x128xbf16, #tpu.memory_space<vmem>>, vector<1x640x128xbf16>
    %382 = vector.shape_cast %381 : vector<1x640x128xbf16> to vector<640x128xbf16>
    %cst_197 = arith.constant dense<0.000000e+00> : vector<2x128xf32>
    %383 = tpu.matmul %380, %382, %cst_197 {dimension_numbers = #tpu.dot_dimension_numbers<[1], [0], [0], [1], [0, 0, 1, 1], [], []>} : vector<2x640xbf16>, vector<640x128xbf16>, vector<2x128xf32> -> vector<2x128xf32>
    %384 = arith.addf %378, %383 : vector<2x128xf32>
    %c20_198 = arith.constant 20 : index
    %c0_199 = arith.constant 0 : index
    %385 = vector.load %arg11[%c20_198, %c0_199] : memref<36x640xf32, #tpu.memory_space<vmem>>, vector<2x640xf32>
    %386 = arith.truncf %385 : vector<2x640xf32> to vector<2x640xbf16>
    %c10_200 = arith.constant 10 : index
    %c0_201 = arith.constant 0 : index
    %c0_202 = arith.constant 0 : index
    %387 = vector.load %arg6[%c10_200, %c0_201, %c0_202] : memref<18x640x128xbf16, #tpu.memory_space<vmem>>, vector<1x640x128xbf16>
    %388 = vector.shape_cast %387 : vector<1x640x128xbf16> to vector<640x128xbf16>
    %cst_203 = arith.constant dense<0.000000e+00> : vector<2x128xf32>
    %389 = tpu.matmul %386, %388, %cst_203 {dimension_numbers = #tpu.dot_dimension_numbers<[1], [0], [0], [1], [0, 0, 1, 1], [], []>} : vector<2x640xbf16>, vector<640x128xbf16>, vector<2x128xf32> -> vector<2x128xf32>
    %390 = arith.addf %384, %389 : vector<2x128xf32>
    %c22_204 = arith.constant 22 : index
    %c0_205 = arith.constant 0 : index
    %391 = vector.load %arg11[%c22_204, %c0_205] : memref<36x640xf32, #tpu.memory_space<vmem>>, vector<2x640xf32>
    %392 = arith.truncf %391 : vector<2x640xf32> to vector<2x640xbf16>
    %c11_206 = arith.constant 11 : index
    %c0_207 = arith.constant 0 : index
    %c0_208 = arith.constant 0 : index
    %393 = vector.load %arg6[%c11_206, %c0_207, %c0_208] : memref<18x640x128xbf16, #tpu.memory_space<vmem>>, vector<1x640x128xbf16>
    %394 = vector.shape_cast %393 : vector<1x640x128xbf16> to vector<640x128xbf16>
    %cst_209 = arith.constant dense<0.000000e+00> : vector<2x128xf32>
    %395 = tpu.matmul %392, %394, %cst_209 {dimension_numbers = #tpu.dot_dimension_numbers<[1], [0], [0], [1], [0, 0, 1, 1], [], []>} : vector<2x640xbf16>, vector<640x128xbf16>, vector<2x128xf32> -> vector<2x128xf32>
    %396 = arith.addf %390, %395 : vector<2x128xf32>
    %c24_210 = arith.constant 24 : index
    %c0_211 = arith.constant 0 : index
    %397 = vector.load %arg11[%c24_210, %c0_211] : memref<36x640xf32, #tpu.memory_space<vmem>>, vector<2x640xf32>
    %398 = arith.truncf %397 : vector<2x640xf32> to vector<2x640xbf16>
    %c12_212 = arith.constant 12 : index
    %c0_213 = arith.constant 0 : index
    %c0_214 = arith.constant 0 : index
    %399 = vector.load %arg6[%c12_212, %c0_213, %c0_214] : memref<18x640x128xbf16, #tpu.memory_space<vmem>>, vector<1x640x128xbf16>
    %400 = vector.shape_cast %399 : vector<1x640x128xbf16> to vector<640x128xbf16>
    %cst_215 = arith.constant dense<0.000000e+00> : vector<2x128xf32>
    %401 = tpu.matmul %398, %400, %cst_215 {dimension_numbers = #tpu.dot_dimension_numbers<[1], [0], [0], [1], [0, 0, 1, 1], [], []>} : vector<2x640xbf16>, vector<640x128xbf16>, vector<2x128xf32> -> vector<2x128xf32>
    %402 = arith.addf %396, %401 : vector<2x128xf32>
    %c26_216 = arith.constant 26 : index
    %c0_217 = arith.constant 0 : index
    %403 = vector.load %arg11[%c26_216, %c0_217] : memref<36x640xf32, #tpu.memory_space<vmem>>, vector<2x640xf32>
    %404 = arith.truncf %403 : vector<2x640xf32> to vector<2x640xbf16>
    %c13_218 = arith.constant 13 : index
    %c0_219 = arith.constant 0 : index
    %c0_220 = arith.constant 0 : index
    %405 = vector.load %arg6[%c13_218, %c0_219, %c0_220] : memref<18x640x128xbf16, #tpu.memory_space<vmem>>, vector<1x640x128xbf16>
    %406 = vector.shape_cast %405 : vector<1x640x128xbf16> to vector<640x128xbf16>
    %cst_221 = arith.constant dense<0.000000e+00> : vector<2x128xf32>
    %407 = tpu.matmul %404, %406, %cst_221 {dimension_numbers = #tpu.dot_dimension_numbers<[1], [0], [0], [1], [0, 0, 1, 1], [], []>} : vector<2x640xbf16>, vector<640x128xbf16>, vector<2x128xf32> -> vector<2x128xf32>
    %408 = arith.addf %402, %407 : vector<2x128xf32>
    %c28_222 = arith.constant 28 : index
    %c0_223 = arith.constant 0 : index
    %409 = vector.load %arg11[%c28_222, %c0_223] : memref<36x640xf32, #tpu.memory_space<vmem>>, vector<2x640xf32>
    %410 = arith.truncf %409 : vector<2x640xf32> to vector<2x640xbf16>
    %c14_224 = arith.constant 14 : index
    %c0_225 = arith.constant 0 : index
    %c0_226 = arith.constant 0 : index
    %411 = vector.load %arg6[%c14_224, %c0_225, %c0_226] : memref<18x640x128xbf16, #tpu.memory_space<vmem>>, vector<1x640x128xbf16>
    %412 = vector.shape_cast %411 : vector<1x640x128xbf16> to vector<640x128xbf16>
    %cst_227 = arith.constant dense<0.000000e+00> : vector<2x128xf32>
    %413 = tpu.matmul %410, %412, %cst_227 {dimension_numbers = #tpu.dot_dimension_numbers<[1], [0], [0], [1], [0, 0, 1, 1], [], []>} : vector<2x640xbf16>, vector<640x128xbf16>, vector<2x128xf32> -> vector<2x128xf32>
    %414 = arith.addf %408, %413 : vector<2x128xf32>
    %c30_228 = arith.constant 30 : index
    %c0_229 = arith.constant 0 : index
    %415 = vector.load %arg11[%c30_228, %c0_229] : memref<36x640xf32, #tpu.memory_space<vmem>>, vector<2x640xf32>
    %416 = arith.truncf %415 : vector<2x640xf32> to vector<2x640xbf16>
    %c15_230 = arith.constant 15 : index
    %c0_231 = arith.constant 0 : index
    %c0_232 = arith.constant 0 : index
    %417 = vector.load %arg6[%c15_230, %c0_231, %c0_232] : memref<18x640x128xbf16, #tpu.memory_space<vmem>>, vector<1x640x128xbf16>
    %418 = vector.shape_cast %417 : vector<1x640x128xbf16> to vector<640x128xbf16>
    %cst_233 = arith.constant dense<0.000000e+00> : vector<2x128xf32>
    %419 = tpu.matmul %416, %418, %cst_233 {dimension_numbers = #tpu.dot_dimension_numbers<[1], [0], [0], [1], [0, 0, 1, 1], [], []>} : vector<2x640xbf16>, vector<640x128xbf16>, vector<2x128xf32> -> vector<2x128xf32>
    %420 = arith.addf %414, %419 : vector<2x128xf32>
    %c32_234 = arith.constant 32 : index
    %c0_235 = arith.constant 0 : index
    %421 = vector.load %arg11[%c32_234, %c0_235] : memref<36x640xf32, #tpu.memory_space<vmem>>, vector<2x640xf32>
    %422 = arith.truncf %421 : vector<2x640xf32> to vector<2x640xbf16>
    %c16_236 = arith.constant 16 : index
    %c0_237 = arith.constant 0 : index
    %c0_238 = arith.constant 0 : index
    %423 = vector.load %arg6[%c16_236, %c0_237, %c0_238] : memref<18x640x128xbf16, #tpu.memory_space<vmem>>, vector<1x640x128xbf16>
    %424 = vector.shape_cast %423 : vector<1x640x128xbf16> to vector<640x128xbf16>
    %cst_239 = arith.constant dense<0.000000e+00> : vector<2x128xf32>
    %425 = tpu.matmul %422, %424, %cst_239 {dimension_numbers = #tpu.dot_dimension_numbers<[1], [0], [0], [1], [0, 0, 1, 1], [], []>} : vector<2x640xbf16>, vector<640x128xbf16>, vector<2x128xf32> -> vector<2x128xf32>
    %426 = arith.addf %420, %425 : vector<2x128xf32>
    %c34_240 = arith.constant 34 : index
    %c0_241 = arith.constant 0 : index
    %427 = vector.load %arg11[%c34_240, %c0_241] : memref<36x640xf32, #tpu.memory_space<vmem>>, vector<2x640xf32>
    %428 = arith.truncf %427 : vector<2x640xf32> to vector<2x640xbf16>
    %c17_242 = arith.constant 17 : index
    %c0_243 = arith.constant 0 : index
    %c0_244 = arith.constant 0 : index
    %429 = vector.load %arg6[%c17_242, %c0_243, %c0_244] : memref<18x640x128xbf16, #tpu.memory_space<vmem>>, vector<1x640x128xbf16>
    %430 = vector.shape_cast %429 : vector<1x640x128xbf16> to vector<640x128xbf16>
    %cst_245 = arith.constant dense<0.000000e+00> : vector<2x128xf32>
    %431 = tpu.matmul %428, %430, %cst_245 {dimension_numbers = #tpu.dot_dimension_numbers<[1], [0], [0], [1], [0, 0, 1, 1], [], []>} : vector<2x640xbf16>, vector<640x128xbf16>, vector<2x128xf32> -> vector<2x128xf32>
    %432 = arith.addf %426, %431 : vector<2x128xf32>
    %c0_246 = arith.constant 0 : index
    %c0_247 = arith.constant 0 : index
    %433 = vector.load %arg7[%c0_246, %c0_247] : memref<1x128xf32, #tpu.memory_space<vmem>>, vector<1x128xf32>
    %434 = vector.broadcast %433 : vector<1x128xf32> to vector<2x128xf32>
    %435 = arith.addf %432, %434 : vector<2x128xf32>
    %cst_248 = arith.constant dense<0xFF800000> : vector<2xf32>
    %436 = vector.multi_reduction <maximumf>, %435, %cst_248 [1] : vector<2x128xf32> to vector<2xf32>
    %437 = vector.shape_cast %436 : vector<2xf32> to vector<2x1xf32>
    %438 = vector.broadcast %437 : vector<2x1xf32> to vector<2x128xf32>
    %439 = arith.subf %435, %438 : vector<2x128xf32>
    %440 = math.exp %439 : vector<2x128xf32>
    %cst_249 = arith.constant dense<0.000000e+00> : vector<2xf32>
    %441 = vector.multi_reduction <add>, %440, %cst_249 [1] : vector<2x128xf32> to vector<2xf32>
    %442 = vector.shape_cast %441 : vector<2xf32> to vector<2x1xf32>
    %443 = tpu.reciprocal %442 {approx = true} : vector<2x1xf32> -> vector<2x1xf32>
    %444 = vector.broadcast %443 : vector<2x1xf32> to vector<2x128xf32>
    %445 = arith.mulf %440, %444 : vector<2x128xf32>
    %c0_250 = arith.constant 0 : index
    %c0_251 = arith.constant 0 : index
    %446 = vector.load %arg8[%c0_250, %c0_251] : memref<2x128xf32, #tpu.memory_space<vmem>>, vector<2x128xf32>
    tpu.vector_store %arg8[%c0_250, %c0_251], %445 {strides = array<i32>} : memref<2x128xf32, #tpu.memory_space<vmem>>, vector<2x128xf32>,
    return
  }
  func.func @transform_0(%arg0: i32) -> (i32, i32) {
    %c0_i32 = arith.constant 0 : i32
    %c0_i32_0 = arith.constant 0 : i32
    return %arg0, %c0_i32 : i32, i32
  }
  func.func @transform_1(%arg0: i32) -> (i32, i32) {
    %c0_i32 = arith.constant 0 : i32
    %c0_i32_0 = arith.constant 0 : i32
    %c0_i32_1 = arith.constant 0 : i32
    return %c0_i32, %c0_i32_0 : i32, i32
  }
  func.func @transform_2(%arg0: i32) -> (i32, i32) {
    %c0_i32 = arith.constant 0 : i32
    %c0_i32_0 = arith.constant 0 : i32
    %c0_i32_1 = arith.constant 0 : i32
    return %c0_i32, %c0_i32_0 : i32, i32
  }
  func.func @transform_3(%arg0: i32) -> (i32, i32) {
    %c0_i32 = arith.constant 0 : i32
    %c0_i32_0 = arith.constant 0 : i32
    %c0_i32_1 = arith.constant 0 : i32
    return %c0_i32, %c0_i32_0 : i32, i32
  }
  func.func @transform_4(%arg0: i32) -> (i32, i32) {
    %c0_i32 = arith.constant 0 : i32
    %c0_i32_0 = arith.constant 0 : i32
    %c0_i32_1 = arith.constant 0 : i32
    return %c0_i32, %c0_i32_0 : i32, i32
  }
  func.func @transform_5(%arg0: i32) -> (i32, i32, i32) {
    %c0_i32 = arith.constant 0 : i32
    %c0_i32_0 = arith.constant 0 : i32
    %c0_i32_1 = arith.constant 0 : i32
    %c0_i32_2 = arith.constant 0 : i32
    return %c0_i32, %c0_i32_0, %c0_i32_1 : i32, i32, i32
  }
  func.func @transform_6(%arg0: i32) -> (i32, i32) {
    %c0_i32 = arith.constant 0 : i32
    %c0_i32_0 = arith.constant 0 : i32
    %c0_i32_1 = arith.constant 0 : i32
    return %c0_i32, %c0_i32_0 : i32, i32
  }
  func.func @transform_7(%arg0: i32) -> (i32, i32) {
    %c0_i32 = arith.constant 0 : i32
    %c0_i32_0 = arith.constant 0 : i32
    return %arg0, %c0_i32 : i32, i32
  }
}

</mosaic_0001>

<bundles_post_ra>
// kernel: tile.8
= control target key start
LH: loop header
LB: loop body
LE: loop exit
PB: predicated region body
PF: predicated region fallthrough
CT: control target
= control target key end

     0   :  { %s22_s0 = inlined_call_operand.vmem [shape: f32[24], index: 0, kind: input, shape index: {}]   ;;  %s23_s1 = inlined_call_operand.vmem [shape: f32[2,24], index: 1, kind: output, shape index: {}]  }
   0x1   :  { %v4_v0 = vld [vmem:[%s22_s0] ss:$0 sm:$0xff] }
   0x2   :  { %5 = vst [vmem:[%s23_s1] sm:$0x3] %v4_v0 }

// kernel: tile.0
= control target key start
LH: loop header
LB: loop body
LE: loop exit
PB: predicated region body
PF: predicated region fallthrough
CT: control target
= control target key end

     0   :  { %s226_s8 = smov 125   ;;  %s227_s9 = smov 126   ;;  %vm7_vm0 = vcmask 7168   ;;  %s357_s0 = inlined_call_operand.vmem [shape: f32[2,24], index: 0, kind: input, shape index: {}]   ;;  %s358_s1 = inlined_call_operand.vmem [shape: f32[48,1], index: 1, kind: output, shape index: {}]  }
   0x1   :  { %v4_v0 = vld [vmem:[%s357_s0] sm:$0x3]  ;;  %s225_s0 = smov 127   ;;  %s228_s10 = smov 124  }
   0x2   :  { %5 = vst [vmem:[#allocation0] sm:$0x3] %v4_v0  ;;  %s52_s11 = smov 3  ;;  %s229_s12 = smov 123  }
   0x3   :  { %s230_s13 = smov 122   ;;  %s60_s14 = smov 3 }
   0x4   :  { %s68_s15 = smov 3  ;;  %s231_s16 = smov 121  }
   0x5   :  { %s232_s17 = smov 120   ;;  %s76_s18 = smov 3 }
   0x6   :  { %s84_s19 = smov 3  ;;  %s233_s20 = smov 119  }
   0x7   :  { %s234_s21 = smov 118   ;;  %s92_s22 = smov 3 }
   0x8   :  { %s100_s23 = smov 3  ;;  %s235_s24 = smov 117  }
   0x9   :  { %v9_v1 = vld [vmem:[#allocation0] sm:$0x3]   ;;  %s236_s25 = smov 116   ;;  %s108_s26 = smov 3 }
   0xa   :  { %v21_v2 = vld [vmem:[#allocation0] sm:$0x3]   ;;  %10 = vrot.lane.b32.xlu0 %v9_v1, %s225_s0  ;;  %s116_s27 = smov 3  ;;  %s237_s28 = smov 115  }
   0xb   :  { %22 = vrot.lane.b32.xlu1 %v21_v2, %s226_s8  ;;  %v15_v3 = vld [vmem:[#allocation0] sm:$0x3]   ;;  %s238_s29 = smov 114   ;;  %s124_s30 = smov 3 }
   0xc   :  { %v27_v4 = vld [vmem:[#allocation0] sm:$0x3]   ;;  %s132_s2 = smov 3  ;;  %s239_s3 = smov 113  }
   0xd   :  { %v33_v5 = vld [vmem:[#allocation0] sm:$0x3]   ;;  %s240_s4 = smov 112   ;;  %s140_s5 = smov 3 }
   0xe   :  { %16 = vrot.lane.b32.xlu0 %v15_v3, %s227_s9  ;;  %v39_v6 = vld [vmem:[#allocation0] sm:$0x3]   ;;  %s148_s6 = smov 3  ;;  %s241_s8 = smov 111  }
   0xf   :  { %28 = vrot.lane.b32.xlu1 %v27_v4, %s228_s10  ;;  %v45_v7 = vld [vmem:[#allocation0] sm:$0x3]   ;;  %s242_s9 = smov 110   ;;  %s156_s10 = smov 3 }
  0x10   :  { %v53_v8 = vld [vmem:[#allocation0 + $0x1] ss:$-1 sm:%s52_s11]   ;;  %s164_s11 = smov 3 }
  0x11   :  { %v61_v9 = vld [vmem:[#allocation0 + $0x1] ss:$-1 sm:%s60_s14]   ;;  %s172_s14 = smov 3 }
  0x12   :  { %34 = vrot.lane.b32.xlu0 %v33_v5, %s229_s12  ;;  %v69_v10 = vld [vmem:[#allocation0 + $0x1] ss:$-1 sm:%s68_s15]   ;;  %s243_s12 = smov 109   ;;  %s245_s15 = smov 107  }
  0x13   :  { %40 = vrot.lane.b32.xlu1 %v39_v6, %s230_s13  ;;  %v77_v11 = vld [vmem:[#allocation0 + $0x1] ss:$-1 sm:%s76_s18]   ;;  %s244_s13 = smov 108  }
  0x14   :  { %v85_v12 = vld [vmem:[#allocation0 + $0x1] ss:$-1 sm:%s84_s19]  }
  0x15   :  { %v93_v13 = vld [vmem:[#allocation0 + $0x1] ss:$-1 sm:%s92_s22]  }
  0x16   :  { %46 = vrot.lane.b32.xlu0 %v45_v7, %s231_s16  ;;  %v101_v14 = vld [vmem:[#allocation0 + $0x1] ss:$-1 sm:%s100_s23]   ;;  %s246_s16 = smov 106  }
  0x17   :  { %54 = vrot.lane.b32.xlu1 %v53_v8, %s232_s17  ;;  %v109_v15 = vld [vmem:[#allocation0 + $0x1] ss:$-1 sm:%s108_s26]   ;;  %s247_s17 = smov 105  }
  0x18   :  { %v117_v16 = vld [vmem:[#allocation0 + $0x1] ss:$-1 sm:%s116_s27]  }
  0x19   :  { %v125_v17 = vld [vmem:[#allocation0 + $0x1] ss:$-1 sm:%s124_s30]  }
  0x1a   :  { %62 = vrot.lane.b32.xlu0 %v61_v9, %s233_s20  ;;  %v133_v18 = vld [vmem:[#allocation0 + $0x1] ss:$-1 sm:%s132_s2]  }
  0x1b   :  { %70 = vrot.lane.b32.xlu1 %v69_v10, %s234_s21  ;;  %v6_v19 = vld [vmem:[#allocation0] sm:$0x3]  }
  0x1c   :  { %8 = vst.msk [vmem:[%s358_s1] ss:$24 sm:$0x3] %vm7_vm0, %v6_v19   ;;  %v141_v20 = vld [vmem:[#allocation0 + $0x1] ss:$-1 sm:%s140_s5]  }
  0x1d   :  { %v149_v21 = vld [vmem:[#allocation0 + $0x1] ss:$-1 sm:%s148_s6]  }
  0x1e   :  { %78 = vrot.lane.b32.xlu0 %v77_v11, %s235_s24  ;;  %v157_v22 = vld [vmem:[#allocation0 + $0x1] ss:$-1 sm:%s156_s10]  }
  0x1f   :  { %86 = vrot.lane.b32.xlu1 %v85_v12, %s236_s25  ;;  %v165_v23 = vld [vmem:[#allocation0 + $0x1] ss:$-1 sm:%s164_s11]  }
  0x20   :  { %v173_v24 = vld [vmem:[#allocation0 + $0x1] ss:$-1 sm:%s172_s14]  }
  0x22   :  { %94 = vrot.lane.b32.xlu0 %v93_v13, %s237_s28 }
  0x23   :  { %102 = vrot.lane.b32.xlu1 %v101_v14, %s238_s29 }
  0x26   :  { %110 = vrot.lane.b32.xlu0 %v109_v15, %s239_s3 }
  0x27   :  { %118 = vrot.lane.b32.xlu1 %v117_v16, %s240_s4 }
  0x2a   :  { %126 = vrot.lane.b32.xlu0 %v125_v17, %s241_s8 }
  0x2b   :  { %134 = vrot.lane.b32.xlu1 %v133_v18, %s242_s9 }
  0x2e   :  { %142 = vrot.lane.b32.xlu0 %v141_v20, %s243_s12 }
  0x2f   :  { %150 = vrot.lane.b32.xlu1 %v149_v21, %s244_s13 }
  0x32   :  { %158 = vrot.lane.b32.xlu0 %v157_v22, %s245_s15 }
  0x33   :  { %166 = vrot.lane.b32.xlu1 %v165_v23, %s246_s16 }
  0x36   :  { %174 = vrot.lane.b32.xlu0 %v173_v24, %s247_s17 }
  0x7c   :  { %v11_v25 = vpop.permute.xlu0 %10  }
  0x7d   :  { %v23_v26 = vpop.permute.xlu1 %22   ;;  %179 = vst.msk [vmem:[%s358_s1 + $0x1] ss:$24 sm:$0x3] %vm7_vm0, %v11_v25  }
  0x7e   :  { %181 = vst.msk [vmem:[%s358_s1 + $0x3] ss:$24 sm:$0x3] %vm7_vm0, %v23_v26  }
  0x80   :  { %v17_v27 = vpop.permute.xlu0 %16  }
  0x81   :  { %v29_v28 = vpop.permute.xlu1 %28   ;;  %180 = vst.msk [vmem:[%s358_s1 + $0x2] ss:$24 sm:$0x3] %vm7_vm0, %v17_v27  }
  0x82   :  { %182 = vst.msk [vmem:[%s358_s1 + $0x4] ss:$24 sm:$0x3] %vm7_vm0, %v29_v28  }
  0x84   :  { %v35_v29 = vpop.permute.xlu0 %34  }
  0x85   :  { %v41_v30 = vpop.permute.xlu1 %40   ;;  %183 = vst.msk [vmem:[%s358_s1 + $0x5] ss:$24 sm:$0x3] %vm7_vm0, %v35_v29  }
  0x86   :  { %184 = vst.msk [vmem:[%s358_s1 + $0x6] ss:$24 sm:$0x3] %vm7_vm0, %v41_v30  }
  0x88   :  { %v47_v31 = vpop.permute.xlu0 %46  }
  0x89   :  { %v55_v32 = vpop.permute.xlu1 %54   ;;  %185 = vst.msk [vmem:[%s358_s1 + $0x7] ss:$24 sm:$0x3] %vm7_vm0, %v47_v31  }
  0x8a   :  { %186 = vst.msk [vmem:[%s358_s1 + $0x20] ss:$-24 sm:$0x3] %vm7_vm0, %v55_v32  }
  0x8c   :  { %v63_v33 = vpop.permute.xlu0 %62  }
  0x8d   :  { %v71_v34 = vpop.permute.xlu1 %70   ;;  %187 = vst.msk [vmem:[%s358_s1 + $0x21] ss:$-24 sm:$0x3] %vm7_vm0, %v63_v33  }
  0x8e   :  { %188 = vst.msk [vmem:[%s358_s1 + $0x22] ss:$-24 sm:$0x3] %vm7_vm0, %v71_v34  }
  0x90   :  { %v79_v35 = vpop.permute.xlu0 %78  }
  0x91   :  { %v87_v36 = vpop.permute.xlu1 %86   ;;  %189 = vst.msk [vmem:[%s358_s1 + $0x23] ss:$-24 sm:$0x3] %vm7_vm0, %v79_v35  }
  0x92   :  { %190 = vst.msk [vmem:[%s358_s1 + $0x24] ss:$-24 sm:$0x3] %vm7_vm0, %v87_v36  }
  0x94   :  { %v95_v37 = vpop.permute.xlu0 %94  }
  0x95   :  { %v103_v38 = vpop.permute.xlu1 %102   ;;  %191 = vst.msk [vmem:[%s358_s1 + $0x25] ss:$-24 sm:$0x3] %vm7_vm0, %v95_v37  }
  0x96   :  { %192 = vst.msk [vmem:[%s358_s1 + $0x26] ss:$-24 sm:$0x3] %vm7_vm0, %v103_v38  }
  0x98   :  { %v111_v39 = vpop.permute.xlu0 %110  }
  0x99   :  { %v119_v40 = vpop.permute.xlu1 %118   ;;  %193 = vst.msk [vmem:[%s358_s1 + $0x27] ss:$-24 sm:$0x3] %vm7_vm0, %v111_v39  }
  0x9a   :  { %194 = vst.msk [vmem:[%s358_s1 + $0x28] ss:$-24 sm:$0x3] %vm7_vm0, %v119_v40  }
  0x9c   :  { %v127_v41 = vpop.permute.xlu0 %126  }
  0x9d   :  { %v135_v42 = vpop.permute.xlu1 %134   ;;  %195 = vst.msk [vmem:[%s358_s1 + $0x29] ss:$-24 sm:$0x3] %vm7_vm0, %v127_v41  }
  0x9e   :  { %196 = vst.msk [vmem:[%s358_s1 + $0x2a] ss:$-24 sm:$0x3] %vm7_vm0, %v135_v42  }
  0xa0   :  { %v143_v43 = vpop.permute.xlu0 %142  }
  0xa1   :  { %v151_v44 = vpop.permute.xlu1 %150   ;;  %197 = vst.msk [vmem:[%s358_s1 + $0x2b] ss:$-24 sm:$0x3] %vm7_vm0, %v143_v43  }
  0xa2   :  { %198 = vst.msk [vmem:[%s358_s1 + $0x2c] ss:$-24 sm:$0x3] %vm7_vm0, %v151_v44  }
  0xa4   :  { %v159_v45 = vpop.permute.xlu0 %158  }
  0xa5   :  { %v167_v46 = vpop.permute.xlu1 %166   ;;  %199 = vst.msk [vmem:[%s358_s1 + $0x2d] ss:$-24 sm:$0x3] %vm7_vm0, %v159_v45  }
  0xa6   :  { %200 = vst.msk [vmem:[%s358_s1 + $0x2e] ss:$-24 sm:$0x3] %vm7_vm0, %v167_v46  }
  0xa8   :  { %v175_v47 = vpop.permute.xlu0 %174  }
  0xa9   :  { %201 = vst.msk [vmem:[%s358_s1 + $0x2f] ss:$-24 sm:$0x3] %vm7_vm0, %v175_v47  }

// kernel: ccnn_forward.1
= control target key start
LH: loop header
LB: loop body
LE: loop exit
PB: predicated region body
PF: predicated region fallthrough
CT: control target
= control target key end

     0   :  { %v20010_v2 = vmov 0   ;;  %v20008_v36 = vmov 0.0   ;;  %vm15829_vm0 = vmmov 0   ;;  %s15831_s28 = smov 126   ;;  %s15832_s29 = smov 125   ;;  %vm654_vm1 = vcmask 1043456   ;;  %s20000_s0 = inlined_call_operand.vmem [shape: bf16[48,128], index: 0, kind: input, shape index: {}]   ;;  %s20001_s1 = inlined_call_operand.vmem [shape: bf16[128,640], index: 1, kind: input, shape index: {}]   ;;  %s20002_s2 = inlined_call_operand.vmem [shape: f32[48,1], index: 2, kind: input, shape index: {}]   ;;  %s20003_s3 = inlined_call_operand.vmem [shape: bf16[24,240], index: 3, kind: input, shape index: {}]   ;;  %s20004_s4 = inlined_call_operand.vmem [shape: f32[24,1], index: 4, kind: input, shape index: {}]   ;;  %s20005_s5 = inlined_call_operand.vmem [shape: bf16[18,640,128], index: 5, kind: input, shape index: {}]   ;;  %s20006_s6 = inlined_call_operand.vmem [shape: f32[1,128], index: 6, kind: input, shape index: {}]   ;;  %s20007_s7 = inlined_call_operand.hbm [shape: f32[2,128], index: 7, kind: output, shape index: {}]  }
   0x1   :  { %v14980_v0 = vld [vmem:[%s20001_s1 + $0x4] ss:$20 sps:$4 sm:$0xff]   ;;  %v14982_v1 = vld [vmem:[%s20001_s1 + $0xc] ss:$20 sps:$4 sm:$0xff]   ;;  %376 = vmatprep.mubr.bf16.mxu0 %v20010_v2  ;;  %439 = vmatprep.mubr.bf16.mxu1 %v20010_v2  ;;  %v14985_v4 = vld [vmem:[%s20001_s1 + $0x8] ss:$20 sps:$4 sm:$0xff]  }
   0x2   :  { %344 = vmatprep.subr.bf16.mxu0 %v14980_v0  ;;  %v14984_v3 = vld [vmem:[%s20001_s1] ss:$20 sps:$4 sm:$0xff]   ;;  %14978 = vset.pattern.permute.xlu0 %v20010_v2  ;;  %v14990_v7 = vld [vmem:[%s20001_s1 + $0x28] ss:$20 sps:$4 sm:$0xff]   ;;  %v14991_v8 = vld [vmem:[%s20001_s1 + $0x30] ss:$20 sps:$4 sm:$0xff]  }
   0x3   :  { %407 = vmatprep.subr.bf16.mxu1 %v14982_v1  ;;  %v14986_v5 = vld [vmem:[%s20001_s1 + $0x2c] ss:$20 sps:$4 sm:$0xff]   ;;  %14979 = vset.pattern.permute.xlu1 %v20010_v2  ;;  %v14988_v6 = vld [vmem:[%s20001_s1 + $0x34] ss:$20 sps:$4 sm:$0xff]   ;;  %v14994_v10 = vld [vmem:[%s20001_s1 + $0x5c] ss:$20 sps:$4 sm:$0xff]  }
   0x4   :  { %345 = vmatpush1.bf16.msra.mxu0 %v14984_v3  ;;  %408 = vmatpush1.bf16.msra.mxu1 %v14985_v4  ;;  %v14992_v9 = vld [vmem:[%s20001_s1 + $0x54] ss:$20 sps:$4 sm:$0xff]   ;;  %v14996_v11 = vld [vmem:[%s20001_s1 + $0x50] ss:$20 sps:$4 sm:$0xff]   ;;  %v14997_v12 = vld [vmem:[%s20001_s1 + $0x58] ss:$20 sps:$4 sm:$0xff]  }
   0x5   :  { %346 = vmatprep.subr.bf16.mxu0 %v14986_v5  ;;  %409 = vmatprep.subr.bf16.mxu1 %v14988_v6  ;;  %v14998_v13 = vld [vmem:[%s20001_s1 + $0x7c] ss:$20 sps:$4 sm:$0xff]   ;;  %v15000_v14 = vld [vmem:[%s20001_s1 + $0x84] ss:$20 sps:$4 sm:$0xff]   ;;  %v15003_v16 = vld [vmem:[%s20001_s1 + $0x80] ss:$20 sps:$4 sm:$0xff]  }
   0x6   :  { %v15002_v15 = vld [vmem:[%s20001_s1 + $0x78] ss:$20 sps:$4 sm:$0xff]   ;;  %v15008_v19 = vld [vmem:[%s20001_s1 + $0xa0] ss:$20 sps:$4 sm:$0xff]   ;;  %v15009_v20 = vld [vmem:[%s20001_s1 + $0xa8] ss:$20 sps:$4 sm:$0xff]  }
   0x7   :  { %v15004_v17 = vld [vmem:[%s20001_s1 + $0xa4] ss:$20 sps:$4 sm:$0xff]   ;;  %v15006_v18 = vld [vmem:[%s20001_s1 + $0xac] ss:$20 sps:$4 sm:$0xff]   ;;  %v15012_v22 = vld [vmem:[%s20001_s1 + $0xd4] ss:$20 sps:$4 sm:$0xff]  }
   0x8   :  { %347 = vmatpush1.bf16.msra.mxu0 %v14990_v7  ;;  %410 = vmatpush1.bf16.msra.mxu1 %v14991_v8  ;;  %v15010_v21 = vld [vmem:[%s20001_s1 + $0xcc] ss:$20 sps:$4 sm:$0xff]   ;;  %v15014_v23 = vld [vmem:[%s20001_s1 + $0xc8] ss:$20 sps:$4 sm:$0xff]   ;;  %v15015_v24 = vld [vmem:[%s20001_s1 + $0xd0] ss:$20 sps:$4 sm:$0xff]  }
   0x9   :  { %348 = vmatprep.subr.bf16.mxu0 %v14992_v9  ;;  %411 = vmatprep.subr.bf16.mxu1 %v14994_v10  ;;  %v15016_v25 = vld [vmem:[%s20001_s1 + $0xf4] ss:$20 sps:$4 sm:$0xff]   ;;  %v15018_v26 = vld [vmem:[%s20001_s1 + $0xfc] ss:$20 sps:$4 sm:$0xff]   ;;  %v15021_v28 = vld [vmem:[%s20001_s1 + $0xf8] ss:$20 sps:$4 sm:$0xff]  }
   0xa   :  { %v15020_v27 = vld [vmem:[%s20001_s1 + $0xf0] ss:$20 sps:$4 sm:$0xff]   ;;  %v15026_v31 = vld [vmem:[%s20001_s1 + $0x118] ss:$20 sps:$4 sm:$0xff]   ;;  %v15027_v32 = vld [vmem:[%s20001_s1 + $0x120] ss:$20 sps:$4 sm:$0xff]  }
   0xb   :  { %v15022_v29 = vld [vmem:[%s20001_s1 + $0x11c] ss:$20 sps:$4 sm:$0xff]   ;;  %v15024_v30 = vld [vmem:[%s20001_s1 + $0x124] ss:$20 sps:$4 sm:$0xff]   ;;  %v83_v37 = vld [vmem:[%s20002_s2 + $0x8] sm:$0xff]  ;;  %s15833_s30 = smov 124  }
   0xc   :  { %349 = vmatpush1.bf16.msra.mxu0 %v14996_v11  ;;  %412 = vmatpush1.bf16.msra.mxu1 %v14997_v12  ;;  %v15028_v33 = vld [vmem:[%s20000_s0] sm:$0xff]   ;;  %v84_v38 = vld [vmem:[%s20002_s2 + $0x10] sm:$0xff]  ;;  %v15030_v39 = vld [vmem:[%s20001_s1 + $0x38] ss:$20 sps:$4 sm:$0xff]   ;;  %s15834_s8 = smov 123   ;;  %s15835_s9 = smov 122  }
   0xd   :  { %350 = vmatprep.subr.bf16.mxu0 %v14998_v13  ;;  %413 = vmatprep.subr.bf16.mxu1 %v15000_v14  ;;  %v15029_v34 = vld [vmem:[%s20001_s1 + $0x10] ss:$20 sps:$4 sm:$0xff]   ;;  %v85_v40 = vld [vmem:[%s20002_s2 + $0x18] sm:$0xff]  ;;  %v15031_v41 = vld [vmem:[%s20000_s0 + $0x8] sm:$0xff]   ;;  %s15836_s10 = smov 121   ;;  %s15837_s11 = smov 120  }
   0xe   :  { %v82_v35 = vld [vmem:[%s20002_s2] sm:$0xff]  ;;  %100 = vperm.xlu1 %14979, %v84_v38   ;;  %v87_v43 = vld [vmem:[%s20002_s2 + $0x28] sm:$0xff]  ;;  %v15034_v46 = vld [vmem:[%s20000_s0 + $0x10] sm:$0xff]   ;;  %s15838_s12 = smov 119   ;;  %vm637_vm2 = vcmask 1039360   ;;  %vm764_vm3 = vcmask 1022976  }
   0xf   :  { %90 = vperm.xlu0 %14978, %v82_v35   ;;  %v86_v42 = vld [vmem:[%s20002_s2 + $0x20] sm:$0xff]  ;;  %v15033_v45 = vld [vmem:[%s20001_s1 + $0x88] ss:$20 sps:$4 sm:$0xff]   ;;  %v15036_v48 = vld [vmem:[%s20001_s1 + $0xd8] ss:$20 sps:$4 sm:$0xff]   ;;  %vm710_vm4 = vcmask 1031168  }
  0x10   :  { %351 = vmatpush1.bf16.msra.mxu0 %v15002_v15  ;;  %414 = vmatpush1.bf16.msra.mxu1 %v15003_v16  ;;  %v15032_v44 = vld [vmem:[%s20001_s1 + $0x60] ss:$20 sps:$4 sm:$0xff]   ;;  %v15035_v47 = vld [vmem:[%s20001_s1 + $0xb0] ss:$20 sps:$4 sm:$0xff]   ;;  %v15038_v50 = vld [vmem:[%s20001_s1 + $0x128] ss:$20 sps:$4 sm:$0xff]  }
  0x11   :  { %352 = vmatprep.subr.bf16.mxu0 %v15004_v17  ;;  %415 = vmatprep.subr.bf16.mxu1 %v15006_v18  ;;  %v15037_v49 = vld [vmem:[%s20001_s1 + $0x100] ss:$20 sps:$4 sm:$0xff]   ;;  %s15830_s1 = smov 127   ;;  %vm835_vm5 = vcmask 1014784   ;;  %vm960_vm6 = vcmask 998400   ;;  %vm889_vm7 = vcmask 1006592  }
  0x12   :  { %105 = vperm.xlu1 %14979, %v85_v40   ;;  %vm1085_vm8 = vcmask 982016   ;;  %vm1014_vm9 = vcmask 990208   ;;  %vm1301_vm10 = vcmask 916480   ;;  %vm1139_vm11 = vcmask 973824  }
  0x13   :  { %95 = vperm.xlu0 %14978, %v83_v37  }
  0x14   :  { %353 = vmatpush1.bf16.msra.mxu0 %v15008_v19  ;;  %416 = vmatpush1.bf16.msra.mxu1 %v15009_v20 }
  0x15   :  { %354 = vmatprep.subr.bf16.mxu0 %v15010_v21  ;;  %417 = vmatprep.subr.bf16.mxu1 %v15012_v22 }
  0x16   :  { %115 = vperm.xlu1 %14979, %v87_v43  }
  0x17   :  { %110 = vperm.xlu0 %14978, %v86_v42  }
  0x18   :  { %355 = vmatpush1.bf16.msra.mxu0 %v15014_v23  ;;  %418 = vmatpush1.bf16.msra.mxu1 %v15015_v24 }
  0x19   :  { %356 = vmatprep.subr.bf16.mxu0 %v15016_v25  ;;  %419 = vmatprep.subr.bf16.mxu1 %v15018_v26 }
  0x1c   :  { %357 = vmatpush1.bf16.msra.mxu0 %v15020_v27  ;;  %420 = vmatpush1.bf16.msra.mxu1 %v15021_v28 }
  0x1d   :  { %358 = vmatprep.subr.bf16.mxu0 %v15022_v29  ;;  %421 = vmatprep.subr.bf16.mxu1 %v15024_v30 }
  0x20   :  { %359 = vmatpush1.bf16.msra.mxu0 %v15026_v31  ;;  %422 = vmatpush1.bf16.msra.mxu1 %v15027_v32 }
  0x21   :  { %14576 = vmatprep.subr.bf16.mxu0 %v20008_v36 }
  0x23   :  { %377 = vmatmul.mubr.bf16.vlgmr.msra.gmra.mrb[0].mxu0 %v15028_v33  ;;  %440 = vmatmul.mubr.bf16.vlgmr.msra.gmra.mrb[0].mxu1 %v15028_v33 }
  0x24   :  { %14577 = vmatpush3.bf16.msra.mxu0 %v15029_v34  ;;  %386 = vmatprep.mubr.bf16.mxu0 %v20010_v2 }
  0x25   :  { %14578 = vmatprep.subr.bf16.mxu0 %v20008_v36  ;;  %449 = vmatprep.mubr.bf16.mxu1 %v20010_v2 }
  0x28   :  { %14579 = vmatpush3.bf16.msra.mxu0 %v15030_v39 }
  0x29   :  { %14580 = vmatprep.subr.bf16.mxu0 %v20008_v36 }
  0x2b   :  { %387 = vmatmul.mubr.bf16.gmra.mrb[4].mxu0 %v15031_v41  ;;  %450 = vmatmul.mubr.bf16.gmra.mrb[4].mxu1 %v15031_v41 }
  0x2c   :  { %14581 = vmatpush3.bf16.msra.mxu0 %v15032_v44  ;;  %396 = vmatprep.mubr.bf16.mxu0 %v20010_v2 }
  0x2d   :  { %14582 = vmatprep.subr.bf16.mxu0 %v20008_v36  ;;  %459 = vmatprep.mubr.bf16.mxu1 %v20010_v2 }
  0x30   :  { %14583 = vmatpush3.bf16.msra.mxu0 %v15033_v45 }
  0x31   :  { %14584 = vmatprep.subr.bf16.mxu0 %v20008_v36 }
  0x33   :  { %397 = vmatmul.mubr.bf16.gmra.mrb[8].mxu0 %v15034_v46  ;;  %460 = vmatmul.mubr.bf16.gmra.mrb[8].mxu1 %v15034_v46 }
  0x34   :  { %14585 = vmatpush3.bf16.msra.mxu0 %v15035_v47  ;;  %14592 = vmatprep.mubr.msk.bf16.mxu0 %vm15829_vm0, %v20008_v36 }
  0x35   :  { %14586 = vmatprep.subr.bf16.mxu0 %v20008_v36 }
  0x38   :  { %14587 = vmatpush3.bf16.msra.mxu0 %v15036_v48 }
  0x39   :  { %14588 = vmatprep.subr.bf16.mxu0 %v20008_v36 }
  0x3c   :  { %14589 = vmatpush3.bf16.msra.mxu0 %v15037_v49 }
  0x3d   :  { %14590 = vmatprep.subr.bf16.mxu0 %v20008_v36 }
  0x40   :  { %14591 = vmatpush3.bf16.msra.mxu0 %v15038_v50 }
  0x43   :  { %14593 = vmatmul.mubr.bf16.vlgmr.msra.gmra.mrb[12].mxu0 %v15028_v33 }
  0x44   :  { %14596 = vmatprep.mubr.msk.bf16.mxu0 %vm15829_vm0, %v20008_v36 }
  0x4b   :  { %14597 = vmatmul.mubr.bf16.gmra.mrb[16].mxu0 %v15031_v41 }
  0x4c   :  { %14600 = vmatprep.mubr.msk.bf16.mxu0 %vm15829_vm0, %v20008_v36 }
  0x53   :  { %14601 = vmatmul.mubr.bf16.gmra.mrb[20].mxu0 %v15034_v46 }
  0x8d   :  { %v16054_v53 = vpop.permute.xlu1 %100 }
  0x8e   :  { %v16050_v51 = vpop.permute.xlu0 %90 }
  0x91   :  { %v16068_v17 = vpop.permute.xlu1 %105 }
  0x92   :  { %v16052_v52 = vpop.permute.xlu0 %95 }
  0x95   :  { %v16096_v48 = vpop.permute.xlu1 %115 }
  0x96   :  { %v16094_v45 = vpop.permute.xlu0 %110 }
  0xf6   :  { %v378_v54 = vpop.f32.mrb[0].mxu0  ;;  %v441_v55 = vpop.f32.mrb[0].mxu1 }
  0xf7   :  { %v379_v56 = vadd.f32 %v378_v54, %v16050_v51  ;;  %v442_v57 = vadd.f32 %v441_v55, %v16050_v51  ;;  %v380_v58 = vpop.f32.mrb[1].mxu0  ;;  %v443_v59 = vpop.f32.mrb[1].mxu1 }
  0xf8   :  { %v381_v60 = vadd.f32 %v380_v58, %v16050_v51  ;;  %v444_v61 = vadd.f32 %v443_v59, %v16050_v51  ;;  %v382_v62 = vpop.f32.mrb[2].mxu0  ;;  %v445_v63 = vpop.f32.mrb[2].mxu1 }
  0xf9   :  { %v527_v0 = vmax.f32 %v379_v56, 0.0  ;;  %v529_v1 = vmax.f32 %v442_v57, 0.0  ;;  %v383_v3 = vadd.f32 %v382_v62, %v16052_v52  ;;  %v446_v4 = vadd.f32 %v445_v63, %v16052_v52  ;;  %v384_v5 = vpop.f32.mrb[3].mxu0  ;;  %v447_v6 = vpop.f32.mrb[3].mxu1 }
  0xfa   :  { %v528_v7 = vmax.f32 %v381_v60, 0.0  ;;  %v530_v8 = vmax.f32 %v444_v61, 0.0  ;;  %v385_v9 = vadd.f32 %v384_v5, %v16052_v52  ;;  %v448_v10 = vadd.f32 %v447_v6, %v16052_v52 }
  0xfb   :  { %v532_v11 = vmax.f32 %v383_v3, 0.0  ;;  %v534_v12 = vmax.f32 %v446_v4, 0.0 }
  0xfc   :  { %v533_v13 = vmax.f32 %v385_v9, 0.0  ;;  %v535_v14 = vmax.f32 %v448_v10, 0.0 }
  0xfd   :  { %v16064_v15 = vpack.c.bf16 %v532_v11, %v527_v0  ;;  %v16066_v16 = vpack.c.bf16 %v534_v12, %v529_v1 }
  0xfe   :  { %v16070_v18 = vpack.c.bf16 %v533_v13, %v528_v7  ;;  %v16072_v19 = vpack.c.bf16 %v535_v14, %v530_v8  ;;  %v388_v20 = vpop.f32.mrb[4].mxu0  ;;  %v451_v21 = vpop.f32.mrb[4].mxu1 }
  0xff   :  { %v389_v22 = vadd.f32 %v388_v20, %v16054_v53  ;;  %v452_v23 = vadd.f32 %v451_v21, %v16054_v53  ;;  %v390_v24 = vpop.f32.mrb[5].mxu0  ;;  %v453_v25 = vpop.f32.mrb[5].mxu1  ;;  %621 = vrot.lane.b32.xlu1 %v16066_v16, %s15830_s1  ;;  %617 = vrot.lane.b32.xlu0 %v16064_v15, %s15830_s1 }
 0x100   :  { %v391_v26 = vadd.f32 %v390_v24, %v16054_v53  ;;  %v454_v27 = vadd.f32 %v453_v25, %v16054_v53  ;;  %v392_v28 = vpop.f32.mrb[6].mxu0  ;;  %v455_v29 = vpop.f32.mrb[6].mxu1  ;;  %1308 = vmatprep.subr.bf16.mxu1 %v16070_v18  ;;  %1359 = vmatprep.subr.bf16.mxu0 %v16072_v19 }
 0x101   :  { %v537_v30 = vmax.f32 %v389_v22, 0.0  ;;  %v539_v31 = vmax.f32 %v452_v23, 0.0  ;;  %v393_v32 = vadd.f32 %v392_v28, %v16068_v17  ;;  %v456_v33 = vadd.f32 %v455_v29, %v16068_v17  ;;  %v394_v34 = vpop.f32.mrb[7].mxu0  ;;  %v457_v35 = vpop.f32.mrb[7].mxu1  ;;  %1309 = vmatpush1.bf16.msra.mxu1 %v16064_v15  ;;  %1360 = vmatpush1.bf16.msra.mxu0 %v16066_v16 }
 0x102   :  { %v538_v37 = vmax.f32 %v391_v26, 0.0  ;;  %v540_v38 = vmax.f32 %v454_v27, 0.0  ;;  %v395_v39 = vadd.f32 %v394_v34, %v16068_v17  ;;  %v458_v40 = vadd.f32 %v457_v35, %v16068_v17 }
 0x103   :  { %v542_v41 = vmax.f32 %v393_v32, 0.0  ;;  %v544_v42 = vmax.f32 %v456_v33, 0.0  ;;  %694 = vrot.lane.b32.xlu1 %v16066_v16, %s15831_s28  ;;  %690 = vrot.lane.b32.xlu0 %v16064_v15, %s15831_s28 }
 0x104   :  { %v543_v43 = vmax.f32 %v395_v39, 0.0  ;;  %v545_v44 = vmax.f32 %v458_v40, 0.0 }
 0x105   :  { %v562_v46 = vpack.c.bf16 %v542_v41, %v537_v30  ;;  %v564_v47 = vpack.c.bf16 %v544_v42, %v539_v31 }
 0x106   :  { %v563_v49 = vpack.c.bf16 %v543_v43, %v538_v37  ;;  %v565_v50 = vpack.c.bf16 %v545_v44, %v540_v38  ;;  %v398_v54 = vpop.f32.mrb[8].mxu0  ;;  %v461_v55 = vpop.f32.mrb[8].mxu1 }
 0x107   :  { %577 = vst [vmem:[#allocation2 + $0x28] sm:$0xff] %v562_v46  ;;  %579 = vst [vmem:[#allocation2 + $0x38] sm:$0xff] %v564_v47  ;;  %v399_v56 = vadd.f32 %v398_v54, %v16094_v45  ;;  %v462_v57 = vadd.f32 %v461_v55, %v16094_v45  ;;  %v463_v58 = vpop.f32.mrb[9].mxu1  ;;  %v400_v59 = vpop.f32.mrb[9].mxu0  ;;  %744 = vrot.lane.b32.xlu1 %v16064_v15, %s15832_s29  ;;  %748 = vrot.lane.b32.xlu0 %v16066_v16, %s15832_s29 }
 0x108   :  { %578 = vst [vmem:[#allocation2 + $0x30] sm:$0xff] %v563_v49  ;;  %580 = vst [vmem:[#allocation2 + $0x40] sm:$0xff] %v565_v50  ;;  %v464_v60 = vadd.f32 %v463_v58, %v16094_v45  ;;  %v401_v61 = vadd.f32 %v400_v59, %v16094_v45  ;;  %v402_v62 = vpop.f32.mrb[10].mxu0  ;;  %v465_v63 = vpop.f32.mrb[10].mxu1 }
 0x109   :  { %v547_v0 = vmax.f32 %v399_v56, 0.0  ;;  %v549_v1 = vmax.f32 %v462_v57, 0.0  ;;  %v403_v3 = vadd.f32 %v402_v62, %v16096_v48  ;;  %v466_v4 = vadd.f32 %v465_v63, %v16096_v48  ;;  %v404_v5 = vpop.f32.mrb[11].mxu0  ;;  %v467_v6 = vpop.f32.mrb[11].mxu1 }
 0x10a   :  { %v550_v7 = vmax.f32 %v464_v60, 0.0  ;;  %v548_v8 = vmax.f32 %v401_v61, 0.0  ;;  %v405_v9 = vadd.f32 %v404_v5, %v16096_v48  ;;  %v468_v10 = vadd.f32 %v467_v6, %v16096_v48 }
 0x10b   :  { %v552_v11 = vmax.f32 %v403_v3, 0.0  ;;  %v554_v12 = vmax.f32 %v466_v4, 0.0  ;;  %819 = vrot.lane.b32.xlu1 %v16066_v16, %s15833_s30  ;;  %815 = vrot.lane.b32.xlu0 %v16064_v15, %s15833_s30 }
 0x10c   :  { %v553_v13 = vmax.f32 %v405_v9, 0.0  ;;  %v555_v14 = vmax.f32 %v468_v10, 0.0 }
 0x10d   :  { %v567_v20 = vpack.c.bf16 %v552_v11, %v547_v0  ;;  %v569_v21 = vpack.c.bf16 %v554_v12, %v549_v1 }
 0x10e   :  { %v568_v22 = vpack.c.bf16 %v553_v13, %v548_v8  ;;  %v570_v23 = vpack.c.bf16 %v555_v14, %v550_v7  ;;  %v16114_v24 = vld [vmem:[#allocation2 + $0x38] sm:$0xf]  ;;  %v16116_v25 = vld [vmem:[#allocation2 + $0x28] sm:$0xf]  ;;  %v16118_v26 = vld [vmem:[#allocation2 + $0x28] sm:$0xf0] }
 0x10f   :  { %582 = vst [vmem:[#allocation2 + $0x50] sm:$0xff] %v567_v20  ;;  %584 = vst [vmem:[#allocation2 + $0x60] sm:$0xff] %v569_v21  ;;  %869 = vrot.lane.b32.xlu1 %v16064_v15, %s15834_s8  ;;  %873 = vrot.lane.b32.xlu0 %v16066_v16, %s15834_s8  ;;  %v16126_v27 = vld [vmem:[#allocation2 + $0x40] sm:$0xf]  ;;  %v16128_v28 = vld [vmem:[#allocation2 + $0x30] sm:$0xf] }
 0x110   :  { %604 = vst [vmem:[#allocation3 + $0x38] sm:$0xf] %v16114_v24  ;;  %602 = vst [vmem:[#allocation3 + $0x28] sm:$0xf] %v16116_v25  ;;  %v16130_v29 = vld [vmem:[#allocation2 + $0x38] sm:$0xf0] }
 0x111   :  { %583 = vst [vmem:[#allocation2 + $0x58] sm:$0xff] %v568_v22  ;;  %585 = vst [vmem:[#allocation2 + $0x68] sm:$0xff] %v570_v23  ;;  %v1854_v30 = vld [vmem:[#allocation2 + $0x30] sm:$0xf0]  ;;  %v1856_v31 = vld [vmem:[#allocation2 + $0x40] sm:$0xf0] }
 0x112   :  { %605 = vst [vmem:[#allocation3 + $0x40] sm:$0xf] %v16126_v27  ;;  %603 = vst [vmem:[#allocation3 + $0x30] sm:$0xf] %v16128_v28  ;;  %v1877_v32 = vrot.slane %v568_v22, 4  ;;  %v1873_v33 = vrot.slane %v16118_v26, 4 }
 0x113   :  { %v1876_v34 = vrot.slane %v1854_v30, 4  ;;  %v1874_v35 = vrot.slane %v567_v20, 4  ;;  %v1882_v37 = vrot.slane %v1856_v31, 4  ;;  %v1883_v38 = vrot.slane %v570_v23, 4  ;;  %944 = vrot.lane.b32.xlu1 %v16066_v16, %s15835_s9  ;;  %940 = vrot.lane.b32.xlu0 %v16064_v15, %s15835_s9 }
 0x114   :  { %1905 = vst [vmem:[#allocation3 + $0x288] sm:$0xf] %v1877_v32  ;;  %v1879_v39 = vrot.slane %v16130_v29, 4  ;;  %v1880_v40 = vrot.slane %v569_v21, 4 }
 0x115   :  { %v1878_v41 = vsel %vm654_vm1, %v1876_v34, %v1877_v32  ;;  %v1875_v42 = vsel %vm654_vm1, %v1873_v33, %v1874_v35  ;;  %1904 = vst [vmem:[#allocation3 + $0x280] sm:$0xf] %v1874_v35  ;;  %v1884_v43 = vsel %vm654_vm1, %v1882_v37, %v1883_v38  ;;  %1907 = vst [vmem:[#allocation3 + $0x298] sm:$0xf] %v1883_v38 }
 0x116   :  { %1900 = vst [vmem:[#allocation3 + $0x260] sm:$0xff] %v1878_v41  ;;  %1899 = vst [vmem:[#allocation3 + $0x258] sm:$0xff] %v1875_v42  ;;  %v1881_v44 = vsel %vm654_vm1, %v1879_v39, %v1880_v40  ;;  %v504_v46 = vpop.f32.mrb[12].mxu0 }
 0x117   :  { %1902 = vst [vmem:[#allocation3 + $0x270] sm:$0xff] %v1884_v43  ;;  %1906 = vst [vmem:[#allocation3 + $0x290] sm:$0xf] %v1880_v40  ;;  %v505_v47 = vadd.f32 %v504_v46, %v16050_v51  ;;  %v14594_v49 = vpop.f32.mrb[13].mxu0  ;;  %994 = vrot.lane.b32.xlu1 %v16064_v15, %s15836_s10  ;;  %998 = vrot.lane.b32.xlu0 %v16066_v16, %s15836_s10 }
 0x118   :  { %1901 = vst [vmem:[#allocation3 + $0x268] sm:$0xff] %v1881_v44  ;;  %v507_v50 = vpop.f32.mrb[14].mxu0 }
 0x119   :  { %v508_v54 = vadd.f32 %v507_v50, %v16052_v52  ;;  %v14595_v55 = vpop.f32.mrb[15].mxu0  ;;  %v531_v56 = vmax.f32 %v505_v47, 0.0 }
 0x11a   :  { %v16349_v55 = vld [vmem:[#allocation2 + $0x30] sm:$0xf0] }
 0x11b   :  { %v536_v57 = vmax.f32 %v508_v54, 0.0  ;;  %1069 = vrot.lane.b32.xlu1 %v16066_v16, %s15837_s11  ;;  %1065 = vrot.lane.b32.xlu0 %v16064_v15, %s15837_s11 }
 0x11d   :  { %v561_v51 = vpack.c.bf16 %v536_v57, %v531_v56 }
 0x11e   :  { %v512_v58 = vpop.f32.mrb[16].mxu0 }
 0x11f   :  { %576 = vst [vmem:[#allocation2 + $0x20] sm:$0xff] %v561_v51  ;;  %v513_v59 = vadd.f32 %v512_v58, %v16054_v53  ;;  %v14598_v60 = vpop.f32.mrb[17].mxu0  ;;  %1119 = vrot.lane.b32.xlu1 %v16064_v15, %s15838_s12  ;;  %1123 = vrot.lane.b32.xlu0 %v16066_v16, %s15838_s12 }
 0x120   :  { %v515_v52 = vpop.f32.mrb[18].mxu0 }
 0x121   :  { %v541_v61 = vmax.f32 %v513_v59, 0.0  ;;  %v516_v62 = vadd.f32 %v515_v52, %v16068_v17  ;;  %v14599_v63 = vpop.f32.mrb[19].mxu0  ;;  %v16365_v59 = vld [vmem:[#allocation2 + $0x50] sm:$0xff] }
 0x123   :  { %v546_v0 = vmax.f32 %v516_v62, 0.0  ;;  %623 = vrot.lane.b32.xlu1 %v16072_v19, %s15830_s1  ;;  %619 = vrot.lane.b32.xlu0 %v16070_v18, %s15830_s1 }
 0x125   :  { %v566_v53 = vpack.c.bf16 %v546_v0, %v541_v61 }
 0x126   :  { %v520_v1 = vpop.f32.mrb[20].mxu0 }
 0x127   :  { %581 = vst [vmem:[#allocation2 + $0x48] sm:$0xff] %v566_v53  ;;  %v521_v15 = vadd.f32 %v520_v1, %v16094_v45  ;;  %v14602_v3 = vpop.f32.mrb[21].mxu0  ;;  %746 = vrot.lane.b32.xlu1 %v16070_v18, %s15832_s29  ;;  %692 = vrot.lane.b32.xlu0 %v16070_v18, %s15831_s28 }
 0x128   :  { %v523_v16 = vpop.f32.mrb[22].mxu0 }
 0x129   :  { %v524_v17 = vadd.f32 %v523_v16, %v16096_v48  ;;  %v14603_v4 = vpop.f32.mrb[23].mxu0  ;;  %v551_v5 = vmax.f32 %v521_v15, 0.0  ;;  %v16383_v15 = vld [vmem:[#allocation2 + $0x60] sm:$0xff] }
 0x12b   :  { %v556_v6 = vmax.f32 %v524_v17, 0.0  ;;  %696 = vrot.lane.b32.xlu1 %v16072_v19, %s15831_s28  ;;  %817 = vrot.lane.b32.xlu0 %v16070_v18, %s15833_s30 }
 0x12d   :  { %v571_v45 = vpack.c.bf16 %v556_v6, %v551_v5 }
 0x12e   :  { %v16174_v7 = vld [vmem:[#allocation2 + $0x48] sm:$0xf]  ;;  %v1857_v8 = vld [vmem:[#allocation2 + $0x48] sm:$0xf0] }
 0x12f   :  { %586 = vst [vmem:[#allocation2 + $0x70] sm:$0xff] %v571_v45  ;;  %750 = vrot.lane.b32.xlu1 %v16072_v19, %s15832_s29  ;;  %942 = vrot.lane.b32.xlu0 %v16070_v18, %s15835_s9  ;;  %606 = vst [vmem:[#allocation3 + $0x48] sm:$0xf] %v16174_v7  ;;  %v1885_v48 = vrot.slane %v1857_v8, 4  ;;  %v1886_v9 = vrot.slane %v571_v45, 4 }
 0x131   :  { %v1887_v10 = vsel %vm654_vm1, %v1885_v48, %v1886_v9  ;;  %1908 = vst [vmem:[#allocation3 + $0x2a0] sm:$0xf] %v1886_v9 }
 0x132   :  { %1903 = vst [vmem:[#allocation3 + $0x278] sm:$0xff] %v1887_v10 }
 0x133   :  { %871 = vrot.lane.b32.xlu1 %v16070_v18, %s15834_s8  ;;  %1067 = vrot.lane.b32.xlu0 %v16070_v18, %s15837_s11 }
 0x137   :  { %821 = vrot.lane.b32.xlu1 %v16072_v19, %s15833_s30  ;;  %631 = vrot.lane.b32.xlu0 %v16114_v24, %s15830_s1 }
 0x13b   :  { %875 = vrot.lane.b32.xlu1 %v16072_v19, %s15834_s8  ;;  %700 = vrot.lane.b32.xlu0 %v16116_v25, %s15831_s28 }
 0x13f   :  { %996 = vrot.lane.b32.xlu1 %v16070_v18, %s15836_s10  ;;  %758 = vrot.lane.b32.xlu0 %v16114_v24, %s15832_s29 }
 0x143   :  { %946 = vrot.lane.b32.xlu1 %v16072_v19, %s15835_s9  ;;  %825 = vrot.lane.b32.xlu0 %v16116_v25, %s15833_s30 }
 0x147   :  { %1000 = vrot.lane.b32.xlu1 %v16072_v19, %s15836_s10  ;;  %883 = vrot.lane.b32.xlu0 %v16114_v24, %s15834_s8 }
 0x14b   :  { %1121 = vrot.lane.b32.xlu1 %v16070_v18, %s15838_s12  ;;  %950 = vrot.lane.b32.xlu0 %v16116_v25, %s15835_s9 }
 0x14f   :  { %1071 = vrot.lane.b32.xlu1 %v16072_v19, %s15837_s11  ;;  %1008 = vrot.lane.b32.xlu0 %v16114_v24, %s15836_s10 }
 0x153   :  { %1125 = vrot.lane.b32.xlu1 %v16072_v19, %s15838_s12  ;;  %1075 = vrot.lane.b32.xlu0 %v16116_v25, %s15837_s11 }
 0x157   :  { %627 = vrot.lane.b32.xlu1 %v16116_v25, %s15830_s1  ;;  %1133 = vrot.lane.b32.xlu0 %v16114_v24, %s15838_s12 }
 0x15b   :  { %704 = vrot.lane.b32.xlu1 %v16114_v24, %s15831_s28  ;;  %1909 = vrot.lane.b32.xlu0 %v16118_v26, %s15830_s1 }
 0x15f   :  { %754 = vrot.lane.b32.xlu1 %v16116_v25, %s15832_s29  ;;  %1961 = vrot.lane.b32.xlu0 %v16118_v26, %s15831_s28 }
 0x163   :  { %829 = vrot.lane.b32.xlu1 %v16114_v24, %s15833_s30  ;;  %2030 = vrot.lane.b32.xlu0 %v16118_v26, %s15832_s29 }
 0x167   :  { %879 = vrot.lane.b32.xlu1 %v16116_v25, %s15834_s8  ;;  %633 = vrot.lane.b32.xlu0 %v16126_v27, %s15830_s1 }
 0x16b   :  { %954 = vrot.lane.b32.xlu1 %v16114_v24, %s15835_s9  ;;  %702 = vrot.lane.b32.xlu0 %v16128_v28, %s15831_s28 }
 0x16f   :  { %1004 = vrot.lane.b32.xlu1 %v16116_v25, %s15836_s10  ;;  %706 = vrot.lane.b32.xlu0 %v16126_v27, %s15831_s28 }
 0x171   :  { %v622_v18 = vpop.permute.xlu1 %621  ;;  %v618_v19 = vpop.permute.xlu0 %617 }
 0x173   :  { %1079 = vrot.lane.b32.xlu1 %v16114_v24, %s15837_s11  ;;  %760 = vrot.lane.b32.xlu0 %v16126_v27, %s15832_s29 }
 0x175   :  { %v16250_v11 = vpop.permute.xlu1 %694  ;;  %v691_v12 = vpop.permute.xlu0 %690 }
 0x177   :  { %1129 = vrot.lane.b32.xlu1 %v16116_v25, %s15838_s12  ;;  %827 = vrot.lane.b32.xlu0 %v16128_v28, %s15833_s30 }
 0x179   :  { %v745_v13 = vpop.permute.xlu1 %744  ;;  %v16256_v14 = vpop.permute.xlu0 %748 }
 0x17b   :  { %1913 = vrot.lane.b32.xlu1 %v16130_v29, %s15830_s1  ;;  %831 = vrot.lane.b32.xlu0 %v16126_v27, %s15833_s30 }
 0x17d   :  { %v16262_v20 = vpop.permute.xlu1 %819  ;;  %v816_v21 = vpop.permute.xlu0 %815 }
 0x17f   :  { %1965 = vrot.lane.b32.xlu1 %v16130_v29, %s15831_s28  ;;  %885 = vrot.lane.b32.xlu0 %v16126_v27, %s15834_s8 }
 0x181   :  { %v16268_v22 = vpop.permute.xlu1 %869  ;;  %v16270_v23 = vpop.permute.xlu0 %873 }
 0x183   :  { %2034 = vrot.lane.b32.xlu1 %v16130_v29, %s15832_s29  ;;  %952 = vrot.lane.b32.xlu0 %v16128_v28, %s15835_s9 }
 0x185   :  { %v16276_v24 = vpop.permute.xlu1 %944  ;;  %v16278_v25 = vpop.permute.xlu0 %940 }
 0x187   :  { %2086 = vrot.lane.b32.xlu1 %v16130_v29, %s15833_s30  ;;  %956 = vrot.lane.b32.xlu0 %v16126_v27, %s15835_s9 }
 0x189   :  { %v16284_v26 = vpop.permute.xlu1 %994  ;;  %v16286_v30 = vpop.permute.xlu0 %998 }
 0x18b   :  { %629 = vrot.lane.b32.xlu1 %v16128_v28, %s15830_s1  ;;  %1010 = vrot.lane.b32.xlu0 %v16126_v27, %s15836_s10 }
 0x18d   :  { %v16292_v31 = vpop.permute.xlu1 %1069  ;;  %v16294_v32 = vpop.permute.xlu0 %1065 }
 0x18f   :  { %756 = vrot.lane.b32.xlu1 %v16128_v28, %s15832_s29  ;;  %1077 = vrot.lane.b32.xlu0 %v16128_v28, %s15837_s11 }
 0x191   :  { %v16300_v29 = vpop.permute.xlu1 %1119  ;;  %v16302_v33 = vpop.permute.xlu0 %1123 }
 0x193   :  { %881 = vrot.lane.b32.xlu1 %v16128_v28, %s15834_s8  ;;  %1081 = vrot.lane.b32.xlu0 %v16126_v27, %s15837_s11 }
 0x195   :  { %v16308_v34 = vpop.permute.xlu1 %623  ;;  %v620_v35 = vpop.permute.xlu0 %619 }
 0x196   :  { %v16312_v37 = vsel %vm637_vm2, %v622_v18, %v16308_v34  ;;  %v16315_v38 = vsel %vm637_vm2, %v618_v19, %v620_v35  ;;  %v16318_v39 = vsel %vm637_vm2, %v620_v35, %v622_v18 }
 0x197   :  { %v657_v40 = vrot.slane %v16312_v37, 4  ;;  %v655_v41 = vrot.slane %v16315_v38, 4  ;;  %v656_v42 = vrot.slane %v16318_v39, 4  ;;  %1006 = vrot.lane.b32.xlu1 %v16128_v28, %s15836_s10  ;;  %1135 = vrot.lane.b32.xlu0 %v16126_v27, %s15838_s12 }
 0x199   :  { %682 = vst [vmem:[#allocation3 + $0x38] sm:$0xf0] %v657_v40  ;;  %680 = vst [vmem:[#allocation3 + $0x28] sm:$0xf0] %v655_v41  ;;  %v747_v43 = vpop.permute.xlu1 %746  ;;  %v693_v44 = vpop.permute.xlu0 %692 }
 0x19a   :  { %681 = vst [vmem:[#allocation3 + $0x30] sm:$0xf0] %v656_v42  ;;  %v16334_v46 = vsel %vm764_vm3, %v745_v13, %v747_v43  ;;  %v16338_v47 = vsel %vm764_vm3, %v747_v43, %v16256_v14  ;;  %v711_v27 = vsel %vm710_vm4, %v691_v12, %v693_v44  ;;  %v16343_v49 = vsel %vm710_vm4, %v693_v44, %v16250_v11 }
 0x19b   :  { %v20020_v50 = vrot.slane %v16334_v46, 4  ;;  %v20019_v54 = vrot.slane %v16338_v47, 4  ;;  %734 = vst [vmem:[#allocation3 + $0x78] sm:$0xff] %v711_v27  ;;  %1131 = vrot.lane.b32.xlu1 %v16128_v28, %s15838_s12  ;;  %1911 = vrot.lane.b32.xlu0 %v16349_v55, %s15830_s1 }
 0x19d   :  { %805 = vst [vmem:[#allocation3 + $0xa0] sm:$0xf0] %v20020_v50  ;;  %806 = vst [vmem:[#allocation3 + $0xa8] sm:$0xf0] %v20019_v54  ;;  %v16357_v56 = vpop.permute.xlu1 %696  ;;  %v818_v57 = vpop.permute.xlu0 %817 }
 0x19e   :  { %v713_v51 = vsel %vm710_vm4, %v16250_v11, %v16357_v56  ;;  %v836_v28 = vsel %vm835_vm5, %v816_v21, %v818_v57  ;;  %v837_v58 = vsel %vm835_vm5, %v818_v57, %v16262_v20 }
 0x19f   :  { %736 = vst [vmem:[#allocation3 + $0x88] sm:$0xff] %v713_v51  ;;  %859 = vst [vmem:[#allocation3 + $0xf0] sm:$0xff] %v836_v28  ;;  %1919 = vrot.lane.b32.xlu1 %v16365_v59, %s15830_s1  ;;  %1963 = vrot.lane.b32.xlu0 %v16349_v55, %s15831_s28  ;;  %v15772_v51 = vld [vmem:[#allocation2 + $0x20] sm:$0xff] }
 0x1a0   :  { %860 = vst [vmem:[#allocation3 + $0xf8] sm:$0xff] %v837_v58  ;;  %v1198_v52 = vld [vmem:[#allocation3 + $0x28] sm:$0xff] }
 0x1a1   :  { %v1199_v60 = vld [vmem:[#allocation3 + $0x30] sm:$0xff]  ;;  %v16371_v61 = vpop.permute.xlu1 %750  ;;  %v943_v62 = vpop.permute.xlu0 %942 }
 0x1a2   :  { %1310 = vmatprep.subr.bf16.mxu1 %v1199_v60  ;;  %v16376_v63 = vsel %vm764_vm3, %v16256_v14, %v16371_v61  ;;  %v961_v0 = vsel %vm960_vm6, %v16278_v25, %v943_v62  ;;  %v962_v53 = vsel %vm960_vm6, %v943_v62, %v16276_v24  ;;  %v16452_v25 = vld [vmem:[#allocation2 + $0x58] sm:$0xff] }
 0x1a3   :  { %1311 = vmatpush1.bf16.msra.mxu1 %v1198_v52  ;;  %v782_v1 = vrot.slane %v16376_v63, 4  ;;  %984 = vst [vmem:[#allocation3 + $0x168] sm:$0xff] %v961_v0  ;;  %985 = vst [vmem:[#allocation3 + $0x170] sm:$0xff] %v962_v53  ;;  %1975 = vrot.lane.b32.xlu1 %v16383_v15, %s15831_s28  ;;  %v16507_v0 = vld [vmem:[#allocation2 + $0x28] sm:$0xf0] }
 0x1a4   :  { %2032 = vrot.lane.b32.xlu0 %v16349_v55, %s15832_s29 }
 0x1a5   :  { %807 = vst [vmem:[#allocation3 + $0xb0] sm:$0xf0] %v782_v1  ;;  %v872_v3 = vpop.permute.xlu1 %871  ;;  %v1068_v16 = vpop.permute.xlu0 %1067 }
 0x1a6   :  { %v16393_v17 = vsel %vm889_vm7, %v16268_v22, %v872_v3  ;;  %v16397_v4 = vsel %vm889_vm7, %v872_v3, %v16270_v23  ;;  %v1086_v5 = vsel %vm1085_vm8, %v16294_v32, %v1068_v16  ;;  %v1087_v6 = vsel %vm1085_vm8, %v1068_v16, %v16292_v31 }
 0x1a7   :  { %v20018_v45 = vrot.slane %v16393_v17, 4  ;;  %v20017_v8 = vrot.slane %v16397_v4, 4  ;;  %1109 = vst [vmem:[#allocation3 + $0x1e0] sm:$0xff] %v1086_v5  ;;  %1110 = vst [vmem:[#allocation3 + $0x1e8] sm:$0xff] %v1087_v6  ;;  %1971 = vrot.lane.b32.xlu1 %v16365_v59, %s15831_s28 }
 0x1a8   :  { %2084 = vrot.lane.b32.xlu0 %v16349_v55, %s15833_s30 }
 0x1a9   :  { %930 = vst [vmem:[#allocation3 + $0x118] sm:$0xf0] %v20018_v45  ;;  %931 = vst [vmem:[#allocation3 + $0x120] sm:$0xf0] %v20017_v8  ;;  %v16413_v48 = vpop.permute.xlu1 %821  ;;  %v16415_v9 = vpop.permute.xlu0 %631 }
 0x1aa   :  { %v838_v10 = vsel %vm835_vm5, %v16262_v20, %v16413_v48 }
 0x1ab   :  { %861 = vst [vmem:[#allocation3 + $0x100] sm:$0xff] %v838_v10  ;;  %2040 = vrot.lane.b32.xlu1 %v16365_v59, %s15832_s29 }
 0x1ac   :  { %1923 = vrot.lane.b32.xlu0 %v16383_v15, %s15830_s1 }
 0x1ad   :  { %v16424_v18 = vpop.permute.xlu1 %875  ;;  %v16426_v19 = vpop.permute.xlu0 %700 }
 0x1ae   :  { %v16431_v11 = vsel %vm889_vm7, %v16270_v23, %v16424_v18 }
 0x1af   :  { %v907_v12 = vrot.slane %v16431_v11, 4  ;;  %2096 = vrot.lane.b32.xlu1 %v16383_v15, %s15833_s30 }
 0x1b0   :  { %2044 = vrot.lane.b32.xlu0 %v16383_v15, %s15832_s29 }
 0x1b1   :  { %932 = vst [vmem:[#allocation3 + $0x128] sm:$0xf0] %v907_v12  ;;  %v997_v13 = vpop.permute.xlu1 %996  ;;  %v16440_v14 = vpop.permute.xlu0 %758 }
 0x1b2   :  { %v16444_v20 = vsel %vm1014_vm9, %v16284_v26, %v997_v13  ;;  %v16448_v21 = vsel %vm1014_vm9, %v997_v13, %v16286_v30  ;;  %v15041_v26 = vld [vmem:[%s20003_s3 + $0x4] ss:$8 sps:$4 sm:$0xff]  }
 0x1b3   :  { %v20016_v22 = vrot.slane %v16444_v20, 4  ;;  %v20015_v23 = vrot.slane %v16448_v21, 4  ;;  %1921 = vrot.lane.b32.xlu1 %v16452_v25, %s15830_s1  ;;  %11514 = vmatprep.mubr.msk.bf16.mxu1 %vm1301_vm10, %v15041_v26 }
 0x1b4   :  { %1973 = vrot.lane.b32.xlu0 %v16452_v25, %s15831_s28  ;;  %11516 = vmatprep.mubr.msk.bf16.mxu0 %vm1301_vm10, %v15041_v26  ;;  %v16544_v26 = vld [vmem:[#allocation2 + $0x38] sm:$0xf0] }
 0x1b5   :  { %1055 = vst [vmem:[#allocation3 + $0x190] sm:$0xf0] %v20016_v22  ;;  %1056 = vst [vmem:[#allocation3 + $0x198] sm:$0xf0] %v20015_v23  ;;  %v16465_v32 = vpop.permute.xlu1 %946  ;;  %v16467_v35 = vpop.permute.xlu0 %825 }
 0x1b6   :  { %v963_v43 = vsel %vm960_vm6, %v16276_v24, %v16465_v32 }
 0x1b7   :  { %986 = vst [vmem:[#allocation3 + $0x178] sm:$0xff] %v963_v43  ;;  %2042 = vrot.lane.b32.xlu1 %v16452_v25, %s15832_s29 }
 0x1b8   :  { %2094 = vrot.lane.b32.xlu0 %v16452_v25, %s15833_s30 }
 0x1b9   :  { %v16478_v44 = vpop.permute.xlu1 %1000  ;;  %v16480_v27 = vpop.permute.xlu0 %883 }
 0x1ba   :  { %v16485_v57 = vsel %vm1014_vm9, %v16286_v30, %v16478_v44 }
 0x1bb   :  { %v1032_v24 = vrot.slane %v16485_v57, 4  ;;  %635 = vrot.lane.b32.xlu1 %v16174_v7, %s15830_s1 }
 0x1bc   :  { %625 = vrot.lane.b32.xlu0 %v15772_v51, %s15830_s1 }
 0x1bd   :  { %1057 = vst [vmem:[#allocation3 + $0x1a0] sm:$0xf0] %v1032_v24  ;;  %v1122_v28 = vpop.permute.xlu1 %1121  ;;  %v16493_v58 = vpop.permute.xlu0 %950 }
 0x1be   :  { %v16497_v60 = vsel %vm1139_vm11, %v16300_v29, %v1122_v28  ;;  %v16501_v30 = vsel %vm1139_vm11, %v1122_v28, %v16302_v33 }
 0x1bf   :  { %v20013_v52 = vrot.slane %v16497_v60, 4  ;;  %v20012_v62 = vrot.slane %v16501_v30, 4  ;;  %2092 = vrot.lane.b32.xlu1 %v16365_v59, %s15833_s30 }
 0x1c0   :  { %2082 = vrot.lane.b32.xlu0 %v16507_v0, %s15833_s30 }
 0x1c1   :  { %1180 = vst [vmem:[#allocation3 + $0x208] sm:$0xf0] %v20013_v52  ;;  %1181 = vst [vmem:[#allocation3 + $0x210] sm:$0xf0] %v20012_v62  ;;  %v16515_v29 = vpop.permute.xlu1 %1071  ;;  %v16517_v53 = vpop.permute.xlu0 %1008 }
 0x1c2   :  { %v1088_v3 = vsel %vm1085_vm8, %v16292_v31, %v16515_v29 }
 0x1c3   :  { %1111 = vst [vmem:[#allocation3 + $0x1f0] sm:$0xff] %v1088_v3  ;;  %708 = vrot.lane.b32.xlu1 %v16174_v7, %s15831_s28 }
 0x1c4   :  { %698 = vrot.lane.b32.xlu0 %v15772_v51, %s15831_s28 }
 0x1c5   :  { %v16525_v16 = vpop.permute.xlu1 %1125  ;;  %v16527_v5 = vpop.permute.xlu0 %1075 }
 0x1c6   :  { %v16532_v6 = vsel %vm1139_vm11, %v16302_v33, %v16525_v16 }
 0x1c7   :  { %v20014_v10 = vrot.slane %v16532_v6, 4  ;;  %762 = vrot.lane.b32.xlu1 %v16174_v7, %s15832_s29 }
 0x1c8   :  { %752 = vrot.lane.b32.xlu0 %v15772_v51, %s15832_s29 }
 0x1c9   :  { %1182 = vst [vmem:[#allocation3 + $0x218] sm:$0xf0] %v20014_v10  ;;  %v16540_v31 = vpop.permute.xlu1 %627  ;;  %v16542_v13 = vpop.permute.xlu0 %1133 }
 0x1cb   :  { %2155 = vrot.lane.b32.xlu1 %v16544_v26, %s15834_s8 }
 0x1cc   :  { %823 = vrot.lane.b32.xlu0 %v15772_v51, %s15833_s30 }
 0x1cd   :  { %v705_v33 = vpop.permute.xlu1 %704  ;;  %v16549_v43 = vpop.permute.xlu0 %1909 }
 0x1cf   :  { %833 = vrot.lane.b32.xlu1 %v16174_v7, %s15833_s30 }
 0x1d0   :  { %877 = vrot.lane.b32.xlu0 %v15772_v51, %s15834_s8 }
 0x1d1   :  { %v16554_v28 = vpop.permute.xlu1 %754  ;;  %v16556_v3 = vpop.permute.xlu0 %1961 }
 0x1d3   :  { %887 = vrot.lane.b32.xlu1 %v16174_v7, %s15834_s8 }
 0x1d4   :  { %948 = vrot.lane.b32.xlu0 %v15772_v51, %s15835_s9 }
 0x1d5   :  { %v830_v36 = vpop.permute.xlu1 %829  ;;  %v16561_v2 = vpop.permute.xlu0 %2030 }
 0x1d7   :  { %2163 = vrot.lane.b32.xlu1 %v16452_v25, %s15834_s8 }
 0x1d8   :  { %1002 = vrot.lane.b32.xlu0 %v15772_v51, %s15836_s10 }
 0x1d9   :  { %v16566_v62 = vpop.permute.xlu1 %879  ;;  %v16568_v52 = vpop.permute.xlu0 %633 }
 0x1da   :  { %v644_v10 = vsel %vm637_vm2, %v16415_v9, %v16568_v52 }
 0x1db   :  { %v664_v23 = vrot.slane %v644_v10, 4  ;;  %958 = vrot.lane.b32.xlu1 %v16174_v7, %s15835_s9 }
 0x1dc   :  { %1073 = vrot.lane.b32.xlu0 %v15772_v51, %s15837_s11 }
 0x1dd   :  { %v665_v22 = vsel %vm654_vm1, %v657_v40, %v664_v23  ;;  %v955_v8 = vpop.permute.xlu1 %954  ;;  %v703_v45 = vpop.permute.xlu0 %702 }
 0x1de   :  { %687 = vst [vmem:[#allocation3 + $0x60] sm:$0xff] %v665_v22  ;;  %v715_v54 = vsel %vm710_vm4, %v16426_v19, %v703_v45  ;;  %v716_v50 = vsel %vm710_vm4, %v703_v45, %v705_v33 }
 0x1df   :  { %739 = vst [vmem:[#allocation3 + $0xa0] sm:$0xf] %v715_v54  ;;  %740 = vst [vmem:[#allocation3 + $0xa8] sm:$0xf] %v716_v50  ;;  %1012 = vrot.lane.b32.xlu1 %v16174_v7, %s15836_s10 }
 0x1e0   :  { %1127 = vrot.lane.b32.xlu0 %v15772_v51, %s15838_s12 }
 0x1e1   :  { %v16585_v10 = vpop.permute.xlu1 %1004  ;;  %v16587_v37 = vpop.permute.xlu0 %706 }
 0x1e2   :  { %v717_v40 = vsel %vm710_vm4, %v705_v33, %v16587_v37 }
 0x1e3   :  { %741 = vst [vmem:[#allocation3 + $0xb0] sm:$0xf] %v717_v40  ;;  %2161 = vrot.lane.b32.xlu1 %v16365_v59, %s15834_s8 }
 0x1e4   :  { %2153 = vrot.lane.b32.xlu0 %v16349_v55, %s15834_s8 }
 0x1e5   :  { %v16595_v50 = vpop.permute.xlu1 %1079  ;;  %v16597_v54 = vpop.permute.xlu0 %760 }
 0x1e6   :  { %v771_v45 = vsel %vm764_vm3, %v16440_v14, %v16597_v54 }
 0x1e7   :  { %v789_v19 = vrot.slane %v771_v45, 4  ;;  %1083 = vrot.lane.b32.xlu1 %v16174_v7, %s15837_s11 }
 0x1e8   :  { %2151 = vrot.lane.b32.xlu0 %v16507_v0, %s15834_s8 }
 0x1e9   :  { %v790_v22 = vsel %vm654_vm1, %v782_v1, %v789_v19  ;;  %v16609_v23 = vpop.permute.xlu1 %1129  ;;  %v828_v51 = vpop.permute.xlu0 %827 }
 0x1ea   :  { %812 = vst [vmem:[#allocation3 + $0xd8] sm:$0xff] %v790_v22  ;;  %v840_v33 = vsel %vm835_vm5, %v16467_v35, %v828_v51  ;;  %v841_v40 = vsel %vm835_vm5, %v828_v51, %v830_v36 }
 0x1eb   :  { %864 = vst [vmem:[#allocation3 + $0x118] sm:$0xf] %v840_v33  ;;  %865 = vst [vmem:[#allocation3 + $0x120] sm:$0xf] %v841_v40  ;;  %1137 = vrot.lane.b32.xlu1 %v16174_v7, %s15838_s12 }
 0x1ec   :  { %2165 = vrot.lane.b32.xlu0 %v16383_v15, %s15834_s8 }
 0x1ed   :  { %v16618_v63 = vpop.permute.xlu1 %1913  ;;  %v16620_v1 = vpop.permute.xlu0 %831 }
 0x1ee   :  { %v842_v45 = vsel %vm835_vm5, %v830_v36, %v16620_v1 }
 0x1ef   :  { %866 = vst [vmem:[#allocation3 + $0x128] sm:$0xf] %v842_v45  ;;  %2207 = vrot.lane.b32.xlu1 %v16544_v26, %s15835_s9 }
 0x1f0   :  { %2205 = vrot.lane.b32.xlu0 %v16349_v55, %s15835_s9 }
 0x1f1   :  { %v16628_v35 = vpop.permute.xlu1 %1965  ;;  %v16630_v7 = vpop.permute.xlu0 %885 }
 0x1f2   :  { %v896_v19 = vsel %vm889_vm7, %v16480_v27, %v16630_v7 }
 0x1f3   :  { %v914_v22 = vrot.slane %v896_v19, 4  ;;  %2217 = vrot.lane.b32.xlu1 %v16383_v15, %s15835_s9 }
 0x1f4   :  { %2215 = vrot.lane.b32.xlu0 %v16452_v25, %s15835_s9 }
 0x1f5   :  { %v915_v36 = vsel %vm654_vm1, %v907_v12, %v914_v22  ;;  %v16642_v51 = vpop.permute.xlu1 %2034  ;;  %v953_v33 = vpop.permute.xlu0 %952 }
 0x1f6   :  { %937 = vst [vmem:[#allocation3 + $0x150] sm:$0xff] %v915_v36  ;;  %v965_v40 = vsel %vm960_vm6, %v16493_v58, %v953_v33  ;;  %v966_v45 = vsel %vm960_vm6, %v953_v33, %v955_v8 }
 0x1f7   :  { %989 = vst [vmem:[#allocation3 + $0x190] sm:$0xf] %v965_v40  ;;  %990 = vst [vmem:[#allocation3 + $0x198] sm:$0xf] %v966_v45  ;;  %2213 = vrot.lane.b32.xlu1 %v16365_v59, %s15835_s9 }
 0x1f8   :  { %2203 = vrot.lane.b32.xlu0 %v16507_v0, %s15835_s9 }
 0x1f9   :  { %v16651_v11 = vpop.permute.xlu1 %2086  ;;  %v16653_v12 = vpop.permute.xlu0 %956 }
 0x1fa   :  { %v967_v19 = vsel %vm960_vm6, %v955_v8, %v16653_v12 }
 0x1fb   :  { %991 = vst [vmem:[#allocation3 + $0x1a0] sm:$0xf] %v967_v19  ;;  %2276 = vrot.lane.b32.xlu1 %v16544_v26, %s15836_s10 }
 0x1fc   :  { %2274 = vrot.lane.b32.xlu0 %v16349_v55, %s15836_s10 }
 0x1fd   :  { %v630_v58 = vpop.permute.xlu1 %629  ;;  %v16661_v22 = vpop.permute.xlu0 %1010 }
 0x1fe   :  { %v642_v36 = vsel %vm637_vm2, %v16540_v31, %v630_v58  ;;  %v643_v33 = vsel %vm637_vm2, %v630_v58, %v16415_v9  ;;  %v1021_v8 = vsel %vm1014_vm9, %v16517_v53, %v16661_v22 }
 0x1ff   :  { %v660_v40 = vrot.slane %v642_v36, 4  ;;  %v662_v45 = vrot.slane %v643_v33, 4  ;;  %v1039_v19 = vrot.slane %v1021_v8, 4  ;;  %2284 = vrot.lane.b32.xlu1 %v16452_v25, %s15836_s10 }
 0x200   :  { %2272 = vrot.lane.b32.xlu0 %v16507_v0, %s15836_s10 }
 0x201   :  { %v661_v55 = vsel %vm654_vm1, %v655_v41, %v660_v40  ;;  %v663_v9 = vsel %vm654_vm1, %v656_v42, %v662_v45  ;;  %v1040_v31 = vsel %vm654_vm1, %v1032_v24, %v1039_v19  ;;  %v757_v58 = vpop.permute.xlu1 %756  ;;  %v1078_v36 = vpop.permute.xlu0 %1077  ;;  %v20022_v24 = vrot.slane %v16338_v47, 4  ;;  %v1214_v19 = vld [vmem:[#allocation3 + $0xa8] sm:$0xff] }
 0x202   :  { %1062 = vst [vmem:[#allocation3 + $0x1c8] sm:$0xff] %v1040_v31  ;;  %v769_v33 = vsel %vm764_vm3, %v16554_v28, %v757_v58  ;;  %v770_v8 = vsel %vm764_vm3, %v757_v58, %v16440_v14  ;;  %v1090_v38 = vsel %vm1085_vm8, %v16527_v5, %v1078_v36  ;;  %v1091_v39 = vsel %vm1085_vm8, %v1078_v36, %v16595_v50 }
 0x203   :  { %1312 = vmatprep.subr.bf16.mxu1 %v663_v9  ;;  %v785_v41 = vrot.slane %v769_v33, 4  ;;  %v787_v42 = vrot.slane %v770_v8, 4  ;;  %1114 = vst [vmem:[#allocation3 + $0x208] sm:$0xf] %v1090_v38  ;;  %1115 = vst [vmem:[#allocation3 + $0x210] sm:$0xf] %v1091_v39  ;;  %2282 = vrot.lane.b32.xlu1 %v16365_v59, %s15836_s10 }
 0x204   :  { %2286 = vrot.lane.b32.xlu0 %v16383_v15, %s15836_s10  ;;  %1313 = vmatpush1.bf16.msra.mxu1 %v661_v55  ;;  %v20021_v14 = vrot.slane %v16334_v46, 4  ;;  %v15775_v9 = vld [vmem:[#allocation2 + $0x30] sm:$0xf0]  ;;  %v20024_v31 = vrot.slane %v16397_v4, 4  ;;  %v1213_v4 = vld [vmem:[#allocation3 + $0xa0] sm:$0xff] }
 0x205   :  { %v788_v5 = vsel %vm654_vm1, %v20022_v24, %v787_v42  ;;  %v882_v28 = vpop.permute.xlu1 %881  ;;  %v16701_v40 = vpop.permute.xlu0 %1081  ;;  %1314 = vmatprep.subr.bf16.mxu1 %v16343_v49  ;;  %v15776_v49 = vld [vmem:[#allocation3 + $0x78] sm:$0xff]  ;;  %v20027_v24 = vrot.slane %v16532_v6, 4 }
 0x206   :  { %v786_v57 = vsel %vm654_vm1, %v20021_v14, %v785_v41  ;;  %v894_v59 = vsel %vm889_vm7, %v16566_v62, %v882_v28  ;;  %v895_v45 = vsel %vm889_vm7, %v882_v28, %v16480_v27  ;;  %v1092_v46 = vsel %vm1085_vm8, %v16595_v50, %v16701_v40 }
 0x207   :  { %v910_v55 = vrot.slane %v894_v59, 4  ;;  %v912_v47 = vrot.slane %v895_v45, 4  ;;  %1116 = vst [vmem:[#allocation3 + $0x218] sm:$0xf] %v1092_v46  ;;  %2328 = vrot.lane.b32.xlu1 %v16544_v26, %s15837_s11  ;;  %v20023_v62 = vrot.slane %v16393_v17, 4 }
 0x208   :  { %2326 = vrot.lane.b32.xlu0 %v15775_v9, %s15837_s11  ;;  %1315 = vmatpush1.bf16.msra.mxu1 %v15776_v49 }
 0x209   :  { %v911_v27 = vsel %vm654_vm1, %v20023_v62, %v910_v55  ;;  %v913_v50 = vsel %vm654_vm1, %v20024_v31, %v912_v47  ;;  %v1007_v58 = vpop.permute.xlu1 %1006  ;;  %v16720_v36 = vpop.permute.xlu0 %1135  ;;  %1316 = vmatprep.subr.bf16.mxu1 %v1214_v19  ;;  %v15777_v55 = vld [vmem:[#allocation2 + $0x50] sm:$0xff]  ;;  %v15779_v31 = vld [vmem:[#allocation3 + $0xf0] sm:$0xff] }
 0x20a   :  { %v1019_v33 = vsel %vm1014_vm9, %v16585_v10, %v1007_v58  ;;  %v1020_v8 = vsel %vm1014_vm9, %v1007_v58, %v16517_v53  ;;  %v1146_v17 = vsel %vm1139_vm11, %v16542_v13, %v16720_v36  ;;  %v20025_v10 = vrot.slane %v16444_v20, 4  ;;  %v15778_v62 = vld [vmem:[#allocation3 + $0xf8] sm:$0xff] }
 0x20b   :  { %v1035_v38 = vrot.slane %v1019_v33, 4  ;;  %v1037_v39 = vrot.slane %v1020_v8, 4  ;;  %v1164_v41 = vrot.slane %v1146_v17, 4  ;;  %2338 = vrot.lane.b32.xlu1 %v16383_v15, %s15837_s11  ;;  %v20026_v53 = vrot.slane %v16448_v21, 4 }
 0x20c   :  { %2336 = vrot.lane.b32.xlu0 %v16452_v25, %s15837_s11  ;;  %1317 = vmatpush1.bf16.msra.mxu1 %v1213_v4  ;;  %v15784_v4 = vld [vmem:[#allocation3 + $0x168] sm:$0xff] }
 0x20d   :  { %v16736_v42 = vsel %vm654_vm1, %v20025_v10, %v1035_v38  ;;  %v16741_v14 = vsel %vm654_vm1, %v20026_v53, %v1037_v39  ;;  %v16746_v28 = vsel %vm654_vm1, %v20027_v24, %v1164_v41  ;;  %v1132_v15 = vpop.permute.xlu1 %1131  ;;  %v1912_v59 = vpop.permute.xlu0 %1911  ;;  %1318 = vmatprep.subr.bf16.mxu1 %v788_v5  ;;  %v15781_v39 = vld [vmem:[#allocation3 + $0x170] sm:$0xff] }
 0x20e   :  { %v1144_v45 = vsel %vm1139_vm11, %v16609_v23, %v1132_v15  ;;  %v1145_v20 = vsel %vm1139_vm11, %v1132_v15, %v16542_v13  ;;  %v1929_v21 = vsel %vm637_vm2, %v16549_v43, %v1912_v59  ;;  %v1930_v46 = vsel %vm637_vm2, %v1912_v59, %v16618_v63  ;;  %v1243_v24 = vld [vmem:[#allocation3 + $0x190] sm:$0xff] }
 0x20f   :  { %v1160_v19 = vrot.slane %v1144_v45, 4  ;;  %v1162_v6 = vrot.slane %v1145_v20, 4  ;;  %1951 = vst [vmem:[#allocation3 + $0x280] sm:$0xf0] %v1929_v21  ;;  %1952 = vst [vmem:[#allocation3 + $0x288] sm:$0xf0] %v1930_v46  ;;  %2334 = vrot.lane.b32.xlu1 %v15777_v55, %s15837_s11 }
 0x210   :  { %2324 = vrot.lane.b32.xlu0 %v16507_v0, %s15837_s11  ;;  %1319 = vmatpush1.bf16.msra.mxu1 %v786_v57  ;;  %v20028_v23 = vrot.slane %v16497_v60, 4  ;;  %v20029_v43 = vrot.slane %v16501_v30, 4  ;;  %v1229_v57 = vld [vmem:[#allocation3 + $0x120] sm:$0xff]  ;;  %v16806_v45 = vld [vmem:[#allocation2 + $0x68] sm:$0xff] }
 0x211   :  { %v1920_v47 = vpop.permute.xlu1 %1919  ;;  %v1964_v49 = vpop.permute.xlu0 %1963  ;;  %1320 = vmatprep.subr.bf16.mxu1 %v15778_v62 }
 0x212   :  { %v16762_v13 = vsel %vm654_vm1, %v20028_v23, %v1160_v19  ;;  %v16767_v5 = vsel %vm654_vm1, %v20029_v43, %v1162_v6  ;;  %v1981_v41 = vsel %vm710_vm4, %v16556_v3, %v1964_v49  ;;  %v16821_v43 = vld [vmem:[#allocation2 + $0x70] sm:$0xff] }
 0x213   :  { %2397 = vrot.lane.b32.xlu1 %v16544_v26, %s15838_s12  ;;  %v1228_v26 = vld [vmem:[#allocation3 + $0x118] sm:$0xff]  ;;  %v1995_v15 = vrot.slane %v1981_v41, 4  ;;  %v1258_v41 = vld [vmem:[#allocation3 + $0x208] sm:$0xff] }
 0x214   :  { %2395 = vrot.lane.b32.xlu0 %v15775_v9, %s15838_s12  ;;  %1321 = vmatpush1.bf16.msra.mxu1 %v15779_v31  ;;  %v15787_v31 = vld [vmem:[#allocation3 + $0x1e8] sm:$0xff] }
 0x215   :  { %v16772_v60 = vpop.permute.xlu1 %1975  ;;  %1322 = vmatprep.subr.bf16.mxu1 %v1229_v57 }
 0x216   :  { %v2033_v58 = vpop.permute.xlu0 %2032 }
 0x217   :  { %v2050_v30 = vsel %vm764_vm3, %v16561_v2, %v2033_v58  ;;  %v2051_v33 = vsel %vm764_vm3, %v2033_v58, %v16642_v51  ;;  %2405 = vrot.lane.b32.xlu1 %v16452_v25, %s15838_s12  ;;  %v15780_v2 = vld [vmem:[#allocation2 + $0x60] sm:$0xff]  ;;  %v16788_v25 = vld [vmem:[#allocation2 + $0x48] sm:$0xf0] }
 0x218   :  { %2072 = vst [vmem:[#allocation3 + $0x2f8] sm:$0xf0] %v2050_v30  ;;  %2073 = vst [vmem:[#allocation3 + $0x300] sm:$0xf0] %v2051_v33  ;;  %2393 = vrot.lane.b32.xlu0 %v16507_v0, %s15838_s12  ;;  %1323 = vmatpush1.bf16.msra.mxu1 %v1228_v26  ;;  %v16792_v0 = vld [vmem:[#allocation2 + $0x40] sm:$0xf0] }
 0x219   :  { %v1972_v9 = vpop.permute.xlu1 %1971  ;;  %1324 = vmatprep.subr.bf16.mxu1 %v913_v50  ;;  %v1244_v50 = vld [vmem:[#allocation3 + $0x198] sm:$0xff]  ;;  %v1259_v33 = vld [vmem:[#allocation3 + $0x210] sm:$0xff] }
 0x21a   :  { %v16782_v8 = vpop.permute.xlu0 %2084 }
 0x21b   :  { %2403 = vrot.lane.b32.xlu1 %v15777_v55, %s15838_s12 }
 0x21c   :  { %2407 = vrot.lane.b32.xlu0 %v15780_v2, %s15838_s12  ;;  %1325 = vmatpush1.bf16.msra.mxu1 %v911_v27  ;;  %v1982_v27 = vsel %vm710_vm4, %v1964_v49, %v16628_v35  ;;  %v15788_v2 = vld [vmem:[#allocation3 + $0x1e0] sm:$0xff] }
 0x21d   :  { %v2041_v17 = vpop.permute.xlu1 %2040  ;;  %1326 = vmatprep.subr.bf16.mxu1 %v15781_v39  ;;  %v1998_v59 = vrot.slane %v1982_v27, 4 }
 0x21e   :  { %v16786_v38 = vpop.permute.xlu0 %1923 }
 0x21f   :  { %1917 = vrot.lane.b32.xlu1 %v16788_v25, %s15830_s1 }
 0x220   :  { %1915 = vrot.lane.b32.xlu0 %v16792_v0, %s15830_s1  ;;  %1327 = vmatpush1.bf16.msra.mxu1 %v15784_v4 }
 0x221   :  { %v16800_v10 = vpop.permute.xlu1 %2096  ;;  %1328 = vmatprep.subr.bf16.mxu1 %v1244_v50 }
 0x222   :  { %v16802_v53 = vpop.permute.xlu0 %2044 }
 0x223   :  { %1969 = vrot.lane.b32.xlu1 %v16788_v25, %s15831_s28 }
 0x224   :  { %1925 = vrot.lane.b32.xlu0 %v16806_v45, %s15830_s1  ;;  %1329 = vmatpush1.bf16.msra.mxu1 %v1243_v24 }
 0x225   :  { %v1922_v3 = vpop.permute.xlu1 %1921  ;;  %1330 = vmatprep.subr.bf16.mxu1 %v16741_v14  ;;  %v2103_v14 = vsel %vm835_vm5, %v16782_v8, %v16651_v11 }
 0x226   :  { %v1974_v20 = vpop.permute.xlu0 %1973  ;;  %v16812_v21 = vsel %vm637_vm2, %v1920_v47, %v1922_v3  ;;  %v16816_v46 = vsel %vm637_vm2, %v1922_v3, %v16786_v38  ;;  %v2119_v26 = vrot.slane %v2103_v14, 4 }
 0x227   :  { %v1985_v19 = vsel %vm710_vm4, %v1972_v9, %v1974_v20  ;;  %v1986_v6 = vsel %vm710_vm4, %v1974_v20, %v16772_v60  ;;  %1927 = vrot.lane.b32.xlu1 %v16821_v43, %s15830_s1 }
 0x228   :  { %v1996_v55 = vrot.slane %v1985_v19, 4  ;;  %v1999_v23 = vrot.slane %v1986_v6, 4  ;;  %1967 = vrot.lane.b32.xlu0 %v16792_v0, %s15831_s28  ;;  %1331 = vmatpush1.bf16.msra.mxu1 %v16736_v42 }
 0x229   :  { %v2043_v62 = vpop.permute.xlu1 %2042  ;;  %1332 = vmatprep.subr.bf16.mxu1 %v15787_v31 }
 0x22a   :  { %v16832_v47 = vsel %vm654_vm1, %v1995_v15, %v1996_v55  ;;  %v16835_v49 = vsel %vm654_vm1, %v1998_v59, %v1999_v23  ;;  %2025 = vst [vmem:[#allocation3 + $0x2f8] sm:$0xf] %v1996_v55  ;;  %2026 = vst [vmem:[#allocation3 + $0x300] sm:$0xf] %v1999_v23  ;;  %v2095_v57 = vpop.permute.xlu0 %2094  ;;  %v16838_v58 = vsel %vm764_vm3, %v2041_v17, %v2043_v62 }
 0x22b   :  { %v16842_v30 = vsel %vm764_vm3, %v2043_v62, %v16802_v53  ;;  %v2107_v42 = vsel %vm835_vm5, %v2095_v57, %v16800_v10  ;;  %1979 = vrot.lane.b32.xlu1 %v16821_v43, %s15831_s28  ;;  %v16874_v62 = vld [vmem:[%s20003_s3] ss:$8 sps:$4 sm:$0xff]  }
 0x22c   :  { %v2120_v9 = vrot.slane %v2107_v42, 4  ;;  %1977 = vrot.lane.b32.xlu0 %v16806_v45, %s15831_s28  ;;  %1333 = vmatpush1.bf16.msra.mxu1 %v15788_v2 }
 0x22d   :  { %v636_v39 = vpop.permute.xlu1 %635  ;;  %1334 = vmatprep.subr.bf16.mxu1 %v1259_v33 }
 0x22e   :  { %v16851_v17 = vsel %vm654_vm1, %v2119_v26, %v2120_v9  ;;  %2147 = vst [vmem:[#allocation3 + $0x378] sm:$0xf] %v2120_v9  ;;  %v626_v50 = vpop.permute.xlu0 %625  ;;  %v645_v27 = vsel %vm637_vm2, %v16568_v52, %v636_v39  ;;  %v651_v4 = vsel %vm637_vm2, %v636_v39, 0  ;;  %v20030_v26 = vmov 0  }
 0x22f   :  { %v641_v24 = vsel %vm637_vm2, %v16308_v34, %v626_v50  ;;  %v649_v15 = vsel %vm637_vm2, %v626_v50, 0  ;;  %v666_v59 = vrot.slane %v645_v27, 4  ;;  %v668_v3 = vrot.slane %v651_v4, 4  ;;  %2038 = vrot.lane.b32.xlu1 %v16788_v25, %s15832_s29  ;;  %v15789_v4 = vld [vmem:[#allocation2 + $0x20] sm:$0xff] }
 0x230   :  { %v658_v20 = vrot.slane %v641_v24, 4  ;;  %v659_v19 = vrot.slane %v649_v15, 4  ;;  %2036 = vrot.lane.b32.xlu0 %v16792_v0, %s15832_s29  ;;  %1335 = vmatpush1.bf16.msra.mxu1 %v1258_v41  ;;  %v1200_v41 = vld [vmem:[#allocation3 + $0x38] sm:$0xff] }
 0x231   :  { %v2093_v34 = vpop.permute.xlu1 %2092  ;;  %1336 = vmatprep.subr.bf16.mxu1 %v16767_v5  ;;  %v1192_v5 = vld [vmem:[%s20003_s3 + $0x10] sm:$0xff] }
 0x232   :  { %v667_v52 = vsel %vm654_vm1, %v658_v20, %v666_v59  ;;  %v16865_v6 = vsel %vm654_vm1, %v659_v19, %v668_v3  ;;  %683 = vst [vmem:[#allocation3 + $0x40] sm:$0xf0] %v658_v20  ;;  %684 = vst [vmem:[#allocation3 + $0x48] sm:$0xf0] %v659_v19  ;;  %v2083_v55 = vpop.permute.xlu0 %2082  ;;  %v2106_v23 = vsel %vm835_vm5, %v2093_v34, %v2095_v57 }
 0x233   :  { %v2102_v14 = vsel %vm835_vm5, %v2083_v55, %v16782_v8  ;;  %v2117_v31 = vrot.slane %v2106_v23, 4  ;;  %2048 = vrot.lane.b32.xlu1 %v16821_v43, %s15832_s29 }
 0x234   :  { %v2116_v42 = vrot.slane %v2102_v14, 4  ;;  %2046 = vrot.lane.b32.xlu0 %v16806_v45, %s15832_s29  ;;  %1337 = vmatpush1.bf16.msra.mxu1 %v16762_v13 }
 0x235   :  { %2146 = vst [vmem:[#allocation3 + $0x370] sm:$0xf] %v2117_v31  ;;  %v709_v57 = vpop.permute.xlu1 %708  ;;  %1410 = vmatprep.subr.bf16.mxu1 %v20030_v26 }
 0x236   :  { %v16885_v8 = vsel %vm654_vm1, %v2116_v42, %v2117_v31  ;;  %v699_v33 = vpop.permute.xlu0 %698  ;;  %v718_v9 = vsel %vm710_vm4, %v16587_v37, %v709_v57  ;;  %v732_v2 = vsel %vm710_vm4, %v709_v57, 0  ;;  %v16901_v37 = vcombine.high %v1192_v5, %v1192_v5 }
 0x237   :  { %v714_v39 = vsel %vm710_vm4, %v16357_v56, %v699_v33  ;;  %v16894_v50 = vsel %vm710_vm4, %v699_v33, 0  ;;  %742 = vst [vmem:[#allocation3 + $0xb8] sm:$0xf] %v718_v9  ;;  %743 = vst [vmem:[#allocation3 + $0xc0] sm:$0xf] %v732_v2  ;;  %2090 = vrot.lane.b32.xlu1 %v16788_v25, %s15833_s30  ;;  %1341 = vmatmul.mubr.bf16.vlgmr.msra.gmra.mrb[12].mxu1 %v16874_v62 }
 0x238   :  { %2088 = vrot.lane.b32.xlu0 %v16792_v0, %s15833_s30  ;;  %1411 = vmatpush1.bf16.msra.mxu1 %v15789_v4 }
 0x239   :  { %v1201_v13 = vld [vmem:[#allocation3 + $0x40] sm:$0xff]  ;;  %v763_v27 = vpop.permute.xlu1 %762  ;;  %1412 = vmatprep.subr.bf16.mxu1 %v20030_v26  ;;  %v1202_v20 = vld [vmem:[#allocation3 + $0x48] sm:$0xff]  ;;  %11515 = vmatprep.mubr.msk.bf16.mxu1 %vm1301_vm10, %v16901_v37 }
 0x23a   :  { %1361 = vmatprep.subr.bf16.mxu0 %v1201_v13  ;;  %v753_v56 = vpop.permute.xlu0 %752  ;;  %v772_v24 = vsel %vm764_vm3, %v16597_v54, %v763_v27  ;;  %v777_v15 = vsel %vm764_vm3, %v763_v27, 0 }
 0x23b   :  { %v768_v59 = vsel %vm764_vm3, %v16371_v61, %v753_v56  ;;  %v775_v3 = vsel %vm764_vm3, %v753_v56, 0  ;;  %1362 = vmatpush1.bf16.msra.mxu0 %v1200_v41  ;;  %v791_v19 = vrot.slane %v772_v24, 4  ;;  %v793_v34 = vrot.slane %v777_v15, 4  ;;  %2100 = vrot.lane.b32.xlu1 %v16821_v43, %s15833_s30 }
 0x23c   :  { %v783_v55 = vrot.slane %v768_v59, 4  ;;  %v784_v23 = vrot.slane %v775_v3, 4  ;;  %2098 = vrot.lane.b32.xlu0 %v16806_v45, %s15833_s30  ;;  %1363 = vmatprep.subr.bf16.mxu0 %v667_v52  ;;  %v16916_v61 = vcombine.low %v1192_v5, %v1192_v5 }
 0x23d   :  { %v16922_v31 = vpop.permute.xlu1 %2155  ;;  %1413 = vmatpush1.bf16.msra.mxu1 %v1202_v20 }
 0x23e   :  { %v792_v54 = vsel %vm654_vm1, %v783_v55, %v791_v19  ;;  %v16920_v14 = vsel %vm654_vm1, %v784_v23, %v793_v34  ;;  %808 = vst [vmem:[#allocation3 + $0xb8] sm:$0xf0] %v783_v55  ;;  %809 = vst [vmem:[#allocation3 + $0xc0] sm:$0xf0] %v784_v23  ;;  %v824_v42 = vpop.permute.xlu0 %823 }
 0x23f   :  { %12 = vsyncpa [#allocation6], 0  ;;  %v839_v52 = vsel %vm835_vm5, %v16413_v48, %v824_v42  ;;  %v16927_v57 = vsel %vm835_vm5, %v824_v42, 0  ;;  %v15790_v5 = vld [vmem:[#allocation3 + $0x60] sm:$0xff]  ;;  %1414 = vmatprep.subr.bf16.mxu1 %v20030_v26  ;;  %2159 = vrot.lane.b32.xlu1 %v16788_v25, %s15834_s8  ;;  %v16939_v48 = vld [vmem:[%s20003_s3 + $0x4] ss:$8 sps:$4 sm:$0xff]  }
 0x240   :  { %1364 = vmatpush1.bf16.msra.mxu0 %v15790_v5  ;;  %2157 = vrot.lane.b32.xlu0 %v16792_v0, %s15834_s8  ;;  %v15792_v27 = vld [vmem:[#allocation3 + $0x88] sm:$0xff]  ;;  %v1215_v24 = vld [vmem:[#allocation3 + $0xb0] sm:$0xff]  ;;  %vm11440_vm13 = vcmask 1041408   ;;  %s15840_s14 = smov [#allocation5]  }
 0x241   :  { %1365 = vmatprep.subr.bf16.mxu0 %v714_v39  ;;  %1351 = vmatmul.mubr.bf16.gmra.mrb[16].mxu1 %v16916_v61  ;;  %v834_v33 = vpop.permute.xlu1 %833  ;;  %s11459_s15 = sshll.u32 %s15840_s14, 4  ;;  %s11460_s15 = int_to_ptr.vmem [resolvable:$true] %s11459_s15 }
 0x242   :  { %v878_v9 = vpop.permute.xlu0 %877  ;;  %1415 = vmatpush1.bf16.msra.mxu1 %v16865_v6  ;;  %11518 = vmatprep.mubr.msk.bf16.mxu1 %vm1301_vm10, %v16939_v48  ;;  %v843_v2 = vsel %vm835_vm5, %v16620_v1, %v834_v33  ;;  %v857_v13 = vsel %vm835_vm5, %v834_v33, 0  ;;  %v15793_v33 = vld [vmem:[#allocation3 + $0xd8] sm:$0xff]  ;;  %p15808_p1 = scmp.lt.s32.totalorder %s11460_s15, %s11460_s15 }
 0x243   :  { %v893_v39 = vsel %vm889_vm7, %v16424_v18, %v878_v9  ;;  %v900_v41 = vsel %vm889_vm7, %v878_v9, 0  ;;  %1416 = vmatprep.subr.bf16.mxu1 %v20030_v26  ;;  %867 = vst [vmem:[#allocation3 + $0x130] sm:$0xf] %v843_v2  ;;  %868 = vst [vmem:[#allocation3 + $0x138] sm:$0xf] %v857_v13  ;;  %2169 = vrot.lane.b32.xlu1 %v16821_v43, %s15834_s8 }
 0x244   :  { %1366 = vmatpush1.bf16.msra.mxu0 %v15792_v27  ;;  %v908_v6 = vrot.slane %v893_v39, 4  ;;  %v909_v56 = vrot.slane %v900_v41, 4  ;;  %2167 = vrot.lane.b32.xlu0 %v16806_v45, %s15834_s8 }
 0x245   :  { %v1216_v1 = vld [vmem:[#allocation3 + $0xb8] sm:$0xff]  ;;  %v888_v18 = vpop.permute.xlu1 %887 }
 0x246   :  { %933 = vst [vmem:[#allocation3 + $0x130] sm:$0xf0] %v908_v6  ;;  %934 = vst [vmem:[#allocation3 + $0x138] sm:$0xf0] %v909_v56  ;;  %1367 = vmatprep.subr.bf16.mxu0 %v1216_v1  ;;  %v949_v4 = vpop.permute.xlu0 %948  ;;  %1417 = vmatpush1.bf16.msra.mxu1 %v16894_v50  ;;  %v897_v15 = vsel %vm889_vm7, %v16630_v7, %v888_v18  ;;  %v902_v59 = vsel %vm889_vm7, %v888_v18, 0  ;;  %v1217_v7 = vld [vmem:[#allocation3 + $0xc0] sm:$0xff] }
 0x247   :  { %v16960_v3 = vsel %vm960_vm6, %v16465_v32, %v949_v4  ;;  %v16963_v20 = vsel %vm960_vm6, %v949_v4, 0  ;;  %1418 = vmatprep.subr.bf16.mxu1 %v20030_v26  ;;  %v916_v19 = vrot.slane %v897_v15, 4  ;;  %v918_v34 = vrot.slane %v902_v59, 4  ;;  %2211 = vrot.lane.b32.xlu1 %v16788_v25, %s15835_s9 }
 0x248   :  { %1368 = vmatpush1.bf16.msra.mxu0 %v1215_v24  ;;  %2209 = vrot.lane.b32.xlu0 %v16792_v0, %s15835_s9 }
 0x249   :  { %1369 = vmatprep.subr.bf16.mxu0 %v792_v54  ;;  %v917_v50 = vsel %vm654_vm1, %v908_v6, %v916_v19  ;;  %v16972_v32 = vsel %vm654_vm1, %v909_v56, %v918_v34  ;;  %v16974_v55 = vpop.permute.xlu1 %2163  ;;  %v15794_v6 = vld [vmem:[#allocation3 + $0x100] sm:$0xff] }
 0x24a   :  { %v1003_v23 = vpop.permute.xlu0 %1002  ;;  %1419 = vmatpush1.bf16.msra.mxu1 %v1217_v7 }
 0x24b   :  { %v1018_v42 = vsel %vm1014_vm9, %v16478_v44, %v1003_v23  ;;  %v1025_v5 = vsel %vm1014_vm9, %v1003_v23, 0  ;;  %1420 = vmatprep.subr.bf16.mxu1 %v20030_v26  ;;  %2221 = vrot.lane.b32.xlu1 %v16821_v43, %s15835_s9 }
 0x24c   :  { %1370 = vmatpush1.bf16.msra.mxu0 %v15793_v33  ;;  %v1033_v54 = vrot.slane %v1018_v42, 4  ;;  %v1034_v9 = vrot.slane %v1025_v5, 4  ;;  %2219 = vrot.lane.b32.xlu0 %v16806_v45, %s15835_s9  ;;  %v15795_v5 = vld [vmem:[#allocation3 + $0x150] sm:$0xff] }
 0x24d   :  { %1371 = vmatprep.subr.bf16.mxu0 %v839_v52  ;;  %v959_v2 = vpop.permute.xlu1 %958  ;;  %v1230_v52 = vld [vmem:[#allocation3 + $0x128] sm:$0xff] }
 0x24e   :  { %1058 = vst [vmem:[#allocation3 + $0x1a8] sm:$0xf0] %v1033_v54  ;;  %1059 = vst [vmem:[#allocation3 + $0x1b0] sm:$0xf0] %v1034_v9  ;;  %v1074_v13 = vpop.permute.xlu0 %1073  ;;  %1421 = vmatpush1.bf16.msra.mxu1 %v16920_v14  ;;  %v968_v44 = vsel %vm960_vm6, %v16653_v12, %v959_v2  ;;  %v982_v39 = vsel %vm960_vm6, %v959_v2, 0  ;;  %v1231_v12 = vld [vmem:[#allocation3 + $0x130] sm:$0xff] }
 0x24f   :  { %v16990_v41 = vsel %vm1085_vm8, %v16515_v29, %v1074_v13  ;;  %v16993_v27 = vsel %vm1085_vm8, %v1074_v13, 0  ;;  %1422 = vmatprep.subr.bf16.mxu1 %v20030_v26  ;;  %992 = vst [vmem:[#allocation3 + $0x1a8] sm:$0xf] %v968_v44  ;;  %993 = vst [vmem:[#allocation3 + $0x1b0] sm:$0xf] %v982_v39  ;;  %2280 = vrot.lane.b32.xlu1 %v16788_v25, %s15836_s10  ;;  %v1245_v44 = vld [vmem:[#allocation3 + $0x1a0] sm:$0xff] }
 0x250   :  { %1372 = vmatpush1.bf16.msra.mxu0 %v15794_v6  ;;  %2278 = vrot.lane.b32.xlu0 %v16792_v0, %s15836_s10 }
 0x251   :  { %1373 = vmatprep.subr.bf16.mxu0 %v1231_v12  ;;  %v1013_v14 = vpop.permute.xlu1 %1012 }
 0x252   :  { %v1128_v29 = vpop.permute.xlu0 %1127  ;;  %1423 = vmatpush1.bf16.msra.mxu1 %v16927_v57  ;;  %v1022_v56 = vsel %vm1014_vm9, %v16661_v22, %v1013_v14  ;;  %v1027_v1 = vsel %vm1014_vm9, %v1013_v14, 0  ;;  %v1232_v22 = vld [vmem:[#allocation3 + $0x138] sm:$0xff] }
 0x253   :  { %v1143_v18 = vsel %vm1139_vm11, %v16525_v16, %v1128_v29  ;;  %v1150_v4 = vsel %vm1139_vm11, %v1128_v29, 0  ;;  %1424 = vmatprep.subr.bf16.mxu1 %v20030_v26  ;;  %v1041_v24 = vrot.slane %v1022_v56, 4  ;;  %v1043_v15 = vrot.slane %v1027_v1, 4  ;;  %2290 = vrot.lane.b32.xlu1 %v16821_v43, %s15836_s10  ;;  %v15796_v1 = vld [vmem:[#allocation3 + $0x1c8] sm:$0xff] }
 0x254   :  { %1374 = vmatpush1.bf16.msra.mxu0 %v1230_v52  ;;  %v1158_v59 = vrot.slane %v1143_v18, 4  ;;  %v1159_v19 = vrot.slane %v1150_v4, 4  ;;  %2288 = vrot.lane.b32.xlu0 %v16806_v45, %s15836_s10 }
 0x255   :  { %1375 = vmatprep.subr.bf16.mxu0 %v917_v50  ;;  %v1042_v57 = vsel %vm654_vm1, %v1033_v54, %v1041_v24  ;;  %v1044_v16 = vsel %vm654_vm1, %v1034_v9, %v1043_v15  ;;  %v2162_v34 = vpop.permute.xlu1 %2161  ;;  %v1240_v54 = vld [vmem:[#allocation3 + $0x178] sm:$0xff]  ;;  %v1255_v24 = vld [vmem:[#allocation3 + $0x1f0] sm:$0xff] }
 0x256   :  { %1183 = vst [vmem:[#allocation3 + $0x220] sm:$0xf0] %v1158_v59  ;;  %1184 = vst [vmem:[#allocation3 + $0x228] sm:$0xf0] %v1159_v19  ;;  %v2154_v7 = vpop.permute.xlu0 %2153  ;;  %1425 = vmatpush1.bf16.msra.mxu1 %v1232_v22  ;;  %v17016_v23 = vsel %vm889_vm7, %v2162_v34, %v16974_v55 }
 0x257   :  { %v2172_v42 = vsel %vm889_vm7, %v2154_v7, %v16922_v31  ;;  %1426 = vmatprep.subr.bf16.mxu1 %v20030_v26  ;;  %2332 = vrot.lane.b32.xlu1 %v16788_v25, %s15837_s11 }
 0x258   :  { %1376 = vmatpush1.bf16.msra.mxu0 %v15795_v5  ;;  %2194 = vst [vmem:[#allocation3 + $0x378] sm:$0xf0] %v2172_v42  ;;  %2330 = vrot.lane.b32.xlu0 %v16792_v0, %s15837_s11 }
 0x259   :  { %1377 = vmatprep.subr.bf16.mxu0 %v16960_v3  ;;  %v1084_v50 = vpop.permute.xlu1 %1083  ;;  %v1246_v3 = vld [vmem:[#allocation3 + $0x1a8] sm:$0xff] }
 0x25a   :  { %v2152_v33 = vpop.permute.xlu0 %2151  ;;  %1427 = vmatpush1.bf16.msra.mxu1 %v16972_v32  ;;  %v1093_v9 = vsel %vm1085_vm8, %v16701_v40, %v1084_v50  ;;  %v1107_v2 = vsel %vm1085_vm8, %v1084_v50, 0  ;;  %v2525_v50 = vld [vmem:[%s20004_s4 + $0x10] sm:$0xff] }
 0x25b   :  { %v2171_v13 = vsel %vm889_vm7, %v2152_v33, %v2154_v7  ;;  %1428 = vmatprep.subr.bf16.mxu1 %v20030_v26  ;;  %1117 = vst [vmem:[#allocation3 + $0x220] sm:$0xf] %v1093_v9  ;;  %1118 = vst [vmem:[#allocation3 + $0x228] sm:$0xf] %v1107_v2  ;;  %2342 = vrot.lane.b32.xlu1 %v16821_v43, %s15837_s11 }
 0x25c   :  { %1378 = vmatpush1.bf16.msra.mxu0 %v1240_v54  ;;  %2193 = vst [vmem:[#allocation3 + $0x370] sm:$0xf0] %v2171_v13  ;;  %2340 = vrot.lane.b32.xlu0 %v16806_v45, %s15837_s11  ;;  %v15797_v13 = vld [vmem:[#allocation3 + $0x260] sm:$0xff] }
 0x25d   :  { %1379 = vmatprep.subr.bf16.mxu0 %v1246_v3  ;;  %v1138_v32 = vpop.permute.xlu1 %1137 }
 0x25e   :  { %v17036_v40 = vpop.permute.xlu0 %2165  ;;  %1429 = vmatpush1.bf16.msra.mxu1 %v16963_v20  ;;  %v1147_v39 = vsel %vm1139_vm11, %v16720_v36, %v1138_v32  ;;  %v1152_v6 = vsel %vm1139_vm11, %v1138_v32, 0  ;;  %v1247_v36 = vld [vmem:[#allocation3 + $0x1b0] sm:$0xff] }
 0x25f   :  { %v17045_v12 = vsel %vm889_vm7, %v16974_v55, %v17036_v40  ;;  %1430 = vmatprep.subr.bf16.mxu1 %v20030_v26  ;;  %v1166_v14 = vrot.slane %v1147_v39, 4  ;;  %v1168_v29 = vrot.slane %v1152_v6, 4  ;;  %2401 = vrot.lane.b32.xlu1 %v16788_v25, %s15838_s12  ;;  %v15798_v39 = vld [vmem:[#allocation3 + $0x258] sm:$0xff]  ;;  %v2454_v6 = vld [vmem:[#allocation3 + $0x288] sm:$0xff] }
 0x260   :  { %1380 = vmatpush1.bf16.msra.mxu0 %v1245_v44  ;;  %2399 = vrot.lane.b32.xlu0 %v16792_v0, %s15838_s12  ;;  %v2523_v0 = vld [vmem:[%s20004_s4] sm:$0xff] }
 0x261   :  { %1381 = vmatprep.subr.bf16.mxu0 %v1042_v57  ;;  %v1167_v20 = vsel %vm654_vm1, %v1158_v59, %v1166_v14  ;;  %v1169_v52 = vsel %vm654_vm1, %v1159_v19, %v1168_v29  ;;  %v17054_v56 = vpop.permute.xlu1 %2207  ;;  %v2524_v59 = vld [vmem:[%s20004_s4 + $0x8] sm:$0xff] }
 0x262   :  { %v2206_v55 = vpop.permute.xlu0 %2205  ;;  %1431 = vmatpush1.bf16.msra.mxu1 %v1247_v36  ;;  %v1262_v33 = vld [vmem:[#allocation3 + $0x228] sm:$0xff]  ;;  %v2453_v36 = vld [vmem:[#allocation3 + $0x280] sm:$0xff] }
 0x263   :  { %1432 = vmatprep.subr.bf16.mxu1 %v20030_v26  ;;  %2411 = vrot.lane.b32.xlu1 %v16821_v43, %s15838_s12  ;;  %v2224_v25 = vsel %vm960_vm6, %v2206_v55, %v17054_v56 }
 0x264   :  { %1382 = vmatpush1.bf16.msra.mxu0 %v15796_v1  ;;  %2409 = vrot.lane.b32.xlu0 %v16806_v45, %s15838_s12  ;;  %v2240_v45 = vrot.slane %v2224_v25, 4 }
 0x265   :  { %1383 = vmatprep.subr.bf16.mxu0 %v16990_v41  ;;  %v17067_v18 = vpop.permute.xlu1 %2217  ;;  %v1261_v41 = vld [vmem:[#allocation3 + $0x220] sm:$0xff] }
 0x266   :  { %v2216_v4 = vpop.permute.xlu0 %2215  ;;  %1433 = vmatpush1.bf16.msra.mxu1 %v1044_v16  ;;  %v1260_v16 = vld [vmem:[#allocation3 + $0x218] sm:$0xff] }
 0x267   :  { %v2228_v43 = vsel %vm960_vm6, %v2216_v4, %v17067_v18  ;;  %1434 = vmatprep.subr.bf16.mxu1 %v20030_v26  ;;  %2528 = vperm.xlu1 %14979, %v2523_v0  }
 0x268   :  { %1384 = vmatpush1.bf16.msra.mxu0 %v1255_v24  ;;  %v2241_v15 = vrot.slane %v2228_v43, 4  ;;  %1273 = vperm.xlu0 %14978, %v2523_v0  }
 0x269   :  { %1385 = vmatprep.subr.bf16.mxu0 %v1261_v41  ;;  %v2214_v22 = vpop.permute.xlu1 %2213 }
 0x26a   :  { %v17076_v19 = vsel %vm654_vm1, %v2240_v45, %v2241_v15  ;;  %2268 = vst [vmem:[#allocation3 + $0x3f0] sm:$0xf] %v2241_v15  ;;  %v2204_v57 = vpop.permute.xlu0 %2203  ;;  %1435 = vmatpush1.bf16.msra.mxu1 %v16993_v27  ;;  %v2227_v34 = vsel %vm960_vm6, %v2214_v22, %v2216_v4 }
 0x26b   :  { %v2223_v7 = vsel %vm960_vm6, %v2204_v57, %v2206_v55  ;;  %1436 = vmatprep.subr.bf16.mxu1 %v20030_v26  ;;  %v2238_v42 = vrot.slane %v2227_v34, 4  ;;  %2533 = vperm.xlu1 %14979, %v2524_v59  }
 0x26c   :  { %1386 = vmatpush1.bf16.msra.mxu0 %v1260_v16  ;;  %v2237_v5 = vrot.slane %v2223_v7, 4  ;;  %1278 = vperm.xlu0 %14978, %v2524_v59   ;;  %v2468_v59 = vld [vmem:[#allocation3 + $0x2f8] sm:$0xff] }
 0x26d   :  { %1387 = vmatprep.subr.bf16.mxu0 %v1167_v20  ;;  %2267 = vst [vmem:[#allocation3 + $0x3e8] sm:$0xf] %v2238_v42  ;;  %v17088_v54 = vpop.permute.xlu1 %2276  ;;  %v15800_v20 = vld [vmem:[#allocation3 + $0x268] sm:$0xff] }
 0x26e   :  { %v17086_v27 = vsel %vm654_vm1, %v2237_v5, %v2238_v42  ;;  %v2275_v9 = vpop.permute.xlu0 %2274  ;;  %1437 = vmatpush1.bf16.msra.mxu1 %v1262_v33 }
 0x26f   :  { %v2293_v2 = vsel %vm1014_vm9, %v2275_v9, %v17088_v54  ;;  %1438 = vmatprep.subr.bf16.mxu1 %v20030_v26  ;;  %2538 = vperm.xlu1 %14979, %v2525_v50  }
 0x270   :  { %1388 = vmatpush1.bf16.msra.mxu0 %v16746_v28  ;;  %2315 = vst [vmem:[#allocation3 + $0x3f0] sm:$0xf0] %v2293_v2  ;;  %1283 = vperm.xlu0 %14978, %v2525_v50   ;;  %v15799_v28 = vld [vmem:[#allocation3 + $0x270] sm:$0xff] }
 0x271   :  { %2562 = vmatprep.subr.bf16.mxu0 %v15797_v13  ;;  %v2285_v3 = vpop.permute.xlu1 %2284 }
 0x272   :  { %v2273_v32 = vpop.permute.xlu0 %2272  ;;  %1439 = vmatpush1.bf16.msra.mxu1 %v1169_v52 }
 0x273   :  { %1392 = vmatmul.mubr.bf16.vlgmr.msra.gmra.mrb[24].mxu0 %v16874_v62  ;;  %v2292_v44 = vsel %vm1014_vm9, %v2273_v32, %v2275_v9  ;;  %2613 = vmatprep.subr.bf16.mxu1 %v15799_v28 }
 0x274   :  { %2563 = vmatpush1.bf16.msra.mxu0 %v15798_v39  ;;  %11517 = vmatprep.mubr.msk.bf16.mxu0 %vm1301_vm10, %v16901_v37  ;;  %2314 = vst [vmem:[#allocation3 + $0x3e8] sm:$0xf0] %v2292_v44 }
 0x275   :  { %2564 = vmatprep.subr.bf16.mxu0 %v2454_v6  ;;  %1443 = vmatmul.mubr.bf16.vlgmr.msra.gmra.mrb[20].mxu1 %v16874_v62  ;;  %v2283_v14 = vpop.permute.xlu1 %2282 }
 0x276   :  { %v17099_v29 = vpop.permute.xlu0 %2286  ;;  %2614 = vmatpush1.bf16.msra.mxu1 %v15800_v20  ;;  %11519 = vmatprep.mubr.msk.bf16.mxu1 %vm1301_vm10, %v16901_v37  ;;  %v17104_v52 = vsel %vm1014_vm9, %v2283_v14, %v2285_v3 }
 0x277   :  { %v17108_v55 = vsel %vm1014_vm9, %v2285_v3, %v17099_v29  ;;  %v2483_v3 = vld [vmem:[#allocation3 + $0x370] sm:$0xff] }
 0x278   :  { %2565 = vmatpush1.bf16.msra.mxu0 %v2453_v36  ;;  %v2499_v36 = vld [vmem:[#allocation3 + $0x3f0] sm:$0xff] }
 0x279   :  { %2566 = vmatprep.subr.bf16.mxu0 %v16816_v46  ;;  %v17111_v1 = vpop.permute.xlu1 %2328 }
 0x27a   :  { %v2327_v25 = vpop.permute.xlu0 %2326 }
 0x27b   :  { %1402 = vmatmul.mubr.bf16.gmra.mrb[28].mxu0 %v16916_v61  ;;  %v2345_v0 = vsel %vm1085_vm8, %v2327_v25, %v17111_v1 }
 0x27c   :  { %2567 = vmatpush1.bf16.msra.mxu0 %v16812_v21  ;;  %11524 = vmatprep.mubr.msk.bf16.mxu0 %vm1301_vm10, %v16939_v48  ;;  %v2469_v21 = vld [vmem:[#allocation3 + $0x300] sm:$0xff]  ;;  %v2361_v43 = vrot.slane %v2345_v0, 4 }
 0x27d   :  { %2568 = vmatprep.subr.bf16.mxu0 %v16835_v49  ;;  %1451 = vmatmul.mubr.bf16.gmra.mrb[24].mxu1 %v16916_v61  ;;  %v17121_v4 = vpop.permute.xlu1 %2338 }
 0x27e   :  { %v2337_v46 = vpop.permute.xlu0 %2336  ;;  %11526 = vmatprep.mubr.msk.bf16.mxu1 %vm1301_vm10, %v16939_v48 }
 0x27f   :  { %v2349_v24 = vsel %vm1085_vm8, %v2337_v46, %v17121_v4 }
 0x280   :  { %2569 = vmatpush1.bf16.msra.mxu0 %v16832_v47  ;;  %v2362_v45 = vrot.slane %v2349_v24, 4 }
 0x281   :  { %2570 = vmatprep.subr.bf16.mxu0 %v2469_v21  ;;  %v2335_v15 = vpop.permute.xlu1 %2334 }
 0x282   :  { %v17129_v49 = vsel %vm654_vm1, %v2361_v43, %v2362_v45  ;;  %2389 = vst [vmem:[#allocation3 + $0x468] sm:$0xf] %v2362_v45  ;;  %v2325_v41 = vpop.permute.xlu0 %2324  ;;  %v2348_v22 = vsel %vm1085_vm8, %v2335_v15, %v2337_v46 }
 0x283   :  { %v2344_v57 = vsel %vm1085_vm8, %v2325_v41, %v2327_v25  ;;  %v2359_v16 = vrot.slane %v2348_v22, 4  ;;  %v2498_v25 = vld [vmem:[#allocation3 + $0x3e8] sm:$0xff] }
 0x284   :  { %2571 = vmatpush1.bf16.msra.mxu0 %v2468_v59  ;;  %v2358_v34 = vrot.slane %v2344_v57, 4 }
 0x285   :  { %2572 = vmatprep.subr.bf16.mxu0 %v16842_v30  ;;  %2388 = vst [vmem:[#allocation3 + $0x460] sm:$0xf] %v2359_v16  ;;  %v17137_v7 = vpop.permute.xlu1 %2397  ;;  %v2484_v30 = vld [vmem:[#allocation3 + $0x378] sm:$0xff] }
 0x286   :  { %v17135_v47 = vsel %vm654_vm1, %v2358_v34, %v2359_v16  ;;  %v2396_v42 = vpop.permute.xlu0 %2395 }
 0x287   :  { %v2414_v5 = vsel %vm1139_vm11, %v2396_v42, %v17137_v7 }
 0x288   :  { %2573 = vmatpush1.bf16.msra.mxu0 %v16838_v58  ;;  %2436 = vst [vmem:[#allocation3 + $0x468] sm:$0xf0] %v2414_v5 }
 0x289   :  { %2574 = vmatprep.subr.bf16.mxu0 %v16851_v17  ;;  %v2406_v50 = vpop.permute.xlu1 %2405 }
 0x28a   :  { %v2394_v33 = vpop.permute.xlu0 %2393 }
 0x28b   :  { %v2413_v9 = vsel %vm1139_vm11, %v2394_v33, %v2396_v42 }
 0x28c   :  { %2575 = vmatpush1.bf16.msra.mxu0 %v16885_v8  ;;  %2435 = vst [vmem:[#allocation3 + $0x460] sm:$0xf0] %v2413_v9 }
 0x28d   :  { %2576 = vmatprep.subr.bf16.mxu0 %v2484_v30  ;;  %v2404_v2 = vpop.permute.xlu1 %2403 }
 0x28e   :  { %v17145_v13 = vpop.permute.xlu0 %2407  ;;  %v17148_v32 = vsel %vm1139_vm11, %v2404_v2, %v2406_v50 }
 0x28f   :  { %v17152_v58 = vsel %vm1139_vm11, %v2406_v50, %v17145_v13  ;;  %v2514_v9 = vld [vmem:[#allocation3 + $0x468] sm:$0xff] }
 0x290   :  { %2577 = vmatpush1.bf16.msra.mxu0 %v2483_v3 }
 0x291   :  { %2578 = vmatprep.subr.bf16.mxu0 %v17045_v12  ;;  %v1918_v17 = vpop.permute.xlu1 %1917 }
 0x292   :  { %v1916_v44 = vpop.permute.xlu0 %1915  ;;  %v1946_v8 = vsel %vm637_vm2, %v1918_v17, 0 }
 0x293   :  { %v1931_v39 = vsel %vm637_vm2, %v16618_v63, %v1916_v44  ;;  %v1932_v6 = vsel %vm637_vm2, %v1916_v44, %v1918_v17  ;;  %1955 = vst [vmem:[#allocation3 + $0x2a0] sm:$0xf0] %v1946_v8  ;;  %v2513_v3 = vld [vmem:[#allocation3 + $0x460] sm:$0xff] }
 0x294   :  { %2579 = vmatpush1.bf16.msra.mxu0 %v17016_v23  ;;  %1953 = vst [vmem:[#allocation3 + $0x290] sm:$0xf0] %v1931_v39  ;;  %1954 = vst [vmem:[#allocation3 + $0x298] sm:$0xf0] %v1932_v6 }
 0x295   :  { %2580 = vmatprep.subr.bf16.mxu0 %v17076_v19  ;;  %v1970_v28 = vpop.permute.xlu1 %1969 }
 0x296   :  { %v1926_v14 = vpop.permute.xlu0 %1925  ;;  %v1990_v0 = vsel %vm710_vm4, %v1970_v28, 0 }
 0x297   :  { %v1935_v12 = vsel %vm637_vm2, %v16786_v38, %v1926_v14  ;;  %v2007_v21 = vrot.slane %v1990_v0, 4 }
 0x298   :  { %2581 = vmatpush1.bf16.msra.mxu0 %v17086_v27 }
 0x299   :  { %2582 = vmatprep.subr.bf16.mxu0 %v2499_v36  ;;  %v1928_v20 = vpop.permute.xlu1 %1927 }
 0x29a   :  { %v1968_v63 = vpop.permute.xlu0 %1967  ;;  %v1936_v23 = vsel %vm637_vm2, %v1926_v14, %v1928_v20  ;;  %v17167_v46 = vsel %vm637_vm2, %v1928_v20, 0 }
 0x29b   :  { %v2456_v19 = vld [vmem:[#allocation3 + $0x298] sm:$0xff]  ;;  %v2455_v24 = vld [vmem:[#allocation3 + $0x290] sm:$0xff]  ;;  %v1983_v38 = vsel %vm710_vm4, %v16628_v35, %v1968_v63  ;;  %v1984_v27 = vsel %vm710_vm4, %v1968_v63, %v1970_v28 }
 0x29c   :  { %2583 = vmatpush1.bf16.msra.mxu0 %v2498_v25  ;;  %2615 = vmatprep.subr.bf16.mxu1 %v2456_v19  ;;  %v2001_v15 = vrot.slane %v1983_v38, 4  ;;  %v2004_v35 = vrot.slane %v1984_v27, 4  ;;  %v15801_v25 = vld [vmem:[#allocation3 + $0x278] sm:$0xff] }
 0x29d   :  { %2584 = vmatprep.subr.bf16.mxu0 %v17108_v55  ;;  %2616 = vmatpush1.bf16.msra.mxu1 %v2455_v24  ;;  %v1980_v43 = vpop.permute.xlu1 %1979 }
 0x29e   :  { %v1978_v45 = vpop.permute.xlu0 %1977  ;;  %2617 = vmatprep.subr.bf16.mxu1 %v1936_v23  ;;  %v1992_v41 = vsel %vm710_vm4, %v1980_v43, 0 }
 0x29f   :  { %v1987_v59 = vsel %vm710_vm4, %v16772_v60, %v1978_v45  ;;  %v1988_v22 = vsel %vm710_vm4, %v1978_v45, %v1980_v43  ;;  %v2008_v55 = vrot.slane %v1992_v41, 4  ;;  %v2457_v43 = vld [vmem:[#allocation3 + $0x2a0] sm:$0xff] }
 0x2a0   :  { %2585 = vmatpush1.bf16.msra.mxu0 %v17104_v52  ;;  %v2002_v57 = vrot.slane %v1987_v59, 4  ;;  %v2005_v16 = vrot.slane %v1988_v22, 4 }
 0x2a1   :  { %2586 = vmatprep.subr.bf16.mxu0 %v17129_v49  ;;  %2618 = vmatpush1.bf16.msra.mxu1 %v1935_v12  ;;  %v17180_v34 = vsel %vm654_vm1, %v2007_v21, %v2008_v55  ;;  %2029 = vst [vmem:[#allocation3 + $0x318] sm:$0xf] %v2008_v55  ;;  %v2039_v60 = vpop.permute.xlu1 %2038 }
 0x2a2   :  { %v2003_v42 = vsel %vm654_vm1, %v2001_v15, %v2002_v57  ;;  %v2006_v5 = vsel %vm654_vm1, %v2004_v35, %v2005_v16  ;;  %2027 = vst [vmem:[#allocation3 + $0x308] sm:$0xf] %v2002_v57  ;;  %2028 = vst [vmem:[#allocation3 + $0x310] sm:$0xf] %v2005_v16  ;;  %v2037_v50 = vpop.permute.xlu0 %2036  ;;  %v2067_v52 = vsel %vm764_vm3, %v2039_v60, 0 }
 0x2a3   :  { %v2052_v33 = vsel %vm764_vm3, %v16642_v51, %v2037_v50  ;;  %v2053_v49 = vsel %vm764_vm3, %v2037_v50, %v2039_v60  ;;  %2619 = vmatprep.subr.bf16.mxu1 %v2006_v5  ;;  %2076 = vst [vmem:[#allocation3 + $0x318] sm:$0xf0] %v2067_v52 }
 0x2a4   :  { %2587 = vmatpush1.bf16.msra.mxu0 %v17135_v47  ;;  %2074 = vst [vmem:[#allocation3 + $0x308] sm:$0xf0] %v2052_v33  ;;  %2075 = vst [vmem:[#allocation3 + $0x310] sm:$0xf0] %v2053_v49 }
 0x2a5   :  { %2588 = vmatprep.subr.bf16.mxu0 %v2514_v9  ;;  %2620 = vmatpush1.bf16.msra.mxu1 %v2003_v42  ;;  %v2049_v30 = vpop.permute.xlu1 %2048 }
 0x2a6   :  { %v2047_v2 = vpop.permute.xlu0 %2046  ;;  %v17190_v17 = vsel %vm764_vm3, %v2049_v30, 0 }
 0x2a7   :  { %v2056_v51 = vsel %vm764_vm3, %v16802_v53, %v2047_v2  ;;  %v2057_v44 = vsel %vm764_vm3, %v2047_v2, %v2049_v30 }
 0x2a8   :  { %2589 = vmatpush1.bf16.msra.mxu0 %v2513_v3 }
 0x2a9   :  { %2590 = vmatprep.subr.bf16.mxu0 %v17152_v58  ;;  %v2091_v47 = vpop.permute.xlu1 %2090 }
 0x2aa   :  { %v2089_v8 = vpop.permute.xlu0 %2088  ;;  %v2111_v39 = vsel %vm835_vm5, %v2091_v47, 0  ;;  %v2472_v33 = vld [vmem:[#allocation3 + $0x318] sm:$0xff] }
 0x2ab   :  { %v2471_v6 = vld [vmem:[#allocation3 + $0x310] sm:$0xff]  ;;  %v2470_v28 = vld [vmem:[#allocation3 + $0x308] sm:$0xff]  ;;  %v2104_v14 = vsel %vm835_vm5, %v16651_v11, %v2089_v8  ;;  %v2105_v53 = vsel %vm835_vm5, %v2089_v8, %v2091_v47  ;;  %v2128_v12 = vrot.slane %v2111_v39, 4 }
 0x2ac   :  { %2591 = vmatpush1.bf16.msra.mxu0 %v17148_v32  ;;  %2621 = vmatprep.subr.bf16.mxu1 %v2471_v6  ;;  %v2122_v20 = vrot.slane %v2104_v14, 4  ;;  %v2125_v0 = vrot.slane %v2105_v53, 4 }
 0x2ad   :  { %2664 = vmatprep.subr.bf16.mxu0 %v20030_v26  ;;  %2622 = vmatpush1.bf16.msra.mxu1 %v2470_v28  ;;  %v2101_v36 = vpop.permute.xlu1 %2100 }
 0x2ae   :  { %v2099_v58 = vpop.permute.xlu0 %2098  ;;  %2623 = vmatprep.subr.bf16.mxu1 %v2057_v44  ;;  %v2113_v32 = vsel %vm835_vm5, %v2101_v36, 0 }
 0x2af   :  { %2595 = vmatmul.mubr.bf16.vlgmr.msra.gmra.mrb[32].mxu0 %v16874_v62  ;;  %v2108_v63 = vsel %vm835_vm5, %v16800_v10, %v2099_v58  ;;  %v2109_v11 = vsel %vm835_vm5, %v2099_v58, %v2101_v36  ;;  %v2129_v23 = vrot.slane %v2113_v32, 4 }
 0x2b0   :  { %2665 = vmatpush1.bf16.msra.mxu0 %v15801_v25  ;;  %11525 = vmatprep.mubr.msk.bf16.mxu0 %vm1301_vm10, %v16901_v37  ;;  %v2123_v19 = vrot.slane %v2108_v63, 4  ;;  %v2126_v24 = vrot.slane %v2109_v11, 4 }
 0x2b1   :  { %2666 = vmatprep.subr.bf16.mxu0 %v20030_v26  ;;  %2624 = vmatpush1.bf16.msra.mxu1 %v2056_v51  ;;  %v17211_v62 = vsel %vm654_vm1, %v2128_v12, %v2129_v23  ;;  %2150 = vst [vmem:[#allocation3 + $0x390] sm:$0xf] %v2129_v23  ;;  %v2160_v27 = vpop.permute.xlu1 %2159 }
 0x2b2   :  { %v2124_v10 = vsel %vm654_vm1, %v2122_v20, %v2123_v19  ;;  %v2127_v38 = vsel %vm654_vm1, %v2125_v0, %v2126_v24  ;;  %2148 = vst [vmem:[#allocation3 + $0x380] sm:$0xf] %v2123_v19  ;;  %2149 = vst [vmem:[#allocation3 + $0x388] sm:$0xf] %v2126_v24  ;;  %v2158_v21 = vpop.permute.xlu0 %2157  ;;  %v2188_v45 = vsel %vm889_vm7, %v2160_v27, 0 }
 0x2b3   :  { %v2173_v15 = vsel %vm889_vm7, %v16922_v31, %v2158_v21  ;;  %v2174_v41 = vsel %vm889_vm7, %v2158_v21, %v2160_v27  ;;  %2625 = vmatprep.subr.bf16.mxu1 %v2127_v38  ;;  %2197 = vst [vmem:[#allocation3 + $0x390] sm:$0xf0] %v2188_v45 }
 0x2b4   :  { %2667 = vmatpush1.bf16.msra.mxu0 %v2457_v43  ;;  %2195 = vst [vmem:[#allocation3 + $0x380] sm:$0xf0] %v2173_v15  ;;  %2196 = vst [vmem:[#allocation3 + $0x388] sm:$0xf0] %v2174_v41 }
 0x2b5   :  { %2668 = vmatprep.subr.bf16.mxu0 %v20030_v26  ;;  %2626 = vmatpush1.bf16.msra.mxu1 %v2124_v10  ;;  %v2170_v59 = vpop.permute.xlu1 %2169 }
 0x2b6   :  { %v2168_v22 = vpop.permute.xlu0 %2167  ;;  %v17222_v35 = vsel %vm889_vm7, %v2170_v59, 0 }
 0x2b7   :  { %2605 = vmatmul.mubr.bf16.gmra.mrb[36].mxu0 %v16916_v61  ;;  %v2177_v31 = vsel %vm889_vm7, %v17036_v40, %v2168_v22  ;;  %v2178_v55 = vsel %vm889_vm7, %v2168_v22, %v2170_v59 }
 0x2b8   :  { %2669 = vmatpush1.bf16.msra.mxu0 %v17167_v46  ;;  %11528 = vmatprep.mubr.msk.bf16.mxu0 %vm1301_vm10, %v16939_v48 }
 0x2b9   :  { %2670 = vmatprep.subr.bf16.mxu0 %v20030_v26  ;;  %v2212_v57 = vpop.permute.xlu1 %2211 }
 0x2ba   :  { %v2210_v16 = vpop.permute.xlu0 %2209  ;;  %v2232_v42 = vsel %vm960_vm6, %v2212_v57, 0  ;;  %v2487_v32 = vld [vmem:[#allocation3 + $0x390] sm:$0xff] }
 0x2bb   :  { %v2486_v5 = vld [vmem:[#allocation3 + $0x388] sm:$0xff]  ;;  %v2485_v60 = vld [vmem:[#allocation3 + $0x380] sm:$0xff]  ;;  %v2225_v40 = vsel %vm960_vm6, %v17054_v56, %v2210_v16  ;;  %v2226_v46 = vsel %vm960_vm6, %v2210_v16, %v2212_v57  ;;  %v2249_v48 = vrot.slane %v2232_v42, 4 }
 0x2bc   :  { %2671 = vmatpush1.bf16.msra.mxu0 %v17180_v34  ;;  %2627 = vmatprep.subr.bf16.mxu1 %v2486_v5  ;;  %v2243_v49 = vrot.slane %v2225_v40, 4  ;;  %v2246_v56 = vrot.slane %v2226_v46, 4 }
 0x2bd   :  { %2672 = vmatprep.subr.bf16.mxu0 %v20030_v26  ;;  %2628 = vmatpush1.bf16.msra.mxu1 %v2485_v60  ;;  %v2222_v50 = vpop.permute.xlu1 %2221 }
 0x2be   :  { %v2220_v52 = vpop.permute.xlu0 %2219  ;;  %2629 = vmatprep.subr.bf16.mxu1 %v2178_v55  ;;  %v2234_v9 = vsel %vm960_vm6, %v2222_v50, 0 }
 0x2bf   :  { %v2229_v34 = vsel %vm960_vm6, %v17067_v18, %v2220_v52  ;;  %v2230_v30 = vsel %vm960_vm6, %v2220_v52, %v2222_v50  ;;  %v2250_v2 = vrot.slane %v2234_v9, 4 }
 0x2c0   :  { %2673 = vmatpush1.bf16.msra.mxu0 %v2472_v33  ;;  %v2244_v3 = vrot.slane %v2229_v34, 4  ;;  %v2247_v51 = vrot.slane %v2230_v30, 4 }
 0x2c1   :  { %2674 = vmatprep.subr.bf16.mxu0 %v20030_v26  ;;  %2630 = vmatpush1.bf16.msra.mxu1 %v2177_v31  ;;  %v17243_v44 = vsel %vm654_vm1, %v2249_v48, %v2250_v2  ;;  %2271 = vst [vmem:[#allocation3 + $0x408] sm:$0xf] %v2250_v2  ;;  %v2281_v18 = vpop.permute.xlu1 %2280 }
 0x2c2   :  { %v2245_v47 = vsel %vm654_vm1, %v2243_v49, %v2244_v3  ;;  %v2248_v8 = vsel %vm654_vm1, %v2246_v56, %v2247_v51  ;;  %2269 = vst [vmem:[#allocation3 + $0x3f8] sm:$0xf] %v2244_v3  ;;  %2270 = vst [vmem:[#allocation3 + $0x400] sm:$0xf] %v2247_v51  ;;  %v2279_v39 = vpop.permute.xlu0 %2278  ;;  %v2309_v6 = vsel %vm1014_vm9, %v2281_v18, 0 }
 0x2c3   :  { %v2294_v28 = vsel %vm1014_vm9, %v17088_v54, %v2279_v39  ;;  %v2295_v14 = vsel %vm1014_vm9, %v2279_v39, %v2281_v18  ;;  %2631 = vmatprep.subr.bf16.mxu1 %v2248_v8  ;;  %2318 = vst [vmem:[#allocation3 + $0x408] sm:$0xf0] %v2309_v6  ;;  %v15047_v6 = vld [vmem:[%s20005_s5 + $0x1c0] sm:$0xff]  }
 0x2c4   :  { %2675 = vmatpush1.bf16.msra.mxu0 %v17190_v17  ;;  %2316 = vst [vmem:[#allocation3 + $0x3f8] sm:$0xf0] %v2294_v28  ;;  %2317 = vst [vmem:[#allocation3 + $0x400] sm:$0xf0] %v2295_v14 }
 0x2c5   :  { %2676 = vmatprep.subr.bf16.mxu0 %v20030_v26  ;;  %2632 = vmatpush1.bf16.msra.mxu1 %v2245_v47  ;;  %v2291_v53 = vpop.permute.xlu1 %2290  ;;  %v15046_v47 = vld [vmem:[%s20005_s5 + $0x140] sm:$0xff]  }
 0x2c6   :  { %v2289_v12 = vpop.permute.xlu0 %2288  ;;  %v2312_v36 = vsel %vm1014_vm9, %v2291_v53, 0 }
 0x2c7   :  { %v2298_v58 = vsel %vm1014_vm9, %v17099_v29, %v2289_v12  ;;  %v2299_v54 = vsel %vm1014_vm9, %v2289_v12, %v2291_v53 }
 0x2c8   :  { %2677 = vmatpush1.bf16.msra.mxu0 %v17211_v62 }
 0x2c9   :  { %2678 = vmatprep.subr.bf16.mxu0 %v20030_v26  ;;  %v2333_v17 = vpop.permute.xlu1 %2332 }
 0x2ca   :  { %v2331_v20 = vpop.permute.xlu0 %2330  ;;  %v2353_v63 = vsel %vm1085_vm8, %v2333_v17, 0  ;;  %v2502_v42 = vld [vmem:[#allocation3 + $0x408] sm:$0xff] }
 0x2cb   :  { %v2501_v11 = vld [vmem:[#allocation3 + $0x400] sm:$0xff]  ;;  %v2500_v25 = vld [vmem:[#allocation3 + $0x3f8] sm:$0xff]  ;;  %v2346_v0 = vsel %vm1085_vm8, %v17111_v1, %v2331_v20  ;;  %v2347_v29 = vsel %vm1085_vm8, %v2331_v20, %v2333_v17  ;;  %v2370_v23 = vrot.slane %v2353_v63, 4 }
 0x2cc   :  { %2679 = vmatpush1.bf16.msra.mxu0 %v2487_v32  ;;  %2633 = vmatprep.subr.bf16.mxu1 %v2501_v11  ;;  %v2364_v62 = vrot.slane %v2346_v0, 4  ;;  %v2367_v1 = vrot.slane %v2347_v29, 4  ;;  %v15049_v0 = vld [vmem:[%s20005_s5 + $0x208] sm:$0xff]   ;;  %v15839_v29 = vmov 1966171168  }
 0x2cd   :  { %2680 = vmatprep.subr.bf16.mxu0 %v20030_v26  ;;  %2634 = vmatpush1.bf16.msra.mxu1 %v2500_v25  ;;  %v2343_v19 = vpop.permute.xlu1 %2342  ;;  %v15048_v25 = vld [vmem:[%s20005_s5 + $0x188] sm:$0xff]  }
 0x2ce   :  { %v2341_v24 = vpop.permute.xlu0 %2340  ;;  %2635 = vmatprep.subr.bf16.mxu1 %v2299_v54  ;;  %v2355_v10 = vsel %vm1085_vm8, %v2343_v19, 0 }
 0x2cf   :  { %v2350_v38 = vsel %vm1085_vm8, %v17121_v4, %v2341_v24  ;;  %v2351_v27 = vsel %vm1085_vm8, %v2341_v24, %v2343_v19  ;;  %v2371_v21 = vrot.slane %v2355_v10, 4  ;;  %v1483_v19 = vlaneseq  ;;  %v15050_v10 = vld [vmem:[%s20005_s5 + $0x148] sm:$0xff]  }
 0x2d0   :  { %2681 = vmatpush1.bf16.msra.mxu0 %v17222_v35  ;;  %v2365_v43 = vrot.slane %v2350_v38, 4  ;;  %v2368_v45 = vrot.slane %v2351_v27, 4  ;;  %v15051_v38 = vld [vmem:[%s20005_s5 + $0x1c8] sm:$0xff]  }
 0x2d1   :  { %2682 = vmatprep.subr.bf16.mxu0 %v20030_v26  ;;  %2636 = vmatpush1.bf16.msra.mxu1 %v2298_v58  ;;  %v2372_v15 = vsel %vm654_vm1, %v2370_v23, %v2371_v21  ;;  %2392 = vst [vmem:[#allocation3 + $0x480] sm:$0xf] %v2371_v21  ;;  %v2402_v4 = vpop.permute.xlu1 %2401  ;;  %v1481_v23 = vunpack.c.l.s4 %v15839_v29  ;;  %vm17353_vm12 = vcmp.lt.s32.totalorder %v1483_v19, 640 }
 0x2d2   :  { %v2366_v41 = vsel %vm654_vm1, %v2364_v62, %v2365_v43  ;;  %v2369_v59 = vsel %vm654_vm1, %v2367_v1, %v2368_v45  ;;  %2390 = vst [vmem:[#allocation3 + $0x470] sm:$0xf] %v2365_v43  ;;  %2391 = vst [vmem:[#allocation3 + $0x478] sm:$0xf] %v2368_v45  ;;  %v2400_v22 = vpop.permute.xlu0 %2399  ;;  %v2430_v35 = vsel %vm1139_vm11, %v2402_v4, 0  ;;  %v1484_v62 = vshrl.u32 %v1483_v19, 7 }
 0x2d3   :  { %v2415_v31 = vsel %vm1139_vm11, %v17137_v7, %v2400_v22  ;;  %v2416_v55 = vsel %vm1139_vm11, %v2400_v22, %v2402_v4  ;;  %2637 = vmatprep.subr.bf16.mxu1 %v2369_v59  ;;  %2439 = vst [vmem:[#allocation3 + $0x480] sm:$0xf0] %v2430_v35  ;;  %v1482_v24 = vunpack.c.0.s8 %v1481_v23 }
 0x2d4   :  { %2683 = vmatpush1.bf16.msra.mxu0 %v17243_v44  ;;  %2437 = vst [vmem:[#allocation3 + $0x470] sm:$0xf0] %v2415_v31  ;;  %2438 = vst [vmem:[#allocation3 + $0x478] sm:$0xf0] %v2416_v55  ;;  %v15045_v44 = vld [vmem:[%s20005_s5 + $0x200] sm:$0xff]  }
 0x2d5   :  { %2684 = vmatprep.subr.bf16.mxu0 %v20030_v26  ;;  %2638 = vmatpush1.bf16.msra.mxu1 %v2366_v41  ;;  %v2412_v57 = vpop.permute.xlu1 %2411  ;;  %v17332_v1 = vsub.s32 %v1482_v24, %v1484_v62 }
 0x2d6   :  { %v2410_v16 = vpop.permute.xlu0 %2409  ;;  %v2433_v5 = vsel %vm1139_vm11, %v2412_v57, 0 }
 0x2d7   :  { %v2419_v60 = vsel %vm1139_vm11, %v17145_v13, %v2410_v16  ;;  %v2420_v7 = vsel %vm1139_vm11, %v2410_v16, %v2412_v57  ;;  %v15802_v13 = vld [vmem:[%s20003_s3] ss:$8 sps:$4 sm:$0xff]   ;;  %v15052_v16 = vld [vmem:[%s20005_s5 + $0x190] sm:$0xff]  }
 0x2d8   :  { %2685 = vmatpush1.bf16.msra.mxu0 %v2502_v42  ;;  %v15053_v42 = vld [vmem:[%s20005_s5 + $0x210] sm:$0xff]  }
 0x2d9   :  { %2686 = vmatprep.subr.bf16.mxu0 %v20030_v26 }
 0x2da   :  { %v2517_v48 = vld [vmem:[#allocation3 + $0x480] sm:$0xff] }
 0x2db   :  { %v2516_v40 = vld [vmem:[#allocation3 + $0x478] sm:$0xff]  ;;  %v2515_v46 = vld [vmem:[#allocation3 + $0x470] sm:$0xff] }
 0x2dc   :  { %2687 = vmatpush1.bf16.msra.mxu0 %v2312_v36  ;;  %2639 = vmatprep.subr.bf16.mxu1 %v2516_v40  ;;  %v15054_v40 = vld [vmem:[%s20005_s5 + $0x150] sm:$0xff]  }
 0x2dd   :  { %2688 = vmatprep.subr.bf16.mxu0 %v20030_v26  ;;  %2640 = vmatpush1.bf16.msra.mxu1 %v2515_v46  ;;  %v15055_v46 = vld [vmem:[%s20005_s5 + $0x1d0] sm:$0xff]  }
 0x2de   :  { %2641 = vmatprep.subr.bf16.mxu1 %v2420_v7 }
 0x2e0   :  { %2689 = vmatpush1.bf16.msra.mxu0 %v2372_v15 }
 0x2e1   :  { %2690 = vmatprep.subr.bf16.mxu0 %v20030_v26  ;;  %2642 = vmatpush1.bf16.msra.mxu1 %v2419_v60 }
 0x2e4   :  { %2691 = vmatpush1.bf16.msra.mxu0 %v2517_v48  ;;  %2646 = vmatmul.mubr.bf16.vlgmr.msra.gmra.mrb[28].mxu1 %v15802_v13 }
 0x2e5   :  { %2692 = vmatprep.subr.bf16.mxu0 %v20030_v26  ;;  %11527 = vmatprep.mubr.msk.bf16.mxu1 %vm1301_vm10, %v16901_v37 }
 0x2e7   :  { %v1274_v50 = vpop.permute.xlu0 %1273 }
 0x2e8   :  { %2693 = vmatpush1.bf16.msra.mxu0 %v2433_v5 }
 0x2e9   :  { %13644 = vmatprep.subr.bf16.mxu0 %v15045_v44  ;;  %v15057_v44 = vld [vmem:[%s20005_s5 + $0x218] sm:$0xff]  }
 0x2eb   :  { %2697 = vmatmul.mubr.bf16.vlgmr.msra.gmra.mrb[40].mxu0 %v15802_v13  ;;  %v17296_v49 = vpop.permute.xlu0 %1278 }
 0x2ec   :  { %11529 = vmatprep.mubr.msk.bf16.mxu0 %vm1301_vm10, %v16901_v37  ;;  %2656 = vmatmul.mubr.bf16.gmra.mrb[32].mxu1 %v16916_v61 }
 0x2ed   :  { %13645 = vmatpush3.bf16.msra.mxu0 %v15047_v6  ;;  %v15058_v6 = vld [vmem:[%s20005_s5 + $0x158] sm:$0xff]  }
 0x2ee   :  { %13646 = vmatprep.subr.bf16.mxu0 %v15049_v0 }
 0x2ef   :  { %v17312_v28 = vpop.permute.xlu0 %1283 }
 0x2f1   :  { %13647 = vmatpush3.bf16.msra.mxu0 %v15051_v38  ;;  %v15061_v38 = vld [vmem:[%s20005_s5 + $0x220] sm:$0xff]  }
 0x2f2   :  { %13648 = vmatprep.subr.bf16.mxu0 %v15053_v42 }
 0x2f3   :  { %2705 = vmatmul.mubr.bf16.gmra.mrb[44].mxu0 %v16916_v61  ;;  %v15044_v61 = vld [vmem:[%s20005_s5 + $0x180] sm:$0xff]  }
 0x2f4   :  { %13622 = vmatprep.subr.bf16.mxu1 %v15044_v61  ;;  %v15056_v61 = vld [vmem:[%s20005_s5 + $0x198] sm:$0xff]  }
 0x2f5   :  { %13623 = vmatpush3.bf16.msra.mxu1 %v15046_v47  ;;  %13649 = vmatpush3.bf16.msra.mxu0 %v15055_v46  ;;  %v15064_v46 = vld [vmem:[%s20005_s5 + $0x1a8] sm:$0xff]  }
 0x2f6   :  { %13624 = vmatprep.subr.bf16.mxu1 %v15048_v25  ;;  %13650 = vmatprep.subr.bf16.mxu0 %v15057_v44 }
 0x2f9   :  { %13625 = vmatpush3.bf16.msra.mxu1 %v15050_v10  ;;  %v15060_v10 = vld [vmem:[%s20005_s5 + $0x1a0] sm:$0xff]  }
 0x2fa   :  { %13626 = vmatprep.subr.bf16.mxu1 %v15052_v16 }
 0x2fd   :  { %13627 = vmatpush3.bf16.msra.mxu1 %v15054_v40 }
 0x2fe   :  { %13628 = vmatprep.subr.bf16.mxu1 %v15056_v61 }
 0x301   :  { %13629 = vmatpush3.bf16.msra.mxu1 %v15058_v6  ;;  %v15068_v6 = vld [vmem:[%s20005_s5 + $0x1b0] sm:$0xff]  }
 0x302   :  { %13630 = vmatprep.subr.bf16.mxu1 %v15060_v10 }
 0x30a   :  { %v1342_v52 = vpop.f32.mrb[12].mxu1 }
 0x30b   :  { %v1343_v26 = vadd.f32 %v1342_v52, %v1274_v50  ;;  %v1344_v33 = vpop.f32.mrb[13].mxu1 }
 0x30c   :  { %v1345_v9 = vadd.f32 %v1344_v33, %v1274_v50  ;;  %v1346_v34 = vpop.f32.mrb[14].mxu1 }
 0x30d   :  { %v1458_v30 = vmax.f32 %v1343_v26, 0.0  ;;  %v1347_v56 = vadd.f32 %v1346_v34, %v17296_v49  ;;  %v1348_v2 = vpop.f32.mrb[15].mxu1  ;;  %v15083_v34 = vld [vmem:[%s20005_s5 + $0x250] sm:$0xff]  }
 0x30e   :  { %v1459_v3 = vmax.f32 %v1345_v9, 0.0  ;;  %v1349_v51 = vadd.f32 %v1348_v2, %v17296_v49 }
 0x30f   :  { %v1463_v37 = vmax.f32 %v1347_v56, 0.0 }
 0x310   :  { %v1478_v8 = vcombine.low %v1458_v30, %v1459_v3  ;;  %v1555_v18 = vcombine.high %v1458_v30, %v1459_v3  ;;  %v1464_v39 = vmax.f32 %v1349_v51, 0.0 }
 0x312   :  { %v1635_v14 = vcombine.low %v1463_v37, %v1464_v39  ;;  %v17314_v53 = vcombine.high %v1463_v37, %v1464_v39  ;;  %v1486_v5 = vrot.slane %v1478_v8, %v17332_v1  ;;  %v1564_v33 = vrot.slane %v1555_v18, %v17332_v1 }
 0x314   :  { %v1352_v12 = vpop.f32.mrb[16].mxu1  ;;  %v17351_v9 = vrot.slane %v1635_v14, %v17332_v1  ;;  %v15059_v14 = vld [vmem:[%s20005_s5 + $0x1d8] sm:$0xff]  }
 0x315   :  { %v1353_v36 = vadd.f32 %v1352_v12, %v17312_v28  ;;  %v1354_v58 = vpop.f32.mrb[17].mxu1  ;;  %13651 = vmatpush3.bf16.msra.mxu0 %v15059_v14  ;;  %v15069_v14 = vld [vmem:[%s20005_s5 + $0x230] sm:$0xff]  }
 0x316   :  { %v1355_v54 = vadd.f32 %v1354_v58, %v17312_v28  ;;  %v1356_v17 = vpop.f32.mrb[18].mxu1  ;;  %13652 = vmatprep.subr.bf16.mxu0 %v15061_v38  ;;  %v15075_v38 = vld [vmem:[%s20005_s5 + $0x1f8] sm:$0xff]  }
 0x317   :  { %v1468_v20 = vmax.f32 %v1353_v36, 0.0  ;;  %v1357_v32 = vpop.f32.mrb[19].mxu1 }
 0x318   :  { %v1469_v63 = vmax.f32 %v1355_v54, 0.0 }
 0x31a   :  { %v17318_v11 = vcombine.low %v1468_v20, %v1469_v63 }
 0x31c   :  { %v17389_v29 = vrot.slane %v17318_v11, %v17332_v1 }
 0x346   :  { %v1393_v27 = vpop.f32.mrb[24].mxu0 }
 0x347   :  { %v1394_v21 = vadd.f32 %v1393_v27, %v1274_v50  ;;  %v1395_v43 = vpop.f32.mrb[25].mxu0 }
 0x348   :  { %v1396_v45 = vadd.f32 %v1395_v43, %v1274_v50  ;;  %v1397_v15 = vpop.f32.mrb[26].mxu0  ;;  %v1444_v22 = vpop.f32.mrb[20].mxu1 }
 0x349   :  { %v1460_v41 = vmax.f32 %v1394_v21, 0.0  ;;  %v1398_v59 = vadd.f32 %v1397_v15, %v17296_v49  ;;  %v1399_v4 = vpop.f32.mrb[27].mxu0  ;;  %v1445_v55 = vadd.f32 %v1444_v22, %v1274_v50  ;;  %v1446_v57 = vpop.f32.mrb[21].mxu1  ;;  %v15062_v15 = vld [vmem:[%s20005_s5 + $0x160] sm:$0xff]  }
 0x34a   :  { %v1461_v35 = vmax.f32 %v1396_v45, 0.0  ;;  %v1400_v31 = vadd.f32 %v1399_v4, %v17296_v49  ;;  %v1447_v7 = vpop.f32.mrb[22].mxu1  ;;  %13631 = vmatpush3.bf16.msra.mxu1 %v15062_v15 }
 0x34b   :  { %v1465_v60 = vmax.f32 %v1398_v59, 0.0  ;;  %v1462_v52 = vmax.f32 %v1445_v55, 0.0  ;;  %v1449_v26 = vpop.f32.mrb[23].mxu1  ;;  %v1448_v30 = vadd.f32 %v1447_v7, %v17296_v49  ;;  %v17368_v49 = vrot.slane %v17314_v53, %v17332_v1  ;;  %13632 = vmatprep.subr.bf16.mxu1 %v15064_v46 }
 0x34c   :  { %v1479_v48 = vcombine.low %v1460_v41, %v1461_v35  ;;  %v1556_v13 = vcombine.high %v1460_v41, %v1461_v35  ;;  %v1466_v50 = vmax.f32 %v1400_v31, 0.0  ;;  %v15063_v41 = vld [vmem:[%s20005_s5 + $0x1e0] sm:$0xff]  }
 0x34d   :  { %v1500_v18 = vrot.slane %v1462_v52, %v17332_v1  ;;  %v1557_v39 = vcombine.high %v1462_v52, %v1462_v52  ;;  %v17383_v63 = vmax.f32 %v1448_v30, 0.0  ;;  %13653 = vmatpush3.bf16.msra.mxu0 %v15063_v41 }
 0x34e   :  { %v1493_v56 = vrot.slane %v1479_v48, %v17332_v1  ;;  %v1571_v2 = vrot.slane %v1556_v13, %v17332_v1  ;;  %v1636_v3 = vcombine.low %v1465_v60, %v1466_v50  ;;  %v1710_v51 = vcombine.high %v1465_v60, %v1466_v50  ;;  %v1403_v37 = vpop.f32.mrb[28].mxu0  ;;  %v15065_v48 = vld [vmem:[%s20005_s5 + $0x228] sm:$0xff]  }
 0x34f   :  { %v1404_v47 = vadd.f32 %v1403_v37, %v17312_v28  ;;  %v1405_v8 = vpop.f32.mrb[29].mxu0  ;;  %v1515_v4 = vrot.slane %v1500_v18, %v17332_v1  ;;  %v1525_v22 = vcombine.high %v1500_v18, %v1500_v18  ;;  %v1578_v35 = vrot.slane %v1557_v39, %v17332_v1  ;;  %13654 = vmatprep.subr.bf16.mxu0 %v15065_v48 }
 0x350   :  { %v1501_v12 = vcombine.low %v1486_v5, %v1493_v56  ;;  %v1524_v36 = vcombine.high %v1486_v5, %v1493_v56  ;;  %v1579_v58 = vcombine.low %v1564_v33, %v1571_v2  ;;  %v1599_v54 = vcombine.high %v1564_v33, %v1571_v2  ;;  %v1407_v53 = vpop.f32.mrb[30].mxu0  ;;  %v17385_v25 = vpop.f32.mrb[24].mxu1  ;;  %v15066_v33 = vld [vmem:[%s20005_s5 + $0x168] sm:$0xff]  }
 0x351   :  { %v1650_v17 = vrot.slane %v1636_v3, %v17332_v1  ;;  %v17380_v20 = vrot.slane %v1710_v51, %v17332_v1  ;;  %v1406_v32 = vadd.f32 %v1405_v8, %v17312_v28  ;;  %v1408_v0 = vpop.f32.mrb[31].mxu0  ;;  %v1470_v19 = vmax.f32 %v1404_v47, 0.0  ;;  %v1454_v62 = vpop.f32.mrb[25].mxu1  ;;  %13633 = vmatpush3.bf16.msra.mxu1 %v15066_v33 }
 0x352   :  { %v1532_v23 = vrot.slane %v1524_v36, %v17332_v1  ;;  %v1508_v24 = vrot.slane %v1501_v12, %v17332_v1  ;;  %v1455_v45 = vpop.f32.mrb[26].mxu1  ;;  %v1586_v55 = vrot.slane %v1579_v58, %v17332_v1  ;;  %v1607_v57 = vrot.slane %v1599_v54, %v17332_v1  ;;  %v15070_v12 = vld [vmem:[%s20005_s5 + $0x170] sm:$0xff]   ;;  %13634 = vmatprep.subr.bf16.mxu1 %v15068_v6 }
 0x353   :  { %v1658_v27 = vcombine.low %v17351_v9, %v1650_v17  ;;  %v1678_v11 = vcombine.high %v17351_v9, %v1650_v17  ;;  %v1733_v21 = vcombine.low %v17368_v49, %v17380_v20  ;;  %v1753_v43 = vcombine.high %v17368_v49, %v17380_v20  ;;  %v1456_v31 = vpop.f32.mrb[27].mxu1  ;;  %v15067_v9 = vld [vmem:[%s20005_s5 + $0x1e8] sm:$0xff]   ;;  %v15071_v17 = vld [vmem:[%s20005_s5 + $0x1f0] sm:$0xff]   ;;  %v15074_v49 = vld [vmem:[%s20005_s5 + $0x178] sm:$0xff]  }
 0x354   :  { %v1471_v59 = vmax.f32 %v1406_v32, 0.0  ;;  %v1657_v42 = vrot.slane %v17383_v63, %v17332_v1  ;;  %v1516_v60 = vcombine.low %v1508_v24, %v1515_v4  ;;  %v1539_v7 = vrot.slane %v1525_v22, %v17332_v1  ;;  %13655 = vmatpush3.bf16.msra.mxu0 %v15067_v9  ;;  %v15072_v32 = vld [vmem:[%s20005_s5 + $0x1b8] sm:$0xff]  }
 0x355   :  { %v1686_v16 = vrot.slane %v1678_v11, %v17332_v1  ;;  %v1545_v40 = vcombine.high %v1508_v24, %v1515_v4  ;;  %v1593_v13 = vrot.slane %v1578_v35, %v17332_v1  ;;  %v1600_v50 = vcombine.high %v1578_v35, %v1578_v35  ;;  %13656 = vmatprep.subr.bf16.mxu0 %v15069_v14 }
 0x356   :  { %v1790_v5 = vcombine.low %v1470_v19, %v1471_v59  ;;  %v1665_v52 = vrot.slane %v1658_v27, %v17332_v1  ;;  %v1672_v26 = vrot.slane %v1657_v42, %v17332_v1  ;;  %1522 = vst.msk [vmem:[#allocation4] ss:$8 sm:$0xf] %vm17353_vm12, %v1516_v60  ;;  %1523 = vst.msk [vmem:[#allocation4] ss:$8 sm:$0x10] %vm17353_vm12, %v1516_v60  ;;  %13635 = vmatpush3.bf16.msra.mxu1 %v15070_v12 }
 0x357   :  { %v1540_v56 = vcombine.low %v1532_v23, %v1539_v7  ;;  %1548 = vst.msk [vmem:[#allocation4 + $0x4] ss:$8 sm:$0xf] %vm17353_vm12, %v1545_v40  ;;  %1549 = vst.msk [vmem:[#allocation4 + $0x4] ss:$8 sm:$0x10] %vm17353_vm12, %v1545_v40  ;;  %v1550_v2 = vcombine.high %v1532_v23, %v1539_v7  ;;  %v1679_v3 = vcombine.high %v1657_v42, %v1657_v42  ;;  %13636 = vmatprep.subr.bf16.mxu1 %v15072_v32 }
 0x358   :  { %v17435_v30 = vrot.slane %v1790_v5, %v17332_v1  ;;  %v1594_v51 = vcombine.low %v1586_v55, %v1593_v13  ;;  %v1614_v37 = vrot.slane %v1600_v50, %v17332_v1  ;;  %v1620_v61 = vcombine.high %v1586_v55, %v1593_v13  ;;  %13657 = vmatpush3.bf16.msra.mxu0 %v15071_v17  ;;  %v15076_v27 = vld [vmem:[%s20005_s5 + $0x40] sm:$0xff]  }
 0x359   :  { %v1673_v44 = vcombine.low %v1665_v52, %v1672_v26  ;;  %1543 = vst.msk [vmem:[#allocation4 + $0x2] ss:$8 sm:$0xf] %vm17353_vm12, %v1540_v56  ;;  %1544 = vst.msk [vmem:[#allocation4 + $0x2] ss:$8 sm:$0x10] %vm17353_vm12, %v1540_v56  ;;  %v1693_v18 = vrot.slane %v1679_v3, %v17332_v1  ;;  %v1699_v39 = vcombine.high %v1665_v52, %v1672_v26 }
 0x35a   :  { %v1812_v47 = vcombine.low %v17389_v29, %v17435_v30  ;;  %v1832_v8 = vcombine.high %v17389_v29, %v17435_v30  ;;  %1553 = vst.msk [vmem:[#allocation4 + $0x6] ss:$8 sm:$0xf] %vm17353_vm12, %v1550_v2  ;;  %1554 = vst.msk [vmem:[#allocation4 + $0x6] ss:$8 sm:$0x10] %vm17353_vm12, %v1550_v2  ;;  %v1615_v36 = vcombine.low %v1607_v57, %v1614_v37  ;;  %13637 = vmatpush3.bf16.msra.mxu1 %v15074_v49 }
 0x35b   :  { %1597 = vst.msk [vmem:[#allocation4 + $0x28] ss:$8 sm:$0xf] %vm17353_vm12, %v1594_v51  ;;  %1598 = vst.msk [vmem:[#allocation4 + $0x28] ss:$8 sm:$0x10] %vm17353_vm12, %v1594_v51  ;;  %v1625_v58 = vcombine.high %v1607_v57, %v1614_v37  ;;  %v1711_v54 = vcombine.high %v17383_v63, %v17383_v63  ;;  %v1453_v53 = vadd.f32 %v17385_v25, %v17312_v28  ;;  %v2529_v57 = vpop.permute.xlu1 %2528 }
 0x35c   :  { %1623 = vst.msk [vmem:[#allocation4 + $0x2c] ss:$8 sm:$0xf] %vm17353_vm12, %v1620_v61  ;;  %1624 = vst.msk [vmem:[#allocation4 + $0x2c] ss:$8 sm:$0x10] %vm17353_vm12, %v1620_v61  ;;  %v1694_v0 = vcombine.low %v1686_v16, %v1693_v18  ;;  %v1704_v63 = vcombine.high %v1686_v16, %v1693_v18  ;;  %v1740_v25 = vrot.slane %v1733_v21, %v17332_v1 }
 0x35d   :  { %1676 = vst.msk [vmem:[#allocation4 + $0x50] ss:$8 sm:$0xf] %vm17353_vm12, %v1673_v44  ;;  %1677 = vst.msk [vmem:[#allocation4 + $0x50] ss:$8 sm:$0x10] %vm17353_vm12, %v1673_v44  ;;  %v1732_v29 = vrot.slane %v1711_v54, %v17332_v1  ;;  %v1761_v19 = vrot.slane %v1753_v43, %v17332_v1  ;;  %v1819_v24 = vrot.slane %v1812_v47, %v17332_v1 }
 0x35e   :  { %1702 = vst.msk [vmem:[#allocation4 + $0x54] ss:$8 sm:$0xf] %vm17353_vm12, %v1699_v39  ;;  %1703 = vst.msk [vmem:[#allocation4 + $0x54] ss:$8 sm:$0x10] %vm17353_vm12, %v1699_v39  ;;  %v1840_v15 = vrot.slane %v1832_v8, %v17332_v1 }
 0x35f   :  { %v15073_v28 = vld [vmem:[%s20005_s5 + $0x238] sm:$0xff]   ;;  %1618 = vst.msk [vmem:[#allocation4 + $0x2a] ss:$8 sm:$0xf] %vm17353_vm12, %v1615_v36  ;;  %v1472_v23 = vmax.f32 %v1453_v53, 0.0  ;;  %v1747_v20 = vrot.slane %v1732_v29, %v17332_v1  ;;  %v1754_v62 = vcombine.high %v1732_v29, %v1732_v29  ;;  %v20033_v35 = vmov 0.0   ;;  %v2534_v60 = vpop.permute.xlu1 %2533 }
 0x360   :  { %1619 = vst.msk [vmem:[#allocation4 + $0x2a] ss:$8 sm:$0x10] %vm17353_vm12, %v1615_v36  ;;  %1628 = vst.msk [vmem:[#allocation4 + $0x2e] ss:$8 sm:$0xf] %vm17353_vm12, %v1625_v58  ;;  %13658 = vmatprep.subr.bf16.mxu0 %v15073_v28  ;;  %14604 = vmatprep.subr.bf16.mxu1 %v20033_v35 }
 0x361   :  { %1629 = vst.msk [vmem:[#allocation4 + $0x2e] ss:$8 sm:$0x10] %vm17353_vm12, %v1625_v58  ;;  %1697 = vst.msk [vmem:[#allocation4 + $0x52] ss:$8 sm:$0xf] %vm17353_vm12, %v1694_v0  ;;  %v1811_v10 = vrot.slane %v1472_v23, %v17332_v1  ;;  %v1748_v11 = vcombine.low %v1740_v25, %v1747_v20  ;;  %v1768_v21 = vrot.slane %v1754_v62, %v17332_v1  ;;  %13659 = vmatpush3.bf16.msra.mxu0 %v15075_v38 }
 0x362   :  { %1698 = vst.msk [vmem:[#allocation4 + $0x52] ss:$8 sm:$0x10] %vm17353_vm12, %v1694_v0  ;;  %1707 = vst.msk [vmem:[#allocation4 + $0x56] ss:$8 sm:$0xf] %vm17353_vm12, %v1704_v63  ;;  %v1774_v43 = vcombine.high %v1740_v25, %v1747_v20  ;;  %13675 = vmatprep.subr.bf16.mxu0 %v15076_v27 }
 0x363   :  { %1708 = vst.msk [vmem:[#allocation4 + $0x56] ss:$8 sm:$0x10] %vm17353_vm12, %v1704_v63  ;;  %v1826_v45 = vrot.slane %v1811_v10, %v17332_v1  ;;  %v1833_v41 = vcombine.high %v1811_v10, %v1811_v10  ;;  %1751 = vst.msk [vmem:[#allocation4 + $0x78] ss:$8 sm:$0xf] %vm17353_vm12, %v1748_v11  ;;  %v1769_v59 = vcombine.low %v1761_v19, %v1768_v21  ;;  %v17563_v56 = vpop.permute.xlu1 %2538 }
 0x364   :  { %1752 = vst.msk [vmem:[#allocation4 + $0x78] ss:$8 sm:$0x10] %vm17353_vm12, %v1748_v11  ;;  %1777 = vst.msk [vmem:[#allocation4 + $0x7c] ss:$8 sm:$0xf] %vm17353_vm12, %v1774_v43  ;;  %v1779_v4 = vcombine.high %v1761_v19, %v1768_v21 }
 0x365   :  { %1778 = vst.msk [vmem:[#allocation4 + $0x7c] ss:$8 sm:$0x10] %vm17353_vm12, %v1774_v43  ;;  %v1827_v22 = vcombine.low %v1819_v24, %v1826_v45  ;;  %v1847_v31 = vrot.slane %v1833_v41, %v17332_v1  ;;  %1772 = vst.msk [vmem:[#allocation4 + $0x7a] ss:$8 sm:$0xf] %vm17353_vm12, %v1769_v59 }
 0x366   :  { %1773 = vst.msk [vmem:[#allocation4 + $0x7a] ss:$8 sm:$0x10] %vm17353_vm12, %v1769_v59  ;;  %1782 = vst.msk [vmem:[#allocation4 + $0x7e] ss:$8 sm:$0xf] %vm17353_vm12, %v1779_v4 }
 0x367   :  { %1783 = vst.msk [vmem:[#allocation4 + $0x7e] ss:$8 sm:$0x10] %vm17353_vm12, %v1779_v4  ;;  %1830 = vst.msk [vmem:[#allocation4 + $0xa0] ss:$8 sm:$0xf] %vm17353_vm12, %v1827_v22  ;;  %v1848_v55 = vcombine.low %v1840_v15, %v1847_v31 }
 0x368   :  { %1831 = vst.msk [vmem:[#allocation4 + $0xa0] ss:$8 sm:$0x10] %vm17353_vm12, %v1827_v22 }
 0x369   :  { %1851 = vst.msk [vmem:[#allocation4 + $0xa2] ss:$8 sm:$0xf] %vm17353_vm12, %v1848_v55  ;;  %1852 = vst.msk [vmem:[#allocation4 + $0xa2] ss:$8 sm:$0x10] %vm17353_vm12, %v1848_v55 }
 0x382   :  { %v2596_v16 = vpop.f32.mrb[32].mxu0 }
 0x383   :  { %v2597_v42 = vadd.f32 %v2596_v16, %v2529_v57  ;;  %v2598_v5 = vpop.f32.mrb[33].mxu0 }
 0x384   :  { %v2599_v7 = vadd.f32 %v2598_v5, %v2529_v57  ;;  %v2600_v40 = vpop.f32.mrb[34].mxu0 }
 0x385   :  { %v2712_v46 = vmax.f32 %v2597_v42, 0.0  ;;  %v2601_v48 = vadd.f32 %v2600_v40, %v2534_v60  ;;  %v2602_v13 = vpop.f32.mrb[35].mxu0 }
 0x386   :  { %v2713_v50 = vmax.f32 %v2599_v7, 0.0  ;;  %v2603_v52 = vadd.f32 %v2602_v13, %v2534_v60 }
 0x387   :  { %v2717_v26 = vmax.f32 %v2601_v48, 0.0 }
 0x388   :  { %v2732_v33 = vcombine.low %v2712_v46, %v2713_v50  ;;  %v2806_v9 = vcombine.high %v2712_v46, %v2713_v50  ;;  %v2718_v30 = vmax.f32 %v2603_v52, 0.0 }
 0x38a   :  { %v2886_v2 = vcombine.low %v2717_v26, %v2718_v30  ;;  %v2960_v3 = vcombine.high %v2717_v26, %v2718_v30  ;;  %v2606_v51 = vpop.f32.mrb[36].mxu0  ;;  %v2740_v24 = vrot.slane %v2732_v33, %v17332_v1  ;;  %v2815_v49 = vrot.slane %v2806_v9, %v17332_v1 }
 0x38b   :  { %v2607_v37 = vadd.f32 %v2606_v51, %v17563_v56  ;;  %v2608_v61 = vpop.f32.mrb[37].mxu0 }
 0x38c   :  { %v2609_v44 = vadd.f32 %v2608_v61, %v17563_v56  ;;  %v2610_v47 = vpop.f32.mrb[38].mxu0  ;;  %v2894_v45 = vrot.slane %v2886_v2, %v17332_v1  ;;  %v17575_v15 = vrot.slane %v2960_v3, %v17332_v1 }
 0x38d   :  { %v2722_v8 = vmax.f32 %v2607_v37, 0.0  ;;  %v2611_v18 = vpop.f32.mrb[39].mxu0 }
 0x38e   :  { %v2723_v39 = vmax.f32 %v2609_v44, 0.0 }
 0x390   :  { %v17567_v6 = vcombine.low %v2722_v8, %v2723_v39 }
 0x3b7   :  { %v2647_v14 = vpop.f32.mrb[28].mxu1 }
 0x3b8   :  { %v2648_v12 = vadd.f32 %v2647_v14, %v2529_v57  ;;  %v2649_v36 = vpop.f32.mrb[29].mxu1 }
 0x3b9   :  { %v2650_v58 = vadd.f32 %v2649_v36, %v2529_v57  ;;  %v2651_v54 = vpop.f32.mrb[30].mxu1 }
 0x3ba   :  { %v2714_v53 = vmax.f32 %v2648_v12, 0.0  ;;  %v2652_v17 = vadd.f32 %v2651_v54, %v2534_v60  ;;  %v2653_v32 = vpop.f32.mrb[31].mxu1 }
 0x3bb   :  { %v2715_v0 = vmax.f32 %v2650_v58, 0.0  ;;  %v2654_v63 = vadd.f32 %v2653_v32, %v2534_v60 }
 0x3bc   :  { %v2719_v28 = vmax.f32 %v2652_v17, 0.0 }
 0x3bd   :  { %v2733_v25 = vcombine.low %v2714_v53, %v2715_v0  ;;  %v2807_v29 = vcombine.high %v2714_v53, %v2715_v0  ;;  %v2720_v23 = vmax.f32 %v2654_v63, 0.0 }
 0x3be   :  { %v2698_v19 = vpop.f32.mrb[40].mxu0 }
 0x3bf   :  { %v2699_v20 = vadd.f32 %v2698_v19, %v2529_v57  ;;  %v2700_v62 = vpop.f32.mrb[41].mxu0  ;;  %v2747_v10 = vrot.slane %v2733_v25, %v17332_v1  ;;  %v2822_v38 = vrot.slane %v2807_v29, %v17332_v1  ;;  %v2887_v27 = vcombine.low %v2719_v28, %v2720_v23  ;;  %v2657_v43 = vpop.f32.mrb[32].mxu1 }
 0x3c0   :  { %v2961_v11 = vcombine.high %v2719_v28, %v2720_v23  ;;  %v2701_v21 = vpop.f32.mrb[42].mxu0  ;;  %v2659_v22 = vpop.f32.mrb[33].mxu1 }
 0x3c1   :  { %v2716_v41 = vmax.f32 %v2699_v20, 0.0  ;;  %v2702_v59 = vadd.f32 %v2701_v21, %v2534_v60  ;;  %v2703_v4 = vpop.f32.mrb[43].mxu0  ;;  %v2755_v31 = vcombine.low %v2740_v24, %v2747_v10  ;;  %v2775_v55 = vcombine.high %v2740_v24, %v2747_v10  ;;  %v2661_v42 = vpop.f32.mrb[34].mxu1 }
 0x3c2   :  { %v2830_v57 = vcombine.low %v2815_v49, %v2822_v38  ;;  %v2850_v16 = vcombine.high %v2815_v49, %v2822_v38  ;;  %v2901_v5 = vrot.slane %v2887_v27, %v17332_v1  ;;  %v17579_v7 = vrot.slane %v2961_v11, %v17332_v1  ;;  %v2662_v48 = vpop.f32.mrb[35].mxu1 }
 0x3c3   :  { %v2754_v40 = vrot.slane %v2716_v41, %v17332_v1  ;;  %v2808_v46 = vcombine.high %v2716_v41, %v2716_v41  ;;  %v2762_v13 = vrot.slane %v2755_v31, %v17332_v1  ;;  %v17584_v60 = vadd.f32 %v2657_v43, %v17563_v56 }
 0x3c4   :  { %v2909_v50 = vcombine.low %v2894_v45, %v2901_v5  ;;  %v2929_v52 = vcombine.high %v2894_v45, %v2901_v5  ;;  %v2984_v26 = vcombine.low %v17575_v15, %v17579_v7  ;;  %v3004_v33 = vcombine.high %v17575_v15, %v17579_v7 }
 0x3c5   :  { %v2769_v9 = vrot.slane %v2754_v40, %v17332_v1  ;;  %v2776_v30 = vcombine.high %v2754_v40, %v2754_v40  ;;  %v2829_v2 = vrot.slane %v2808_v46, %v17332_v1  ;;  %v2721_v3 = vmax.f32 %v2702_v59, 0.0 }
 0x3c6   :  { %v2706_v51 = vpop.f32.mrb[44].mxu0  ;;  %v2783_v37 = vrot.slane %v2775_v55, %v17332_v1  ;;  %v2837_v61 = vrot.slane %v2830_v57, %v17332_v1  ;;  %v2858_v44 = vrot.slane %v2850_v16, %v17332_v1  ;;  %v2937_v47 = vrot.slane %v2929_v52, %v17332_v1 }
 0x3c7   :  { %v2708_v8 = vpop.f32.mrb[45].mxu0  ;;  %v2770_v18 = vcombine.low %v2762_v13, %v2769_v9  ;;  %v2790_v39 = vrot.slane %v2776_v30, %v17332_v1  ;;  %v2796_v14 = vcombine.high %v2762_v13, %v2769_v9  ;;  %v2844_v12 = vrot.slane %v2829_v2, %v17332_v1 }
 0x3c8   :  { %v2709_v36 = vpop.f32.mrb[46].mxu0  ;;  %v2851_v58 = vcombine.high %v2829_v2, %v2829_v2  ;;  %v2908_v54 = vrot.slane %v2721_v3, %v17332_v1  ;;  %v2916_v53 = vrot.slane %v2909_v50, %v17332_v1  ;;  %v2962_v17 = vcombine.high %v2721_v3, %v2721_v3  ;;  %v15077_v8 = vld [vmem:[%s20005_s5 + $0x240] sm:$0xff]  }
 0x3c9   :  { %v2710_v32 = vpop.f32.mrb[47].mxu0  ;;  %2773 = vst.msk [vmem:[#allocation4 + $0x1] ss:$8 sm:$0xf] %vm17353_vm12, %v2770_v18  ;;  %v2791_v0 = vcombine.low %v2783_v37, %v2790_v39  ;;  %v2801_v63 = vcombine.high %v2783_v37, %v2790_v39  ;;  %v2845_v28 = vcombine.low %v2837_v61, %v2844_v12  ;;  %v2871_v25 = vcombine.high %v2837_v61, %v2844_v12 }
 0x3ca   :  { %2774 = vst.msk [vmem:[#allocation4 + $0x1] ss:$8 sm:$0x10] %vm17353_vm12, %v2770_v18  ;;  %2799 = vst.msk [vmem:[#allocation4 + $0x5] ss:$8 sm:$0xf] %vm17353_vm12, %v2796_v14  ;;  %v2865_v29 = vrot.slane %v2851_v58, %v17332_v1  ;;  %v2923_v23 = vrot.slane %v2908_v54, %v17332_v1  ;;  %v2930_v19 = vcombine.high %v2908_v54, %v2908_v54 }
 0x3cb   :  { %2800 = vst.msk [vmem:[#allocation4 + $0x5] ss:$8 sm:$0x10] %vm17353_vm12, %v2796_v14  ;;  %v2983_v24 = vrot.slane %v2962_v17, %v17332_v1  ;;  %v2991_v49 = vrot.slane %v2984_v26, %v17332_v1  ;;  %2794 = vst.msk [vmem:[#allocation4 + $0x3] ss:$8 sm:$0xf] %vm17353_vm12, %v2791_v0  ;;  %v2660_v62 = vadd.f32 %v2659_v22, %v17563_v56 }
 0x3cc   :  { %2795 = vst.msk [vmem:[#allocation4 + $0x3] ss:$8 sm:$0x10] %vm17353_vm12, %v2791_v0  ;;  %2804 = vst.msk [vmem:[#allocation4 + $0x7] ss:$8 sm:$0xf] %vm17353_vm12, %v2801_v63  ;;  %v2707_v10 = vadd.f32 %v2706_v51, %v17563_v56  ;;  %v2866_v38 = vcombine.low %v2858_v44, %v2865_v29  ;;  %v2876_v27 = vcombine.high %v2858_v44, %v2865_v29 }
 0x3cd   :  { %2805 = vst.msk [vmem:[#allocation4 + $0x7] ss:$8 sm:$0x10] %vm17353_vm12, %v2801_v63  ;;  %2848 = vst.msk [vmem:[#allocation4 + $0x29] ss:$8 sm:$0xf] %vm17353_vm12, %v2845_v28  ;;  %v2924_v11 = vcombine.low %v2916_v53, %v2923_v23  ;;  %v2944_v21 = vrot.slane %v2930_v19, %v17332_v1  ;;  %v2950_v43 = vcombine.high %v2916_v53, %v2923_v23 }
 0x3ce   :  { %2849 = vst.msk [vmem:[#allocation4 + $0x29] ss:$8 sm:$0x10] %vm17353_vm12, %v2845_v28  ;;  %2874 = vst.msk [vmem:[#allocation4 + $0x2d] ss:$8 sm:$0xf] %vm17353_vm12, %v2871_v25  ;;  %v2998_v45 = vrot.slane %v2983_v24, %v17332_v1  ;;  %v3005_v15 = vcombine.high %v2983_v24, %v2983_v24  ;;  %v3012_v59 = vrot.slane %v3004_v33, %v17332_v1 }
 0x3cf   :  { %2875 = vst.msk [vmem:[#allocation4 + $0x2d] ss:$8 sm:$0x10] %vm17353_vm12, %v2871_v25  ;;  %v2724_v20 = vmax.f32 %v17584_v60, 0.0  ;;  %v2725_v41 = vmax.f32 %v2660_v62, 0.0  ;;  %v2945_v56 = vcombine.low %v2937_v47, %v2944_v21  ;;  %v2955_v4 = vcombine.high %v2937_v47, %v2944_v21  ;;  %v15078_v18 = vld [vmem:[%s20005_s5] sm:$0xff]  }
 0x3d0   :  { %2869 = vst.msk [vmem:[#allocation4 + $0x2b] ss:$8 sm:$0xf] %vm17353_vm12, %v2866_v38  ;;  %2870 = vst.msk [vmem:[#allocation4 + $0x2b] ss:$8 sm:$0x10] %vm17353_vm12, %v2866_v38  ;;  %v2999_v31 = vcombine.low %v2991_v49, %v2998_v45  ;;  %v3019_v55 = vrot.slane %v3005_v15, %v17332_v1  ;;  %v3025_v57 = vcombine.high %v2991_v49, %v2998_v45 }
 0x3d1   :  { %2879 = vst.msk [vmem:[#allocation4 + $0x2f] ss:$8 sm:$0xf] %vm17353_vm12, %v2876_v27  ;;  %2880 = vst.msk [vmem:[#allocation4 + $0x2f] ss:$8 sm:$0x10] %vm17353_vm12, %v2876_v27  ;;  %v3041_v16 = vcombine.low %v2724_v20, %v2725_v41  ;;  %v3048_v5 = vrot.slane %v17567_v6, %v17332_v1 }
 0x3d2   :  { %2927 = vst.msk [vmem:[#allocation4 + $0x51] ss:$8 sm:$0xf] %vm17353_vm12, %v2924_v11  ;;  %2928 = vst.msk [vmem:[#allocation4 + $0x51] ss:$8 sm:$0x10] %vm17353_vm12, %v2924_v11  ;;  %v3020_v7 = vcombine.low %v3012_v59, %v3019_v55  ;;  %v3030_v40 = vcombine.high %v3012_v59, %v3019_v55 }
 0x3d3   :  { %v2726_v22 = vmax.f32 %v2707_v10, 0.0  ;;  %2953 = vst.msk [vmem:[#allocation4 + $0x55] ss:$8 sm:$0xf] %vm17353_vm12, %v2950_v43  ;;  %v3055_v46 = vrot.slane %v3041_v16, %v17332_v1  ;;  %v3195_v6 = vld [vmem:[#allocation4 + $0x8] sm:$0xc] }
 0x3d4   :  { %2954 = vst.msk [vmem:[#allocation4 + $0x55] ss:$8 sm:$0x10] %vm17353_vm12, %v2950_v43  ;;  %2948 = vst.msk [vmem:[#allocation4 + $0x53] ss:$8 sm:$0xf] %vm17353_vm12, %v2945_v56  ;;  %v3200_v33 = vpack.c.bf16 %v3195_v6, %v3195_v6 }
 0x3d5   :  { %2949 = vst.msk [vmem:[#allocation4 + $0x53] ss:$8 sm:$0x10] %vm17353_vm12, %v2945_v56  ;;  %2958 = vst.msk [vmem:[#allocation4 + $0x57] ss:$8 sm:$0xf] %vm17353_vm12, %v2955_v4  ;;  %v3062_v42 = vrot.slane %v2726_v22, %v17332_v1  ;;  %v3063_v52 = vcombine.low %v3048_v5, %v3055_v46  ;;  %v3083_v26 = vcombine.high %v3048_v5, %v3055_v46 }
 0x3d6   :  { %2959 = vst.msk [vmem:[#allocation4 + $0x57] ss:$8 sm:$0x10] %vm17353_vm12, %v2955_v4  ;;  %3002 = vst.msk [vmem:[#allocation4 + $0x79] ss:$8 sm:$0xf] %vm17353_vm12, %v2999_v31 }
 0x3d7   :  { %3003 = vst.msk [vmem:[#allocation4 + $0x79] ss:$8 sm:$0x10] %vm17353_vm12, %v2999_v31  ;;  %3028 = vst.msk [vmem:[#allocation4 + $0x7d] ss:$8 sm:$0xf] %vm17353_vm12, %v3025_v57  ;;  %v3077_v48 = vrot.slane %v3062_v42, %v17332_v1  ;;  %v3084_v13 = vcombine.high %v3062_v42, %v3062_v42  ;;  %v3091_v37 = vrot.slane %v3083_v26, %v17332_v1 }
 0x3d8   :  { %3029 = vst.msk [vmem:[#allocation4 + $0x7d] ss:$8 sm:$0x10] %vm17353_vm12, %v3025_v57  ;;  %v3197_v60 = vld [vmem:[#allocation4 + $0x18] sm:$0xc]  ;;  %v3070_v61 = vrot.slane %v3063_v52, %v17332_v1  ;;  %v3291_v44 = vrot.slane %v3200_v33, 1 }
 0x3d9   :  { %v3194_v50 = vld [vmem:[#allocation4] sm:$0xc]  ;;  %3023 = vst.msk [vmem:[#allocation4 + $0x7b] ss:$8 sm:$0xf] %vm17353_vm12, %v3020_v7  ;;  %v3202_v9 = vpack.c.bf16 %v3197_v60, %v3197_v60  ;;  %v3098_v2 = vrot.slane %v3084_v13, %v17332_v1  ;;  %v15082_v32 = vld [vmem:[%s20005_s5 + $0x50] sm:$0xff]  }
 0x3da   :  { %3024 = vst.msk [vmem:[#allocation4 + $0x7b] ss:$8 sm:$0x10] %vm17353_vm12, %v3020_v7  ;;  %3033 = vst.msk [vmem:[#allocation4 + $0x7f] ss:$8 sm:$0xf] %vm17353_vm12, %v3030_v40  ;;  %v3199_v3 = vpack.c.bf16 %v3194_v50, %v3194_v50  ;;  %v3078_v36 = vcombine.low %v3070_v61, %v3077_v48  ;;  %3572 = vmatprep.mubr.bf16.mxu1 %v3291_v44 }
 0x3db   :  { %3034 = vst.msk [vmem:[#allocation4 + $0x7f] ss:$8 sm:$0x10] %vm17353_vm12, %v3030_v40  ;;  %v3196_v30 = vld [vmem:[#allocation4 + $0x10] sm:$0xc]  ;;  %v3293_v47 = vrot.slane %v3202_v9, 1  ;;  %v3099_v58 = vcombine.low %v3091_v37, %v3098_v2 }
 0x3dc   :  { %v3201_v51 = vpack.c.bf16 %v3196_v30, %v3196_v30  ;;  %v3105_v39 = vld [vmem:[#allocation4 + $0x8] sm:$0x3]  ;;  %v3290_v14 = vrot.slane %v3199_v3, 1  ;;  %v15079_v1 = vld [vmem:[%s20005_s5 + $0x48] sm:$0xff]   ;;  %v15085_v63 = vld [vmem:[%s20005_s5 + $0x58] sm:$0xff]  }
 0x3dd   :  { %3612 = vmatprep.mubr.bf16.mxu0 %v3293_v47  ;;  %v3110_v54 = vpack.c.bf16 %v3105_v39, %v3105_v39  ;;  %3081 = vst.msk [vmem:[#allocation4 + $0xa1] ss:$8 sm:$0xf] %vm17353_vm12, %v3078_v36  ;;  %3082 = vst.msk [vmem:[#allocation4 + $0xa1] ss:$8 sm:$0x10] %vm17353_vm12, %v3078_v36 }
 0x3de   :  { %v3292_v12 = vrot.slane %v3201_v51, 1  ;;  %3573 = vmatmul.mubr.bf16.vlgmr.msra.gmra.mrb[36].mxu1 %v3290_v14  ;;  %3102 = vst.msk [vmem:[#allocation4 + $0xa3] ss:$8 sm:$0xf] %vm17353_vm12, %v3099_v58  ;;  %v15080_v53 = vld [vmem:[%s20005_s5 + $0x248] sm:$0xff]   ;;  %v15084_v0 = vld [vmem:[%s20005_s5 + $0x10] sm:$0xff]  }
 0x3df   :  { %3103 = vst.msk [vmem:[#allocation4 + $0xa3] ss:$8 sm:$0x10] %vm17353_vm12, %v3099_v58  ;;  %14605 = vmatpush3.bf16.msra.mxu1 %v15077_v8  ;;  %v15081_v17 = vld [vmem:[%s20005_s5 + $0x8] sm:$0xff]   ;;  %14620 = vmatprep.mubr.msk.bf16.mxu1 %vm15829_vm0, %v20033_v35  ;;  %v15086_v28 = vld [vmem:[%s20005_s5 + $0x258] sm:$0xff]   ;;  %v15088_v29 = vld [vmem:[%s20005_s5 + $0x60] sm:$0xff]  }
 0x3e0   :  { %3613 = vmatmul.mubr.bf16.vlgmr.msra.gmra.mrb[48].mxu0 %v3292_v12  ;;  %14606 = vmatprep.subr.bf16.mxu1 %v20033_v35  ;;  %v15087_v25 = vld [vmem:[%s20005_s5 + $0x18] sm:$0xff]   ;;  %v15089_v23 = vld [vmem:[%s20005_s5 + $0x260] sm:$0xff]   ;;  %v15091_v24 = vld [vmem:[%s20005_s5 + $0x68] sm:$0xff]  }
 0x3e1   :  { %13676 = vmatpush3.bf16.msra.mxu0 %v15078_v18  ;;  %3932 = vmatprep.mubr.bf16.mxu0 %v3110_v54  ;;  %v15090_v19 = vld [vmem:[%s20005_s5 + $0x20] sm:$0xff]   ;;  %v15092_v49 = vld [vmem:[%s20005_s5 + $0x268] sm:$0xff]   ;;  %v15094_v62 = vld [vmem:[%s20005_s5 + $0x70] sm:$0xff]  }
 0x3e2   :  { %13677 = vmatprep.subr.bf16.mxu0 %v15079_v1  ;;  %v15093_v20 = vld [vmem:[%s20005_s5 + $0x28] sm:$0xff]   ;;  %v15095_v10 = vld [vmem:[%s20005_s5 + $0x270] sm:$0xff]   ;;  %v15097_v27 = vld [vmem:[%s20005_s5 + $0x78] sm:$0xff]  }
 0x3e3   :  { %14607 = vmatpush3.bf16.msra.mxu1 %v15080_v53  ;;  %v15096_v38 = vld [vmem:[%s20005_s5 + $0x30] sm:$0xff]   ;;  %v3198_v11 = vld [vmem:[#allocation4 + $0x20] sm:$0xc]  ;;  %v15098_v21 = vld [vmem:[%s20005_s5 + $0x278] sm:$0xff]  }
 0x3e4   :  { %14608 = vmatprep.subr.bf16.mxu1 %v20033_v35  ;;  %v15099_v43 = vld [vmem:[%s20005_s5 + $0x38] sm:$0xff]   ;;  %v3203_v45 = vpack.c.bf16 %v3198_v11, %v3198_v11  ;;  %v15100_v15 = vld [vmem:[%s20005_s5 + $0xc0] sm:$0xff]   ;;  %v3104_v41 = vld [vmem:[#allocation4] sm:$0x3] }
 0x3e5   :  { %13678 = vmatpush3.bf16.msra.mxu0 %v15081_v17  ;;  %v3107_v59 = vld [vmem:[#allocation4 + $0x18] sm:$0x3]  ;;  %v3109_v22 = vpack.c.bf16 %v3104_v41, %v3104_v41  ;;  %v15103_v55 = vld [vmem:[%s20005_s5 + $0xc8] sm:$0xff]   ;;  %v15106_v5 = vld [vmem:[%s20005_s5 + $0xd0] sm:$0xff]  }
 0x3e6   :  { %13679 = vmatprep.subr.bf16.mxu0 %v15082_v32  ;;  %v15101_v56 = vld [vmem:[%s20005_s5 + $0x80] sm:$0xff]   ;;  %v3294_v4 = vrot.slane %v3203_v45, 1  ;;  %v3112_v57 = vpack.c.bf16 %v3107_v59, %v3107_v59  ;;  %v15104_v16 = vld [vmem:[%s20005_s5 + $0x88] sm:$0xff]   ;;  %v15107_v7 = vld [vmem:[%s20005_s5 + $0x90] sm:$0xff]  }
 0x3e7   :  { %14609 = vmatpush3.bf16.msra.mxu1 %v15083_v34  ;;  %v15102_v31 = vld [vmem:[%s20005_s5 + $0x100] sm:$0xff]   ;;  %v15105_v42 = vld [vmem:[%s20005_s5 + $0x108] sm:$0xff]   ;;  %v15108_v40 = vld [vmem:[%s20005_s5 + $0x110] sm:$0xff]  }
 0x3e8   :  { %14610 = vmatprep.subr.bf16.mxu1 %v20033_v35  ;;  %v15109_v46 = vld [vmem:[%s20005_s5 + $0xd8] sm:$0xff]   ;;  %v15112_v6 = vld [vmem:[%s20005_s5 + $0xe0] sm:$0xff]   ;;  %v15115_v52 = vld [vmem:[%s20005_s5 + $0xe8] sm:$0xff]  }
 0x3e9   :  { %13680 = vmatpush3.bf16.msra.mxu0 %v15084_v0  ;;  %v15110_v48 = vld [vmem:[%s20005_s5 + $0x98] sm:$0xff]   ;;  %v15113_v60 = vld [vmem:[%s20005_s5 + $0xa0] sm:$0xff]   ;;  %v15116_v26 = vld [vmem:[%s20005_s5 + $0xa8] sm:$0xff]  }
 0x3ea   :  { %13681 = vmatprep.subr.bf16.mxu0 %v15085_v63  ;;  %v15111_v13 = vld [vmem:[%s20005_s5 + $0x118] sm:$0xff]   ;;  %v15114_v50 = vld [vmem:[%s20005_s5 + $0x120] sm:$0xff]   ;;  %v15117_v33 = vld [vmem:[%s20005_s5 + $0x128] sm:$0xff]  }
 0x3eb   :  { %14611 = vmatpush3.bf16.msra.mxu1 %v15086_v28  ;;  %v15118_v9 = vld [vmem:[%s20005_s5 + $0xf0] sm:$0xff]   ;;  %v15121_v3 = vld [vmem:[%s20005_s5 + $0xf8] sm:$0xff]   ;;  %v15124_v44 = vld [vmem:[%s20005_s5 + $0x2c0] sm:$0xff]  }
 0x3ec   :  { %14612 = vmatprep.subr.bf16.mxu1 %v20033_v35  ;;  %v15119_v30 = vld [vmem:[%s20005_s5 + $0xb0] sm:$0xff]   ;;  %v15122_v51 = vld [vmem:[%s20005_s5 + $0xb8] sm:$0xff]   ;;  %v4023_v47 = vld [vmem:[#allocation4 + $0x18] sm:$0x30] }
 0x3ed   :  { %13682 = vmatpush3.bf16.msra.mxu0 %v15087_v25  ;;  %v15120_v2 = vld [vmem:[%s20005_s5 + $0x130] sm:$0xff]   ;;  %v15123_v61 = vld [vmem:[%s20005_s5 + $0x138] sm:$0xff]   ;;  %v15125_v18 = vld [vmem:[%s20005_s5 + $0x340] sm:$0xff]   ;;  %v4028_v36 = vpack.c.bf16 %v4023_v47, %v4023_v47 }
 0x3ee   :  { %13683 = vmatprep.subr.bf16.mxu0 %v15088_v29  ;;  %v4021_v37 = vld [vmem:[#allocation4 + $0x8] sm:$0x30]  ;;  %v3106_v8 = vld [vmem:[#allocation4 + $0x10] sm:$0x3]  ;;  %v3108_v39 = vld [vmem:[#allocation4 + $0x20] sm:$0x3] }
 0x3ef   :  { %14613 = vmatpush3.bf16.msra.mxu1 %v15089_v23  ;;  %v4026_v14 = vpack.c.bf16 %v4021_v37, %v4021_v37  ;;  %v15126_v12 = vld [vmem:[%s20005_s5 + $0x280] sm:$0xff]   ;;  %v3111_v58 = vpack.c.bf16 %v3106_v8, %v3106_v8  ;;  %v3113_v54 = vpack.c.bf16 %v3108_v39, %v3108_v39  ;;  %v15128_v53 = vld [vmem:[%s20005_s5 + $0x2c8] sm:$0xff]   ;;  %v4119_v34 = vrot.slane %v4028_v36, 2  ;;  %v15132_v28 = vld [vmem:[%s20005_s5 + $0x2d0] sm:$0xff]  }
 0x3f0   :  { %14614 = vmatprep.subr.bf16.mxu1 %v20033_v35  ;;  %v15127_v1 = vld [vmem:[%s20005_s5 + $0x300] sm:$0xff]   ;;  %v15129_v32 = vld [vmem:[%s20005_s5 + $0x348] sm:$0xff]   ;;  %v15133_v25 = vld [vmem:[%s20005_s5 + $0x350] sm:$0xff]  }
 0x3f1   :  { %13684 = vmatpush3.bf16.msra.mxu0 %v15090_v19  ;;  %v4117_v17 = vrot.slane %v4026_v14, 2  ;;  %v15130_v0 = vld [vmem:[%s20005_s5 + $0x288] sm:$0xff]   ;;  %v15134_v29 = vld [vmem:[%s20005_s5 + $0x290] sm:$0xff]   ;;  %v15136_v19 = vld [vmem:[%s20005_s5 + $0x2d8] sm:$0xff]  }
 0x3f2   :  { %13685 = vmatprep.subr.bf16.mxu0 %v15091_v24  ;;  %v15131_v63 = vld [vmem:[%s20005_s5 + $0x308] sm:$0xff]   ;;  %v15135_v23 = vld [vmem:[%s20005_s5 + $0x310] sm:$0xff]   ;;  %v15137_v24 = vld [vmem:[%s20005_s5 + $0x358] sm:$0xff]  }
 0x3f3   :  { %14615 = vmatpush3.bf16.msra.mxu1 %v15092_v49  ;;  %v15138_v49 = vld [vmem:[%s20005_s5 + $0x298] sm:$0xff]   ;;  %v15144_v11 = vld [vmem:[%s20005_s5 + $0x2e8] sm:$0xff]   ;;  %v15149_v41 = vld [vmem:[%s20005_s5 + $0x370] sm:$0xff]  }
 0x3f4   :  { %14616 = vmatprep.subr.bf16.mxu1 %v20033_v35  ;;  %v15147_v45 = vld [vmem:[%s20005_s5 + $0x328] sm:$0xff]   ;;  %v15150_v59 = vld [vmem:[%s20005_s5 + $0x2b0] sm:$0xff]   ;;  %v15167_v37 = vld [vmem:[%s20005_s5 + $0x3d8] sm:$0xff]  }
 0x3f5   :  { %13686 = vmatpush3.bf16.msra.mxu0 %v15093_v20  ;;  %v15139_v20 = vld [vmem:[%s20005_s5 + $0x318] sm:$0xff]   ;;  %v15170_v47 = vld [vmem:[%s20005_s5 + $0x3e0] sm:$0xff]   ;;  %v15171_v8 = vld [vmem:[%s20005_s5 + $0x428] sm:$0xff]  }
 0x3f6   :  { %13687 = vmatprep.subr.bf16.mxu0 %v15094_v62  ;;  %v15140_v62 = vld [vmem:[%s20005_s5 + $0x2e0] sm:$0xff]   ;;  %v15173_v39 = vld [vmem:[%s20005_s5 + $0x3e8] sm:$0xff]   ;;  %v15174_v14 = vld [vmem:[%s20005_s5 + $0x430] sm:$0xff]  }
 0x3f7   :  { %14617 = vmatpush3.bf16.msra.mxu1 %v15095_v10  ;;  %v15141_v10 = vld [vmem:[%s20005_s5 + $0x360] sm:$0xff]   ;;  %v15176_v36 = vld [vmem:[%s20005_s5 + $0x3f0] sm:$0xff]  }
 0x3f8   :  { %14618 = vmatprep.subr.bf16.mxu1 %v20033_v35 }
 0x3f9   :  { %13688 = vmatpush3.bf16.msra.mxu0 %v15096_v38  ;;  %v15142_v38 = vld [vmem:[%s20005_s5 + $0x2a0] sm:$0xff]  }
 0x3fa   :  { %13689 = vmatprep.subr.bf16.mxu0 %v15097_v27  ;;  %v15143_v27 = vld [vmem:[%s20005_s5 + $0x320] sm:$0xff]  }
 0x3fb   :  { %14619 = vmatpush3.bf16.msra.mxu1 %v15098_v21  ;;  %v15145_v21 = vld [vmem:[%s20005_s5 + $0x368] sm:$0xff]  }
 0x3fc   :  { %13697 = vmatprep.subr.bf16.mxu1 %v15100_v15  ;;  %v15148_v15 = vld [vmem:[%s20005_s5 + $0x2f0] sm:$0xff]  }
 0x3fd   :  { %13690 = vmatpush3.bf16.msra.mxu0 %v15099_v43  ;;  %v15146_v43 = vld [vmem:[%s20005_s5 + $0x2a8] sm:$0xff]  }
 0x3fe   :  { %14624 = vmatprep.subr.bf16.mxu0 %v20033_v35  ;;  %14621 = vmatmul.mubr.bf16.vlgmr.msra.gmra.mrb[40].mxu1 %v3294_v4  ;;  %v15152_v4 = vld [vmem:[%s20005_s5 + $0x2f8] sm:$0xff]  }
 0x3ff   :  { %13698 = vmatpush3.bf16.msra.mxu1 %v15101_v56  ;;  %3972 = vmatprep.mubr.bf16.mxu1 %v3112_v57  ;;  %v15151_v56 = vld [vmem:[%s20005_s5 + $0x330] sm:$0xff]   ;;  %v15154_v57 = vld [vmem:[%s20005_s5 + $0x2b8] sm:$0xff]  }
 0x400   :  { %3933 = vmatmul.mubr.bf16.vlgmr.msra.gmra.mrb[52].mxu0 %v3109_v22  ;;  %13699 = vmatprep.subr.bf16.mxu1 %v15103_v55  ;;  %v15153_v22 = vld [vmem:[%s20005_s5 + $0x378] sm:$0xff]  }
 0x401   :  { %14625 = vmatpush3.bf16.msra.mxu0 %v15102_v31  ;;  %14640 = vmatprep.mubr.msk.bf16.mxu0 %vm15829_vm0, %v20033_v35  ;;  %v4020_v31 = vld [vmem:[#allocation4] sm:$0x30]  ;;  %v4022_v55 = vld [vmem:[#allocation4 + $0x10] sm:$0x30] }
 0x402   :  { %14626 = vmatprep.subr.bf16.mxu0 %v20033_v35 }
 0x403   :  { %13700 = vmatpush3.bf16.msra.mxu1 %v15104_v16  ;;  %v4488_v16 = vld [vmem:[#allocation4 + $0x8] sm:$0xc0] }
 0x404   :  { %13701 = vmatprep.subr.bf16.mxu1 %v15106_v5  ;;  %v4025_v5 = vpack.c.bf16 %v4020_v31, %v4020_v31  ;;  %v15199_v31 = vld [vmem:[%s20005_s5 + $0x470] sm:$0xff]  }
 0x405   :  { %14627 = vmatpush3.bf16.msra.mxu0 %v15105_v42  ;;  %v15155_v42 = vld [vmem:[%s20005_s5 + $0x338] sm:$0xff]  }
 0x406   :  { %14628 = vmatprep.subr.bf16.mxu0 %v20033_v35 }
 0x407   :  { %13702 = vmatpush3.bf16.msra.mxu1 %v15107_v7  ;;  %v4027_v7 = vpack.c.bf16 %v4022_v55, %v4022_v55  ;;  %v15200_v55 = vld [vmem:[%s20005_s5 + $0x4f0] sm:$0xff]  }
 0x408   :  { %13703 = vmatprep.subr.bf16.mxu1 %v15109_v46  ;;  %v4493_v46 = vpack.c.bf16 %v4488_v16, %v4488_v16  ;;  %v4489_v16 = vld [vmem:[#allocation4 + $0x10] sm:$0xc0] }
 0x409   :  { %14629 = vmatpush3.bf16.msra.mxu0 %v15108_v40  ;;  %v15156_v40 = vld [vmem:[%s20005_s5 + $0x400] sm:$0xff]  }
 0x40a   :  { %14630 = vmatprep.subr.bf16.mxu0 %v20033_v35 }
 0x40b   :  { %13704 = vmatpush3.bf16.msra.mxu1 %v15110_v48  ;;  %v15157_v48 = vld [vmem:[%s20005_s5 + $0x380] sm:$0xff]  }
 0x40c   :  { %13705 = vmatprep.subr.bf16.mxu1 %v15112_v6  ;;  %v15158_v6 = vld [vmem:[%s20005_s5 + $0x3c0] sm:$0xff]  }
 0x40d   :  { %14631 = vmatpush3.bf16.msra.mxu0 %v15111_v13  ;;  %v4116_v13 = vrot.slane %v4025_v5, 2  ;;  %v15202_v5 = vld [vmem:[%s20005_s5 + $0x478] sm:$0xff]  }
 0x40e   :  { %14632 = vmatprep.subr.bf16.mxu0 %v20033_v35 }
 0x40f   :  { %13706 = vmatpush3.bf16.msra.mxu1 %v15113_v60  ;;  %v4118_v60 = vrot.slane %v4027_v7, 2  ;;  %v15203_v7 = vld [vmem:[%s20005_s5 + $0x4f8] sm:$0xff]  }
 0x410   :  { %13707 = vmatprep.subr.bf16.mxu1 %v15115_v52  ;;  %v4584_v52 = vrot.slane %v4493_v46, 3  ;;  %v15204_v46 = vld [vmem:[%s20005_s5 + $0x540] sm:$0xff]  }
 0x411   :  { %14633 = vmatpush3.bf16.msra.mxu0 %v15114_v50  ;;  %v15159_v50 = vld [vmem:[%s20005_s5 + $0x408] sm:$0xff]  }
 0x412   :  { %14634 = vmatprep.subr.bf16.mxu0 %v20033_v35 }
 0x413   :  { %13708 = vmatpush3.bf16.msra.mxu1 %v15116_v26  ;;  %v15160_v26 = vld [vmem:[%s20005_s5 + $0x388] sm:$0xff]  }
 0x414   :  { %13709 = vmatprep.subr.bf16.mxu1 %v15118_v9  ;;  %v15162_v9 = vld [vmem:[%s20005_s5 + $0x410] sm:$0xff]  }
 0x415   :  { %14635 = vmatpush3.bf16.msra.mxu0 %v15117_v33  ;;  %v15161_v33 = vld [vmem:[%s20005_s5 + $0x3c8] sm:$0xff]  }
 0x416   :  { %14636 = vmatprep.subr.bf16.mxu0 %v20033_v35 }
 0x417   :  { %13710 = vmatpush3.bf16.msra.mxu1 %v15119_v30  ;;  %v15163_v30 = vld [vmem:[%s20005_s5 + $0x390] sm:$0xff]  }
 0x418   :  { %13711 = vmatprep.subr.bf16.mxu1 %v15121_v3  ;;  %v15165_v3 = vld [vmem:[%s20005_s5 + $0x418] sm:$0xff]  }
 0x419   :  { %14637 = vmatpush3.bf16.msra.mxu0 %v15120_v2  ;;  %v15164_v2 = vld [vmem:[%s20005_s5 + $0x3d0] sm:$0xff]  }
 0x41a   :  { %14638 = vmatprep.subr.bf16.mxu0 %v20033_v35 }
 0x41b   :  { %13712 = vmatpush3.bf16.msra.mxu1 %v15122_v51  ;;  %v15166_v51 = vld [vmem:[%s20005_s5 + $0x398] sm:$0xff]  }
 0x41c   :  { %13728 = vmatprep.subr.bf16.mxu1 %v15124_v44  ;;  %v15169_v44 = vld [vmem:[%s20005_s5 + $0x3a0] sm:$0xff]  }
 0x41d   :  { %14639 = vmatpush3.bf16.msra.mxu0 %v15123_v61  ;;  %v15168_v61 = vld [vmem:[%s20005_s5 + $0x420] sm:$0xff]  }
 0x41e   :  { %13750 = vmatprep.subr.bf16.mxu0 %v15125_v18  ;;  %3973 = vmatmul.mubr.bf16.vlgmr.msra.gmra.mrb[44].mxu1 %v3111_v58  ;;  %v15172_v18 = vld [vmem:[%s20005_s5 + $0x3a8] sm:$0xff]   ;;  %v15177_v58 = vld [vmem:[%s20005_s5 + $0x438] sm:$0xff]  }
 0x41f   :  { %13729 = vmatpush3.bf16.msra.mxu1 %v15126_v12  ;;  %4398 = vmatprep.mubr.bf16.mxu1 %v4117_v17  ;;  %v15175_v12 = vld [vmem:[%s20005_s5 + $0x3b0] sm:$0xff]   ;;  %v4490_v17 = vld [vmem:[#allocation4 + $0x18] sm:$0xc0] }
 0x420   :  { %14641 = vmatmul.mubr.bf16.vlgmr.msra.gmra.mrb[56].mxu0 %v3113_v54  ;;  %13730 = vmatprep.subr.bf16.mxu1 %v15128_v53  ;;  %v4487_v54 = vld [vmem:[#allocation4] sm:$0xc0]  ;;  %v15178_v53 = vld [vmem:[%s20005_s5 + $0x3b8] sm:$0xff]  }
 0x421   :  { %13751 = vmatpush3.bf16.msra.mxu0 %v15127_v1  ;;  %4438 = vmatprep.mubr.bf16.mxu0 %v4119_v34  ;;  %v4024_v1 = vld [vmem:[#allocation4 + $0x20] sm:$0x30] }
 0x422   :  { %13752 = vmatprep.subr.bf16.mxu0 %v15129_v32  ;;  %v15179_v32 = vld [vmem:[%s20005_s5 + $0x3f8] sm:$0xff]   ;;  %v4029_v34 = vpack.c.bf16 %v4024_v1, %v4024_v1  ;;  %v15222_v1 = vld [vmem:[%s20005_s5 + $0x520] sm:$0xff]  }
 0x423   :  { %13731 = vmatpush3.bf16.msra.mxu1 %v15130_v0  ;;  %v15180_v0 = vld [vmem:[%s20005_s5 + $0x480] sm:$0xff]  }
 0x424   :  { %13732 = vmatprep.subr.bf16.mxu1 %v15132_v28  ;;  %v4495_v28 = vpack.c.bf16 %v4490_v17, %v4490_v17  ;;  %v15225_v17 = vld [vmem:[%s20005_s5 + $0x5e8] sm:$0xff]  }
 0x425   :  { %13753 = vmatpush3.bf16.msra.mxu0 %v15131_v63  ;;  %v4492_v63 = vpack.c.bf16 %v4487_v54, %v4487_v54  ;;  %v15223_v54 = vld [vmem:[%s20005_s5 + $0x5a0] sm:$0xff]  }
 0x426   :  { %13754 = vmatprep.subr.bf16.mxu0 %v15133_v25  ;;  %v15181_v25 = vld [vmem:[%s20005_s5 + $0x440] sm:$0xff]  }
 0x427   :  { %13733 = vmatpush3.bf16.msra.mxu1 %v15134_v29  ;;  %v4120_v29 = vrot.slane %v4029_v34, 2  ;;  %v15227_v34 = vld [vmem:[%s20005_s5 + $0x5a8] sm:$0xff]  }
 0x428   :  { %13734 = vmatprep.subr.bf16.mxu1 %v15136_v19  ;;  %v4583_v19 = vrot.slane %v4492_v63, 3  ;;  %v15229_v63 = vld [vmem:[%s20005_s5 + $0x5f0] sm:$0xff]  }
 0x429   :  { %13755 = vmatpush3.bf16.msra.mxu0 %v15135_v23  ;;  %v15182_v23 = vld [vmem:[%s20005_s5 + $0x4c0] sm:$0xff]  }
 0x42a   :  { %13756 = vmatprep.subr.bf16.mxu0 %v15137_v24  ;;  %v15183_v24 = vld [vmem:[%s20005_s5 + $0x488] sm:$0xff]  }
 0x42b   :  { %13735 = vmatpush3.bf16.msra.mxu1 %v15138_v49  ;;  %v4586_v49 = vrot.slane %v4495_v28, 3  ;;  %v15230_v28 = vld [vmem:[%s20005_s5 + $0x530] sm:$0xff]  }
 0x42c   :  { %13736 = vmatprep.subr.bf16.mxu1 %v15140_v62  ;;  %v15185_v62 = vld [vmem:[%s20005_s5 + $0x4c8] sm:$0xff]  }
 0x42d   :  { %13757 = vmatpush3.bf16.msra.mxu0 %v15139_v20  ;;  %v15184_v20 = vld [vmem:[%s20005_s5 + $0x448] sm:$0xff]  }
 0x42e   :  { %13758 = vmatprep.subr.bf16.mxu0 %v15141_v10  ;;  %v15186_v10 = vld [vmem:[%s20005_s5 + $0x490] sm:$0xff]  }
 0x42f   :  { %13737 = vmatpush3.bf16.msra.mxu1 %v15142_v38  ;;  %v15187_v38 = vld [vmem:[%s20005_s5 + $0x450] sm:$0xff]  }
 0x430   :  { %13738 = vmatprep.subr.bf16.mxu1 %v15144_v11  ;;  %v15189_v11 = vld [vmem:[%s20005_s5 + $0x498] sm:$0xff]  }
 0x431   :  { %13759 = vmatpush3.bf16.msra.mxu0 %v15143_v27  ;;  %v15188_v27 = vld [vmem:[%s20005_s5 + $0x4d0] sm:$0xff]  }
 0x432   :  { %13760 = vmatprep.subr.bf16.mxu0 %v15145_v21  ;;  %v15190_v21 = vld [vmem:[%s20005_s5 + $0x458] sm:$0xff]  }
 0x433   :  { %13739 = vmatpush3.bf16.msra.mxu1 %v15146_v43  ;;  %v15191_v43 = vld [vmem:[%s20005_s5 + $0x4d8] sm:$0xff]  }
 0x434   :  { %13740 = vmatprep.subr.bf16.mxu1 %v15148_v15  ;;  %v15193_v15 = vld [vmem:[%s20005_s5 + $0x460] sm:$0xff]  }
 0x435   :  { %13761 = vmatpush3.bf16.msra.mxu0 %v15147_v45  ;;  %v15192_v45 = vld [vmem:[%s20005_s5 + $0x4a0] sm:$0xff]  }
 0x436   :  { %13762 = vmatprep.subr.bf16.mxu0 %v15149_v41  ;;  %v15194_v41 = vld [vmem:[%s20005_s5 + $0x4e0] sm:$0xff]  }
 0x437   :  { %13741 = vmatpush3.bf16.msra.mxu1 %v15150_v59  ;;  %v15195_v59 = vld [vmem:[%s20005_s5 + $0x4a8] sm:$0xff]  }
 0x438   :  { %13742 = vmatprep.subr.bf16.mxu1 %v15152_v4  ;;  %v15197_v4 = vld [vmem:[%s20005_s5 + $0x4e8] sm:$0xff]  }
 0x439   :  { %13763 = vmatpush3.bf16.msra.mxu0 %v15151_v56  ;;  %v15196_v56 = vld [vmem:[%s20005_s5 + $0x468] sm:$0xff]  }
 0x43a   :  { %13764 = vmatprep.subr.bf16.mxu0 %v15153_v22  ;;  %v15198_v22 = vld [vmem:[%s20005_s5 + $0x4b0] sm:$0xff]  }
 0x43b   :  { %13743 = vmatpush3.bf16.msra.mxu1 %v15154_v57  ;;  %v15201_v57 = vld [vmem:[%s20005_s5 + $0x4b8] sm:$0xff]  }
 0x43c   :  { %14644 = vmatprep.subr.bf16.mxu1 %v20033_v35 }
 0x43d   :  { %13765 = vmatpush3.bf16.msra.mxu0 %v15155_v42  ;;  %v4491_v42 = vld [vmem:[#allocation4 + $0x20] sm:$0xc0] }
 0x43e   :  { %13781 = vmatprep.subr.bf16.mxu0 %v15156_v40  ;;  %4399 = vmatmul.mubr.bf16.vlgmr.msra.gmra.mrb[48].mxu1 %v4116_v13  ;;  %v4494_v40 = vpack.c.bf16 %v4489_v16, %v4489_v16  ;;  %v15205_v13 = vld [vmem:[%s20005_s5 + $0x5c0] sm:$0xff]  }
 0x43f   :  { %14645 = vmatpush3.bf16.msra.mxu1 %v15157_v48  ;;  %14660 = vmatprep.mubr.msk.bf16.mxu1 %vm15829_vm0, %v20033_v35  ;;  %v4496_v48 = vpack.c.bf16 %v4491_v42, %v4491_v42  ;;  %v15248_v16 = vld [vmem:[%s20005_s5 + $0x6a0] sm:$0xff]  }
 0x440   :  { %4439 = vmatmul.mubr.bf16.vlgmr.msra.gmra.mrb[60].mxu0 %v4118_v60  ;;  %14646 = vmatprep.subr.bf16.mxu1 %v20033_v35  ;;  %v4955_v60 = vld [vmem:[#allocation4 + $0x30] sm:$0x3]  ;;  %v15249_v42 = vld [vmem:[%s20005_s5 + $0x620] sm:$0xff]  }
 0x441   :  { %13782 = vmatpush3.bf16.msra.mxu0 %v15158_v6  ;;  %4865 = vmatprep.mubr.bf16.mxu0 %v4584_v52  ;;  %v15206_v6 = vld [vmem:[%s20005_s5 + $0x500] sm:$0xff]  }
 0x442   :  { %13783 = vmatprep.subr.bf16.mxu0 %v15159_v50  ;;  %v4585_v50 = vrot.slane %v4494_v40, 3  ;;  %v15207_v52 = vld [vmem:[%s20005_s5 + $0x580] sm:$0xff]   ;;  %v15252_v40 = vld [vmem:[%s20005_s5 + $0x628] sm:$0xff]  }
 0x443   :  { %14647 = vmatpush3.bf16.msra.mxu1 %v15160_v26  ;;  %v4957_v26 = vld [vmem:[#allocation4 + $0x40] sm:$0x3] }
 0x444   :  { %14648 = vmatprep.subr.bf16.mxu1 %v20033_v35 }
 0x445   :  { %13784 = vmatpush3.bf16.msra.mxu0 %v15161_v33  ;;  %v4587_v33 = vrot.slane %v4496_v48, 3 }
 0x446   :  { %13785 = vmatprep.subr.bf16.mxu0 %v15162_v9  ;;  %v15208_v9 = vld [vmem:[%s20005_s5 + $0x548] sm:$0xff]  }
 0x447   :  { %14649 = vmatpush3.bf16.msra.mxu1 %v15163_v30  ;;  %v4960_v30 = vpack.c.bf16 %v4955_v60, %v4955_v60 }
 0x448   :  { %14650 = vmatprep.subr.bf16.mxu1 %v20033_v35 }
 0x449   :  { %13786 = vmatpush3.bf16.msra.mxu0 %v15164_v2  ;;  %v15209_v2 = vld [vmem:[%s20005_s5 + $0x5c8] sm:$0xff]  }
 0x44a   :  { %13787 = vmatprep.subr.bf16.mxu0 %v15165_v3  ;;  %v4962_v3 = vpack.c.bf16 %v4957_v26, %v4957_v26 }
 0x44b   :  { %14651 = vmatpush3.bf16.msra.mxu1 %v15166_v51  ;;  %v15210_v51 = vld [vmem:[%s20005_s5 + $0x508] sm:$0xff]  }
 0x44c   :  { %14652 = vmatprep.subr.bf16.mxu1 %v20033_v35 }
 0x44d   :  { %13788 = vmatpush3.bf16.msra.mxu0 %v15167_v37  ;;  %v15211_v37 = vld [vmem:[%s20005_s5 + $0x588] sm:$0xff]  }
 0x44e   :  { %13789 = vmatprep.subr.bf16.mxu0 %v15168_v61  ;;  %v15212_v61 = vld [vmem:[%s20005_s5 + $0x550] sm:$0xff]  }
 0x44f   :  { %14653 = vmatpush3.bf16.msra.mxu1 %v15169_v44  ;;  %v15213_v44 = vld [vmem:[%s20005_s5 + $0x5d0] sm:$0xff]  }
 0x450   :  { %14654 = vmatprep.subr.bf16.mxu1 %v20033_v35 }
 0x451   :  { %13790 = vmatpush3.bf16.msra.mxu0 %v15170_v47  ;;  %v15214_v47 = vld [vmem:[%s20005_s5 + $0x510] sm:$0xff]  }
 0x452   :  { %13791 = vmatprep.subr.bf16.mxu0 %v15171_v8  ;;  %v15215_v8 = vld [vmem:[%s20005_s5 + $0x590] sm:$0xff]  }
 0x453   :  { %14655 = vmatpush3.bf16.msra.mxu1 %v15172_v18  ;;  %v15216_v18 = vld [vmem:[%s20005_s5 + $0x558] sm:$0xff]  }
 0x454   :  { %14656 = vmatprep.subr.bf16.mxu1 %v20033_v35 }
 0x455   :  { %13792 = vmatpush3.bf16.msra.mxu0 %v15173_v39  ;;  %v15217_v39 = vld [vmem:[%s20005_s5 + $0x5d8] sm:$0xff]  }
 0x456   :  { %13793 = vmatprep.subr.bf16.mxu0 %v15174_v14  ;;  %v15218_v14 = vld [vmem:[%s20005_s5 + $0x518] sm:$0xff]  }
 0x457   :  { %14657 = vmatpush3.bf16.msra.mxu1 %v15175_v12  ;;  %v15219_v12 = vld [vmem:[%s20005_s5 + $0x598] sm:$0xff]  }
 0x458   :  { %14658 = vmatprep.subr.bf16.mxu1 %v20033_v35 }
 0x459   :  { %13794 = vmatpush3.bf16.msra.mxu0 %v15176_v36  ;;  %v15220_v36 = vld [vmem:[%s20005_s5 + $0x560] sm:$0xff]  }
 0x45a   :  { %13795 = vmatprep.subr.bf16.mxu0 %v15177_v58  ;;  %v15221_v58 = vld [vmem:[%s20005_s5 + $0x5e0] sm:$0xff]  }
 0x45b   :  { %14659 = vmatpush3.bf16.msra.mxu1 %v15178_v53  ;;  %v15224_v53 = vld [vmem:[%s20005_s5 + $0x568] sm:$0xff]  }
 0x45c   :  { %13803 = vmatprep.subr.bf16.mxu1 %v15180_v0  ;;  %v15228_v0 = vld [vmem:[%s20005_s5 + $0x570] sm:$0xff]  }
 0x45d   :  { %13796 = vmatpush3.bf16.msra.mxu0 %v15179_v32  ;;  %v15226_v32 = vld [vmem:[%s20005_s5 + $0x528] sm:$0xff]  }
 0x45e   :  { %14664 = vmatprep.subr.bf16.mxu0 %v20033_v35  ;;  %14661 = vmatmul.mubr.bf16.vlgmr.msra.gmra.mrb[52].mxu1 %v4120_v29  ;;  %v15232_v29 = vld [vmem:[%s20005_s5 + $0x578] sm:$0xff]  }
 0x45f   :  { %13804 = vmatpush3.bf16.msra.mxu1 %v15181_v25  ;;  %4905 = vmatprep.mubr.bf16.mxu1 %v4586_v49  ;;  %v15231_v25 = vld [vmem:[%s20005_s5 + $0x5b0] sm:$0xff]   ;;  %v15235_v49 = vld [vmem:[%s20005_s5 + $0x5b8] sm:$0xff]  }
 0x460   :  { %4866 = vmatmul.mubr.bf16.vlgmr.msra.gmra.mrb[64].mxu0 %v4583_v19  ;;  %13805 = vmatprep.subr.bf16.mxu1 %v15183_v24  ;;  %v15234_v19 = vld [vmem:[%s20005_s5 + $0x538] sm:$0xff]  }
 0x461   :  { %14665 = vmatpush3.bf16.msra.mxu0 %v15182_v23  ;;  %14680 = vmatprep.mubr.msk.bf16.mxu0 %vm15829_vm0, %v20033_v35  ;;  %v15233_v23 = vld [vmem:[%s20005_s5 + $0x5f8] sm:$0xff]  }
 0x462   :  { %14666 = vmatprep.subr.bf16.mxu0 %v20033_v35  ;;  %v5407_v24 = vld [vmem:[#allocation4 + $0x30] sm:$0xc] }
 0x463   :  { %13806 = vmatpush3.bf16.msra.mxu1 %v15184_v20  ;;  %v4954_v20 = vld [vmem:[#allocation4 + $0x28] sm:$0x3] }
 0x464   :  { %13807 = vmatprep.subr.bf16.mxu1 %v15186_v10  ;;  %v4956_v10 = vld [vmem:[#allocation4 + $0x38] sm:$0x3] }
 0x465   :  { %14667 = vmatpush3.bf16.msra.mxu0 %v15185_v62  ;;  %v15236_v62 = vld [vmem:[%s20005_s5 + $0x680] sm:$0xff]  }
 0x466   :  { %14668 = vmatprep.subr.bf16.mxu0 %v20033_v35 }
 0x467   :  { %13808 = vmatpush3.bf16.msra.mxu1 %v15187_v38  ;;  %v5412_v38 = vpack.c.bf16 %v5407_v24, %v5407_v24  ;;  %v15272_v24 = vld [vmem:[%s20005_s5 + $0x720] sm:$0xff]  }
 0x468   :  { %13809 = vmatprep.subr.bf16.mxu1 %v15189_v11  ;;  %v4959_v11 = vpack.c.bf16 %v4954_v20, %v4954_v20  ;;  %v15274_v20 = vld [vmem:[%s20005_s5 + $0x760] sm:$0xff]  }
 0x469   :  { %14669 = vmatpush3.bf16.msra.mxu0 %v15188_v27  ;;  %v15237_v27 = vld [vmem:[%s20005_s5 + $0x600] sm:$0xff]  }
 0x46a   :  { %14670 = vmatprep.subr.bf16.mxu0 %v20033_v35 }
 0x46b   :  { %13810 = vmatpush3.bf16.msra.mxu1 %v15190_v21  ;;  %v15238_v21 = vld [vmem:[%s20005_s5 + $0x640] sm:$0xff]  }
 0x46c   :  { %13811 = vmatprep.subr.bf16.mxu1 %v15192_v45  ;;  %v15239_v45 = vld [vmem:[%s20005_s5 + $0x688] sm:$0xff]  }
 0x46d   :  { %14671 = vmatpush3.bf16.msra.mxu0 %v15191_v43  ;;  %v4961_v43 = vpack.c.bf16 %v4956_v10, %v4956_v10  ;;  %v15276_v10 = vld [vmem:[%s20005_s5 + $0x6e8] sm:$0xff]  }
 0x46e   :  { %14672 = vmatprep.subr.bf16.mxu0 %v20033_v35 }
 0x46f   :  { %13812 = vmatpush3.bf16.msra.mxu1 %v15193_v15  ;;  %v5503_v15 = vrot.slane %v5412_v38, 1  ;;  %v15277_v38 = vld [vmem:[%s20005_s5 + $0x768] sm:$0xff]  }
 0x470   :  { %13813 = vmatprep.subr.bf16.mxu1 %v15195_v59  ;;  %v15241_v59 = vld [vmem:[%s20005_s5 + $0x648] sm:$0xff]  }
 0x471   :  { %14673 = vmatpush3.bf16.msra.mxu0 %v15194_v41  ;;  %v15240_v41 = vld [vmem:[%s20005_s5 + $0x608] sm:$0xff]  }
 0x472   :  { %14674 = vmatprep.subr.bf16.mxu0 %v20033_v35 }
 0x473   :  { %13814 = vmatpush3.bf16.msra.mxu1 %v15196_v56  ;;  %v15242_v56 = vld [vmem:[%s20005_s5 + $0x690] sm:$0xff]  }
 0x474   :  { %13815 = vmatprep.subr.bf16.mxu1 %v15198_v22  ;;  %v15244_v22 = vld [vmem:[%s20005_s5 + $0x650] sm:$0xff]  }
 0x475   :  { %14675 = vmatpush3.bf16.msra.mxu0 %v15197_v4  ;;  %v15243_v4 = vld [vmem:[%s20005_s5 + $0x610] sm:$0xff]  }
 0x476   :  { %14676 = vmatprep.subr.bf16.mxu0 %v20033_v35 }
 0x477   :  { %13816 = vmatpush3.bf16.msra.mxu1 %v15199_v31  ;;  %v15245_v31 = vld [vmem:[%s20005_s5 + $0x698] sm:$0xff]  }
 0x478   :  { %13817 = vmatprep.subr.bf16.mxu1 %v15201_v57  ;;  %v15247_v57 = vld [vmem:[%s20005_s5 + $0x658] sm:$0xff]  }
 0x479   :  { %14677 = vmatpush3.bf16.msra.mxu0 %v15200_v55  ;;  %v15246_v55 = vld [vmem:[%s20005_s5 + $0x618] sm:$0xff]  }
 0x47a   :  { %14678 = vmatprep.subr.bf16.mxu0 %v20033_v35 }
 0x47b   :  { %13818 = vmatpush3.bf16.msra.mxu1 %v15202_v5  ;;  %v15250_v5 = vld [vmem:[%s20005_s5 + $0x660] sm:$0xff]  }
 0x47c   :  { %13834 = vmatprep.subr.bf16.mxu1 %v15204_v46  ;;  %v15253_v46 = vld [vmem:[%s20005_s5 + $0x668] sm:$0xff]  }
 0x47d   :  { %14679 = vmatpush3.bf16.msra.mxu0 %v15203_v7  ;;  %v15251_v7 = vld [vmem:[%s20005_s5 + $0x6a8] sm:$0xff]  }
 0x47e   :  { %13856 = vmatprep.subr.bf16.mxu0 %v15205_v13  ;;  %4906 = vmatmul.mubr.bf16.vlgmr.msra.gmra.mrb[56].mxu1 %v4585_v50 }
 0x47f   :  { %13835 = vmatpush3.bf16.msra.mxu1 %v15206_v6  ;;  %5317 = vmatprep.mubr.bf16.mxu1 %v4960_v30  ;;  %v15254_v6 = vld [vmem:[%s20005_s5 + $0x6b0] sm:$0xff]  }
 0x480   :  { %14681 = vmatmul.mubr.bf16.vlgmr.msra.gmra.mrb[68].mxu0 %v4587_v33  ;;  %13836 = vmatprep.subr.bf16.mxu1 %v15208_v9  ;;  %v15255_v30 = vld [vmem:[%s20005_s5 + $0x630] sm:$0xff]  }
 0x481   :  { %13857 = vmatpush3.bf16.msra.mxu0 %v15207_v52  ;;  %5357 = vmatprep.mubr.bf16.mxu0 %v4962_v3 }
 0x482   :  { %13858 = vmatprep.subr.bf16.mxu0 %v15209_v2 }
 0x483   :  { %13837 = vmatpush3.bf16.msra.mxu1 %v15210_v51  ;;  %v15256_v51 = vld [vmem:[%s20005_s5 + $0x670] sm:$0xff]  }
 0x484   :  { %13838 = vmatprep.subr.bf16.mxu1 %v15212_v61 }
 0x485   :  { %13859 = vmatpush3.bf16.msra.mxu0 %v15211_v37  ;;  %v15257_v37 = vld [vmem:[%s20005_s5 + $0x6b8] sm:$0xff]  }
 0x486   :  { %13860 = vmatprep.subr.bf16.mxu0 %v15213_v44  ;;  %v5406_v44 = vld [vmem:[#allocation4 + $0x28] sm:$0xc] }
 0x487   :  { %13839 = vmatpush3.bf16.msra.mxu1 %v15214_v47  ;;  %v15258_v47 = vld [vmem:[%s20005_s5 + $0x638] sm:$0xff]  }
 0x488   :  { %13840 = vmatprep.subr.bf16.mxu1 %v15216_v18  ;;  %v15259_v18 = vld [vmem:[%s20005_s5 + $0x678] sm:$0xff]  }
 0x489   :  { %13861 = vmatpush3.bf16.msra.mxu0 %v15215_v8  ;;  %v5409_v8 = vld [vmem:[#allocation4 + $0x40] sm:$0xc] }
 0x48a   :  { %13862 = vmatprep.subr.bf16.mxu0 %v15217_v39  ;;  %v15260_v39 = vld [vmem:[%s20005_s5 + $0x700] sm:$0xff]  }
 0x48b   :  { %13841 = vmatpush3.bf16.msra.mxu1 %v15218_v14  ;;  %v4958_v14 = vld [vmem:[#allocation4 + $0x48] sm:$0x3] }
 0x48c   :  { %13842 = vmatprep.subr.bf16.mxu1 %v15220_v36  ;;  %v5414_v36 = vpack.c.bf16 %v5409_v8, %v5409_v8  ;;  %v15292_v8 = vld [vmem:[%s20005_s5 + $0x7d0] sm:$0xff]  }
 0x48d   :  { %13863 = vmatpush3.bf16.msra.mxu0 %v15219_v12  ;;  %v5411_v12 = vpack.c.bf16 %v5406_v44, %v5406_v44  ;;  %v15290_v44 = vld [vmem:[%s20005_s5 + $0x788] sm:$0xff]  }
 0x48e   :  { %13864 = vmatprep.subr.bf16.mxu0 %v15221_v58  ;;  %v15261_v58 = vld [vmem:[%s20005_s5 + $0x6c0] sm:$0xff]  }
 0x48f   :  { %13843 = vmatpush3.bf16.msra.mxu1 %v15222_v1  ;;  %v4963_v1 = vpack.c.bf16 %v4958_v14, %v4958_v14  ;;  %v15295_v14 = vld [vmem:[%s20005_s5 + $0x810] sm:$0xff]  }
 0x490   :  { %13844 = vmatprep.subr.bf16.mxu1 %v15224_v53  ;;  %v5502_v53 = vrot.slane %v5411_v12, 1  ;;  %v15296_v12 = vld [vmem:[%s20005_s5 + $0x7d8] sm:$0xff]  }
 0x491   :  { %13865 = vmatpush3.bf16.msra.mxu0 %v15223_v54  ;;  %v15262_v54 = vld [vmem:[%s20005_s5 + $0x740] sm:$0xff]  }
 0x492   :  { %13866 = vmatprep.subr.bf16.mxu0 %v15225_v17  ;;  %v15263_v17 = vld [vmem:[%s20005_s5 + $0x708] sm:$0xff]  }
 0x493   :  { %13845 = vmatpush3.bf16.msra.mxu1 %v15226_v32  ;;  %v5505_v32 = vrot.slane %v5414_v36, 1  ;;  %v15297_v36 = vld [vmem:[%s20005_s5 + $0x858] sm:$0xff]  }
 0x494   :  { %13846 = vmatprep.subr.bf16.mxu1 %v15228_v0  ;;  %v15265_v0 = vld [vmem:[%s20005_s5 + $0x748] sm:$0xff]  }
 0x495   :  { %13867 = vmatpush3.bf16.msra.mxu0 %v15227_v34  ;;  %v15264_v34 = vld [vmem:[%s20005_s5 + $0x6c8] sm:$0xff]  }
 0x496   :  { %13868 = vmatprep.subr.bf16.mxu0 %v15229_v63  ;;  %v15266_v63 = vld [vmem:[%s20005_s5 + $0x710] sm:$0xff]  }
 0x497   :  { %13847 = vmatpush3.bf16.msra.mxu1 %v15230_v28  ;;  %v15267_v28 = vld [vmem:[%s20005_s5 + $0x6d0] sm:$0xff]  }
 0x498   :  { %13848 = vmatprep.subr.bf16.mxu1 %v15232_v29  ;;  %v15269_v29 = vld [vmem:[%s20005_s5 + $0x718] sm:$0xff]  }
 0x499   :  { %13869 = vmatpush3.bf16.msra.mxu0 %v15231_v25  ;;  %v15268_v25 = vld [vmem:[%s20005_s5 + $0x750] sm:$0xff]  }
 0x49a   :  { %13870 = vmatprep.subr.bf16.mxu0 %v15233_v23  ;;  %v15270_v23 = vld [vmem:[%s20005_s5 + $0x6d8] sm:$0xff]  }
 0x49b   :  { %13849 = vmatpush3.bf16.msra.mxu1 %v15234_v19  ;;  %v15271_v19 = vld [vmem:[%s20005_s5 + $0x758] sm:$0xff]  }
 0x49c   :  { %14684 = vmatprep.subr.bf16.mxu1 %v20033_v35 }
 0x49d   :  { %13871 = vmatpush3.bf16.msra.mxu0 %v15235_v49  ;;  %v15273_v49 = vld [vmem:[%s20005_s5 + $0x6e0] sm:$0xff]  }
 0x49e   :  { %13887 = vmatprep.subr.bf16.mxu0 %v15236_v62  ;;  %5318 = vmatmul.mubr.bf16.vlgmr.msra.gmra.mrb[60].mxu1 %v4959_v11  ;;  %v15275_v62 = vld [vmem:[%s20005_s5 + $0x728] sm:$0xff]  }
 0x49f   :  { %14685 = vmatpush3.bf16.msra.mxu1 %v15237_v27  ;;  %14700 = vmatprep.mubr.msk.bf16.mxu1 %vm15829_vm0, %v20033_v35  ;;  %v15278_v27 = vld [vmem:[%s20005_s5 + $0x730] sm:$0xff]  }
 0x4a0   :  { %5358 = vmatmul.mubr.bf16.vlgmr.msra.gmra.mrb[72].mxu0 %v4961_v43  ;;  %14686 = vmatprep.subr.bf16.mxu1 %v20033_v35 }
 0x4a1   :  { %13888 = vmatpush3.bf16.msra.mxu0 %v15238_v21  ;;  %5784 = vmatprep.mubr.bf16.mxu0 %v5503_v15 }
 0x4a2   :  { %13889 = vmatprep.subr.bf16.mxu0 %v15239_v45 }
 0x4a3   :  { %14687 = vmatpush3.bf16.msra.mxu1 %v15240_v41 }
 0x4a4   :  { %14688 = vmatprep.subr.bf16.mxu1 %v20033_v35 }
 0x4a5   :  { %13890 = vmatpush3.bf16.msra.mxu0 %v15241_v59 }
 0x4a6   :  { %13891 = vmatprep.subr.bf16.mxu0 %v15242_v56 }
 0x4a7   :  { %14689 = vmatpush3.bf16.msra.mxu1 %v15243_v4  ;;  %v15279_v4 = vld [vmem:[%s20005_s5 + $0x6f0] sm:$0xff]  }
 0x4a8   :  { %14690 = vmatprep.subr.bf16.mxu1 %v20033_v35 }
 0x4a9   :  { %13892 = vmatpush3.bf16.msra.mxu0 %v15244_v22 }
 0x4aa   :  { %13893 = vmatprep.subr.bf16.mxu0 %v15245_v31 }
 0x4ab   :  { %14691 = vmatpush3.bf16.msra.mxu1 %v15246_v55  ;;  %v15280_v55 = vld [vmem:[%s20005_s5 + $0x770] sm:$0xff]  }
 0x4ac   :  { %14692 = vmatprep.subr.bf16.mxu1 %v20033_v35 }
 0x4ad   :  { %13894 = vmatpush3.bf16.msra.mxu0 %v15247_v57  ;;  %v15281_v57 = vld [vmem:[%s20005_s5 + $0x738] sm:$0xff]  }
 0x4ae   :  { %13895 = vmatprep.subr.bf16.mxu0 %v15248_v16 }
 0x4af   :  { %14693 = vmatpush3.bf16.msra.mxu1 %v15249_v42  ;;  %v5408_v42 = vld [vmem:[#allocation4 + $0x38] sm:$0xc] }
 0x4b0   :  { %14694 = vmatprep.subr.bf16.mxu1 %v20033_v35 }
 0x4b1   :  { %13896 = vmatpush3.bf16.msra.mxu0 %v15250_v5  ;;  %v13638_v48 = vpop.f32.mrb[36].mxu1  ;;  %v5410_v5 = vld [vmem:[#allocation4 + $0x48] sm:$0xc] }
 0x4b2   :  { %13897 = vmatprep.subr.bf16.mxu0 %v15251_v7  ;;  %v13639_v60 = vpop.f32.mrb[37].mxu1  ;;  %v15282_v7 = vld [vmem:[%s20005_s5 + $0x6f8] sm:$0xff]  }
 0x4b3   :  { %v13660_v13 = vpop.f32.mrb[48].mxu0  ;;  %v13640_v52 = vadd.f32 %v13639_v60, %v13638_v48  ;;  %14695 = vmatpush3.bf16.msra.mxu1 %v15252_v40  ;;  %v13641_v33 = vpop.f32.mrb[38].mxu1  ;;  %v5874_v40 = vld [vmem:[#allocation4 + $0x30] sm:$0x30]  ;;  %v5413_v48 = vpack.c.bf16 %v5408_v42, %v5408_v42  ;;  %v5415_v60 = vpack.c.bf16 %v5410_v5, %v5410_v5  ;;  %v15317_v5 = vld [vmem:[%s20005_s5 + $0x880] sm:$0xff]  }
 0x4b4   :  { %v13661_v50 = vpop.f32.mrb[49].mxu0  ;;  %v13642_v2 = vpop.f32.mrb[39].mxu1  ;;  %14696 = vmatprep.subr.bf16.mxu1 %v20033_v35 }
 0x4b5   :  { %v13662_v26 = vadd.f32 %v13661_v50, %v13660_v13  ;;  %v13663_v9 = vpop.f32.mrb[50].mxu0  ;;  %13898 = vmatpush3.bf16.msra.mxu0 %v15253_v46  ;;  %v15283_v46 = vld [vmem:[%s20005_s5 + $0x778] sm:$0xff]   ;;  %v15284_v13 = vld [vmem:[%s20005_s5 + $0x7c0] sm:$0xff]   ;;  %v5506_v2 = vrot.slane %v5415_v60, 1  ;;  %v15321_v60 = vld [vmem:[%s20005_s5 + $0x8c8] sm:$0xff]  }
 0x4b6   :  { %v13664_v3 = vpop.f32.mrb[51].mxu0  ;;  %13899 = vmatprep.subr.bf16.mxu0 %v15254_v6  ;;  %v5876_v6 = vld [vmem:[#allocation4 + $0x40] sm:$0x30]  ;;  %v15285_v50 = vld [vmem:[%s20005_s5 + $0x840] sm:$0xff]   ;;  %v5504_v9 = vrot.slane %v5413_v48, 1 }
 0x4b7   :  { %v18282_v61 = vadd.f32 %v13662_v26, %v13640_v52  ;;  %14697 = vmatpush3.bf16.msra.mxu1 %v15255_v30  ;;  %v5879_v52 = vpack.c.bf16 %v5874_v40, %v5874_v40  ;;  %v15286_v26 = vld [vmem:[%s20005_s5 + $0x780] sm:$0xff]   ;;  %v5881_v33 = vpack.c.bf16 %v5876_v6, %v5876_v6  ;;  %v15288_v3 = vld [vmem:[%s20005_s5 + $0x7c8] sm:$0xff]  }
 0x4b8   :  { %14698 = vmatprep.subr.bf16.mxu1 %v20033_v35  ;;  %v15287_v30 = vld [vmem:[%s20005_s5 + $0x800] sm:$0xff]   ;;  %v15319_v48 = vld [vmem:[%s20005_s5 + $0x908] sm:$0xff]  }
 0x4b9   :  { %13900 = vmatpush3.bf16.msra.mxu0 %v15256_v51  ;;  %v5970_v51 = vrot.slane %v5879_v52, 2  ;;  %v15318_v40 = vld [vmem:[%s20005_s5 + $0x8c0] sm:$0xff]   ;;  %v15320_v6 = vld [vmem:[%s20005_s5 + $0x888] sm:$0xff]   ;;  %v15323_v52 = vld [vmem:[%s20005_s5 + $0x890] sm:$0xff]  }
 0x4ba   :  { %13901 = vmatprep.subr.bf16.mxu0 %v15257_v37  ;;  %v15289_v37 = vld [vmem:[%s20005_s5 + $0x848] sm:$0xff]  }
 0x4bb   :  { %14699 = vmatpush3.bf16.msra.mxu1 %v15258_v47  ;;  %v15291_v47 = vld [vmem:[%s20005_s5 + $0x808] sm:$0xff]  }
 0x4bc   :  { %13909 = vmatprep.subr.bf16.mxu1 %v15260_v39  ;;  %v15294_v39 = vld [vmem:[%s20005_s5 + $0x790] sm:$0xff]  }
 0x4bd   :  { %13902 = vmatpush3.bf16.msra.mxu0 %v15259_v18  ;;  %v15293_v18 = vld [vmem:[%s20005_s5 + $0x850] sm:$0xff]  }
 0x4be   :  { %14704 = vmatprep.subr.bf16.mxu0 %v20033_v35  ;;  %14701 = vmatmul.mubr.bf16.vlgmr.msra.gmra.mrb[64].mxu1 %v4963_v1  ;;  %v15299_v1 = vld [vmem:[%s20005_s5 + $0x818] sm:$0xff]  }
 0x4bf   :  { %13910 = vmatpush3.bf16.msra.mxu1 %v15261_v58  ;;  %5824 = vmatprep.mubr.bf16.mxu1 %v5505_v32  ;;  %v15298_v58 = vld [vmem:[%s20005_s5 + $0x798] sm:$0xff]   ;;  %v15303_v32 = vld [vmem:[%s20005_s5 + $0x820] sm:$0xff]  }
 0x4c0   :  { %5785 = vmatmul.mubr.bf16.vlgmr.msra.gmra.mrb[76].mxu0 %v5502_v53  ;;  %13911 = vmatprep.subr.bf16.mxu1 %v15263_v17  ;;  %v15301_v53 = vld [vmem:[%s20005_s5 + $0x860] sm:$0xff]  }
 0x4c1   :  { %14705 = vmatpush3.bf16.msra.mxu0 %v15262_v54  ;;  %14720 = vmatprep.mubr.msk.bf16.mxu0 %vm15829_vm0, %v20033_v35  ;;  %v15300_v54 = vld [vmem:[%s20005_s5 + $0x7e0] sm:$0xff]  }
 0x4c2   :  { %14706 = vmatprep.subr.bf16.mxu0 %v20033_v35  ;;  %v15302_v17 = vld [vmem:[%s20005_s5 + $0x7a0] sm:$0xff]  }
 0x4c3   :  { %13912 = vmatpush3.bf16.msra.mxu1 %v15264_v34  ;;  %v15304_v34 = vld [vmem:[%s20005_s5 + $0x7e8] sm:$0xff]  }
 0x4c4   :  { %13913 = vmatprep.subr.bf16.mxu1 %v15266_v63  ;;  %v15306_v63 = vld [vmem:[%s20005_s5 + $0x7a8] sm:$0xff]  }
 0x4c5   :  { %14707 = vmatpush3.bf16.msra.mxu0 %v15265_v0  ;;  %v15305_v0 = vld [vmem:[%s20005_s5 + $0x868] sm:$0xff]  }
 0x4c6   :  { %14708 = vmatprep.subr.bf16.mxu0 %v20033_v35 }
 0x4c7   :  { %13914 = vmatpush3.bf16.msra.mxu1 %v15267_v28  ;;  %v15307_v28 = vld [vmem:[%s20005_s5 + $0x828] sm:$0xff]  }
 0x4c8   :  { %13915 = vmatprep.subr.bf16.mxu1 %v15269_v29 }
 0x4c9   :  { %14709 = vmatpush3.bf16.msra.mxu0 %v15268_v25  ;;  %v15308_v25 = vld [vmem:[%s20005_s5 + $0x7f0] sm:$0xff]  }
 0x4ca   :  { %14710 = vmatprep.subr.bf16.mxu0 %v20033_v35 }
 0x4cb   :  { %13916 = vmatpush3.bf16.msra.mxu1 %v15270_v23  ;;  %v15309_v23 = vld [vmem:[%s20005_s5 + $0x870] sm:$0xff]  }
 0x4cc   :  { %13917 = vmatprep.subr.bf16.mxu1 %v15272_v24 }
 0x4cd   :  { %14711 = vmatpush3.bf16.msra.mxu0 %v15271_v19 }
 0x4ce   :  { %14712 = vmatprep.subr.bf16.mxu0 %v20033_v35 }
 0x4cf   :  { %13918 = vmatpush3.bf16.msra.mxu1 %v15273_v49 }
 0x4d0   :  { %13919 = vmatprep.subr.bf16.mxu1 %v15275_v62 }
 0x4d1   :  { %14713 = vmatpush3.bf16.msra.mxu0 %v15274_v20  ;;  %v3654_v11 = vpop.f32.mrb[40].mxu1 }
 0x4d2   :  { %14714 = vmatprep.subr.bf16.mxu0 %v20033_v35  ;;  %v3655_v43 = vadd.f32 %v3654_v11, %v18282_v61  ;;  %v14622_v45 = vpop.f32.mrb[41].mxu1  ;;  %v5972_v61 = vrot.slane %v5881_v33, 2  ;;  %v15311_v11 = vld [vmem:[%s20005_s5 + $0x830] sm:$0xff]   ;;  %v15325_v33 = vld [vmem:[%s20005_s5 + $0x918] sm:$0xff]  }
 0x4d3   :  { %v13691_v21 = vpop.f32.mrb[52].mxu0  ;;  %v3657_v59 = vpop.f32.mrb[42].mxu1  ;;  %13920 = vmatpush3.bf16.msra.mxu1 %v15276_v10  ;;  %v15310_v10 = vld [vmem:[%s20005_s5 + $0x7b0] sm:$0xff]  }
 0x4d4   :  { %v13692_v15 = vpop.f32.mrb[53].mxu0  ;;  %v14623_v22 = vpop.f32.mrb[43].mxu1  ;;  %13921 = vmatprep.subr.bf16.mxu1 %v15278_v27  ;;  %v5875_v59 = vld [vmem:[#allocation4 + $0x38] sm:$0x30] }
 0x4d5   :  { %v13693_v41 = vadd.f32 %v13692_v15, %v13691_v21  ;;  %v13694_v56 = vpop.f32.mrb[54].mxu0  ;;  %14715 = vmatpush3.bf16.msra.mxu0 %v15277_v38  ;;  %v15312_v21 = vld [vmem:[%s20005_s5 + $0x7f8] sm:$0xff]  }
 0x4d6   :  { %v13695_v31 = vpop.f32.mrb[55].mxu0  ;;  %14716 = vmatprep.subr.bf16.mxu0 %v20033_v35  ;;  %v15313_v15 = vld [vmem:[%s20005_s5 + $0x878] sm:$0xff]  }
 0x4d7   :  { %v18366_v16 = vadd.f32 %v13693_v41, %v3655_v43  ;;  %13922 = vmatpush3.bf16.msra.mxu1 %v15279_v4  ;;  %v5873_v41 = vld [vmem:[#allocation4 + $0x28] sm:$0x30]  ;;  %v15314_v56 = vld [vmem:[%s20005_s5 + $0x7b8] sm:$0xff]  }
 0x4d8   :  { %13923 = vmatprep.subr.bf16.mxu1 %v15281_v57  ;;  %v6341_v4 = vld [vmem:[#allocation4 + $0x30] sm:$0xc0]  ;;  %v5880_v57 = vpack.c.bf16 %v5875_v59, %v5875_v59  ;;  %v15348_v59 = vld [vmem:[%s20005_s5 + $0x9d0] sm:$0xff]  }
 0x4d9   :  { %14717 = vmatpush3.bf16.msra.mxu0 %v15280_v55  ;;  %v15315_v31 = vld [vmem:[%s20005_s5 + $0x838] sm:$0xff]   ;;  %v5878_v55 = vpack.c.bf16 %v5873_v41, %v5873_v41  ;;  %v6346_v42 = vpack.c.bf16 %v6341_v4, %v6341_v4  ;;  %v15347_v41 = vld [vmem:[%s20005_s5 + $0x950] sm:$0xff]  }
 0x4da   :  { %14718 = vmatprep.subr.bf16.mxu0 %v20033_v35  ;;  %v15350_v4 = vld [vmem:[%s20005_s5 + $0x958] sm:$0xff]  }
 0x4db   :  { %13924 = vmatpush3.bf16.msra.mxu1 %v15282_v7  ;;  %v5969_v7 = vrot.slane %v5878_v55, 2  ;;  %v15352_v55 = vld [vmem:[%s20005_s5 + $0x9a0] sm:$0xff]  }
 0x4dc   :  { %13940 = vmatprep.subr.bf16.mxu1 %v15284_v13  ;;  %v6437_v13 = vrot.slane %v6346_v42, 3  ;;  %v15355_v42 = vld [vmem:[%s20005_s5 + $0x9a8] sm:$0xff]  }
 0x4dd   :  { %14719 = vmatpush3.bf16.msra.mxu0 %v15283_v46  ;;  %v5971_v46 = vrot.slane %v5880_v57, 2  ;;  %v15353_v57 = vld [vmem:[%s20005_s5 + $0x960] sm:$0xff]  }
 0x4de   :  { %13962 = vmatprep.subr.bf16.mxu0 %v15285_v50  ;;  %5825 = vmatmul.mubr.bf16.vlgmr.msra.gmra.mrb[68].mxu1 %v5504_v9  ;;  %v15322_v50 = vld [vmem:[%s20005_s5 + $0x910] sm:$0xff]   ;;  %v15326_v9 = vld [vmem:[%s20005_s5 + $0x898] sm:$0xff]  }
 0x4df   :  { %13941 = vmatpush3.bf16.msra.mxu1 %v15286_v26  ;;  %6251 = vmatprep.mubr.bf16.mxu1 %v5970_v51  ;;  %v15324_v26 = vld [vmem:[%s20005_s5 + $0x8d0] sm:$0xff]   ;;  %v15330_v51 = vld [vmem:[%s20005_s5 + $0x8e0] sm:$0xff]  }
 0x4e0   :  { %14721 = vmatmul.mubr.bf16.vlgmr.msra.gmra.mrb[80].mxu0 %v5506_v2  ;;  %13942 = vmatprep.subr.bf16.mxu1 %v15288_v3  ;;  %v15328_v2 = vld [vmem:[%s20005_s5 + $0x920] sm:$0xff]  }
 0x4e1   :  { %13963 = vmatpush3.bf16.msra.mxu0 %v15287_v30  ;;  %6291 = vmatprep.mubr.bf16.mxu0 %v5972_v61  ;;  %v15327_v30 = vld [vmem:[%s20005_s5 + $0x8d8] sm:$0xff]   ;;  %v15329_v3 = vld [vmem:[%s20005_s5 + $0x8a0] sm:$0xff]   ;;  %v15332_v61 = vld [vmem:[%s20005_s5 + $0x8a8] sm:$0xff]  }
 0x4e2   :  { %13964 = vmatprep.subr.bf16.mxu0 %v15289_v37  ;;  %v15331_v37 = vld [vmem:[%s20005_s5 + $0x928] sm:$0xff]  }
 0x4e3   :  { %13943 = vmatpush3.bf16.msra.mxu1 %v15290_v44  ;;  %v15333_v44 = vld [vmem:[%s20005_s5 + $0x8e8] sm:$0xff]  }
 0x4e4   :  { %13944 = vmatprep.subr.bf16.mxu1 %v15292_v8  ;;  %v15334_v8 = vld [vmem:[%s20005_s5 + $0x930] sm:$0xff]  }
 0x4e5   :  { %13965 = vmatpush3.bf16.msra.mxu0 %v15291_v47 }
 0x4e6   :  { %13966 = vmatprep.subr.bf16.mxu0 %v15293_v18 }
 0x4e7   :  { %13945 = vmatpush3.bf16.msra.mxu1 %v15294_v39 }
 0x4e8   :  { %13946 = vmatprep.subr.bf16.mxu1 %v15296_v12 }
 0x4e9   :  { %13967 = vmatpush3.bf16.msra.mxu0 %v15295_v14 }
 0x4ea   :  { %13968 = vmatprep.subr.bf16.mxu0 %v15297_v36 }
 0x4eb   :  { %13947 = vmatpush3.bf16.msra.mxu1 %v15298_v58  ;;  %v15335_v58 = vld [vmem:[%s20005_s5 + $0x8b0] sm:$0xff]  }
 0x4ec   :  { %13948 = vmatprep.subr.bf16.mxu1 %v15300_v54 }
 0x4ed   :  { %13969 = vmatpush3.bf16.msra.mxu0 %v15299_v1 }
 0x4ee   :  { %13970 = vmatprep.subr.bf16.mxu0 %v15301_v53 }
 0x4ef   :  { %13949 = vmatpush3.bf16.msra.mxu1 %v15302_v17  ;;  %v15336_v17 = vld [vmem:[%s20005_s5 + $0x8f0] sm:$0xff]  }
 0x4f0   :  { %13950 = vmatprep.subr.bf16.mxu1 %v15304_v34  ;;  %v15337_v34 = vld [vmem:[%s20005_s5 + $0x938] sm:$0xff]  }
 0x4f1   :  { %13971 = vmatpush3.bf16.msra.mxu0 %v15303_v32  ;;  %v13713_v29 = vpop.f32.mrb[44].mxu1 }
 0x4f2   :  { %13972 = vmatprep.subr.bf16.mxu0 %v15305_v0  ;;  %v13714_v24 = vpop.f32.mrb[45].mxu1  ;;  %v5877_v0 = vld [vmem:[#allocation4 + $0x48] sm:$0x30] }
 0x4f3   :  { %v4014_v19 = vpop.f32.mrb[56].mxu0  ;;  %v13715_v49 = vadd.f32 %v13714_v24, %v13713_v29  ;;  %v13716_v62 = vpop.f32.mrb[46].mxu1  ;;  %13951 = vmatpush3.bf16.msra.mxu1 %v15306_v63  ;;  %v6340_v63 = vld [vmem:[#allocation4 + $0x28] sm:$0xc0]  ;;  %v6343_v29 = vld [vmem:[#allocation4 + $0x40] sm:$0xc0] }
 0x4f4   :  { %v14642_v20 = vpop.f32.mrb[57].mxu0  ;;  %v13717_v27 = vpop.f32.mrb[47].mxu1  ;;  %13952 = vmatprep.subr.bf16.mxu1 %v15308_v25  ;;  %v15338_v25 = vld [vmem:[%s20005_s5 + $0x8b8] sm:$0xff]   ;;  %v15340_v24 = vld [vmem:[%s20005_s5 + $0x980] sm:$0xff]  }
 0x4f5   :  { %v4017_v38 = vpop.f32.mrb[58].mxu0  ;;  %13973 = vmatpush3.bf16.msra.mxu0 %v15307_v28  ;;  %v3975_v43 = vadd.f32 %v13715_v49, %v18366_v16  ;;  %v15316_v16 = vld [vmem:[%s20005_s5 + $0x900] sm:$0xff]   ;;  %v6345_v49 = vpack.c.bf16 %v6340_v63, %v6340_v63  ;;  %v6348_v20 = vpack.c.bf16 %v6343_v29, %v6343_v29  ;;  %v15371_v63 = vld [vmem:[%s20005_s5 + $0xa88] sm:$0xff]   ;;  %v15374_v29 = vld [vmem:[%s20005_s5 + $0xa10] sm:$0xff]  }
 0x4f6   :  { %v14643_v45 = vpop.f32.mrb[59].mxu0  ;;  %13974 = vmatprep.subr.bf16.mxu0 %v15309_v23  ;;  %v15339_v23 = vld [vmem:[%s20005_s5 + $0x8f8] sm:$0xff]   ;;  %v15341_v62 = vld [vmem:[%s20005_s5 + $0x940] sm:$0xff]  }
 0x4f7   :  { %13953 = vmatpush3.bf16.msra.mxu1 %v15310_v10  ;;  %v18470_v22 = vadd.f32 %v4014_v19, %v3975_v43  ;;  %v5882_v19 = vpack.c.bf16 %v5877_v0, %v5877_v0  ;;  %v15342_v38 = vld [vmem:[%s20005_s5 + $0x9c0] sm:$0xff]   ;;  %v6436_v27 = vrot.slane %v6345_v49, 3  ;;  %v15344_v43 = vld [vmem:[%s20005_s5 + $0x948] sm:$0xff]   ;;  %v15378_v49 = vld [vmem:[%s20005_s5 + $0xa18] sm:$0xff]  }
 0x4f8   :  { %13954 = vmatprep.subr.bf16.mxu1 %v15312_v21  ;;  %v6439_v21 = vrot.slane %v6348_v20, 3  ;;  %v15345_v45 = vld [vmem:[%s20005_s5 + $0x9c8] sm:$0xff]   ;;  %v15379_v20 = vld [vmem:[%s20005_s5 + $0xa98] sm:$0xff]  }
 0x4f9   :  { %13975 = vmatpush3.bf16.msra.mxu0 %v15311_v11  ;;  %v5973_v10 = vrot.slane %v5882_v19, 2  ;;  %v15343_v11 = vld [vmem:[%s20005_s5 + $0x988] sm:$0xff]   ;;  %v15376_v19 = vld [vmem:[%s20005_s5 + $0xa58] sm:$0xff]  }
 0x4fa   :  { %13976 = vmatprep.subr.bf16.mxu0 %v15313_v15  ;;  %v15346_v15 = vld [vmem:[%s20005_s5 + $0x990] sm:$0xff]   ;;  %v15370_v0 = vld [vmem:[%s20005_s5 + $0xa08] sm:$0xff]  }
 0x4fb   :  { %13955 = vmatpush3.bf16.msra.mxu1 %v15314_v56  ;;  %v15349_v56 = vld [vmem:[%s20005_s5 + $0x998] sm:$0xff]  }
 0x4fc   :  { %14724 = vmatprep.subr.bf16.mxu1 %v20033_v35 }
 0x4fd   :  { %13977 = vmatpush3.bf16.msra.mxu0 %v15315_v31  ;;  %v15351_v31 = vld [vmem:[%s20005_s5 + $0x9d8] sm:$0xff]  }
 0x4fe   :  { %13993 = vmatprep.subr.bf16.mxu0 %v15316_v16  ;;  %6252 = vmatmul.mubr.bf16.vlgmr.msra.gmra.mrb[72].mxu1 %v5969_v7  ;;  %v15354_v16 = vld [vmem:[%s20005_s5 + $0x9e0] sm:$0xff]   ;;  %v15357_v7 = vld [vmem:[%s20005_s5 + $0x9e8] sm:$0xff]  }
 0x4ff   :  { %14725 = vmatpush3.bf16.msra.mxu1 %v15317_v5  ;;  %14740 = vmatprep.mubr.msk.bf16.mxu1 %vm15829_vm0, %v20033_v35  ;;  %v15356_v5 = vld [vmem:[%s20005_s5 + $0x968] sm:$0xff]  }
 0x500   :  { %6292 = vmatmul.mubr.bf16.vlgmr.msra.gmra.mrb[84].mxu0 %v5971_v46  ;;  %14726 = vmatprep.subr.bf16.mxu1 %v20033_v35 }
 0x501   :  { %13994 = vmatpush3.bf16.msra.mxu0 %v15318_v40  ;;  %6718 = vmatprep.mubr.bf16.mxu0 %v6437_v13  ;;  %v15358_v40 = vld [vmem:[%s20005_s5 + $0x9b0] sm:$0xff]  }
 0x502   :  { %13995 = vmatprep.subr.bf16.mxu0 %v15319_v48 }
 0x503   :  { %14727 = vmatpush3.bf16.msra.mxu1 %v15320_v6 }
 0x504   :  { %14728 = vmatprep.subr.bf16.mxu1 %v20033_v35 }
 0x505   :  { %13996 = vmatpush3.bf16.msra.mxu0 %v15321_v60 }
 0x506   :  { %13997 = vmatprep.subr.bf16.mxu0 %v15322_v50 }
 0x507   :  { %14729 = vmatpush3.bf16.msra.mxu1 %v15323_v52  ;;  %v15359_v52 = vld [vmem:[%s20005_s5 + $0x970] sm:$0xff]  }
 0x508   :  { %14730 = vmatprep.subr.bf16.mxu1 %v20033_v35 }
 0x509   :  { %13998 = vmatpush3.bf16.msra.mxu0 %v15324_v26 }
 0x50a   :  { %13999 = vmatprep.subr.bf16.mxu0 %v15325_v33 }
 0x50b   :  { %14731 = vmatpush3.bf16.msra.mxu1 %v15326_v9 }
 0x50c   :  { %14732 = vmatprep.subr.bf16.mxu1 %v20033_v35 }
 0x50d   :  { %14000 = vmatpush3.bf16.msra.mxu0 %v15327_v30 }
 0x50e   :  { %14001 = vmatprep.subr.bf16.mxu0 %v15328_v2  ;;  %v15360_v2 = vld [vmem:[%s20005_s5 + $0x9f0] sm:$0xff]  }
 0x50f   :  { %14733 = vmatpush3.bf16.msra.mxu1 %v15329_v3  ;;  %v15361_v3 = vld [vmem:[%s20005_s5 + $0x9b8] sm:$0xff]  }
 0x510   :  { %14734 = vmatprep.subr.bf16.mxu1 %v20033_v35 }
 0x511   :  { %14002 = vmatpush3.bf16.msra.mxu0 %v15330_v51  ;;  %v13744_v47 = vpop.f32.mrb[48].mxu1 }
 0x512   :  { %14003 = vmatprep.subr.bf16.mxu0 %v15331_v37  ;;  %v13745_v39 = vpop.f32.mrb[49].mxu1  ;;  %v6342_v37 = vld [vmem:[#allocation4 + $0x38] sm:$0xc0] }
 0x513   :  { %v13766_v18 = vpop.f32.mrb[60].mxu0  ;;  %v13746_v14 = vadd.f32 %v13745_v39, %v13744_v47  ;;  %v13747_v36 = vpop.f32.mrb[50].mxu1  ;;  %14735 = vmatpush3.bf16.msra.mxu1 %v15332_v61  ;;  %v15362_v61 = vld [vmem:[%s20005_s5 + $0x978] sm:$0xff]   ;;  %v6347_v47 = vpack.c.bf16 %v6342_v37, %v6342_v37  ;;  %v15365_v39 = vld [vmem:[%s20005_s5 + $0xac0] sm:$0xff]  }
 0x514   :  { %v13767_v12 = vpop.f32.mrb[61].mxu0  ;;  %v13748_v53 = vpop.f32.mrb[51].mxu1  ;;  %14736 = vmatprep.subr.bf16.mxu1 %v20033_v35 }
 0x515   :  { %v13768_v1 = vadd.f32 %v13767_v12, %v13766_v18  ;;  %v13769_v54 = vpop.f32.mrb[62].mxu0  ;;  %14004 = vmatpush3.bf16.msra.mxu0 %v15333_v44  ;;  %v15363_v44 = vld [vmem:[%s20005_s5 + $0x9f8] sm:$0xff]   ;;  %v6808_v12 = vld [vmem:[#allocation4 + $0x58] sm:$0x3]  ;;  %v6438_v36 = vrot.slane %v6347_v47, 3  ;;  %v15368_v53 = vld [vmem:[%s20005_s5 + $0xa48] sm:$0xff]  }
 0x516   :  { %v13770_v32 = vpop.f32.mrb[63].mxu0  ;;  %14005 = vmatprep.subr.bf16.mxu0 %v15334_v8  ;;  %v15364_v8 = vld [vmem:[%s20005_s5 + $0xa40] sm:$0xff]   ;;  %v15400_v47 = vld [vmem:[%s20005_s5 + $0xb08] sm:$0xff]  }
 0x517   :  { %v4441_v28 = vadd.f32 %v13768_v1, %v13746_v14  ;;  %14737 = vmatpush3.bf16.msra.mxu1 %v15335_v58  ;;  %v15366_v14 = vld [vmem:[%s20005_s5 + $0xa00] sm:$0xff]   ;;  %v6810_v1 = vld [vmem:[#allocation4 + $0x68] sm:$0x3]  ;;  %v15369_v32 = vld [vmem:[%s20005_s5 + $0xac8] sm:$0xff]  }
 0x518   :  { %14738 = vmatprep.subr.bf16.mxu1 %v20033_v35  ;;  %v15367_v58 = vld [vmem:[%s20005_s5 + $0xa80] sm:$0xff]  }
 0x519   :  { %14006 = vmatpush3.bf16.msra.mxu0 %v15336_v17  ;;  %v6813_v17 = vpack.c.bf16 %v6808_v12, %v6808_v12  ;;  %v15405_v12 = vld [vmem:[%s20005_s5 + $0xb98] sm:$0xff]  }
 0x51a   :  { %14007 = vmatprep.subr.bf16.mxu0 %v15337_v34  ;;  %v6815_v34 = vpack.c.bf16 %v6810_v1, %v6810_v1  ;;  %v15408_v1 = vld [vmem:[%s20005_s5 + $0xba0] sm:$0xff]  }
 0x51b   :  { %14739 = vmatpush3.bf16.msra.mxu1 %v15338_v25  ;;  %v15373_v25 = vld [vmem:[%s20005_s5 + $0xad0] sm:$0xff]  }
 0x51c   :  { %14015 = vmatprep.subr.bf16.mxu1 %v15340_v24  ;;  %v15377_v24 = vld [vmem:[%s20005_s5 + $0xad8] sm:$0xff]  }
 0x51d   :  { %14008 = vmatpush3.bf16.msra.mxu0 %v15339_v23  ;;  %v15375_v23 = vld [vmem:[%s20005_s5 + $0xa90] sm:$0xff]  }
 0x51e   :  { %14744 = vmatprep.subr.bf16.mxu0 %v20033_v35  ;;  %14741 = vmatmul.mubr.bf16.vlgmr.msra.gmra.mrb[76].mxu1 %v5973_v10  ;;  %v15381_v10 = vld [vmem:[%s20005_s5 + $0xae0] sm:$0xff]  }
 0x51f   :  { %14016 = vmatpush3.bf16.msra.mxu1 %v15341_v62  ;;  %6758 = vmatprep.mubr.bf16.mxu1 %v6439_v21  ;;  %v15380_v62 = vld [vmem:[%s20005_s5 + $0xa60] sm:$0xff]   ;;  %v15385_v21 = vld [vmem:[%s20005_s5 + $0xae8] sm:$0xff]  }
 0x520   :  { %6719 = vmatmul.mubr.bf16.vlgmr.msra.gmra.mrb[88].mxu0 %v6436_v27  ;;  %14017 = vmatprep.subr.bf16.mxu1 %v15343_v11  ;;  %v15383_v27 = vld [vmem:[%s20005_s5 + $0xaa0] sm:$0xff]   ;;  %v15384_v11 = vld [vmem:[%s20005_s5 + $0xa68] sm:$0xff]  }
 0x521   :  { %14745 = vmatpush3.bf16.msra.mxu0 %v15342_v38  ;;  %14760 = vmatprep.mubr.msk.bf16.mxu0 %vm15829_vm0, %v20033_v35  ;;  %v15382_v38 = vld [vmem:[%s20005_s5 + $0xa20] sm:$0xff]  }
 0x522   :  { %14746 = vmatprep.subr.bf16.mxu0 %v20033_v35 }
 0x523   :  { %14018 = vmatpush3.bf16.msra.mxu1 %v15344_v43  ;;  %v15386_v43 = vld [vmem:[%s20005_s5 + $0xa28] sm:$0xff]  }
 0x524   :  { %14019 = vmatprep.subr.bf16.mxu1 %v15346_v15  ;;  %v15388_v15 = vld [vmem:[%s20005_s5 + $0xa70] sm:$0xff]  }
 0x525   :  { %14747 = vmatpush3.bf16.msra.mxu0 %v15345_v45  ;;  %v15387_v45 = vld [vmem:[%s20005_s5 + $0xaa8] sm:$0xff]  }
 0x526   :  { %14748 = vmatprep.subr.bf16.mxu0 %v20033_v35 }
 0x527   :  { %14020 = vmatpush3.bf16.msra.mxu1 %v15347_v41 }
 0x528   :  { %14021 = vmatprep.subr.bf16.mxu1 %v15349_v56 }
 0x529   :  { %14749 = vmatpush3.bf16.msra.mxu0 %v15348_v59  ;;  %v15389_v59 = vld [vmem:[%s20005_s5 + $0xaf0] sm:$0xff]  }
 0x52a   :  { %14750 = vmatprep.subr.bf16.mxu0 %v20033_v35 }
 0x52b   :  { %14022 = vmatpush3.bf16.msra.mxu1 %v15350_v4 }
 0x52c   :  { %14023 = vmatprep.subr.bf16.mxu1 %v15352_v55 }
 0x52d   :  { %14751 = vmatpush3.bf16.msra.mxu0 %v15351_v31 }
 0x52e   :  { %14752 = vmatprep.subr.bf16.mxu0 %v20033_v35 }
 0x52f   :  { %14024 = vmatpush3.bf16.msra.mxu1 %v15353_v57 }
 0x530   :  { %14025 = vmatprep.subr.bf16.mxu1 %v15355_v42 }
 0x531   :  { %14753 = vmatpush3.bf16.msra.mxu0 %v15354_v16  ;;  %v4480_v46 = vpop.f32.mrb[52].mxu1  ;;  %v15390_v16 = vld [vmem:[%s20005_s5 + $0xa30] sm:$0xff]  }
 0x532   :  { %14754 = vmatprep.subr.bf16.mxu0 %v20033_v35  ;;  %v4481_v48 = vadd.f32 %v4480_v46, %v4441_v28  ;;  %v14662_v6 = vpop.f32.mrb[53].mxu1  ;;  %v15372_v28 = vld [vmem:[%s20005_s5 + $0xa50] sm:$0xff]  }
 0x533   :  { %v13797_v13 = vpop.f32.mrb[64].mxu0  ;;  %v4483_v50 = vpop.f32.mrb[54].mxu1  ;;  %14026 = vmatpush3.bf16.msra.mxu1 %v15356_v5 }
 0x534   :  { %v13798_v60 = vpop.f32.mrb[65].mxu0  ;;  %v18626_v26 = vadd.f32 %v4481_v48, %v18470_v22  ;;  %v14663_v30 = vpop.f32.mrb[55].mxu1  ;;  %14027 = vmatprep.subr.bf16.mxu1 %v15358_v40  ;;  %v6344_v22 = vld [vmem:[#allocation4 + $0x48] sm:$0xc0]  ;;  %v15392_v40 = vld [vmem:[%s20005_s5 + $0xa78] sm:$0xff]  }
 0x535   :  { %v18628_v33 = vadd.f32 %v13798_v60, %v13797_v13  ;;  %v13800_v9 = vpop.f32.mrb[66].mxu0  ;;  %14755 = vmatpush3.bf16.msra.mxu0 %v15357_v7  ;;  %v6349_v18 = vpack.c.bf16 %v6344_v22, %v6344_v22  ;;  %v15391_v7 = vld [vmem:[%s20005_s5 + $0xab0] sm:$0xff]   ;;  %v15393_v13 = vld [vmem:[%s20005_s5 + $0xaf8] sm:$0xff]   ;;  %v7260_v50 = vld [vmem:[#allocation4 + $0x58] sm:$0xc] }
 0x536   :  { %v13801_v51 = vpop.f32.mrb[67].mxu0  ;;  %14756 = vmatprep.subr.bf16.mxu0 %v20033_v35  ;;  %v15394_v60 = vld [vmem:[%s20005_s5 + $0xa38] sm:$0xff]   ;;  %v15396_v9 = vld [vmem:[%s20005_s5 + $0xb80] sm:$0xff]  }
 0x537   :  { %14028 = vmatpush3.bf16.msra.mxu1 %v15359_v52  ;;  %v6440_v54 = vrot.slane %v6349_v18, 3  ;;  %v15395_v52 = vld [vmem:[%s20005_s5 + $0xab8] sm:$0xff]   ;;  %v15397_v51 = vld [vmem:[%s20005_s5 + $0xb00] sm:$0xff]   ;;  %v15402_v18 = vld [vmem:[%s20005_s5 + $0xb90] sm:$0xff]  }
 0x538   :  { %14029 = vmatprep.subr.bf16.mxu1 %v15361_v3  ;;  %v7265_v3 = vpack.c.bf16 %v7260_v50, %v7260_v50  ;;  %v15398_v22 = vld [vmem:[%s20005_s5 + $0xb40] sm:$0xff]   ;;  %v15431_v50 = vld [vmem:[%s20005_s5 + $0xc58] sm:$0xff]  }
 0x539   :  { %14757 = vmatpush3.bf16.msra.mxu0 %v15360_v2  ;;  %v6809_v2 = vld [vmem:[#allocation4 + $0x60] sm:$0x3] }
 0x53a   :  { %14758 = vmatprep.subr.bf16.mxu0 %v20033_v35 }
 0x53b   :  { %14030 = vmatpush3.bf16.msra.mxu1 %v15362_v61  ;;  %v6814_v61 = vpack.c.bf16 %v6809_v2, %v6809_v2  ;;  %v15435_v2 = vld [vmem:[%s20005_s5 + $0xc28] sm:$0xff]  }
 0x53c   :  { %14046 = vmatprep.subr.bf16.mxu1 %v15364_v8  ;;  %v15401_v8 = vld [vmem:[%s20005_s5 + $0xb48] sm:$0xff]  }
 0x53d   :  { %14759 = vmatpush3.bf16.msra.mxu0 %v15363_v44  ;;  %v7356_v44 = vrot.slane %v7265_v3, 1  ;;  %v15436_v3 = vld [vmem:[%s20005_s5 + $0xbe8] sm:$0xff]  }
 0x53e   :  { %14068 = vmatprep.subr.bf16.mxu0 %v15365_v39  ;;  %6759 = vmatmul.mubr.bf16.vlgmr.msra.gmra.mrb[80].mxu1 %v6438_v36  ;;  %v15403_v39 = vld [vmem:[%s20005_s5 + $0xb10] sm:$0xff]   ;;  %v15406_v36 = vld [vmem:[%s20005_s5 + $0xb18] sm:$0xff]  }
 0x53f   :  { %14047 = vmatpush3.bf16.msra.mxu1 %v15366_v14  ;;  %7170 = vmatprep.mubr.bf16.mxu1 %v6813_v17  ;;  %v15404_v14 = vld [vmem:[%s20005_s5 + $0xb50] sm:$0xff]   ;;  %v15411_v17 = vld [vmem:[%s20005_s5 + $0xba8] sm:$0xff]  }
 0x540   :  { %14761 = vmatmul.mubr.bf16.vlgmr.msra.gmra.mrb[92].mxu0 %v6440_v54  ;;  %14048 = vmatprep.subr.bf16.mxu1 %v15368_v53  ;;  %v15409_v54 = vld [vmem:[%s20005_s5 + $0xb20] sm:$0xff]  }
 0x541   :  { %14069 = vmatpush3.bf16.msra.mxu0 %v15367_v58  ;;  %7210 = vmatprep.mubr.bf16.mxu0 %v6815_v34  ;;  %v15407_v58 = vld [vmem:[%s20005_s5 + $0xb58] sm:$0xff]   ;;  %v15410_v53 = vld [vmem:[%s20005_s5 + $0xb60] sm:$0xff]   ;;  %v15413_v34 = vld [vmem:[%s20005_s5 + $0xb68] sm:$0xff]  }
 0x542   :  { %14070 = vmatprep.subr.bf16.mxu0 %v15369_v32  ;;  %v15412_v32 = vld [vmem:[%s20005_s5 + $0xb28] sm:$0xff]  }
 0x543   :  { %14049 = vmatpush3.bf16.msra.mxu1 %v15370_v0 }
 0x544   :  { %14050 = vmatprep.subr.bf16.mxu1 %v15372_v28 }
 0x545   :  { %14071 = vmatpush3.bf16.msra.mxu0 %v15371_v63  ;;  %v15414_v63 = vld [vmem:[%s20005_s5 + $0xbb0] sm:$0xff]  }
 0x546   :  { %14072 = vmatprep.subr.bf16.mxu0 %v15373_v25 }
 0x547   :  { %14051 = vmatpush3.bf16.msra.mxu1 %v15374_v29 }
 0x548   :  { %14052 = vmatprep.subr.bf16.mxu1 %v15376_v19 }
 0x549   :  { %14073 = vmatpush3.bf16.msra.mxu0 %v15375_v23 }
 0x54a   :  { %14074 = vmatprep.subr.bf16.mxu0 %v15377_v24  ;;  %v15415_v24 = vld [vmem:[%s20005_s5 + $0xb30] sm:$0xff]  }
 0x54b   :  { %14053 = vmatpush3.bf16.msra.mxu1 %v15378_v49 }
 0x54c   :  { %14054 = vmatprep.subr.bf16.mxu1 %v15380_v62 }
 0x54d   :  { %14075 = vmatpush3.bf16.msra.mxu0 %v15379_v20 }
 0x54e   :  { %14076 = vmatprep.subr.bf16.mxu0 %v15381_v10  ;;  %v15416_v10 = vld [vmem:[%s20005_s5 + $0xb70] sm:$0xff]  }
 0x54f   :  { %14055 = vmatpush3.bf16.msra.mxu1 %v15382_v38 }
 0x550   :  { %14056 = vmatprep.subr.bf16.mxu1 %v15384_v11  ;;  %v7259_v11 = vld [vmem:[#allocation4 + $0x50] sm:$0xc] }
 0x551   :  { %14077 = vmatpush3.bf16.msra.mxu0 %v15383_v27  ;;  %v13819_v41 = vpop.f32.mrb[56].mxu1  ;;  %v15417_v27 = vld [vmem:[%s20005_s5 + $0xbb8] sm:$0xff]  }
 0x552   :  { %14078 = vmatprep.subr.bf16.mxu0 %v15385_v21  ;;  %v13820_v4 = vpop.f32.mrb[57].mxu1 }
 0x553   :  { %v4947_v56 = vpop.f32.mrb[68].mxu0  ;;  %v13821_v31 = vadd.f32 %v13820_v4, %v13819_v41  ;;  %v13822_v57 = vpop.f32.mrb[58].mxu1  ;;  %14057 = vmatpush3.bf16.msra.mxu1 %v15386_v43  ;;  %v15418_v43 = vld [vmem:[%s20005_s5 + $0xb38] sm:$0xff]   ;;  %v15420_v41 = vld [vmem:[%s20005_s5 + $0xc00] sm:$0xff]  }
 0x554   :  { %v14682_v55 = vpop.f32.mrb[69].mxu0  ;;  %v13823_v5 = vpop.f32.mrb[59].mxu1  ;;  %14058 = vmatprep.subr.bf16.mxu1 %v15388_v15  ;;  %v15419_v15 = vld [vmem:[%s20005_s5 + $0xb78] sm:$0xff]   ;;  %v15422_v57 = vld [vmem:[%s20005_s5 + $0xc40] sm:$0xff]  }
 0x555   :  { %v4950_v42 = vpop.f32.mrb[70].mxu0  ;;  %14079 = vmatpush3.bf16.msra.mxu0 %v15387_v45  ;;  %v4908_v46 = vadd.f32 %v13821_v31, %v18628_v33  ;;  %v6807_v33 = vld [vmem:[#allocation4 + $0x50] sm:$0x3]  ;;  %v7262_v45 = vld [vmem:[#allocation4 + $0x68] sm:$0xc]  ;;  %v15421_v31 = vld [vmem:[%s20005_s5 + $0xbc0] sm:$0xff]  }
 0x556   :  { %v14683_v48 = vpop.f32.mrb[71].mxu0  ;;  %14080 = vmatprep.subr.bf16.mxu0 %v15389_v59  ;;  %v6812_v37 = vpack.c.bf16 %v6807_v33, %v6807_v33  ;;  %v6811_v59 = vld [vmem:[#allocation4 + $0x70] sm:$0x3]  ;;  %v7267_v4 = vpack.c.bf16 %v7262_v45, %v7262_v45  ;;  %v15423_v42 = vld [vmem:[%s20005_s5 + $0xc08] sm:$0xff]   ;;  %v15433_v33 = vld [vmem:[%s20005_s5 + $0xbe0] sm:$0xff]  }
 0x557   :  { %v4948_v6 = vadd.f32 %v4947_v56, %v4908_v46  ;;  %14059 = vmatpush3.bf16.msra.mxu1 %v15390_v16  ;;  %v7264_v56 = vpack.c.bf16 %v7259_v11, %v7259_v11  ;;  %v6816_v55 = vpack.c.bf16 %v6811_v59, %v6811_v59  ;;  %v15426_v46 = vld [vmem:[%s20005_s5 + $0xc10] sm:$0xff]  }
 0x558   :  { %14060 = vmatprep.subr.bf16.mxu1 %v15392_v40  ;;  %v7358_v5 = vrot.slane %v7267_v4, 1  ;;  %v15425_v40 = vld [vmem:[%s20005_s5 + $0xc48] sm:$0xff]   ;;  %v15427_v48 = vld [vmem:[%s20005_s5 + $0xbd0] sm:$0xff]   ;;  %v15457_v4 = vld [vmem:[%s20005_s5 + $0xd58] sm:$0xff]  }
 0x559   :  { %14081 = vmatpush3.bf16.msra.mxu0 %v15391_v7  ;;  %v18745_v30 = vadd.f32 %v4948_v6, %v18626_v26  ;;  %v15399_v26 = vld [vmem:[%s20005_s5 + $0xb88] sm:$0xff]   ;;  %v7355_v16 = vrot.slane %v7264_v56, 1  ;;  %v15429_v6 = vld [vmem:[%s20005_s5 + $0xc18] sm:$0xff]   ;;  %v15452_v45 = vld [vmem:[%s20005_s5 + $0xcd0] sm:$0xff]  }
 0x55a   :  { %14082 = vmatprep.subr.bf16.mxu0 %v15393_v13  ;;  %v15424_v7 = vld [vmem:[%s20005_s5 + $0xbc8] sm:$0xff]   ;;  %v15428_v13 = vld [vmem:[%s20005_s5 + $0xc50] sm:$0xff]   ;;  %v15456_v56 = vld [vmem:[%s20005_s5 + $0xcd8] sm:$0xff]  }
 0x55b   :  { %14061 = vmatpush3.bf16.msra.mxu1 %v15394_v60  ;;  %v15430_v60 = vld [vmem:[%s20005_s5 + $0xbd8] sm:$0xff]   ;;  %v15455_v59 = vld [vmem:[%s20005_s5 + $0xd10] sm:$0xff]  }
 0x55c   :  { %14764 = vmatprep.subr.bf16.mxu1 %v20033_v35 }
 0x55d   :  { %14083 = vmatpush3.bf16.msra.mxu0 %v15395_v52  ;;  %v15432_v52 = vld [vmem:[%s20005_s5 + $0xc20] sm:$0xff]  }
 0x55e   :  { %14099 = vmatprep.subr.bf16.mxu0 %v15396_v9  ;;  %7171 = vmatmul.mubr.bf16.vlgmr.msra.gmra.mrb[84].mxu1 %v6812_v37  ;;  %v15434_v9 = vld [vmem:[%s20005_s5 + $0xc60] sm:$0xff]   ;;  %v15438_v37 = vld [vmem:[%s20005_s5 + $0xc30] sm:$0xff]  }
 0x55f   :  { %14765 = vmatpush3.bf16.msra.mxu1 %v15397_v51  ;;  %14780 = vmatprep.mubr.msk.bf16.mxu1 %vm15829_vm0, %v20033_v35  ;;  %v15437_v51 = vld [vmem:[%s20005_s5 + $0xc68] sm:$0xff]  }
 0x560   :  { %7211 = vmatmul.mubr.bf16.vlgmr.msra.gmra.mrb[96].mxu0 %v6814_v61  ;;  %14766 = vmatprep.subr.bf16.mxu1 %v20033_v35 }
 0x561   :  { %14100 = vmatpush3.bf16.msra.mxu0 %v15398_v22  ;;  %7637 = vmatprep.mubr.bf16.mxu0 %v7356_v44 }
 0x562   :  { %14101 = vmatprep.subr.bf16.mxu0 %v15399_v26 }
 0x563   :  { %14767 = vmatpush3.bf16.msra.mxu1 %v15400_v47 }
 0x564   :  { %14768 = vmatprep.subr.bf16.mxu1 %v20033_v35 }
 0x565   :  { %14102 = vmatpush3.bf16.msra.mxu0 %v15401_v8 }
 0x566   :  { %14103 = vmatprep.subr.bf16.mxu0 %v15402_v18  ;;  %v15439_v18 = vld [vmem:[%s20005_s5 + $0xbf0] sm:$0xff]  }
 0x567   :  { %14769 = vmatpush3.bf16.msra.mxu1 %v15403_v39 }
 0x568   :  { %14770 = vmatprep.subr.bf16.mxu1 %v20033_v35 }
 0x569   :  { %14104 = vmatpush3.bf16.msra.mxu0 %v15404_v14 }
 0x56a   :  { %14105 = vmatprep.subr.bf16.mxu0 %v15405_v12 }
 0x56b   :  { %14771 = vmatpush3.bf16.msra.mxu1 %v15406_v36 }
 0x56c   :  { %14772 = vmatprep.subr.bf16.mxu1 %v20033_v35 }
 0x56d   :  { %14106 = vmatpush3.bf16.msra.mxu0 %v15407_v58  ;;  %v15440_v58 = vld [vmem:[%s20005_s5 + $0xc70] sm:$0xff]  }
 0x56e   :  { %14107 = vmatprep.subr.bf16.mxu0 %v15408_v1  ;;  %v15441_v1 = vld [vmem:[%s20005_s5 + $0xc38] sm:$0xff]  }
 0x56f   :  { %14773 = vmatpush3.bf16.msra.mxu1 %v15409_v54 }
 0x570   :  { %14774 = vmatprep.subr.bf16.mxu1 %v20033_v35 }
 0x571   :  { %14108 = vmatpush3.bf16.msra.mxu0 %v15410_v53  ;;  %v13850_v0 = vpop.f32.mrb[60].mxu1  ;;  %v7261_v53 = vld [vmem:[#allocation4 + $0x60] sm:$0xc] }
 0x572   :  { %14109 = vmatprep.subr.bf16.mxu0 %v15411_v17  ;;  %v13851_v25 = vpop.f32.mrb[61].mxu1  ;;  %v15442_v17 = vld [vmem:[%s20005_s5 + $0xbf8] sm:$0xff]  }
 0x573   :  { %v13872_v28 = vpop.f32.mrb[72].mxu0  ;;  %v13852_v29 = vadd.f32 %v13851_v25, %v13850_v0  ;;  %v13853_v19 = vpop.f32.mrb[62].mxu1  ;;  %14775 = vmatpush3.bf16.msra.mxu1 %v15412_v32  ;;  %v7727_v32 = vld [vmem:[#allocation4 + $0x58] sm:$0x30]  ;;  %v7266_v0 = vpack.c.bf16 %v7261_v53, %v7261_v53 }
 0x574   :  { %v13873_v23 = vpop.f32.mrb[73].mxu0  ;;  %v13854_v62 = vpop.f32.mrb[63].mxu1  ;;  %14776 = vmatprep.subr.bf16.mxu1 %v20033_v35  ;;  %v15446_v19 = vld [vmem:[%s20005_s5 + $0xc80] sm:$0xff]  }
 0x575   :  { %v13874_v49 = vadd.f32 %v13873_v23, %v13872_v28  ;;  %v13875_v20 = vpop.f32.mrb[74].mxu0  ;;  %14110 = vmatpush3.bf16.msra.mxu0 %v15413_v34  ;;  %v15443_v34 = vld [vmem:[%s20005_s5 + $0xc78] sm:$0xff]   ;;  %v7729_v28 = vld [vmem:[#allocation4 + $0x68] sm:$0x30]  ;;  %v7732_v23 = vpack.c.bf16 %v7727_v32, %v7727_v32  ;;  %v15476_v53 = vld [vmem:[%s20005_s5 + $0xe00] sm:$0xff]  }
 0x576   :  { %v13876_v38 = vpop.f32.mrb[75].mxu0  ;;  %14111 = vmatprep.subr.bf16.mxu0 %v15414_v63  ;;  %v15444_v63 = vld [vmem:[%s20005_s5 + $0xcc0] sm:$0xff]  }
 0x577   :  { %v5360_v21 = vadd.f32 %v13874_v49, %v13852_v29  ;;  %14777 = vmatpush3.bf16.msra.mxu1 %v15415_v24  ;;  %v15445_v29 = vld [vmem:[%s20005_s5 + $0xd40] sm:$0xff]   ;;  %v7734_v24 = vpack.c.bf16 %v7729_v28, %v7729_v28  ;;  %v7357_v49 = vrot.slane %v7266_v0, 1  ;;  %v7823_v38 = vrot.slane %v7732_v23, 2  ;;  %v15482_v23 = vld [vmem:[%s20005_s5 + $0xe10] sm:$0xff]  }
 0x578   :  { %14778 = vmatprep.subr.bf16.mxu1 %v20033_v35  ;;  %v15447_v20 = vld [vmem:[%s20005_s5 + $0xd00] sm:$0xff]  }
 0x579   :  { %14112 = vmatpush3.bf16.msra.mxu0 %v15416_v10  ;;  %v15448_v10 = vld [vmem:[%s20005_s5 + $0xcc8] sm:$0xff]   ;;  %v7825_v11 = vrot.slane %v7734_v24, 2  ;;  %v15477_v32 = vld [vmem:[%s20005_s5 + $0xd80] sm:$0xff]   ;;  %v15484_v24 = vld [vmem:[%s20005_s5 + $0xdd0] sm:$0xff]  }
 0x57a   :  { %14113 = vmatprep.subr.bf16.mxu0 %v15417_v27  ;;  %v15449_v27 = vld [vmem:[%s20005_s5 + $0xd48] sm:$0xff]   ;;  %v15478_v0 = vld [vmem:[%s20005_s5 + $0xdc0] sm:$0xff]  }
 0x57b   :  { %14779 = vmatpush3.bf16.msra.mxu1 %v15418_v43  ;;  %v15451_v43 = vld [vmem:[%s20005_s5 + $0xd08] sm:$0xff]  }
 0x57c   :  { %14121 = vmatprep.subr.bf16.mxu1 %v15420_v41  ;;  %v15454_v41 = vld [vmem:[%s20005_s5 + $0xc90] sm:$0xff]  }
 0x57d   :  { %14114 = vmatpush3.bf16.msra.mxu0 %v15419_v15  ;;  %v15453_v15 = vld [vmem:[%s20005_s5 + $0xd50] sm:$0xff]  }
 0x57e   :  { %14784 = vmatprep.subr.bf16.mxu0 %v20033_v35  ;;  %14781 = vmatmul.mubr.bf16.vlgmr.msra.gmra.mrb[88].mxu1 %v6816_v55  ;;  %v15459_v55 = vld [vmem:[%s20005_s5 + $0xd18] sm:$0xff]  }
 0x57f   :  { %14122 = vmatpush3.bf16.msra.mxu1 %v15421_v31  ;;  %7677 = vmatprep.mubr.bf16.mxu1 %v7358_v5  ;;  %v15458_v31 = vld [vmem:[%s20005_s5 + $0xc98] sm:$0xff]   ;;  %v15463_v5 = vld [vmem:[%s20005_s5 + $0xd20] sm:$0xff]  }
 0x580   :  { %7638 = vmatmul.mubr.bf16.vlgmr.msra.gmra.mrb[100].mxu0 %v7355_v16  ;;  %14123 = vmatprep.subr.bf16.mxu1 %v15423_v42  ;;  %v15461_v16 = vld [vmem:[%s20005_s5 + $0xd60] sm:$0xff]  }
 0x581   :  { %14785 = vmatpush3.bf16.msra.mxu0 %v15422_v57  ;;  %14800 = vmatprep.mubr.msk.bf16.mxu0 %vm15829_vm0, %v20033_v35  ;;  %v15460_v57 = vld [vmem:[%s20005_s5 + $0xce0] sm:$0xff]  }
 0x582   :  { %14786 = vmatprep.subr.bf16.mxu0 %v20033_v35  ;;  %v15462_v42 = vld [vmem:[%s20005_s5 + $0xca0] sm:$0xff]  }
 0x583   :  { %14124 = vmatpush3.bf16.msra.mxu1 %v15424_v7  ;;  %v15464_v7 = vld [vmem:[%s20005_s5 + $0xce8] sm:$0xff]  }
 0x584   :  { %14125 = vmatprep.subr.bf16.mxu1 %v15426_v46  ;;  %v15466_v46 = vld [vmem:[%s20005_s5 + $0xca8] sm:$0xff]  }
 0x585   :  { %14787 = vmatpush3.bf16.msra.mxu0 %v15425_v40  ;;  %v15465_v40 = vld [vmem:[%s20005_s5 + $0xd68] sm:$0xff]  }
 0x586   :  { %14788 = vmatprep.subr.bf16.mxu0 %v20033_v35 }
 0x587   :  { %14126 = vmatpush3.bf16.msra.mxu1 %v15427_v48  ;;  %v15467_v48 = vld [vmem:[%s20005_s5 + $0xd28] sm:$0xff]  }
 0x588   :  { %14127 = vmatprep.subr.bf16.mxu1 %v15429_v6 }
 0x589   :  { %14789 = vmatpush3.bf16.msra.mxu0 %v15428_v13  ;;  %v15468_v13 = vld [vmem:[%s20005_s5 + $0xcf0] sm:$0xff]  }
 0x58a   :  { %14790 = vmatprep.subr.bf16.mxu0 %v20033_v35 }
 0x58b   :  { %14128 = vmatpush3.bf16.msra.mxu1 %v15430_v60  ;;  %v15469_v60 = vld [vmem:[%s20005_s5 + $0xd70] sm:$0xff]  }
 0x58c   :  { %14129 = vmatprep.subr.bf16.mxu1 %v15432_v52 }
 0x58d   :  { %14791 = vmatpush3.bf16.msra.mxu0 %v15431_v50 }
 0x58e   :  { %14792 = vmatprep.subr.bf16.mxu0 %v20033_v35 }
 0x58f   :  { %14130 = vmatpush3.bf16.msra.mxu1 %v15433_v33 }
 0x590   :  { %14131 = vmatprep.subr.bf16.mxu1 %v15435_v2 }
 0x591   :  { %14793 = vmatpush3.bf16.msra.mxu0 %v15434_v9  ;;  %v5399_v22 = vpop.f32.mrb[64].mxu1 }
 0x592   :  { %14794 = vmatprep.subr.bf16.mxu0 %v20033_v35  ;;  %v5400_v61 = vadd.f32 %v5399_v22, %v5360_v21  ;;  %v14702_v44 = vpop.f32.mrb[65].mxu1  ;;  %v15450_v21 = vld [vmem:[%s20005_s5 + $0xc88] sm:$0xff]   ;;  %v15471_v22 = vld [vmem:[%s20005_s5 + $0xd30] sm:$0xff]  }
 0x593   :  { %v13903_v26 = vpop.f32.mrb[76].mxu0  ;;  %v5402_v8 = vpop.f32.mrb[66].mxu1  ;;  %14132 = vmatpush3.bf16.msra.mxu1 %v15436_v3  ;;  %v15470_v3 = vld [vmem:[%s20005_s5 + $0xcb0] sm:$0xff]  }
 0x594   :  { %v13904_v47 = vpop.f32.mrb[77].mxu0  ;;  %v18895_v39 = vadd.f32 %v5400_v61, %v18745_v30  ;;  %v14703_v36 = vpop.f32.mrb[67].mxu1  ;;  %14133 = vmatprep.subr.bf16.mxu1 %v15438_v37  ;;  %v7263_v30 = vld [vmem:[#allocation4 + $0x70] sm:$0xc]  ;;  %v7726_v8 = vld [vmem:[#allocation4 + $0x50] sm:$0x30] }
 0x595   :  { %v18897_v14 = vadd.f32 %v13904_v47, %v13903_v26  ;;  %v13906_v12 = vpop.f32.mrb[78].mxu0  ;;  %14795 = vmatpush3.bf16.msra.mxu0 %v15437_v51  ;;  %v7268_v25 = vpack.c.bf16 %v7263_v30, %v7263_v30  ;;  %v15472_v61 = vld [vmem:[%s20005_s5 + $0xcf8] sm:$0xff]  }
 0x596   :  { %v13907_v54 = vpop.f32.mrb[79].mxu0  ;;  %14796 = vmatprep.subr.bf16.mxu0 %v20033_v35  ;;  %v15473_v47 = vld [vmem:[%s20005_s5 + $0xd78] sm:$0xff]  }
 0x597   :  { %14134 = vmatpush3.bf16.msra.mxu1 %v15439_v18  ;;  %v7359_v62 = vrot.slane %v7268_v25, 1  ;;  %v7728_v18 = vld [vmem:[#allocation4 + $0x60] sm:$0x30]  ;;  %v15474_v36 = vld [vmem:[%s20005_s5 + $0xcb8] sm:$0xff]  }
 0x598   :  { %14135 = vmatprep.subr.bf16.mxu1 %v15441_v1  ;;  %v7731_v1 = vpack.c.bf16 %v7726_v8, %v7726_v8  ;;  %v7733_v54 = vpack.c.bf16 %v7728_v18, %v7728_v18  ;;  %v15480_v25 = vld [vmem:[%s20005_s5 + $0xd88] sm:$0xff]   ;;  %v15506_v8 = vld [vmem:[%s20005_s5 + $0xe90] sm:$0xff]  }
 0x599   :  { %14797 = vmatpush3.bf16.msra.mxu0 %v15440_v58  ;;  %v8194_v58 = vld [vmem:[#allocation4 + $0x58] sm:$0xc0]  ;;  %v15507_v18 = vld [vmem:[%s20005_s5 + $0xe50] sm:$0xff]  }
 0x59a   :  { %14798 = vmatprep.subr.bf16.mxu0 %v20033_v35 }
 0x59b   :  { %14136 = vmatpush3.bf16.msra.mxu1 %v15442_v17  ;;  %v8199_v17 = vpack.c.bf16 %v8194_v58, %v8194_v58  ;;  %v15510_v58 = vld [vmem:[%s20005_s5 + $0xe58] sm:$0xff]  }
 0x59c   :  { %14152 = vmatprep.subr.bf16.mxu1 %v15444_v63  ;;  %v7824_v63 = vrot.slane %v7733_v54, 2  ;;  %v15513_v54 = vld [vmem:[%s20005_s5 + $0xe60] sm:$0xff]  }
 0x59d   :  { %14799 = vmatpush3.bf16.msra.mxu0 %v15443_v34  ;;  %v7822_v34 = vrot.slane %v7731_v1, 2  ;;  %v8290_v28 = vrot.slane %v8199_v17, 3  ;;  %v15512_v1 = vld [vmem:[%s20005_s5 + $0xea0] sm:$0xff]   ;;  %v15515_v17 = vld [vmem:[%s20005_s5 + $0xea8] sm:$0xff]  }
 0x59e   :  { %14174 = vmatprep.subr.bf16.mxu0 %v15445_v29  ;;  %7678 = vmatmul.mubr.bf16.vlgmr.msra.gmra.mrb[92].mxu1 %v7357_v49  ;;  %v15481_v29 = vld [vmem:[%s20005_s5 + $0xdc8] sm:$0xff]   ;;  %v15485_v49 = vld [vmem:[%s20005_s5 + $0xe18] sm:$0xff]  }
 0x59f   :  { %14153 = vmatpush3.bf16.msra.mxu1 %v15446_v19  ;;  %8104 = vmatprep.mubr.bf16.mxu1 %v7823_v38  ;;  %v15483_v19 = vld [vmem:[%s20005_s5 + $0xd90] sm:$0xff]   ;;  %v15489_v38 = vld [vmem:[%s20005_s5 + $0xda0] sm:$0xff]  }
 0x5a0   :  { %14801 = vmatmul.mubr.bf16.vlgmr.msra.gmra.mrb[104].mxu0 %v7359_v62  ;;  %14154 = vmatprep.subr.bf16.mxu1 %v15448_v10  ;;  %v15487_v62 = vld [vmem:[%s20005_s5 + $0xdd8] sm:$0xff]   ;;  %v15488_v10 = vld [vmem:[%s20005_s5 + $0xe20] sm:$0xff]  }
 0x5a1   :  { %14175 = vmatpush3.bf16.msra.mxu0 %v15447_v20  ;;  %8144 = vmatprep.mubr.bf16.mxu0 %v7825_v11  ;;  %v15486_v20 = vld [vmem:[%s20005_s5 + $0xd98] sm:$0xff]   ;;  %v15491_v11 = vld [vmem:[%s20005_s5 + $0xe28] sm:$0xff]  }
 0x5a2   :  { %14176 = vmatprep.subr.bf16.mxu0 %v15449_v27  ;;  %v15490_v27 = vld [vmem:[%s20005_s5 + $0xde0] sm:$0xff]  }
 0x5a3   :  { %14155 = vmatpush3.bf16.msra.mxu1 %v15450_v21  ;;  %v15492_v21 = vld [vmem:[%s20005_s5 + $0xda8] sm:$0xff]  }
 0x5a4   :  { %14156 = vmatprep.subr.bf16.mxu1 %v15452_v45 }
 0x5a5   :  { %14177 = vmatpush3.bf16.msra.mxu0 %v15451_v43  ;;  %v15493_v43 = vld [vmem:[%s20005_s5 + $0xde8] sm:$0xff]  }
 0x5a6   :  { %14178 = vmatprep.subr.bf16.mxu0 %v15453_v15  ;;  %v15494_v15 = vld [vmem:[%s20005_s5 + $0xe30] sm:$0xff]  }
 0x5a7   :  { %14157 = vmatpush3.bf16.msra.mxu1 %v15454_v41 }
 0x5a8   :  { %14158 = vmatprep.subr.bf16.mxu1 %v15456_v56 }
 0x5a9   :  { %14179 = vmatpush3.bf16.msra.mxu0 %v15455_v59 }
 0x5aa   :  { %14180 = vmatprep.subr.bf16.mxu0 %v15457_v4 }
 0x5ab   :  { %14159 = vmatpush3.bf16.msra.mxu1 %v15458_v31 }
 0x5ac   :  { %14160 = vmatprep.subr.bf16.mxu1 %v15460_v57 }
 0x5ad   :  { %14181 = vmatpush3.bf16.msra.mxu0 %v15459_v55  ;;  %v15495_v55 = vld [vmem:[%s20005_s5 + $0xdb0] sm:$0xff]  }
 0x5ae   :  { %14182 = vmatprep.subr.bf16.mxu0 %v15461_v16 }
 0x5af   :  { %14161 = vmatpush3.bf16.msra.mxu1 %v15462_v42 }
 0x5b0   :  { %14162 = vmatprep.subr.bf16.mxu1 %v15464_v7 }
 0x5b1   :  { %14183 = vmatpush3.bf16.msra.mxu0 %v15463_v5  ;;  %v13925_v6 = vpop.f32.mrb[68].mxu1  ;;  %v15496_v5 = vld [vmem:[%s20005_s5 + $0xdf0] sm:$0xff]  }
 0x5b2   :  { %14184 = vmatprep.subr.bf16.mxu0 %v15465_v40  ;;  %v13926_v52 = vpop.f32.mrb[69].mxu1  ;;  %v15497_v40 = vld [vmem:[%s20005_s5 + $0xe38] sm:$0xff]  }
 0x5b3   :  { %v5866_v50 = vpop.f32.mrb[80].mxu0  ;;  %v13927_v33 = vadd.f32 %v13926_v52, %v13925_v6  ;;  %v13928_v2 = vpop.f32.mrb[70].mxu1  ;;  %14163 = vmatpush3.bf16.msra.mxu1 %v15466_v46  ;;  %v7730_v46 = vld [vmem:[#allocation4 + $0x70] sm:$0x30] }
 0x5b4   :  { %v14722_v9 = vpop.f32.mrb[81].mxu0  ;;  %v13929_v37 = vpop.f32.mrb[71].mxu1  ;;  %14164 = vmatprep.subr.bf16.mxu1 %v15468_v13  ;;  %v15498_v6 = vld [vmem:[%s20005_s5 + $0xdb8] sm:$0xff]   ;;  %v7735_v52 = vpack.c.bf16 %v7730_v46, %v7730_v46  ;;  %v15530_v46 = vld [vmem:[%s20005_s5 + $0xf08] sm:$0xff]  }
 0x5b5   :  { %v5869_v51 = vpop.f32.mrb[82].mxu0  ;;  %14185 = vmatpush3.bf16.msra.mxu0 %v15467_v48  ;;  %v5827_v26 = vadd.f32 %v13927_v33, %v18897_v14  ;;  %v15475_v14 = vld [vmem:[%s20005_s5 + $0xd38] sm:$0xff]   ;;  %v15500_v33 = vld [vmem:[%s20005_s5 + $0xe80] sm:$0xff]  }
 0x5b6   :  { %v14723_v44 = vpop.f32.mrb[83].mxu0  ;;  %14186 = vmatprep.subr.bf16.mxu0 %v15469_v60  ;;  %v8193_v48 = vld [vmem:[#allocation4 + $0x50] sm:$0xc0]  ;;  %v8196_v60 = vld [vmem:[#allocation4 + $0x68] sm:$0xc0]  ;;  %v7826_v51 = vrot.slane %v7735_v52, 2 }
 0x5b7   :  { %v5867_v12 = vadd.f32 %v5866_v50, %v5827_v26  ;;  %14165 = vmatpush3.bf16.msra.mxu1 %v15470_v3  ;;  %v15499_v50 = vld [vmem:[%s20005_s5 + $0xdf8] sm:$0xff]   ;;  %v8198_v9 = vpack.c.bf16 %v8193_v48, %v8193_v48  ;;  %v8201_v2 = vpack.c.bf16 %v8196_v60, %v8196_v60  ;;  %v15501_v3 = vld [vmem:[%s20005_s5 + $0xe40] sm:$0xff]   ;;  %v15504_v44 = vld [vmem:[%s20005_s5 + $0xe48] sm:$0xff]  }
 0x5b8   :  { %14166 = vmatprep.subr.bf16.mxu1 %v15472_v61  ;;  %v15502_v37 = vld [vmem:[%s20005_s5 + $0xec0] sm:$0xff]   ;;  %v15503_v61 = vld [vmem:[%s20005_s5 + $0xe88] sm:$0xff]   ;;  %v15534_v60 = vld [vmem:[%s20005_s5 + $0xf10] sm:$0xff]  }
 0x5b9   :  { %14187 = vmatpush3.bf16.msra.mxu0 %v15471_v22  ;;  %v19014_v30 = vadd.f32 %v5867_v12, %v18895_v39  ;;  %v15479_v39 = vld [vmem:[%s20005_s5 + $0xe08] sm:$0xff]   ;;  %v8289_v22 = vrot.slane %v8198_v9, 3  ;;  %v8292_v26 = vrot.slane %v8201_v2, 3  ;;  %v15508_v12 = vld [vmem:[%s20005_s5 + $0xed0] sm:$0xff]   ;;  %v15536_v52 = vld [vmem:[%s20005_s5 + $0xf58] sm:$0xff]  }
 0x5ba   :  { %14188 = vmatprep.subr.bf16.mxu0 %v15473_v47  ;;  %v15505_v47 = vld [vmem:[%s20005_s5 + $0xec8] sm:$0xff]   ;;  %v15538_v9 = vld [vmem:[%s20005_s5 + $0xf18] sm:$0xff]  }
 0x5bb   :  { %14167 = vmatpush3.bf16.msra.mxu1 %v15474_v36  ;;  %v15509_v36 = vld [vmem:[%s20005_s5 + $0xe98] sm:$0xff]   ;;  %v15531_v48 = vld [vmem:[%s20005_s5 + $0xf88] sm:$0xff]  }
 0x5bc   :  { %14804 = vmatprep.subr.bf16.mxu1 %v20033_v35  ;;  %v15539_v2 = vld [vmem:[%s20005_s5 + $0xf98] sm:$0xff]  }
 0x5bd   :  { %14189 = vmatpush3.bf16.msra.mxu0 %v15475_v14  ;;  %v15511_v14 = vld [vmem:[%s20005_s5 + $0xed8] sm:$0xff]  }
 0x5be   :  { %14205 = vmatprep.subr.bf16.mxu0 %v15476_v53  ;;  %8105 = vmatmul.mubr.bf16.vlgmr.msra.gmra.mrb[96].mxu1 %v7822_v34  ;;  %v15514_v53 = vld [vmem:[%s20005_s5 + $0xee0] sm:$0xff]   ;;  %v15517_v34 = vld [vmem:[%s20005_s5 + $0xee8] sm:$0xff]  }
 0x5bf   :  { %14805 = vmatpush3.bf16.msra.mxu1 %v15477_v32  ;;  %14820 = vmatprep.mubr.msk.bf16.mxu1 %vm15829_vm0, %v20033_v35  ;;  %v15516_v32 = vld [vmem:[%s20005_s5 + $0xe68] sm:$0xff]  }
 0x5c0   :  { %8145 = vmatmul.mubr.bf16.vlgmr.msra.gmra.mrb[108].mxu0 %v7824_v63  ;;  %14806 = vmatprep.subr.bf16.mxu1 %v20033_v35 }
 0x5c1   :  { %14206 = vmatpush3.bf16.msra.mxu0 %v15478_v0  ;;  %8571 = vmatprep.mubr.bf16.mxu0 %v8290_v28  ;;  %v15518_v0 = vld [vmem:[%s20005_s5 + $0xeb0] sm:$0xff]  }
 0x5c2   :  { %14207 = vmatprep.subr.bf16.mxu0 %v15479_v39 }
 0x5c3   :  { %14807 = vmatpush3.bf16.msra.mxu1 %v15480_v25 }
 0x5c4   :  { %14808 = vmatprep.subr.bf16.mxu1 %v20033_v35 }
 0x5c5   :  { %14208 = vmatpush3.bf16.msra.mxu0 %v15481_v29 }
 0x5c6   :  { %14209 = vmatprep.subr.bf16.mxu0 %v15482_v23 }
 0x5c7   :  { %14809 = vmatpush3.bf16.msra.mxu1 %v15483_v19  ;;  %v15519_v19 = vld [vmem:[%s20005_s5 + $0xe70] sm:$0xff]  }
 0x5c8   :  { %14810 = vmatprep.subr.bf16.mxu1 %v20033_v35 }
 0x5c9   :  { %14210 = vmatpush3.bf16.msra.mxu0 %v15484_v24 }
 0x5ca   :  { %14211 = vmatprep.subr.bf16.mxu0 %v15485_v49 }
 0x5cb   :  { %14811 = vmatpush3.bf16.msra.mxu1 %v15486_v20 }
 0x5cc   :  { %14812 = vmatprep.subr.bf16.mxu1 %v20033_v35 }
 0x5cd   :  { %14212 = vmatpush3.bf16.msra.mxu0 %v15487_v62 }
 0x5ce   :  { %14213 = vmatprep.subr.bf16.mxu0 %v15488_v10  ;;  %v15520_v10 = vld [vmem:[%s20005_s5 + $0xef0] sm:$0xff]  }
 0x5cf   :  { %14813 = vmatpush3.bf16.msra.mxu1 %v15489_v38  ;;  %v15521_v38 = vld [vmem:[%s20005_s5 + $0xeb8] sm:$0xff]  }
 0x5d0   :  { %14814 = vmatprep.subr.bf16.mxu1 %v20033_v35 }
 0x5d1   :  { %14214 = vmatpush3.bf16.msra.mxu0 %v15490_v27  ;;  %v13956_v45 = vpop.f32.mrb[72].mxu1 }
 0x5d2   :  { %14215 = vmatprep.subr.bf16.mxu0 %v15491_v11  ;;  %v13957_v59 = vpop.f32.mrb[73].mxu1  ;;  %v8195_v11 = vld [vmem:[#allocation4 + $0x60] sm:$0xc0] }
 0x5d3   :  { %v13978_v41 = vpop.f32.mrb[84].mxu0  ;;  %v13958_v56 = vadd.f32 %v13957_v59, %v13956_v45  ;;  %v13959_v31 = vpop.f32.mrb[74].mxu1  ;;  %14815 = vmatpush3.bf16.msra.mxu1 %v15492_v21  ;;  %v15522_v21 = vld [vmem:[%s20005_s5 + $0xe78] sm:$0xff]   ;;  %v8200_v45 = vpack.c.bf16 %v8195_v11, %v8195_v11  ;;  %v15525_v59 = vld [vmem:[%s20005_s5 + $0xfc0] sm:$0xff]  }
 0x5d4   :  { %v13979_v4 = vpop.f32.mrb[85].mxu0  ;;  %v13960_v42 = vpop.f32.mrb[75].mxu1  ;;  %14816 = vmatprep.subr.bf16.mxu1 %v20033_v35 }
 0x5d5   :  { %v13980_v57 = vadd.f32 %v13979_v4, %v13978_v41  ;;  %v13981_v16 = vpop.f32.mrb[86].mxu0  ;;  %14216 = vmatpush3.bf16.msra.mxu0 %v15493_v43  ;;  %v15523_v43 = vld [vmem:[%s20005_s5 + $0xef8] sm:$0xff]   ;;  %v8661_v4 = vld [vmem:[#allocation4 + $0x80] sm:$0x3]  ;;  %v8291_v31 = vrot.slane %v8200_v45, 3 }
 0x5d6   :  { %v13982_v7 = vpop.f32.mrb[87].mxu0  ;;  %14217 = vmatprep.subr.bf16.mxu0 %v15494_v15  ;;  %v15524_v15 = vld [vmem:[%s20005_s5 + $0xf40] sm:$0xff]   ;;  %v15528_v42 = vld [vmem:[%s20005_s5 + $0xf48] sm:$0xff]  }
 0x5d7   :  { %v6294_v13 = vadd.f32 %v13980_v57, %v13958_v56  ;;  %14817 = vmatpush3.bf16.msra.mxu1 %v15495_v55  ;;  %v15526_v56 = vld [vmem:[%s20005_s5 + $0xf00] sm:$0xff]   ;;  %v8663_v57 = vld [vmem:[#allocation4 + $0x90] sm:$0x3]  ;;  %v15529_v7 = vld [vmem:[%s20005_s5 + $0xfc8] sm:$0xff]  }
 0x5d8   :  { %14818 = vmatprep.subr.bf16.mxu1 %v20033_v35  ;;  %v15527_v55 = vld [vmem:[%s20005_s5 + $0xf80] sm:$0xff]   ;;  %v15560_v45 = vld [vmem:[%s20005_s5 + $0x1008] sm:$0xff]  }
 0x5d9   :  { %14218 = vmatpush3.bf16.msra.mxu0 %v15496_v5  ;;  %v8666_v5 = vpack.c.bf16 %v8661_v4, %v8661_v4  ;;  %v15565_v4 = vld [vmem:[%s20005_s5 + $0x1098] sm:$0xff]  }
 0x5da   :  { %14219 = vmatprep.subr.bf16.mxu0 %v15497_v40  ;;  %v8668_v40 = vpack.c.bf16 %v8663_v57, %v8663_v57  ;;  %v15568_v57 = vld [vmem:[%s20005_s5 + $0x10a0] sm:$0xff]  }
 0x5db   :  { %14819 = vmatpush3.bf16.msra.mxu1 %v15498_v6  ;;  %v15533_v6 = vld [vmem:[%s20005_s5 + $0xfd0] sm:$0xff]  }
 0x5dc   :  { %14227 = vmatprep.subr.bf16.mxu1 %v15500_v33  ;;  %v15537_v33 = vld [vmem:[%s20005_s5 + $0xfd8] sm:$0xff]  }
 0x5dd   :  { %14220 = vmatpush3.bf16.msra.mxu0 %v15499_v50  ;;  %v15535_v50 = vld [vmem:[%s20005_s5 + $0xf90] sm:$0xff]  }
 0x5de   :  { %14824 = vmatprep.subr.bf16.mxu0 %v20033_v35  ;;  %14821 = vmatmul.mubr.bf16.vlgmr.msra.gmra.mrb[100].mxu1 %v7826_v51  ;;  %v15541_v51 = vld [vmem:[%s20005_s5 + $0xfe0] sm:$0xff]  }
 0x5df   :  { %14228 = vmatpush3.bf16.msra.mxu1 %v15501_v3  ;;  %8611 = vmatprep.mubr.bf16.mxu1 %v8292_v26  ;;  %v15540_v3 = vld [vmem:[%s20005_s5 + $0xf60] sm:$0xff]   ;;  %v15545_v26 = vld [vmem:[%s20005_s5 + $0xfe8] sm:$0xff]  }
 0x5e0   :  { %8572 = vmatmul.mubr.bf16.vlgmr.msra.gmra.mrb[112].mxu0 %v8289_v22  ;;  %14229 = vmatprep.subr.bf16.mxu1 %v15503_v61  ;;  %v15543_v22 = vld [vmem:[%s20005_s5 + $0xfa0] sm:$0xff]   ;;  %v15544_v61 = vld [vmem:[%s20005_s5 + $0xf68] sm:$0xff]  }
 0x5e1   :  { %14825 = vmatpush3.bf16.msra.mxu0 %v15502_v37  ;;  %14840 = vmatprep.mubr.msk.bf16.mxu0 %vm15829_vm0, %v20033_v35  ;;  %v15542_v37 = vld [vmem:[%s20005_s5 + $0xf20] sm:$0xff]  }
 0x5e2   :  { %14826 = vmatprep.subr.bf16.mxu0 %v20033_v35 }
 0x5e3   :  { %14230 = vmatpush3.bf16.msra.mxu1 %v15504_v44  ;;  %v15546_v44 = vld [vmem:[%s20005_s5 + $0xf28] sm:$0xff]  }
 0x5e4   :  { %14231 = vmatprep.subr.bf16.mxu1 %v15506_v8  ;;  %v15548_v8 = vld [vmem:[%s20005_s5 + $0xf70] sm:$0xff]  }
 0x5e5   :  { %14827 = vmatpush3.bf16.msra.mxu0 %v15505_v47  ;;  %v15547_v47 = vld [vmem:[%s20005_s5 + $0xfa8] sm:$0xff]  }
 0x5e6   :  { %14828 = vmatprep.subr.bf16.mxu0 %v20033_v35 }
 0x5e7   :  { %14232 = vmatpush3.bf16.msra.mxu1 %v15507_v18 }
 0x5e8   :  { %14233 = vmatprep.subr.bf16.mxu1 %v15509_v36 }
 0x5e9   :  { %14829 = vmatpush3.bf16.msra.mxu0 %v15508_v12  ;;  %v15549_v12 = vld [vmem:[%s20005_s5 + $0xff0] sm:$0xff]  }
 0x5ea   :  { %14830 = vmatprep.subr.bf16.mxu0 %v20033_v35 }
 0x5eb   :  { %14234 = vmatpush3.bf16.msra.mxu1 %v15510_v58 }
 0x5ec   :  { %14235 = vmatprep.subr.bf16.mxu1 %v15512_v1 }
 0x5ed   :  { %14831 = vmatpush3.bf16.msra.mxu0 %v15511_v14 }
 0x5ee   :  { %14832 = vmatprep.subr.bf16.mxu0 %v20033_v35 }
 0x5ef   :  { %14236 = vmatpush3.bf16.msra.mxu1 %v15513_v54 }
 0x5f0   :  { %14237 = vmatprep.subr.bf16.mxu1 %v15515_v17 }
 0x5f1   :  { %14833 = vmatpush3.bf16.msra.mxu0 %v15514_v53  ;;  %v6333_v63 = vpop.f32.mrb[76].mxu1  ;;  %v15550_v53 = vld [vmem:[%s20005_s5 + $0xf30] sm:$0xff]  }
 0x5f2   :  { %14834 = vmatprep.subr.bf16.mxu0 %v20033_v35  ;;  %v6334_v39 = vadd.f32 %v6333_v63, %v6294_v13  ;;  %v14742_v25 = vpop.f32.mrb[77].mxu1  ;;  %v15532_v13 = vld [vmem:[%s20005_s5 + $0xf50] sm:$0xff]  }
 0x5f3   :  { %v14009_v28 = vpop.f32.mrb[88].mxu0  ;;  %v6336_v23 = vpop.f32.mrb[78].mxu1  ;;  %14238 = vmatpush3.bf16.msra.mxu1 %v15516_v32 }
 0x5f4   :  { %v14010_v29 = vpop.f32.mrb[89].mxu0  ;;  %v19164_v24 = vadd.f32 %v6334_v39, %v19014_v30  ;;  %v14743_v62 = vpop.f32.mrb[79].mxu1  ;;  %14239 = vmatprep.subr.bf16.mxu1 %v15518_v0  ;;  %v8197_v30 = vld [vmem:[#allocation4 + $0x70] sm:$0xc0]  ;;  %v9113_v23 = vld [vmem:[#allocation4 + $0x80] sm:$0xc] }
 0x5f5   :  { %v19166_v49 = vadd.f32 %v14010_v29, %v14009_v28  ;;  %v14012_v20 = vpop.f32.mrb[90].mxu0  ;;  %14835 = vmatpush3.bf16.msra.mxu0 %v15517_v34  ;;  %v8202_v41 = vpack.c.bf16 %v8197_v30, %v8197_v30  ;;  %v15551_v34 = vld [vmem:[%s20005_s5 + $0xfb0] sm:$0xff]   ;;  %v15552_v0 = vld [vmem:[%s20005_s5 + $0xf78] sm:$0xff]   ;;  %v15558_v30 = vld [vmem:[%s20005_s5 + $0x1040] sm:$0xff]  }
 0x5f6   :  { %v14013_v27 = vpop.f32.mrb[91].mxu0  ;;  %14836 = vmatprep.subr.bf16.mxu0 %v20033_v35  ;;  %v15553_v28 = vld [vmem:[%s20005_s5 + $0xff8] sm:$0xff]   ;;  %v15556_v20 = vld [vmem:[%s20005_s5 + $0x1080] sm:$0xff]  }
 0x5f7   :  { %14240 = vmatpush3.bf16.msra.mxu1 %v15519_v19  ;;  %v8293_v16 = vrot.slane %v8202_v41, 3  ;;  %v15554_v29 = vld [vmem:[%s20005_s5 + $0xf38] sm:$0xff]   ;;  %v15557_v27 = vld [vmem:[%s20005_s5 + $0x1000] sm:$0xff]   ;;  %v15562_v41 = vld [vmem:[%s20005_s5 + $0x1090] sm:$0xff]  }
 0x5f8   :  { %14241 = vmatprep.subr.bf16.mxu1 %v15521_v38  ;;  %v15555_v19 = vld [vmem:[%s20005_s5 + $0xfb8] sm:$0xff]   ;;  %v9118_v38 = vpack.c.bf16 %v9113_v23, %v9113_v23 }
 0x5f9   :  { %14837 = vmatpush3.bf16.msra.mxu0 %v15520_v10  ;;  %v8662_v10 = vld [vmem:[#allocation4 + $0x88] sm:$0x3]  ;;  %v15591_v23 = vld [vmem:[%s20005_s5 + $0x1158] sm:$0xff]  }
 0x5fa   :  { %14838 = vmatprep.subr.bf16.mxu0 %v20033_v35 }
 0x5fb   :  { %14242 = vmatpush3.bf16.msra.mxu1 %v15522_v21  ;;  %v8667_v21 = vpack.c.bf16 %v8662_v10, %v8662_v10  ;;  %v15595_v10 = vld [vmem:[%s20005_s5 + $0x1128] sm:$0xff]  }
 0x5fc   :  { %14258 = vmatprep.subr.bf16.mxu1 %v15524_v15  ;;  %v15561_v15 = vld [vmem:[%s20005_s5 + $0x1048] sm:$0xff]  }
 0x5fd   :  { %14839 = vmatpush3.bf16.msra.mxu0 %v15523_v43  ;;  %v9209_v43 = vrot.slane %v9118_v38, 1  ;;  %v15596_v38 = vld [vmem:[%s20005_s5 + $0x10e8] sm:$0xff]  }
 0x5fe   :  { %14280 = vmatprep.subr.bf16.mxu0 %v15525_v59  ;;  %8612 = vmatmul.mubr.bf16.vlgmr.msra.gmra.mrb[104].mxu1 %v8291_v31  ;;  %v15563_v59 = vld [vmem:[%s20005_s5 + $0x1010] sm:$0xff]   ;;  %v15566_v31 = vld [vmem:[%s20005_s5 + $0x1018] sm:$0xff]  }
 0x5ff   :  { %14259 = vmatpush3.bf16.msra.mxu1 %v15526_v56  ;;  %9023 = vmatprep.mubr.bf16.mxu1 %v8666_v5  ;;  %v15564_v56 = vld [vmem:[%s20005_s5 + $0x1050] sm:$0xff]   ;;  %v15571_v5 = vld [vmem:[%s20005_s5 + $0x10a8] sm:$0xff]  }
 0x600   :  { %14841 = vmatmul.mubr.bf16.vlgmr.msra.gmra.mrb[116].mxu0 %v8293_v16  ;;  %14260 = vmatprep.subr.bf16.mxu1 %v15528_v42  ;;  %v15569_v16 = vld [vmem:[%s20005_s5 + $0x1020] sm:$0xff]  }
 0x601   :  { %14281 = vmatpush3.bf16.msra.mxu0 %v15527_v55  ;;  %9063 = vmatprep.mubr.bf16.mxu0 %v8668_v40  ;;  %v15567_v55 = vld [vmem:[%s20005_s5 + $0x1058] sm:$0xff]   ;;  %v15570_v42 = vld [vmem:[%s20005_s5 + $0x1060] sm:$0xff]   ;;  %v15573_v40 = vld [vmem:[%s20005_s5 + $0x1068] sm:$0xff]  }
 0x602   :  { %14282 = vmatprep.subr.bf16.mxu0 %v15529_v7  ;;  %v15572_v7 = vld [vmem:[%s20005_s5 + $0x1028] sm:$0xff]  }
 0x603   :  { %14261 = vmatpush3.bf16.msra.mxu1 %v15530_v46 }
 0x604   :  { %14262 = vmatprep.subr.bf16.mxu1 %v15532_v13 }
 0x605   :  { %14283 = vmatpush3.bf16.msra.mxu0 %v15531_v48  ;;  %v15574_v48 = vld [vmem:[%s20005_s5 + $0x10b0] sm:$0xff]  }
 0x606   :  { %14284 = vmatprep.subr.bf16.mxu0 %v15533_v6 }
 0x607   :  { %14263 = vmatpush3.bf16.msra.mxu1 %v15534_v60 }
 0x608   :  { %14264 = vmatprep.subr.bf16.mxu1 %v15536_v52 }
 0x609   :  { %14285 = vmatpush3.bf16.msra.mxu0 %v15535_v50 }
 0x60a   :  { %14286 = vmatprep.subr.bf16.mxu0 %v15537_v33  ;;  %v15575_v33 = vld [vmem:[%s20005_s5 + $0x1030] sm:$0xff]  }
 0x60b   :  { %14265 = vmatpush3.bf16.msra.mxu1 %v15538_v9 }
 0x60c   :  { %14266 = vmatprep.subr.bf16.mxu1 %v15540_v3 }
 0x60d   :  { %14287 = vmatpush3.bf16.msra.mxu0 %v15539_v2 }
 0x60e   :  { %14288 = vmatprep.subr.bf16.mxu0 %v15541_v51  ;;  %v15576_v51 = vld [vmem:[%s20005_s5 + $0x1070] sm:$0xff]  }
 0x60f   :  { %14267 = vmatpush3.bf16.msra.mxu1 %v15542_v37 }
 0x610   :  { %14268 = vmatprep.subr.bf16.mxu1 %v15544_v61  ;;  %v9112_v61 = vld [vmem:[#allocation4 + $0x78] sm:$0xc] }
 0x611   :  { %14289 = vmatpush3.bf16.msra.mxu0 %v15543_v22  ;;  %v14031_v18 = vpop.f32.mrb[80].mxu1  ;;  %v15577_v22 = vld [vmem:[%s20005_s5 + $0x10b8] sm:$0xff]  }
 0x612   :  { %14290 = vmatprep.subr.bf16.mxu0 %v15545_v26  ;;  %v14032_v58 = vpop.f32.mrb[81].mxu1 }
 0x613   :  { %v6800_v36 = vpop.f32.mrb[92].mxu0  ;;  %v14033_v14 = vadd.f32 %v14032_v58, %v14031_v18  ;;  %v14034_v54 = vpop.f32.mrb[82].mxu1  ;;  %14269 = vmatpush3.bf16.msra.mxu1 %v15546_v44  ;;  %v15578_v44 = vld [vmem:[%s20005_s5 + $0x1038] sm:$0xff]   ;;  %v15580_v18 = vld [vmem:[%s20005_s5 + $0x1100] sm:$0xff]  }
 0x614   :  { %v14762_v1 = vpop.f32.mrb[93].mxu0  ;;  %v14035_v32 = vpop.f32.mrb[83].mxu1  ;;  %14270 = vmatprep.subr.bf16.mxu1 %v15548_v8  ;;  %v15579_v8 = vld [vmem:[%s20005_s5 + $0x1078] sm:$0xff]   ;;  %v15582_v54 = vld [vmem:[%s20005_s5 + $0x1140] sm:$0xff]  }
 0x615   :  { %v6803_v17 = vpop.f32.mrb[94].mxu0  ;;  %14291 = vmatpush3.bf16.msra.mxu0 %v15547_v47  ;;  %v6761_v63 = vadd.f32 %v14033_v14, %v19166_v49  ;;  %v8660_v49 = vld [vmem:[#allocation4 + $0x78] sm:$0x3]  ;;  %v9115_v47 = vld [vmem:[#allocation4 + $0x90] sm:$0xc] }
 0x616   :  { %v14763_v39 = vpop.f32.mrb[95].mxu0  ;;  %14292 = vmatprep.subr.bf16.mxu0 %v15549_v12  ;;  %v8665_v11 = vpack.c.bf16 %v8660_v49, %v8660_v49  ;;  %v8664_v12 = vld [vmem:[#allocation4 + $0x98] sm:$0x3]  ;;  %v9120_v58 = vpack.c.bf16 %v9115_v47, %v9115_v47  ;;  %v15583_v17 = vld [vmem:[%s20005_s5 + $0x1108] sm:$0xff]   ;;  %v15612_v47 = vld [vmem:[%s20005_s5 + $0x11d0] sm:$0xff]  }
 0x617   :  { %v6801_v25 = vadd.f32 %v6800_v36, %v6761_v63  ;;  %14271 = vmatpush3.bf16.msra.mxu1 %v15550_v53  ;;  %v9117_v36 = vpack.c.bf16 %v9112_v61, %v9112_v61  ;;  %v15581_v14 = vld [vmem:[%s20005_s5 + $0x10c0] sm:$0xff]   ;;  %v8669_v1 = vpack.c.bf16 %v8664_v12, %v8664_v12  ;;  %v15586_v63 = vld [vmem:[%s20005_s5 + $0x1110] sm:$0xff]  }
 0x618   :  { %14272 = vmatprep.subr.bf16.mxu1 %v15552_v0  ;;  %v9211_v32 = vrot.slane %v9120_v58, 1  ;;  %v15585_v0 = vld [vmem:[%s20005_s5 + $0x1148] sm:$0xff]   ;;  %v15587_v39 = vld [vmem:[%s20005_s5 + $0x10d0] sm:$0xff]   ;;  %v15593_v49 = vld [vmem:[%s20005_s5 + $0x10e0] sm:$0xff]  }
 0x619   :  { %14293 = vmatpush3.bf16.msra.mxu0 %v15551_v34  ;;  %v19283_v62 = vadd.f32 %v6801_v25, %v19164_v24  ;;  %v15559_v24 = vld [vmem:[%s20005_s5 + $0x1088] sm:$0xff]   ;;  %v9208_v53 = vrot.slane %v9117_v36, 1  ;;  %v15589_v25 = vld [vmem:[%s20005_s5 + $0x1118] sm:$0xff]   ;;  %v15615_v12 = vld [vmem:[%s20005_s5 + $0x1210] sm:$0xff]  }
 0x61a   :  { %14294 = vmatprep.subr.bf16.mxu0 %v15553_v28  ;;  %v15584_v34 = vld [vmem:[%s20005_s5 + $0x10c8] sm:$0xff]   ;;  %v15588_v28 = vld [vmem:[%s20005_s5 + $0x1150] sm:$0xff]   ;;  %v15616_v36 = vld [vmem:[%s20005_s5 + $0x11d8] sm:$0xff]  }
 0x61b   :  { %14273 = vmatpush3.bf16.msra.mxu1 %v15554_v29  ;;  %v15590_v29 = vld [vmem:[%s20005_s5 + $0x10d8] sm:$0xff]  }
 0x61c   :  { %14844 = vmatprep.subr.bf16.mxu1 %v20033_v35  ;;  %v15617_v58 = vld [vmem:[%s20005_s5 + $0x1258] sm:$0xff]  }
 0x61d   :  { %14295 = vmatpush3.bf16.msra.mxu0 %v15555_v19  ;;  %v15592_v19 = vld [vmem:[%s20005_s5 + $0x1120] sm:$0xff]  }
 0x61e   :  { %14311 = vmatprep.subr.bf16.mxu0 %v15556_v20  ;;  %9024 = vmatmul.mubr.bf16.vlgmr.msra.gmra.mrb[108].mxu1 %v8665_v11  ;;  %v15594_v20 = vld [vmem:[%s20005_s5 + $0x1160] sm:$0xff]   ;;  %v15598_v11 = vld [vmem:[%s20005_s5 + $0x1130] sm:$0xff]  }
 0x61f   :  { %14845 = vmatpush3.bf16.msra.mxu1 %v15557_v27  ;;  %14860 = vmatprep.mubr.msk.bf16.mxu1 %vm15829_vm0, %v20033_v35  ;;  %v15597_v27 = vld [vmem:[%s20005_s5 + $0x1168] sm:$0xff]  }
 0x620   :  { %9064 = vmatmul.mubr.bf16.vlgmr.msra.gmra.mrb[120].mxu0 %v8667_v21  ;;  %14846 = vmatprep.subr.bf16.mxu1 %v20033_v35 }
 0x621   :  { %14312 = vmatpush3.bf16.msra.mxu0 %v15558_v30  ;;  %9490 = vmatprep.mubr.bf16.mxu0 %v9209_v43 }
 0x622   :  { %14313 = vmatprep.subr.bf16.mxu0 %v15559_v24 }
 0x623   :  { %14847 = vmatpush3.bf16.msra.mxu1 %v15560_v45 }
 0x624   :  { %14848 = vmatprep.subr.bf16.mxu1 %v20033_v35 }
 0x625   :  { %14314 = vmatpush3.bf16.msra.mxu0 %v15561_v15 }
 0x626   :  { %14315 = vmatprep.subr.bf16.mxu0 %v15562_v41  ;;  %v15599_v41 = vld [vmem:[%s20005_s5 + $0x10f0] sm:$0xff]  }
 0x627   :  { %14849 = vmatpush3.bf16.msra.mxu1 %v15563_v59 }
 0x628   :  { %14850 = vmatprep.subr.bf16.mxu1 %v20033_v35 }
 0x629   :  { %14316 = vmatpush3.bf16.msra.mxu0 %v15564_v56 }
 0x62a   :  { %14317 = vmatprep.subr.bf16.mxu0 %v15565_v4 }
 0x62b   :  { %14851 = vmatpush3.bf16.msra.mxu1 %v15566_v31 }
 0x62c   :  { %14852 = vmatprep.subr.bf16.mxu1 %v20033_v35 }
 0x62d   :  { %14318 = vmatpush3.bf16.msra.mxu0 %v15567_v55  ;;  %v15600_v55 = vld [vmem:[%s20005_s5 + $0x1170] sm:$0xff]  }
 0x62e   :  { %14319 = vmatprep.subr.bf16.mxu0 %v15568_v57  ;;  %v15601_v57 = vld [vmem:[%s20005_s5 + $0x1138] sm:$0xff]  }
 0x62f   :  { %14853 = vmatpush3.bf16.msra.mxu1 %v15569_v16 }
 0x630   :  { %14854 = vmatprep.subr.bf16.mxu1 %v20033_v35 }
 0x631   :  { %14320 = vmatpush3.bf16.msra.mxu0 %v15570_v42  ;;  %v14062_v46 = vpop.f32.mrb[84].mxu1  ;;  %v9114_v42 = vld [vmem:[#allocation4 + $0x88] sm:$0xc] }
 0x632   :  { %14321 = vmatprep.subr.bf16.mxu0 %v15571_v5  ;;  %v14063_v6 = vpop.f32.mrb[85].mxu1  ;;  %v15602_v5 = vld [vmem:[%s20005_s5 + $0x10f8] sm:$0xff]  }
 0x633   :  { %v14084_v13 = vpop.f32.mrb[96].mxu0  ;;  %v14064_v60 = vadd.f32 %v14063_v6, %v14062_v46  ;;  %v14065_v52 = vpop.f32.mrb[86].mxu1  ;;  %14855 = vmatpush3.bf16.msra.mxu1 %v15572_v7  ;;  %v9580_v7 = vld [vmem:[#allocation4 + $0x80] sm:$0x30]  ;;  %v9119_v46 = vpack.c.bf16 %v9114_v42, %v9114_v42  ;;  %v15636_v42 = vld [vmem:[%s20005_s5 + $0x1300] sm:$0xff]  }
 0x634   :  { %v14085_v50 = vpop.f32.mrb[97].mxu0  ;;  %v14066_v3 = vpop.f32.mrb[87].mxu1  ;;  %14856 = vmatprep.subr.bf16.mxu1 %v20033_v35  ;;  %v15606_v52 = vld [vmem:[%s20005_s5 + $0x1180] sm:$0xff]  }
 0x635   :  { %v14086_v9 = vadd.f32 %v14085_v50, %v14084_v13  ;;  %v14087_v2 = vpop.f32.mrb[98].mxu0  ;;  %14322 = vmatpush3.bf16.msra.mxu0 %v15573_v40  ;;  %v15603_v40 = vld [vmem:[%s20005_s5 + $0x1178] sm:$0xff]   ;;  %v9585_v50 = vpack.c.bf16 %v9580_v7, %v9580_v7  ;;  %v15637_v7 = vld [vmem:[%s20005_s5 + $0x1280] sm:$0xff]  }
 0x636   :  { %v14088_v37 = vpop.f32.mrb[99].mxu0  ;;  %14323 = vmatprep.subr.bf16.mxu0 %v15574_v48  ;;  %v15604_v48 = vld [vmem:[%s20005_s5 + $0x11c0] sm:$0xff]   ;;  %v9582_v13 = vld [vmem:[#allocation4 + $0x90] sm:$0x30] }
 0x637   :  { %v7213_v26 = vadd.f32 %v14086_v9, %v14064_v60  ;;  %14857 = vmatpush3.bf16.msra.mxu1 %v15575_v33  ;;  %v15605_v60 = vld [vmem:[%s20005_s5 + $0x1240] sm:$0xff]   ;;  %v9587_v33 = vpack.c.bf16 %v9582_v13, %v9582_v13  ;;  %v9210_v9 = vrot.slane %v9119_v46, 1  ;;  %v9676_v37 = vrot.slane %v9585_v50, 2  ;;  %v15642_v50 = vld [vmem:[%s20005_s5 + $0x1310] sm:$0xff]  }
 0x638   :  { %14858 = vmatprep.subr.bf16.mxu1 %v20033_v35  ;;  %v15607_v2 = vld [vmem:[%s20005_s5 + $0x1200] sm:$0xff]  }
 0x639   :  { %14324 = vmatpush3.bf16.msra.mxu0 %v15576_v51  ;;  %v15608_v51 = vld [vmem:[%s20005_s5 + $0x11c8] sm:$0xff]   ;;  %v9678_v61 = vrot.slane %v9587_v33, 2  ;;  %v15638_v46 = vld [vmem:[%s20005_s5 + $0x12c0] sm:$0xff]   ;;  %v15644_v33 = vld [vmem:[%s20005_s5 + $0x12d0] sm:$0xff]  }
 0x63a   :  { %14325 = vmatprep.subr.bf16.mxu0 %v15577_v22  ;;  %v15609_v22 = vld [vmem:[%s20005_s5 + $0x1248] sm:$0xff]  }
 0x63b   :  { %14859 = vmatpush3.bf16.msra.mxu1 %v15578_v44  ;;  %v15611_v44 = vld [vmem:[%s20005_s5 + $0x1208] sm:$0xff]  }
 0x63c   :  { %14333 = vmatprep.subr.bf16.mxu1 %v15580_v18  ;;  %v15614_v18 = vld [vmem:[%s20005_s5 + $0x1190] sm:$0xff]  }
 0x63d   :  { %14326 = vmatpush3.bf16.msra.mxu0 %v15579_v8  ;;  %v15613_v8 = vld [vmem:[%s20005_s5 + $0x1250] sm:$0xff]  }
 0x63e   :  { %14864 = vmatprep.subr.bf16.mxu0 %v20033_v35  ;;  %14861 = vmatmul.mubr.bf16.vlgmr.msra.gmra.mrb[112].mxu1 %v8669_v1  ;;  %v15619_v1 = vld [vmem:[%s20005_s5 + $0x1218] sm:$0xff]  }
 0x63f   :  { %14334 = vmatpush3.bf16.msra.mxu1 %v15581_v14  ;;  %9530 = vmatprep.mubr.bf16.mxu1 %v9211_v32  ;;  %v15618_v14 = vld [vmem:[%s20005_s5 + $0x1198] sm:$0xff]   ;;  %v15623_v32 = vld [vmem:[%s20005_s5 + $0x1220] sm:$0xff]  }
 0x640   :  { %9491 = vmatmul.mubr.bf16.vlgmr.msra.gmra.mrb[124].mxu0 %v9208_v53  ;;  %14335 = vmatprep.subr.bf16.mxu1 %v15583_v17  ;;  %v15621_v53 = vld [vmem:[%s20005_s5 + $0x1260] sm:$0xff]  }
 0x641   :  { %14865 = vmatpush3.bf16.msra.mxu0 %v15582_v54  ;;  %14880 = vmatprep.mubr.msk.bf16.mxu0 %vm15829_vm0, %v20033_v35  ;;  %v15620_v54 = vld [vmem:[%s20005_s5 + $0x11e0] sm:$0xff]  }
 0x642   :  { %14866 = vmatprep.subr.bf16.mxu0 %v20033_v35  ;;  %v15622_v17 = vld [vmem:[%s20005_s5 + $0x11a0] sm:$0xff]  }
 0x643   :  { %14336 = vmatpush3.bf16.msra.mxu1 %v15584_v34  ;;  %v15624_v34 = vld [vmem:[%s20005_s5 + $0x11e8] sm:$0xff]  }
 0x644   :  { %14337 = vmatprep.subr.bf16.mxu1 %v15586_v63  ;;  %v15626_v63 = vld [vmem:[%s20005_s5 + $0x11a8] sm:$0xff]  }
 0x645   :  { %14867 = vmatpush3.bf16.msra.mxu0 %v15585_v0  ;;  %v15625_v0 = vld [vmem:[%s20005_s5 + $0x1268] sm:$0xff]  }
 0x646   :  { %14868 = vmatprep.subr.bf16.mxu0 %v20033_v35 }
 0x647   :  { %14338 = vmatpush3.bf16.msra.mxu1 %v15587_v39  ;;  %v15627_v39 = vld [vmem:[%s20005_s5 + $0x1228] sm:$0xff]  }
 0x648   :  { %14339 = vmatprep.subr.bf16.mxu1 %v15589_v25 }
 0x649   :  { %14869 = vmatpush3.bf16.msra.mxu0 %v15588_v28  ;;  %v15628_v28 = vld [vmem:[%s20005_s5 + $0x11f0] sm:$0xff]  }
 0x64a   :  { %14870 = vmatprep.subr.bf16.mxu0 %v20033_v35 }
 0x64b   :  { %14340 = vmatpush3.bf16.msra.mxu1 %v15590_v29  ;;  %v15629_v29 = vld [vmem:[%s20005_s5 + $0x1270] sm:$0xff]  }
 0x64c   :  { %14341 = vmatprep.subr.bf16.mxu1 %v15592_v19 }
 0x64d   :  { %14871 = vmatpush3.bf16.msra.mxu0 %v15591_v23 }
 0x64e   :  { %14872 = vmatprep.subr.bf16.mxu0 %v20033_v35 }
 0x64f   :  { %14342 = vmatpush3.bf16.msra.mxu1 %v15593_v49 }
 0x650   :  { %14343 = vmatprep.subr.bf16.mxu1 %v15595_v10 }
 0x651   :  { %14873 = vmatpush3.bf16.msra.mxu0 %v15594_v20  ;;  %v7252_v30 = vpop.f32.mrb[88].mxu1 }
 0x652   :  { %14874 = vmatprep.subr.bf16.mxu0 %v20033_v35  ;;  %v7253_v21 = vadd.f32 %v7252_v30, %v7213_v26  ;;  %v14782_v43 = vpop.f32.mrb[89].mxu1  ;;  %v15610_v26 = vld [vmem:[%s20005_s5 + $0x1188] sm:$0xff]   ;;  %v15631_v30 = vld [vmem:[%s20005_s5 + $0x1230] sm:$0xff]  }
 0x653   :  { %v14115_v24 = vpop.f32.mrb[100].mxu0  ;;  %v7255_v15 = vpop.f32.mrb[90].mxu1  ;;  %14344 = vmatpush3.bf16.msra.mxu1 %v15596_v38  ;;  %v15630_v38 = vld [vmem:[%s20005_s5 + $0x11b0] sm:$0xff]  }
 0x654   :  { %v14116_v45 = vpop.f32.mrb[101].mxu0  ;;  %v19433_v59 = vadd.f32 %v7253_v21, %v19283_v62  ;;  %v14783_v31 = vpop.f32.mrb[91].mxu1  ;;  %14345 = vmatprep.subr.bf16.mxu1 %v15598_v11  ;;  %v9116_v62 = vld [vmem:[#allocation4 + $0x98] sm:$0xc]  ;;  %v15632_v21 = vld [vmem:[%s20005_s5 + $0x11f8] sm:$0xff]  }
 0x655   :  { %v19435_v56 = vadd.f32 %v14116_v45, %v14115_v24  ;;  %v14118_v4 = vpop.f32.mrb[102].mxu0  ;;  %14875 = vmatpush3.bf16.msra.mxu0 %v15597_v27  ;;  %v9121_v6 = vpack.c.bf16 %v9116_v62, %v9116_v62  ;;  %v15633_v45 = vld [vmem:[%s20005_s5 + $0x1278] sm:$0xff]   ;;  %v9579_v15 = vld [vmem:[#allocation4 + $0x78] sm:$0x30] }
 0x656   :  { %v14119_v16 = vpop.f32.mrb[103].mxu0  ;;  %14876 = vmatprep.subr.bf16.mxu0 %v20033_v35  ;;  %v15634_v31 = vld [vmem:[%s20005_s5 + $0x11b8] sm:$0xff]  }
 0x657   :  { %14346 = vmatpush3.bf16.msra.mxu1 %v15599_v41  ;;  %v9212_v3 = vrot.slane %v9121_v6, 1  ;;  %v9581_v41 = vld [vmem:[#allocation4 + $0x88] sm:$0x30]  ;;  %v15640_v6 = vld [vmem:[%s20005_s5 + $0x1288] sm:$0xff]  }
 0x658   :  { %14347 = vmatprep.subr.bf16.mxu1 %v15601_v57  ;;  %v9584_v57 = vpack.c.bf16 %v9579_v15, %v9579_v15  ;;  %v9586_v16 = vpack.c.bf16 %v9581_v41, %v9581_v41  ;;  %v15666_v15 = vld [vmem:[%s20005_s5 + $0x1390] sm:$0xff]  }
 0x659   :  { %14877 = vmatpush3.bf16.msra.mxu0 %v15600_v55  ;;  %v10047_v55 = vld [vmem:[#allocation4 + $0x80] sm:$0xc0]  ;;  %v15667_v41 = vld [vmem:[%s20005_s5 + $0x1350] sm:$0xff]  }
 0x65a   :  { %14878 = vmatprep.subr.bf16.mxu0 %v20033_v35 }
 0x65b   :  { %14348 = vmatpush3.bf16.msra.mxu1 %v15602_v5  ;;  %v10052_v5 = vpack.c.bf16 %v10047_v55, %v10047_v55  ;;  %v15670_v55 = vld [vmem:[%s20005_s5 + $0x1358] sm:$0xff]  }
 0x65c   :  { %14364 = vmatprep.subr.bf16.mxu1 %v15604_v48  ;;  %v9677_v48 = vrot.slane %v9586_v16, 2  ;;  %v15673_v16 = vld [vmem:[%s20005_s5 + $0x1360] sm:$0xff]  }
 0x65d   :  { %14879 = vmatpush3.bf16.msra.mxu0 %v15603_v40  ;;  %v9675_v40 = vrot.slane %v9584_v57, 2  ;;  %v10143_v13 = vrot.slane %v10052_v5, 3  ;;  %v15672_v57 = vld [vmem:[%s20005_s5 + $0x13a0] sm:$0xff]   ;;  %v15675_v5 = vld [vmem:[%s20005_s5 + $0x13a8] sm:$0xff]  }
 0x65e   :  { %14386 = vmatprep.subr.bf16.mxu0 %v15605_v60  ;;  %9531 = vmatmul.mubr.bf16.vlgmr.msra.gmra.mrb[116].mxu1 %v9210_v9  ;;  %v15641_v60 = vld [vmem:[%s20005_s5 + $0x12c8] sm:$0xff]   ;;  %v15645_v9 = vld [vmem:[%s20005_s5 + $0x1318] sm:$0xff]  }
 0x65f   :  { %14365 = vmatpush3.bf16.msra.mxu1 %v15606_v52  ;;  %9957 = vmatprep.mubr.bf16.mxu1 %v9676_v37  ;;  %v15643_v52 = vld [vmem:[%s20005_s5 + $0x1290] sm:$0xff]   ;;  %v15649_v37 = vld [vmem:[%s20005_s5 + $0x12a0] sm:$0xff]  }
 0x660   :  { %14881 = vmatmul.mubr.bf16.vlgmr.msra.gmra.mrb[128].mxu0 %v9212_v3  ;;  %14366 = vmatprep.subr.bf16.mxu1 %v15608_v51  ;;  %v15647_v3 = vld [vmem:[%s20005_s5 + $0x12d8] sm:$0xff]   ;;  %v15648_v51 = vld [vmem:[%s20005_s5 + $0x1320] sm:$0xff]  }
 0x661   :  { %14387 = vmatpush3.bf16.msra.mxu0 %v15607_v2  ;;  %9997 = vmatprep.mubr.bf16.mxu0 %v9678_v61  ;;  %v15646_v2 = vld [vmem:[%s20005_s5 + $0x1298] sm:$0xff]   ;;  %v15651_v61 = vld [vmem:[%s20005_s5 + $0x1328] sm:$0xff]  }
 0x662   :  { %14388 = vmatprep.subr.bf16.mxu0 %v15609_v22  ;;  %v15650_v22 = vld [vmem:[%s20005_s5 + $0x12e0] sm:$0xff]  }
 0x663   :  { %14367 = vmatpush3.bf16.msra.mxu1 %v15610_v26  ;;  %v15652_v26 = vld [vmem:[%s20005_s5 + $0x12a8] sm:$0xff]  }
 0x664   :  { %14368 = vmatprep.subr.bf16.mxu1 %v15612_v47 }
 0x665   :  { %14389 = vmatpush3.bf16.msra.mxu0 %v15611_v44  ;;  %v15653_v44 = vld [vmem:[%s20005_s5 + $0x12e8] sm:$0xff]  }
 0x666   :  { %14390 = vmatprep.subr.bf16.mxu0 %v15613_v8  ;;  %v15654_v8 = vld [vmem:[%s20005_s5 + $0x1330] sm:$0xff]  }
 0x667   :  { %14369 = vmatpush3.bf16.msra.mxu1 %v15614_v18 }
 0x668   :  { %14370 = vmatprep.subr.bf16.mxu1 %v15616_v36 }
 0x669   :  { %14391 = vmatpush3.bf16.msra.mxu0 %v15615_v12 }
 0x66a   :  { %14392 = vmatprep.subr.bf16.mxu0 %v15617_v58 }
 0x66b   :  { %14371 = vmatpush3.bf16.msra.mxu1 %v15618_v14 }
 0x66c   :  { %14372 = vmatprep.subr.bf16.mxu1 %v15620_v54 }
 0x66d   :  { %14393 = vmatpush3.bf16.msra.mxu0 %v15619_v1  ;;  %v15655_v1 = vld [vmem:[%s20005_s5 + $0x12b0] sm:$0xff]  }
 0x66e   :  { %14394 = vmatprep.subr.bf16.mxu0 %v15621_v53 }
 0x66f   :  { %14373 = vmatpush3.bf16.msra.mxu1 %v15622_v17 }
 0x670   :  { %14374 = vmatprep.subr.bf16.mxu1 %v15624_v34 }
 0x671   :  { %14395 = vmatpush3.bf16.msra.mxu0 %v15623_v32  ;;  %v14137_v25 = vpop.f32.mrb[92].mxu1  ;;  %v15656_v32 = vld [vmem:[%s20005_s5 + $0x12f0] sm:$0xff]  }
 0x672   :  { %14396 = vmatprep.subr.bf16.mxu0 %v15625_v0  ;;  %v14138_v19 = vpop.f32.mrb[93].mxu1  ;;  %v15657_v0 = vld [vmem:[%s20005_s5 + $0x1338] sm:$0xff]  }
 0x673   :  { %v7719_v23 = vpop.f32.mrb[104].mxu0  ;;  %v14139_v49 = vadd.f32 %v14138_v19, %v14137_v25  ;;  %v14140_v10 = vpop.f32.mrb[94].mxu1  ;;  %14375 = vmatpush3.bf16.msra.mxu1 %v15626_v63  ;;  %v9583_v63 = vld [vmem:[#allocation4 + $0x98] sm:$0x30]  ;;  %v15658_v25 = vld [vmem:[%s20005_s5 + $0x12b8] sm:$0xff]  }
 0x674   :  { %v14802_v20 = vpop.f32.mrb[105].mxu0  ;;  %v14141_v11 = vpop.f32.mrb[95].mxu1  ;;  %14376 = vmatprep.subr.bf16.mxu1 %v15628_v28  ;;  %v9588_v19 = vpack.c.bf16 %v9583_v63, %v9583_v63  ;;  %v15690_v63 = vld [vmem:[%s20005_s5 + $0x1408] sm:$0xff]  }
 0x675   :  { %v7722_v27 = vpop.f32.mrb[106].mxu0  ;;  %14397 = vmatpush3.bf16.msra.mxu0 %v15627_v39  ;;  %v7680_v24 = vadd.f32 %v14139_v49, %v19435_v56  ;;  %v15635_v56 = vld [vmem:[%s20005_s5 + $0x1238] sm:$0xff]   ;;  %v10046_v39 = vld [vmem:[#allocation4 + $0x78] sm:$0xc0] }
 0x676   :  { %v14803_v43 = vpop.f32.mrb[107].mxu0  ;;  %14398 = vmatprep.subr.bf16.mxu0 %v15629_v29  ;;  %v10049_v29 = vld [vmem:[#allocation4 + $0x90] sm:$0xc0]  ;;  %v15660_v49 = vld [vmem:[%s20005_s5 + $0x1380] sm:$0xff]   ;;  %v10051_v20 = vpack.c.bf16 %v10046_v39, %v10046_v39  ;;  %v9679_v27 = vrot.slane %v9588_v19, 2  ;;  %v15691_v39 = vld [vmem:[%s20005_s5 + $0x1488] sm:$0xff]  }
 0x677   :  { %v7720_v4 = vadd.f32 %v7719_v23, %v7680_v24  ;;  %14377 = vmatpush3.bf16.msra.mxu1 %v15630_v38  ;;  %v15659_v23 = vld [vmem:[%s20005_s5 + $0x12f8] sm:$0xff]   ;;  %v10054_v10 = vpack.c.bf16 %v10049_v29, %v10049_v29  ;;  %v15661_v38 = vld [vmem:[%s20005_s5 + $0x1340] sm:$0xff]   ;;  %v15664_v43 = vld [vmem:[%s20005_s5 + $0x1348] sm:$0xff]  }
 0x678   :  { %14378 = vmatprep.subr.bf16.mxu1 %v15632_v21  ;;  %v15662_v11 = vld [vmem:[%s20005_s5 + $0x13c0] sm:$0xff]   ;;  %v15663_v21 = vld [vmem:[%s20005_s5 + $0x1388] sm:$0xff]   ;;  %v15694_v29 = vld [vmem:[%s20005_s5 + $0x1410] sm:$0xff]  }
 0x679   :  { %14399 = vmatpush3.bf16.msra.mxu0 %v15631_v30  ;;  %v19552_v62 = vadd.f32 %v7720_v4, %v19433_v59  ;;  %v15639_v59 = vld [vmem:[%s20005_s5 + $0x1308] sm:$0xff]   ;;  %v10142_v30 = vrot.slane %v10051_v20, 3  ;;  %v10145_v24 = vrot.slane %v10054_v10, 3  ;;  %v15668_v4 = vld [vmem:[%s20005_s5 + $0x13d0] sm:$0xff]   ;;  %v15696_v19 = vld [vmem:[%s20005_s5 + $0x1458] sm:$0xff]  }
 0x67a   :  { %14400 = vmatprep.subr.bf16.mxu0 %v15633_v45  ;;  %v15665_v45 = vld [vmem:[%s20005_s5 + $0x13c8] sm:$0xff]   ;;  %v15698_v20 = vld [vmem:[%s20005_s5 + $0x1418] sm:$0xff]  }
 0x67b   :  { %14379 = vmatpush3.bf16.msra.mxu1 %v15634_v31  ;;  %v15669_v31 = vld [vmem:[%s20005_s5 + $0x1398] sm:$0xff]  }
 0x67c   :  { %14884 = vmatprep.subr.bf16.mxu1 %v20033_v35  ;;  %v15699_v10 = vld [vmem:[%s20005_s5 + $0x1498] sm:$0xff]  }
 0x67d   :  { %14401 = vmatpush3.bf16.msra.mxu0 %v15635_v56  ;;  %v15671_v56 = vld [vmem:[%s20005_s5 + $0x13d8] sm:$0xff]  }
 0x67e   :  { %14417 = vmatprep.subr.bf16.mxu0 %v15636_v42  ;;  %9958 = vmatmul.mubr.bf16.vlgmr.msra.gmra.mrb[120].mxu1 %v9675_v40  ;;  %v15674_v42 = vld [vmem:[%s20005_s5 + $0x13e0] sm:$0xff]   ;;  %v15677_v40 = vld [vmem:[%s20005_s5 + $0x13e8] sm:$0xff]  }
 0x67f   :  { %14885 = vmatpush3.bf16.msra.mxu1 %v15637_v7  ;;  %14900 = vmatprep.mubr.msk.bf16.mxu1 %vm15829_vm0, %v20033_v35  ;;  %v15676_v7 = vld [vmem:[%s20005_s5 + $0x1368] sm:$0xff]  }
 0x680   :  { %9998 = vmatmul.mubr.bf16.vlgmr.msra.gmra.mrb[132].mxu0 %v9677_v48  ;;  %14886 = vmatprep.subr.bf16.mxu1 %v20033_v35 }
 0x681   :  { %14418 = vmatpush3.bf16.msra.mxu0 %v15638_v46  ;;  %10424 = vmatprep.mubr.bf16.mxu0 %v10143_v13  ;;  %v15678_v46 = vld [vmem:[%s20005_s5 + $0x13b0] sm:$0xff]  }
 0x682   :  { %14419 = vmatprep.subr.bf16.mxu0 %v15639_v59 }
 0x683   :  { %14887 = vmatpush3.bf16.msra.mxu1 %v15640_v6 }
 0x684   :  { %14888 = vmatprep.subr.bf16.mxu1 %v20033_v35 }
 0x685   :  { %14420 = vmatpush3.bf16.msra.mxu0 %v15641_v60 }
 0x686   :  { %14421 = vmatprep.subr.bf16.mxu0 %v15642_v50 }
 0x687   :  { %14889 = vmatpush3.bf16.msra.mxu1 %v15643_v52  ;;  %v15679_v52 = vld [vmem:[%s20005_s5 + $0x1370] sm:$0xff]  }
 0x688   :  { %14890 = vmatprep.subr.bf16.mxu1 %v20033_v35 }
 0x689   :  { %14422 = vmatpush3.bf16.msra.mxu0 %v15644_v33 }
 0x68a   :  { %14423 = vmatprep.subr.bf16.mxu0 %v15645_v9 }
 0x68b   :  { %14891 = vmatpush3.bf16.msra.mxu1 %v15646_v2 }
 0x68c   :  { %14892 = vmatprep.subr.bf16.mxu1 %v20033_v35 }
 0x68d   :  { %14424 = vmatpush3.bf16.msra.mxu0 %v15647_v3 }
 0x68e   :  { %14425 = vmatprep.subr.bf16.mxu0 %v15648_v51  ;;  %v15680_v51 = vld [vmem:[%s20005_s5 + $0x13f0] sm:$0xff]  }
 0x68f   :  { %14893 = vmatpush3.bf16.msra.mxu1 %v15649_v37  ;;  %v15681_v37 = vld [vmem:[%s20005_s5 + $0x13b8] sm:$0xff]  }
 0x690   :  { %14894 = vmatprep.subr.bf16.mxu1 %v20033_v35 }
 0x691   :  { %14426 = vmatpush3.bf16.msra.mxu0 %v15650_v22  ;;  %v14168_v47 = vpop.f32.mrb[96].mxu1 }
 0x692   :  { %14427 = vmatprep.subr.bf16.mxu0 %v15651_v61  ;;  %v14169_v12 = vpop.f32.mrb[97].mxu1  ;;  %v10048_v61 = vld [vmem:[#allocation4 + $0x88] sm:$0xc0] }
 0x693   :  { %v14190_v18 = vpop.f32.mrb[108].mxu0  ;;  %v14170_v36 = vadd.f32 %v14169_v12, %v14168_v47  ;;  %v14171_v14 = vpop.f32.mrb[98].mxu1  ;;  %14895 = vmatpush3.bf16.msra.mxu1 %v15652_v26  ;;  %v15682_v26 = vld [vmem:[%s20005_s5 + $0x1378] sm:$0xff]   ;;  %v10053_v47 = vpack.c.bf16 %v10048_v61, %v10048_v61  ;;  %v15685_v12 = vld [vmem:[%s20005_s5 + $0x14c0] sm:$0xff]  }
 0x694   :  { %v14191_v58 = vpop.f32.mrb[109].mxu0  ;;  %v14172_v17 = vpop.f32.mrb[99].mxu1  ;;  %14896 = vmatprep.subr.bf16.mxu1 %v20033_v35 }
 0x695   :  { %v14192_v54 = vadd.f32 %v14191_v58, %v14190_v18  ;;  %v14193_v53 = vpop.f32.mrb[110].mxu0  ;;  %14428 = vmatpush3.bf16.msra.mxu0 %v15653_v44  ;;  %v15683_v44 = vld [vmem:[%s20005_s5 + $0x13f8] sm:$0xff]   ;;  %v10514_v58 = vld [vmem:[#allocation4 + $0xa8] sm:$0x3]  ;;  %v10144_v14 = vrot.slane %v10053_v47, 3  ;;  %v15688_v17 = vld [vmem:[%s20005_s5 + $0x1448] sm:$0xff]  }
 0x696   :  { %v14194_v34 = vpop.f32.mrb[111].mxu0  ;;  %14429 = vmatprep.subr.bf16.mxu0 %v15654_v8  ;;  %v15684_v8 = vld [vmem:[%s20005_s5 + $0x1440] sm:$0xff]   ;;  %v15720_v47 = vld [vmem:[%s20005_s5 + $0x1508] sm:$0xff]  }
 0x697   :  { %v8147_v28 = vadd.f32 %v14192_v54, %v14170_v36  ;;  %14897 = vmatpush3.bf16.msra.mxu1 %v15655_v1  ;;  %v15686_v36 = vld [vmem:[%s20005_s5 + $0x1400] sm:$0xff]   ;;  %v15689_v34 = vld [vmem:[%s20005_s5 + $0x14c8] sm:$0xff]  }
 0x698   :  { %14898 = vmatprep.subr.bf16.mxu1 %v20033_v35  ;;  %v15687_v1 = vld [vmem:[%s20005_s5 + $0x1480] sm:$0xff]  }
 0x699   :  { %14430 = vmatpush3.bf16.msra.mxu0 %v15656_v32  ;;  %v10516_v54 = vld [vmem:[#allocation4 + $0xb8] sm:$0x3]  ;;  %v10519_v32 = vpack.c.bf16 %v10514_v58, %v10514_v58  ;;  %v15725_v58 = vld [vmem:[%s20005_s5 + $0x1598] sm:$0xff]  }
 0x69a   :  { %14431 = vmatprep.subr.bf16.mxu0 %v15657_v0  ;;  %v10521_v0 = vpack.c.bf16 %v10516_v54, %v10516_v54  ;;  %v15728_v54 = vld [vmem:[%s20005_s5 + $0x15a0] sm:$0xff]  }
 0x69b   :  { %14899 = vmatpush3.bf16.msra.mxu1 %v15658_v25  ;;  %v15693_v25 = vld [vmem:[%s20005_s5 + $0x14d0] sm:$0xff]  }
 0x69c   :  { %14439 = vmatprep.subr.bf16.mxu1 %v15660_v49  ;;  %v15697_v49 = vld [vmem:[%s20005_s5 + $0x14d8] sm:$0xff]  }
 0x69d   :  { %14432 = vmatpush3.bf16.msra.mxu0 %v15659_v23  ;;  %v15695_v23 = vld [vmem:[%s20005_s5 + $0x1490] sm:$0xff]  }
 0x69e   :  { %14904 = vmatprep.subr.bf16.mxu0 %v20033_v35  ;;  %14901 = vmatmul.mubr.bf16.vlgmr.msra.gmra.mrb[124].mxu1 %v9679_v27  ;;  %v15701_v27 = vld [vmem:[%s20005_s5 + $0x14e0] sm:$0xff]  }
 0x69f   :  { %14440 = vmatpush3.bf16.msra.mxu1 %v15661_v38  ;;  %10464 = vmatprep.mubr.bf16.mxu1 %v10145_v24  ;;  %v15700_v38 = vld [vmem:[%s20005_s5 + $0x1460] sm:$0xff]   ;;  %v15705_v24 = vld [vmem:[%s20005_s5 + $0x14e8] sm:$0xff]  }
 0x6a0   :  { %10425 = vmatmul.mubr.bf16.vlgmr.msra.gmra.mrb[136].mxu0 %v10142_v30  ;;  %14441 = vmatprep.subr.bf16.mxu1 %v15663_v21  ;;  %v15703_v30 = vld [vmem:[%s20005_s5 + $0x14a0] sm:$0xff]   ;;  %v15704_v21 = vld [vmem:[%s20005_s5 + $0x1468] sm:$0xff]  }
 0x6a1   :  { %14905 = vmatpush3.bf16.msra.mxu0 %v15662_v11  ;;  %14920 = vmatprep.mubr.msk.bf16.mxu0 %vm15829_vm0, %v20033_v35  ;;  %v15702_v11 = vld [vmem:[%s20005_s5 + $0x1420] sm:$0xff]  }
 0x6a2   :  { %14906 = vmatprep.subr.bf16.mxu0 %v20033_v35 }
 0x6a3   :  { %14442 = vmatpush3.bf16.msra.mxu1 %v15664_v43  ;;  %v15706_v43 = vld [vmem:[%s20005_s5 + $0x1428] sm:$0xff]  }
 0x6a4   :  { %14443 = vmatprep.subr.bf16.mxu1 %v15666_v15  ;;  %v15708_v15 = vld [vmem:[%s20005_s5 + $0x1470] sm:$0xff]  }
 0x6a5   :  { %14907 = vmatpush3.bf16.msra.mxu0 %v15665_v45  ;;  %v15707_v45 = vld [vmem:[%s20005_s5 + $0x14a8] sm:$0xff]  }
 0x6a6   :  { %14908 = vmatprep.subr.bf16.mxu0 %v20033_v35 }
 0x6a7   :  { %14444 = vmatpush3.bf16.msra.mxu1 %v15667_v41 }
 0x6a8   :  { %14445 = vmatprep.subr.bf16.mxu1 %v15669_v31 }
 0x6a9   :  { %14909 = vmatpush3.bf16.msra.mxu0 %v15668_v4  ;;  %v15709_v4 = vld [vmem:[%s20005_s5 + $0x14f0] sm:$0xff]  }
 0x6aa   :  { %14910 = vmatprep.subr.bf16.mxu0 %v20033_v35 }
 0x6ab   :  { %14446 = vmatpush3.bf16.msra.mxu1 %v15670_v55 }
 0x6ac   :  { %14447 = vmatprep.subr.bf16.mxu1 %v15672_v57 }
 0x6ad   :  { %14911 = vmatpush3.bf16.msra.mxu0 %v15671_v56 }
 0x6ae   :  { %14912 = vmatprep.subr.bf16.mxu0 %v20033_v35 }
 0x6af   :  { %14448 = vmatpush3.bf16.msra.mxu1 %v15673_v16 }
 0x6b0   :  { %14449 = vmatprep.subr.bf16.mxu1 %v15675_v5 }
 0x6b1   :  { %14913 = vmatpush3.bf16.msra.mxu0 %v15674_v42  ;;  %v8186_v48 = vpop.f32.mrb[100].mxu1  ;;  %v15710_v42 = vld [vmem:[%s20005_s5 + $0x1430] sm:$0xff]  }
 0x6b2   :  { %14914 = vmatprep.subr.bf16.mxu0 %v20033_v35  ;;  %v8187_v59 = vadd.f32 %v8186_v48, %v8147_v28  ;;  %v14822_v6 = vpop.f32.mrb[101].mxu1  ;;  %v15692_v28 = vld [vmem:[%s20005_s5 + $0x1450] sm:$0xff]  }
 0x6b3   :  { %v14221_v13 = vpop.f32.mrb[112].mxu0  ;;  %v8189_v50 = vpop.f32.mrb[102].mxu1  ;;  %14450 = vmatpush3.bf16.msra.mxu1 %v15676_v7 }
 0x6b4   :  { %v14222_v60 = vpop.f32.mrb[113].mxu0  ;;  %v19702_v33 = vadd.f32 %v8187_v59, %v19552_v62  ;;  %v14823_v3 = vpop.f32.mrb[103].mxu1  ;;  %14451 = vmatprep.subr.bf16.mxu1 %v15678_v46  ;;  %v10050_v62 = vld [vmem:[#allocation4 + $0x98] sm:$0xc0]  ;;  %v15712_v46 = vld [vmem:[%s20005_s5 + $0x1478] sm:$0xff]  }
 0x6b5   :  { %v19704_v9 = vadd.f32 %v14222_v60, %v14221_v13  ;;  %v14224_v2 = vpop.f32.mrb[114].mxu0  ;;  %14915 = vmatpush3.bf16.msra.mxu0 %v15677_v40  ;;  %v10055_v18 = vpack.c.bf16 %v10050_v62, %v10050_v62  ;;  %v15711_v40 = vld [vmem:[%s20005_s5 + $0x14b0] sm:$0xff]   ;;  %v15713_v13 = vld [vmem:[%s20005_s5 + $0x14f8] sm:$0xff]   ;;  %v15718_v62 = vld [vmem:[%s20005_s5 + $0x1540] sm:$0xff]  }
 0x6b6   :  { %v14225_v22 = vpop.f32.mrb[115].mxu0  ;;  %14916 = vmatprep.subr.bf16.mxu0 %v20033_v35  ;;  %v15714_v60 = vld [vmem:[%s20005_s5 + $0x1438] sm:$0xff]   ;;  %v10966_v50 = vld [vmem:[#allocation4 + $0xa8] sm:$0xc]  ;;  %v15716_v2 = vld [vmem:[%s20005_s5 + $0x1580] sm:$0xff]  }
 0x6b7   :  { %14452 = vmatpush3.bf16.msra.mxu1 %v15679_v52  ;;  %v10146_v53 = vrot.slane %v10055_v18, 3  ;;  %v15715_v52 = vld [vmem:[%s20005_s5 + $0x14b8] sm:$0xff]   ;;  %v15717_v22 = vld [vmem:[%s20005_s5 + $0x1500] sm:$0xff]   ;;  %v15722_v18 = vld [vmem:[%s20005_s5 + $0x1590] sm:$0xff]  }
 0x6b8   :  { %14453 = vmatprep.subr.bf16.mxu1 %v15681_v37  ;;  %v10971_v37 = vpack.c.bf16 %v10966_v50, %v10966_v50  ;;  %v15751_v50 = vld [vmem:[%s20005_s5 + $0x1658] sm:$0xff]  }
 0x6b9   :  { %14917 = vmatpush3.bf16.msra.mxu0 %v15680_v51  ;;  %v10515_v51 = vld [vmem:[#allocation4 + $0xb0] sm:$0x3] }
 0x6ba   :  { %14918 = vmatprep.subr.bf16.mxu0 %v20033_v35 }
 0x6bb   :  { %14454 = vmatpush3.bf16.msra.mxu1 %v15682_v26  ;;  %v10520_v26 = vpack.c.bf16 %v10515_v51, %v10515_v51  ;;  %v15755_v51 = vld [vmem:[%s20005_s5 + $0x1628] sm:$0xff]  }
 0x6bc   :  { %14470 = vmatprep.subr.bf16.mxu1 %v15684_v8  ;;  %v15721_v8 = vld [vmem:[%s20005_s5 + $0x1548] sm:$0xff]  }
 0x6bd   :  { %14919 = vmatpush3.bf16.msra.mxu0 %v15683_v44  ;;  %v11062_v44 = vrot.slane %v10971_v37, 1  ;;  %v15756_v37 = vld [vmem:[%s20005_s5 + $0x15e8] sm:$0xff]  }
 0x6be   :  { %14492 = vmatprep.subr.bf16.mxu0 %v15685_v12  ;;  %10465 = vmatmul.mubr.bf16.vlgmr.msra.gmra.mrb[128].mxu1 %v10144_v14  ;;  %v15723_v12 = vld [vmem:[%s20005_s5 + $0x1510] sm:$0xff]   ;;  %v15726_v14 = vld [vmem:[%s20005_s5 + $0x1518] sm:$0xff]  }
 0x6bf   :  { %14471 = vmatpush3.bf16.msra.mxu1 %v15686_v36  ;;  %10876 = vmatprep.mubr.bf16.mxu1 %v10519_v32  ;;  %v15724_v36 = vld [vmem:[%s20005_s5 + $0x1550] sm:$0xff]   ;;  %v15731_v32 = vld [vmem:[%s20005_s5 + $0x15a8] sm:$0xff]  }
 0x6c0   :  { %14921 = vmatmul.mubr.bf16.vlgmr.msra.gmra.mrb[140].mxu0 %v10146_v53  ;;  %14472 = vmatprep.subr.bf16.mxu1 %v15688_v17  ;;  %v15729_v53 = vld [vmem:[%s20005_s5 + $0x1520] sm:$0xff]  }
 0x6c1   :  { %14493 = vmatpush3.bf16.msra.mxu0 %v15687_v1  ;;  %10916 = vmatprep.mubr.bf16.mxu0 %v10521_v0  ;;  %v15727_v1 = vld [vmem:[%s20005_s5 + $0x1558] sm:$0xff]   ;;  %v15730_v17 = vld [vmem:[%s20005_s5 + $0x1560] sm:$0xff]   ;;  %v15733_v0 = vld [vmem:[%s20005_s5 + $0x1568] sm:$0xff]  }
 0x6c2   :  { %14494 = vmatprep.subr.bf16.mxu0 %v15689_v34  ;;  %v15732_v34 = vld [vmem:[%s20005_s5 + $0x1528] sm:$0xff]  }
 0x6c3   :  { %14473 = vmatpush3.bf16.msra.mxu1 %v15690_v63 }
 0x6c4   :  { %14474 = vmatprep.subr.bf16.mxu1 %v15692_v28 }
 0x6c5   :  { %14495 = vmatpush3.bf16.msra.mxu0 %v15691_v39  ;;  %v15734_v39 = vld [vmem:[%s20005_s5 + $0x15b0] sm:$0xff]  }
 0x6c6   :  { %14496 = vmatprep.subr.bf16.mxu0 %v15693_v25 }
 0x6c7   :  { %14475 = vmatpush3.bf16.msra.mxu1 %v15694_v29 }
 0x6c8   :  { %14476 = vmatprep.subr.bf16.mxu1 %v15696_v19 }
 0x6c9   :  { %14497 = vmatpush3.bf16.msra.mxu0 %v15695_v23 }
 0x6ca   :  { %14498 = vmatprep.subr.bf16.mxu0 %v15697_v49  ;;  %v15735_v49 = vld [vmem:[%s20005_s5 + $0x1530] sm:$0xff]  }
 0x6cb   :  { %14477 = vmatpush3.bf16.msra.mxu1 %v15698_v20 }
 0x6cc   :  { %14478 = vmatprep.subr.bf16.mxu1 %v15700_v38 }
 0x6cd   :  { %14499 = vmatpush3.bf16.msra.mxu0 %v15699_v10 }
 0x6ce   :  { %14500 = vmatprep.subr.bf16.mxu0 %v15701_v27  ;;  %v15736_v27 = vld [vmem:[%s20005_s5 + $0x1570] sm:$0xff]  }
 0x6cf   :  { %14479 = vmatpush3.bf16.msra.mxu1 %v15702_v11 }
 0x6d0   :  { %14480 = vmatprep.subr.bf16.mxu1 %v15704_v21  ;;  %v10965_v21 = vld [vmem:[#allocation4 + $0xa0] sm:$0xc] }
 0x6d1   :  { %14501 = vmatpush3.bf16.msra.mxu0 %v15703_v30  ;;  %v14243_v41 = vpop.f32.mrb[104].mxu1  ;;  %v15737_v30 = vld [vmem:[%s20005_s5 + $0x15b8] sm:$0xff]  }
 0x6d2   :  { %14502 = vmatprep.subr.bf16.mxu0 %v15705_v24  ;;  %v14244_v55 = vpop.f32.mrb[105].mxu1 }
 0x6d3   :  { %v8653_v31 = vpop.f32.mrb[116].mxu0  ;;  %v14245_v56 = vadd.f32 %v14244_v55, %v14243_v41  ;;  %v14246_v16 = vpop.f32.mrb[106].mxu1  ;;  %14481 = vmatpush3.bf16.msra.mxu1 %v15706_v43  ;;  %v15738_v43 = vld [vmem:[%s20005_s5 + $0x1538] sm:$0xff]   ;;  %v15740_v41 = vld [vmem:[%s20005_s5 + $0x1600] sm:$0xff]  }
 0x6d4   :  { %v14842_v57 = vpop.f32.mrb[117].mxu0  ;;  %v14247_v7 = vpop.f32.mrb[107].mxu1  ;;  %14482 = vmatprep.subr.bf16.mxu1 %v15708_v15  ;;  %v15739_v15 = vld [vmem:[%s20005_s5 + $0x1578] sm:$0xff]   ;;  %v15742_v16 = vld [vmem:[%s20005_s5 + $0x1640] sm:$0xff]  }
 0x6d5   :  { %v8656_v5 = vpop.f32.mrb[118].mxu0  ;;  %14503 = vmatpush3.bf16.msra.mxu0 %v15707_v45  ;;  %v8614_v48 = vadd.f32 %v14245_v56, %v19704_v9  ;;  %v10513_v9 = vld [vmem:[#allocation4 + $0xa0] sm:$0x3]  ;;  %v10968_v45 = vld [vmem:[#allocation4 + $0xb8] sm:$0xc] }
 0x6d6   :  { %v14843_v59 = vpop.f32.mrb[119].mxu0  ;;  %14504 = vmatprep.subr.bf16.mxu0 %v15709_v4  ;;  %v10518_v61 = vpack.c.bf16 %v10513_v9, %v10513_v9  ;;  %v10517_v4 = vld [vmem:[#allocation4 + $0xc0] sm:$0x3]  ;;  %v10973_v55 = vpack.c.bf16 %v10968_v45, %v10968_v45  ;;  %v15741_v56 = vld [vmem:[%s20005_s5 + $0x15c0] sm:$0xff]  }
 0x6d7   :  { %v8654_v6 = vadd.f32 %v8653_v31, %v8614_v48  ;;  %14483 = vmatpush3.bf16.msra.mxu1 %v15710_v42  ;;  %v10970_v31 = vpack.c.bf16 %v10965_v21, %v10965_v21  ;;  %v10522_v57 = vpack.c.bf16 %v10517_v4, %v10517_v4  ;;  %v15743_v5 = vld [vmem:[%s20005_s5 + $0x1608] sm:$0xff]   ;;  %v15746_v48 = vld [vmem:[%s20005_s5 + $0x1610] sm:$0xff]   ;;  %v15753_v9 = vld [vmem:[%s20005_s5 + $0x15e0] sm:$0xff]  }
 0x6d8   :  { %14484 = vmatprep.subr.bf16.mxu1 %v15712_v46  ;;  %v11064_v7 = vrot.slane %v10973_v55, 1  ;;  %v15745_v46 = vld [vmem:[%s20005_s5 + $0x1648] sm:$0xff]   ;;  %v15747_v59 = vld [vmem:[%s20005_s5 + $0x15d0] sm:$0xff]  }
 0x6d9   :  { %14505 = vmatpush3.bf16.msra.mxu0 %v15711_v40  ;;  %v19821_v3 = vadd.f32 %v8654_v6, %v19702_v33  ;;  %v15719_v33 = vld [vmem:[%s20005_s5 + $0x1588] sm:$0xff]   ;;  %v11061_v42 = vrot.slane %v10970_v31, 1  ;;  %v15749_v6 = vld [vmem:[%s20005_s5 + $0x1618] sm:$0xff]  }
 0x6da   :  { %14506 = vmatprep.subr.bf16.mxu0 %v15713_v13  ;;  %v15744_v40 = vld [vmem:[%s20005_s5 + $0x15c8] sm:$0xff]   ;;  %v15748_v13 = vld [vmem:[%s20005_s5 + $0x1650] sm:$0xff]  }
 0x6db   :  { %14485 = vmatpush3.bf16.msra.mxu1 %v15714_v60  ;;  %v15750_v60 = vld [vmem:[%s20005_s5 + $0x15d8] sm:$0xff]  }
 0x6dc   :  { %14924 = vmatprep.subr.bf16.mxu1 %v20033_v35 }
 0x6dd   :  { %14507 = vmatpush3.bf16.msra.mxu0 %v15715_v52  ;;  %v15752_v52 = vld [vmem:[%s20005_s5 + $0x1620] sm:$0xff]  }
 0x6de   :  { %14523 = vmatprep.subr.bf16.mxu0 %v15716_v2  ;;  %10877 = vmatmul.mubr.bf16.vlgmr.msra.gmra.mrb[132].mxu1 %v10518_v61  ;;  %v15754_v2 = vld [vmem:[%s20005_s5 + $0x1660] sm:$0xff]   ;;  %v15758_v61 = vld [vmem:[%s20005_s5 + $0x1630] sm:$0xff]  }
 0x6df   :  { %14925 = vmatpush3.bf16.msra.mxu1 %v15717_v22  ;;  %14940 = vmatprep.mubr.msk.bf16.mxu1 %vm15829_vm0, %v20033_v35  ;;  %v15757_v22 = vld [vmem:[%s20005_s5 + $0x1668] sm:$0xff]  }
 0x6e0   :  { %10917 = vmatmul.mubr.bf16.vlgmr.msra.gmra.mrb[144].mxu0 %v10520_v26  ;;  %14926 = vmatprep.subr.bf16.mxu1 %v20033_v35 }
 0x6e1   :  { %14524 = vmatpush3.bf16.msra.mxu0 %v15718_v62  ;;  %11343 = vmatprep.mubr.bf16.mxu0 %v11062_v44 }
 0x6e2   :  { %14525 = vmatprep.subr.bf16.mxu0 %v15719_v33 }
 0x6e3   :  { %14927 = vmatpush3.bf16.msra.mxu1 %v15720_v47 }
 0x6e4   :  { %14928 = vmatprep.subr.bf16.mxu1 %v20033_v35 }
 0x6e5   :  { %14526 = vmatpush3.bf16.msra.mxu0 %v15721_v8 }
 0x6e6   :  { %14527 = vmatprep.subr.bf16.mxu0 %v15722_v18  ;;  %v15759_v18 = vld [vmem:[%s20005_s5 + $0x15f0] sm:$0xff]  }
 0x6e7   :  { %14929 = vmatpush3.bf16.msra.mxu1 %v15723_v12 }
 0x6e8   :  { %14930 = vmatprep.subr.bf16.mxu1 %v20033_v35 }
 0x6e9   :  { %14528 = vmatpush3.bf16.msra.mxu0 %v15724_v36 }
 0x6ea   :  { %14529 = vmatprep.subr.bf16.mxu0 %v15725_v58 }
 0x6eb   :  { %14931 = vmatpush3.bf16.msra.mxu1 %v15726_v14 }
 0x6ec   :  { %14932 = vmatprep.subr.bf16.mxu1 %v20033_v35 }
 0x6ed   :  { %14530 = vmatpush3.bf16.msra.mxu0 %v15727_v1  ;;  %v15760_v1 = vld [vmem:[%s20005_s5 + $0x1670] sm:$0xff]  }
 0x6ee   :  { %14531 = vmatprep.subr.bf16.mxu0 %v15728_v54  ;;  %v15761_v54 = vld [vmem:[%s20005_s5 + $0x1638] sm:$0xff]  }
 0x6ef   :  { %14933 = vmatpush3.bf16.msra.mxu1 %v15729_v53 }
 0x6f0   :  { %14934 = vmatprep.subr.bf16.mxu1 %v20033_v35 }
 0x6f1   :  { %14532 = vmatpush3.bf16.msra.mxu0 %v15730_v17  ;;  %v14274_v63 = vpop.f32.mrb[108].mxu1  ;;  %v10967_v17 = vld [vmem:[#allocation4 + $0xb0] sm:$0xc] }
 0x6f2   :  { %14533 = vmatprep.subr.bf16.mxu0 %v15731_v32  ;;  %v14275_v25 = vpop.f32.mrb[109].mxu1  ;;  %v10969_v32 = vld [vmem:[#allocation4 + $0xc0] sm:$0xc] }
 0x6f3   :  { %v14296_v28 = vpop.f32.mrb[120].mxu0  ;;  %v14276_v29 = vadd.f32 %v14275_v25, %v14274_v63  ;;  %v14277_v19 = vpop.f32.mrb[110].mxu1  ;;  %14935 = vmatpush3.bf16.msra.mxu1 %v15732_v34  ;;  %v15763_v34 = vld [vmem:[%s20005_s5 + $0x1678] sm:$0xff]   ;;  %v10974_v63 = vpack.c.bf16 %v10969_v32, %v10969_v32 }
 0x6f4   :  { %v14297_v23 = vpop.f32.mrb[121].mxu0  ;;  %v14278_v38 = vpop.f32.mrb[111].mxu1  ;;  %14936 = vmatprep.subr.bf16.mxu1 %v20033_v35 }
 0x6f5   :  { %v14298_v20 = vadd.f32 %v14297_v23, %v14296_v28  ;;  %v14299_v10 = vpop.f32.mrb[122].mxu0  ;;  %14534 = vmatpush3.bf16.msra.mxu0 %v15733_v0  ;;  %v10972_v0 = vpack.c.bf16 %v10967_v17, %v10967_v17  ;;  %v11065_v28 = vrot.slane %v10974_v63, 1 }
 0x6f6   :  { %v14300_v11 = vpop.f32.mrb[123].mxu0  ;;  %14535 = vmatprep.subr.bf16.mxu0 %v15734_v39 }
 0x6f7   :  { %v9066_v24 = vadd.f32 %v14298_v20, %v14276_v29  ;;  %14937 = vmatpush3.bf16.msra.mxu1 %v15735_v49  ;;  %v11063_v39 = vrot.slane %v10972_v0, 1 }
 0x6f8   :  { %14938 = vmatprep.subr.bf16.mxu1 %v20033_v35 }
 0x6f9   :  { %14536 = vmatpush3.bf16.msra.mxu0 %v15736_v27 }
 0x6fa   :  { %14537 = vmatprep.subr.bf16.mxu0 %v15737_v30 }
 0x6fb   :  { %14939 = vmatpush3.bf16.msra.mxu1 %v15738_v43 }
 0x6fc   :  { %14545 = vmatprep.subr.bf16.mxu1 %v15740_v41 }
 0x6fd   :  { %14538 = vmatpush3.bf16.msra.mxu0 %v15739_v15 }
 0x6fe   :  { %14944 = vmatprep.subr.bf16.mxu0 %v20033_v35  ;;  %14941 = vmatmul.mubr.bf16.vlgmr.msra.gmra.mrb[136].mxu1 %v10522_v57 }
 0x6ff   :  { %14546 = vmatpush3.bf16.msra.mxu1 %v15741_v56  ;;  %11383 = vmatprep.mubr.bf16.mxu1 %v11064_v7 }
 0x700   :  { %11344 = vmatmul.mubr.bf16.vlgmr.msra.gmra.mrb[148].mxu0 %v11061_v42  ;;  %14547 = vmatprep.subr.bf16.mxu1 %v15743_v5 }
 0x701   :  { %14945 = vmatpush3.bf16.msra.mxu0 %v15742_v16  ;;  %14960 = vmatprep.mubr.msk.bf16.mxu0 %vm15829_vm0, %v20033_v35 }
 0x702   :  { %14946 = vmatprep.subr.bf16.mxu0 %v20033_v35 }
 0x703   :  { %14548 = vmatpush3.bf16.msra.mxu1 %v15744_v40 }
 0x704   :  { %14549 = vmatprep.subr.bf16.mxu1 %v15746_v48 }
 0x705   :  { %14947 = vmatpush3.bf16.msra.mxu0 %v15745_v46 }
 0x706   :  { %14948 = vmatprep.subr.bf16.mxu0 %v20033_v35 }
 0x707   :  { %14550 = vmatpush3.bf16.msra.mxu1 %v15747_v59 }
 0x708   :  { %14551 = vmatprep.subr.bf16.mxu1 %v15749_v6 }
 0x709   :  { %14949 = vmatpush3.bf16.msra.mxu0 %v15748_v13 }
 0x70a   :  { %14950 = vmatprep.subr.bf16.mxu0 %v20033_v35 }
 0x70b   :  { %14552 = vmatpush3.bf16.msra.mxu1 %v15750_v60 }
 0x70c   :  { %14553 = vmatprep.subr.bf16.mxu1 %v15752_v52 }
 0x70d   :  { %14951 = vmatpush3.bf16.msra.mxu0 %v15751_v50 }
 0x70e   :  { %14952 = vmatprep.subr.bf16.mxu0 %v20033_v35 }
 0x70f   :  { %14554 = vmatpush3.bf16.msra.mxu1 %v15753_v9 }
 0x710   :  { %14555 = vmatprep.subr.bf16.mxu1 %v15755_v51 }
 0x711   :  { %14953 = vmatpush3.bf16.msra.mxu0 %v15754_v2  ;;  %v9105_v62 = vpop.f32.mrb[112].mxu1 }
 0x712   :  { %14954 = vmatprep.subr.bf16.mxu0 %v20033_v35  ;;  %v9106_v26 = vadd.f32 %v9105_v62, %v9066_v24  ;;  %v14862_v44 = vpop.f32.mrb[113].mxu1 }
 0x713   :  { %v14327_v33 = vpop.f32.mrb[124].mxu0  ;;  %v9108_v8 = vpop.f32.mrb[114].mxu1  ;;  %14556 = vmatpush3.bf16.msra.mxu1 %v15756_v37 }
 0x714   :  { %v14328_v47 = vpop.f32.mrb[125].mxu0  ;;  %v9111_v12 = vadd.f32 %v9106_v26, %v19821_v3  ;;  %v14863_v14 = vpop.f32.mrb[115].mxu1  ;;  %14557 = vmatprep.subr.bf16.mxu1 %v15758_v61  ;;  %v15762_v3 = vld [vmem:[%s20005_s5 + $0x15f8] sm:$0xff]  }
 0x715   :  { %v14329_v36 = vadd.f32 %v14328_v47, %v14327_v33  ;;  %v14330_v58 = vpop.f32.mrb[126].mxu0  ;;  %14955 = vmatpush3.bf16.msra.mxu0 %v15757_v22 }
 0x716   :  { %v14331_v53 = vpop.f32.mrb[127].mxu0  ;;  %14956 = vmatprep.subr.bf16.mxu0 %v20033_v35 }
 0x717   :  { %14558 = vmatpush3.bf16.msra.mxu1 %v15759_v18 }
 0x718   :  { %14559 = vmatprep.subr.bf16.mxu1 %v15761_v54 }
 0x719   :  { %14957 = vmatpush3.bf16.msra.mxu0 %v15760_v1 }
 0x71a   :  { %14958 = vmatprep.subr.bf16.mxu0 %v20033_v35 }
 0x71b   :  { %14560 = vmatpush3.bf16.msra.mxu1 %v15762_v3 }
 0x71d   :  { %14959 = vmatpush3.bf16.msra.mxu0 %v15763_v34 }
 0x71e   :  { %11384 = vmatmul.mubr.bf16.vlgmr.msra.gmra.mrb[140].mxu1 %v11063_v39 }
 0x720   :  { %14961 = vmatmul.mubr.bf16.vlgmr.msra.gmra.mrb[152].mxu0 %v11065_v28 }
 0x731   :  { %v14349_v25 = vpop.f32.mrb[116].mxu1 }
 0x732   :  { %v14350_v23 = vpop.f32.mrb[117].mxu1 }
 0x733   :  { %v9572_v29 = vpop.f32.mrb[128].mxu0  ;;  %v14351_v19 = vadd.f32 %v14350_v23, %v14349_v25  ;;  %v14352_v20 = vpop.f32.mrb[118].mxu1 }
 0x734   :  { %v14882_v49 = vpop.f32.mrb[129].mxu0  ;;  %v14353_v38 = vpop.f32.mrb[119].mxu1 }
 0x735   :  { %v9575_v10 = vpop.f32.mrb[130].mxu0  ;;  %v9533_v27 = vadd.f32 %v14351_v19, %v14329_v36 }
 0x736   :  { %v14883_v11 = vpop.f32.mrb[131].mxu0 }
 0x737   :  { %v9573_v30 = vadd.f32 %v9572_v29, %v9533_v27 }
 0x739   :  { %v9578_v21 = vadd.f32 %v9573_v30, %v9111_v12 }
 0x751   :  { %v14380_v35 = vpop.f32.mrb[120].mxu1 }
 0x752   :  { %v14381_v43 = vpop.f32.mrb[121].mxu1 }
 0x753   :  { %v14402_v24 = vpop.f32.mrb[132].mxu0  ;;  %v14382_v45 = vadd.f32 %v14381_v43, %v14380_v35  ;;  %v14383_v41 = vpop.f32.mrb[122].mxu1 }
 0x754   :  { %v14403_v15 = vpop.f32.mrb[133].mxu0  ;;  %v14384_v55 = vpop.f32.mrb[123].mxu1 }
 0x755   :  { %v14404_v4 = vadd.f32 %v14403_v15, %v14402_v24  ;;  %v14405_v31 = vpop.f32.mrb[134].mxu0 }
 0x756   :  { %v14406_v56 = vpop.f32.mrb[135].mxu0 }
 0x757   :  { %v10000_v57 = vadd.f32 %v14404_v4, %v14382_v45  ;;  %v13610_v45 = vld [vmem:[%s20006_s6] ss:$0 sm:$0xff]  ;;  %s15803_s6 = scalar_lea.vmem %s11460_s15, 32 }
 0x758   :  { %p15804_p0 = scmp.ne.s32.totalorder %s11460_s15, %s15803_s6  ;;  %p15809_p2 = scmp.lt.s32.totalorder %s15803_s6, %s15803_s6 }
 0x75a   :  { %p15810_p3 = por %p15809_p2, %p15808_p1 }
 0x75c   :  { %p15811_p4 = pnand %p15810_p3, %p15804_p0 }
 0x771   :  { %v10039_v16 = vpop.f32.mrb[124].mxu1 }
 0x772   :  { %v10040_v42 = vadd.f32 %v10039_v16, %v10000_v57  ;;  %v14902_v7 = vpop.f32.mrb[125].mxu1 }
 0x773   :  { %v14433_v5 = vpop.f32.mrb[136].mxu0  ;;  %v10042_v46 = vpop.f32.mrb[126].mxu1 }
 0x774   :  { %v14434_v40 = vpop.f32.mrb[137].mxu0  ;;  %v10045_v48 = vadd.f32 %v10040_v42, %v9578_v21  ;;  %v14903_v6 = vpop.f32.mrb[127].mxu1 }
 0x775   :  { %v14435_v59 = vadd.f32 %v14434_v40, %v14433_v5  ;;  %v14436_v13 = vpop.f32.mrb[138].mxu0 }
 0x776   :  { %v14437_v60 = vpop.f32.mrb[139].mxu0 }
 0x791   :  { %v14455_v50 = vpop.f32.mrb[128].mxu1 }
 0x792   :  { %v14456_v9 = vpop.f32.mrb[129].mxu1 }
 0x793   :  { %v10506_v52 = vpop.f32.mrb[140].mxu0  ;;  %v14457_v2 = vadd.f32 %v14456_v9, %v14455_v50  ;;  %v14458_v37 = vpop.f32.mrb[130].mxu1 }
 0x794   :  { %v14922_v51 = vpop.f32.mrb[141].mxu0  ;;  %v14459_v61 = vpop.f32.mrb[131].mxu1 }
 0x795   :  { %v10509_v22 = vpop.f32.mrb[142].mxu0  ;;  %v10467_v62 = vadd.f32 %v14457_v2, %v14435_v59 }
 0x796   :  { %v14923_v26 = vpop.f32.mrb[143].mxu0 }
 0x797   :  { %v10507_v33 = vadd.f32 %v10506_v52, %v10467_v62 }
 0x799   :  { %v10512_v44 = vadd.f32 %v10507_v33, %v10045_v48 }
 0x7b1   :  { %v14486_v47 = vpop.f32.mrb[132].mxu1 }
 0x7b2   :  { %v14487_v18 = vpop.f32.mrb[133].mxu1 }
 0x7b3   :  { %v14508_v8 = vpop.f32.mrb[144].mxu0  ;;  %v14488_v12 = vadd.f32 %v14487_v18, %v14486_v47  ;;  %v14489_v58 = vpop.f32.mrb[134].mxu1 }
 0x7b4   :  { %v14509_v36 = vpop.f32.mrb[145].mxu0  ;;  %v14490_v54 = vpop.f32.mrb[135].mxu1 }
 0x7b5   :  { %v14510_v14 = vadd.f32 %v14509_v36, %v14508_v8  ;;  %v14511_v1 = vpop.f32.mrb[146].mxu0 }
 0x7b6   :  { %v14512_v53 = vpop.f32.mrb[147].mxu0 }
 0x7b7   :  { %v10919_v17 = vadd.f32 %v14510_v14, %v14488_v12 }
 0x7d1   :  { %v10958_v32 = vpop.f32.mrb[136].mxu1 }
 0x7d2   :  { %v10959_v3 = vadd.f32 %v10958_v32, %v10919_v17  ;;  %v14942_v0 = vpop.f32.mrb[137].mxu1 }
 0x7d3   :  { %v14539_v34 = vpop.f32.mrb[148].mxu0  ;;  %v10961_v39 = vpop.f32.mrb[138].mxu1 }
 0x7d4   :  { %v14540_v63 = vpop.f32.mrb[149].mxu0  ;;  %v10964_v28 = vadd.f32 %v10959_v3, %v10512_v44  ;;  %v14943_v23 = vpop.f32.mrb[139].mxu1 }
 0x7d5   :  { %v14541_v25 = vadd.f32 %v14540_v63, %v14539_v34  ;;  %v14542_v29 = vpop.f32.mrb[150].mxu0 }
 0x7d6   :  { %v14543_v19 = vpop.f32.mrb[151].mxu0 }
 0x7f1   :  { %v14561_v49 = vpop.f32.mrb[140].mxu1 }
 0x7f2   :  { %v14562_v10 = vpop.f32.mrb[141].mxu1 }
 0x7f3   :  { %v11425_v20 = vpop.f32.mrb[152].mxu0  ;;  %v14563_v38 = vadd.f32 %v14562_v10, %v14561_v49  ;;  %v14564_v11 = vpop.f32.mrb[142].mxu1 }
 0x7f4   :  { %v14962_v27 = vpop.f32.mrb[153].mxu0  ;;  %v14565_v21 = vpop.f32.mrb[143].mxu1 }
 0x7f5   :  { %v11428_v30 = vpop.f32.mrb[154].mxu0  ;;  %v11386_v35 = vadd.f32 %v14563_v38, %v14541_v25 }
 0x7f6   :  { %v14963_v24 = vpop.f32.mrb[155].mxu0 }
 0x7f7   :  { %v11426_v43 = vadd.f32 %v11425_v20, %v11386_v35 }
 0x7f9   :  { %v11431_v15 = vadd.f32 %v11426_v43, %v10964_v28 }
 0x7fb   :  { %v11439_v41 = vadd.f32 %v13610_v45, %v11431_v15 }
 0x7fd   :  { %v11441_v4 = vsel %vm11440_vm13, %v11439_v41, -inf }
 0x7fe   :  { %11442 = vmax.xlane.f32.xlu0 %v11441_v4 }
 0x88b   :  { %v11443_v31 = vpop.xlane.xlu0 %11442 }
 0x88c   :  { %v11444_v55 = vsub.f32 %v11439_v41, %v11443_v31 }
 0x88e   :  { %v11445_v56 = vmul.f32 1.442695, %v11444_v55 }
 0x890   :  { %15764 = vpow2.f32 %v11445_v56 }
 0x89a   :  { %v15765_v57 = vpop.eup %15764 }
 0x89b   :  { %v11447_v16 = vsel %vm11440_vm13, %v15765_v57, 0.0 }
 0x89c   :  { %11448 = vadd.xlane.f32.xlu1 %v11447_v16 }
 0x929   :  { %v11449_v42 = vpop.xlane.xlu1 %11448 }
 0x92a   :  { %15766 = vrcp.f32 %v11449_v42 }
 0x934   :  { %v15767_v5 = vpop.eup %15766 }
 0x935   :  { %v11451_v7 = vmul.f32 %v15767_v5, %v15765_v57 }
 0x937   :  { %11452 = vst [vmem:[#allocation5] sm:$0x3] %v11451_v7 }
 0x938   :  { %15814 = shalt.err (!%p15811_p4)
}
 0x939   :  { %s15815_s18 = scalar_lea.hbm %s20007_s7, 32 }
 0x93a   :  { %p15816_p5 = scmp.ne.s32.totalorder %s20007_s7, %s15815_s18  ;;  %p15819_p6 = scmp.lt.u32.totalorder %s15815_s18, %s20007_s7 }
 0x93c   :  { %p15821_p7 = pnand %p15819_p6, %p15816_p5 }
 0x93e   :  { %15824 = shalt.err (!%p15821_p7)
}
 0x93f   :  { %11462 = dma.vmem_to_hbm [thread:$0]  %s11460_s15, 32, %s20007_s7, [#allocation6]  }
 0x940   :  { %15825 = dma.done.wait [#allocation6], 32  }
 0x941   :  { %15826 = vsyncadd [#allocation6], 4294967264 }
 0x942   :  { %11466 = vsyncpa [#allocation6], 1 }

</bundles_post_ra>
